<compile_context>
chip_gen: v7x
topology: tpu7x:2x2x1
jax: 0.10.0
libtpu: 0.0.40
codegen_flags: <defaults>
</compile_context>

<pallas_src>
import math

import numpy as np
import jax
import jax.numpy as jnp
from jax import lax
from jax.experimental import pallas as pl
from jax.experimental.pallas import tpu as pltpu


IMG = 16                                  # input spatial size
ENC_IO = [(3, 16), (16, 8), (8, 4)]       # Conv2d          (Cin, Cout)
DEC_IO = [(4, 8), (8, 16), (16, 3)]       # ConvTranspose2d (Cin, Cout)
BLOCK_BATCH = 8                           # images per grid step (on the lane axis)


# --------------------------- static shape helpers ---------------------------

def _buf_rows(h, w):
    """Rows of a flat zero-padded (pad=1) buffer holding an HxW image."""
    return (h + 2) * (w + 2)


def _span(h, w):
    """Slab length covering all HxW pixels laid out at row pitch (w+2)."""
    return (h - 1) * (w + 2) + w


# ----------------------- constant placement matrices -----------------------
# 0/1 matrices built once in the wrapper (numpy).  A single MXU matmul with
# such a matrix does the stride-2 selection *and* the scatter into the
# consumer's flat padded buffer, so the kernel never needs strided stores.
# They are independent of the batch tile (batch lives on the lane axis).

def _pool_place_matrix(h, w):
    """(span_next, Mp): 2x2/2 max-pool selection + placement into next buffer."""
    wp = w + 2
    mp = (h - 2) * wp + w - 1
    h2, w2 = h // 2, w // 2
    wp2 = w2 + 2
    sel = np.zeros((_span(h2, w2), mp), np.float32)
    for i in range(h2):
        for j in range(w2):
            sel[i * wp2 + j, (2 * i) * wp + 2 * j] = 1.0
    return sel


def _deconv_place_matrix(h, w, dst_wp, dst_span):
    """(dst_span, 4*md): phase-concatenated polyphase->interleaved placement."""
    wp = w + 2
    md = _span(h, w)
    sel = np.zeros((4, dst_span, md), np.float32)
    for p, (dy, dx) in enumerate(((0, 0), (0, 1), (1, 0), (1, 1))):
        for m in range(h):
            for n in range(w):
                sel[p, (2 * m + dy) * dst_wp + (2 * n + dx), m * wp + n] = 1.0
    return np.concatenate([sel[p] for p in range(4)], axis=1)


# ------------------------------ kernel helpers ------------------------------

def _conv3x3_relu(src_ref, w_ref, b_ref, h, w):
    """'Same'-padded 3x3 correlation + bias + ReLU over a flat padded buffer.

    src_ref: ((h+2)*(w+2), B*Cin) flat, zero borders.  Returns an (M, B*Cout)
    value where output pixel (y, x) lives at row y*(w+2)+x (other rows are
    harmless junk, never selected downstream).  Single 'acc += dot' chain so
    v7x can accumulate in the MRB.
    """
    wp = w + 2
    m = _span(h, w)
    acc = None
    for k in range(9):
        off = (k // 3) * wp + (k % 3)
        d = jnp.dot(src_ref[off:off + m, :], w_ref[k],
                    preferred_element_type=jnp.float32)
        acc = d if acc is None else acc + d
    return jnp.maximum(acc + b_ref[...], 0.0)


def _pool2x2_place(conv_ref, sel_ref, dst_ref, h, w):
    """Fused MaxPool2d(2,2) + scatter into the next layer's padded buffer."""
    wp = w + 2
    mp = (h - 2) * wp + w - 1
    mx = jnp.maximum(jnp.maximum(conv_ref[0:mp, :], conv_ref[1:1 + mp, :]),
                     jnp.maximum(conv_ref[wp:wp + mp, :],
                                 conv_ref[wp + 1:wp + 1 + mp, :]))
    placed = jnp.dot(sel_ref[...], mx, preferred_element_type=jnp.float32)
    dst_start = (w // 2 + 2) + 1          # interior (0,0) of the next buffer
    dst_ref[dst_start:dst_start + placed.shape[0], :] = placed


# (slab_idx, tap ky*3+kx) per output phase, derived from oy = 2*iy - 1 + ky
_PHASE_TERMS = (((0, 4),),                           # out(2m  , 2n  )
                ((0, 5), (1, 3)),                    # out(2m  , 2n+1)
                ((0, 7), (2, 1)),                    # out(2m+1, 2n  )
                ((0, 8), (1, 6), (2, 2), (3, 0)))    # out(2m+1, 2n+1)


def _deconvT_phases(src_ref, w_ref, b_ref, h, w):
    """ConvTranspose2d(3x3, stride 2, pad 1, output_pad 1): pre-activation
    polyphase outputs, phase-major concatenated -> (4*md, B*Cout)."""
    wp = w + 2
    md = _span(h, w)
    s00 = wp + 1
    # slabs: x[m,n], x[m,n+1], x[m+1,n], x[m+1,n+1] (zero pads handle edges)
    slabs = [src_ref[s00 + o:s00 + o + md, :] for o in (0, 1, wp, wp + 1)]
    zs = []
    for terms in _PHASE_TERMS:
        y = None
        for si, ti in terms:
            d = jnp.dot(slabs[si], w_ref[ti], preferred_element_type=jnp.float32)
            y = d if y is None else y + d
        zs.append(y + b_ref[...])
    return jnp.concatenate(zs, axis=0)


def _zero_borders(buf_ref, h, w):
    """Zero only the rows of a flat padded buffer that the placement store
    never overwrites (the interior span is fully rewritten every step)."""
    wp = w + 2
    start = wp + 1
    span = _span(h, w)
    rows = _buf_rows(h, w)
    lanes = buf_ref.shape[1]
    buf_ref[0:start, :] = jnp.zeros((start, lanes), jnp.float32)
    buf_ref[start + span:rows, :] = jnp.zeros((rows - start - span, lanes),
                                              jnp.float32)


def _stable_sigmoid(x):
    """Numerically stable sigmoid: EUP exp + approx reciprocal (+2 Newton)."""
    e = jnp.exp(-jnp.abs(x))              # in (0, 1]
    den = 1.0 + e                         # in (1, 2] -> reciprocal is safe
    r = pl.reciprocal(den, approx=True)
    r = r * (2.0 - den * r)
    r = r * (2.0 - den * r)
    return jnp.where(x >= 0.0, r, 1.0 - r)


# ------------------------------- fused kernel -------------------------------

def _autoencoder_kernel(x_ref,
                        ew1, eb1, ep1, ew2, eb2, ep2, ew3, eb3, ep3,
                        dw1, db1, ds1, dw2, db2, ds2, dw3, db3, ds3t,
                        o_ref,
                        b1, b2, b3, b4, b5, s1, s2, s3):
    # Border rows of the padded activation buffers must read as zero; the
    # interior spans are fully rewritten below, so only the borders need
    # (re-)initialisation.  Doing it every step is cheap and megacore-safe.
    _zero_borders(b1, 8, 8)
    _zero_borders(b2, 4, 4)
    _zero_borders(b3, 2, 2)
    _zero_borders(b4, 4, 4)
    _zero_borders(b5, 8, 8)

    # ------------- encoder: 3 x [conv3x3 + ReLU + fused maxpool2x2] -------------
    # x_ref is already the flat zero-padded (18*18, B*3) input block.
    s1[...] = _conv3x3_relu(x_ref, ew1, eb1, 16, 16)
    _pool2x2_place(s1, ep1, b1, 16, 16)
    s2[...] = _conv3x3_relu(b1, ew2, eb2, 8, 8)
    _pool2x2_place(s2, ep2, b2, 8, 8)
    s3[...] = _conv3x3_relu(b2, ew3, eb3, 4, 4)
    _pool2x2_place(s3, ep3, b3, 4, 4)

    # ---------- decoder: polyphase ConvTranspose2d, one placement dot each ----------
    z1 = _deconvT_phases(b3, dw1, db1, 2, 2)                      # (24,  B*8)
    y1 = jnp.maximum(jnp.dot(ds1[...], z1,
                             preferred_element_type=jnp.float32), 0.0)
    b4[7:7 + y1.shape[0], :] = y1                                 # rows [7, 29)

    z2 = _deconvT_phases(b4, dw2, db2, 4, 4)                      # (88,  B*16)
    y2 = jnp.maximum(jnp.dot(ds2[...], z2,
                             preferred_element_type=jnp.float32), 0.0)
    b5[11:11 + y2.shape[0], :] = y2                               # rows [11, 89)

    z3 = _deconvT_phases(b5, dw3, db3, 8, 8)                      # (312, B*3)
    # lane-dense final output: one small transpose, then (B*3, 312)@(312, 256)
    lin = jnp.dot(z3.T, ds3t[...], preferred_element_type=jnp.float32)
    o_ref[...] = _stable_sigmoid(lin)                             # (B*3, 256)


# --------------------------------- wrapper ----------------------------------

def _blockdiag_taps(w_taps, bt):
    """(9, Cin, Cout) -> (9, bt*Cin, bt*Cout) block-diagonal (batch on lanes)."""
    k, cin, cout = w_taps.shape
    eye = jnp.eye(bt, dtype=w_taps.dtype)
    return jnp.einsum('ab,kcd->kacbd', eye, w_taps).reshape(k, bt * cin, bt * cout)


def autoencoder_forward(params, x_nchw, block_batch=BLOCK_BATCH):
    n = x_nchw.shape[0]
    bt = max(1, min(block_batch, n))
    n_pad = -(-n // bt) * bt
    g = n_pad // bt                          # grid length (>=2 for batch >= 16)
    pad_rows = (IMG + 2) * (IMG + 2)

    # NCHW -> flat zero-padded rows (pitch 18), bt images folded onto lanes
    x = jnp.transpose(x_nchw, (0, 2, 3, 1)).astype(jnp.float32)    # (n,16,16,3)
    x = jnp.pad(x, ((0, n_pad - n), (1, 1), (1, 1), (0, 0)))       # (n_pad,18,18,3)
    x = x.reshape(g, bt, pad_rows, 3)
    x = jnp.transpose(x, (0, 2, 1, 3)).reshape(g, pad_rows, bt * 3)

    # constant 0/1 placement matrices (numpy at trace time, batch-independent)
    ep = [jnp.asarray(_pool_place_matrix(16, 16)),
          jnp.asarray(_pool_place_matrix(8, 8)),
          jnp.asarray(_pool_place_matrix(4, 4))]
    dsel = [jnp.asarray(_deconv_place_matrix(2, 2, dst_wp=6, dst_span=_span(4, 4))),
            jnp.asarray(_deconv_place_matrix(4, 4, dst_wp=10, dst_span=_span(8, 8))),
            # final layer: transposed so the kernel can emit a lane-dense output
            jnp.asarray(_deconv_place_matrix(8, 8, dst_wp=IMG, dst_span=IMG * IMG).T)]

    inputs = [x]
    for i in range(3):
        w, b = params[f"enc{i + 1}"]
        inputs += [_blockdiag_taps(w, bt), jnp.tile(b, (1, bt)), ep[i]]
    for i in range(3):
        w, b = params[f"dec{i + 1}"]
        inputs += [_blockdiag_taps(w, bt), jnp.tile(b, (1, bt)), dsel[i]]

    def const_spec(a):
        if a.ndim == 2:
            return pl.BlockSpec(a.shape, lambda i: (0, 0))
        return pl.BlockSpec(a.shape, lambda i: (0, 0, 0))

    in_specs = [pl.BlockSpec((None, pad_rows, bt * 3), lambda i: (i, 0, 0))]
    in_specs += [const_spec(a) for a in inputs[1:]]

    scratch_shapes = []
    #   padded activation buffers b1..b5 (pool / deconv destinations)
    for (h, w, c) in [(8, 8, 16), (4, 4, 8), (2, 2, 4), (4, 4, 8), (8, 8, 16)]:
        scratch_shapes.append(pltpu.VMEM((_buf_rows(h, w), bt * c), jnp.float32))
    #   encoder conv outputs s1..s3
    for (h, w, c) in [(16, 16, 16), (8, 8, 8), (4, 4, 4)]:
        scratch_shapes.append(pltpu.VMEM((_span(h, w), bt * c), jnp.float32))

    out = pl.pallas_call(
        _autoencoder_kernel,
        out_shape=jax.ShapeDtypeStruct((g, bt * 3, IMG * IMG), jnp.float32),
        grid_spec=pltpu.PrefetchScalarGridSpec(
            num_scalar_prefetch=0,
            grid=(g,),
            in_specs=in_specs,
            out_specs=pl.BlockSpec((None, bt * 3, IMG * IMG), lambda i: (i, 0, 0)),
            scratch_shapes=scratch_shapes,
        ),
        compiler_params=pltpu.CompilerParams(
            dimension_semantics=("parallel",)),
    )(*inputs)

    # (g, bt*3, 256) is already NCHW-ordered: just reshape and drop batch pad.
    return out.reshape(n_pad, 3, IMG, IMG)[:n]


# -------------------------------- parameters --------------------------------

def init_params(key):
    def uniform(k, shape, bound):
        return jax.random.uniform(k, shape, jnp.float32, -bound, bound)

    params = {}
    keys = jax.random.split(key, 12)
    ki = 0
    for idx, (cin, cout) in enumerate(ENC_IO):
        bound = 1.0 / math.sqrt(cin * 9)
        w_pt = uniform(keys[ki], (cout, cin, 3, 3), bound); ki += 1   # Conv2d layout
        bias = uniform(keys[ki], (cout,), bound); ki += 1
        w_taps = jnp.transpose(w_pt, (2, 3, 1, 0)).reshape(9, cin, cout)
        params[f"enc{idx + 1}"] = (w_taps, bias.reshape(1, cout))
    for idx, (cin, cout) in enumerate(DEC_IO):
        bound = 1.0 / math.sqrt(cout * 9)
        w_pt = uniform(keys[ki], (cin, cout, 3, 3), bound); ki += 1   # ConvTranspose2d layout
        bias = uniform(keys[ki], (cout,), bound); ki += 1
        # UNflipped (ky, kx) taps: the kernel uses the native transposed-conv
        # definition (oy = 2*iy - 1 + ky) via its polyphase decomposition.
        w_taps = jnp.transpose(w_pt, (2, 3, 0, 1)).reshape(9, cin, cout)
        params[f"dec{idx + 1}"] = (w_taps, bias.reshape(1, cout))
    return params


# ------------------------- pure-lax reference model --------------------------

def reference_forward(params, x_nchw):
    dn = ("NHWC", "HWIO", "NHWC")
    x = jnp.transpose(x_nchw, (0, 2, 3, 1)).astype(jnp.float32)
    for name in ("enc1", "enc2", "enc3"):
        w, b = params[name]
        w4 = w.reshape(3, 3, w.shape[1], w.shape[2])
        x = lax.conv_general_dilated(x, w4, (1, 1), ((1, 1), (1, 1)),
                                     dimension_numbers=dn)
        x = jnp.maximum(x + b.reshape(1, 1, 1, -1), 0.0)
        x = lax.reduce_window(x, -jnp.inf, lax.max,
                              (1, 2, 2, 1), (1, 2, 2, 1), "VALID")
    for idx, name in enumerate(("dec1", "dec2", "dec3")):
        w, b = params[name]
        # transposed conv == lhs-dilated correlation with the flipped kernel
        w4 = jnp.flip(w.reshape(3, 3, w.shape[1], w.shape[2]), (0, 1))
        x = lax.conv_general_dilated(x, w4, (1, 1), ((1, 2), (1, 2)),
                                     lhs_dilation=(2, 2), dimension_numbers=dn)
        x = x + b.reshape(1, 1, 1, -1)
        x = 1.0 / (1.0 + jnp.exp(-x)) if idx == 2 else jnp.maximum(x, 0.0)
    return jnp.transpose(x, (0, 3, 1, 2))


# ------------------------------------ main -----------------------------------

if __name__ == "__main__":
    key = jax.random.PRNGKey(0)
    k_params, k_x = jax.random.split(key)
    params = init_params(k_params)
    x = jax.random.uniform(k_x, (2, 3, 16, 16), dtype=jnp.float32)

    fwd = jax.jit(autoencoder_forward)
    y = jax.block_until_ready(fwd(params, x))

    y_ref = reference_forward(params, x)
    assert y.shape == (2, 3, 16, 16), y.shape
    max_err = float(jnp.max(jnp.abs(y - y_ref)))
    assert max_err < 5e-4, f"mismatch vs lax reference: {max_err}"
    print("KERNEL_OK")
</pallas_src>

<mosaic_0001>
module attributes {stable_mosaic.version = 11 : i64} {
  func.func @_autoencoder_kernel(%arg0: i32, %arg1: memref<1x324x6xf32, #tpu.memory_space<vmem>>, %arg2: memref<9x6x32xf32, #tpu.memory_space<vmem>>, %arg3: memref<1x32xf32, #tpu.memory_space<vmem>>, %arg4: memref<78x267xf32, #tpu.memory_space<vmem>>, %arg5: memref<9x32x16xf32, #tpu.memory_space<vmem>>, %arg6: memref<1x16xf32, #tpu.memory_space<vmem>>, %arg7: memref<22x67xf32, #tpu.memory_space<vmem>>, %arg8: memref<9x16x8xf32, #tpu.memory_space<vmem>>, %arg9: memref<1x8xf32, #tpu.memory_space<vmem>>, %arg10: memref<6x15xf32, #tpu.memory_space<vmem>>, %arg11: memref<9x8x16xf32, #tpu.memory_space<vmem>>, %arg12: memref<1x16xf32, #tpu.memory_space<vmem>>, %arg13: memref<22x24xf32, #tpu.memory_space<vmem>>, %arg14: memref<9x16x32xf32, #tpu.memory_space<vmem>>, %arg15: memref<1x32xf32, #tpu.memory_space<vmem>>, %arg16: memref<78x88xf32, #tpu.memory_space<vmem>>, %arg17: memref<9x32x6xf32, #tpu.memory_space<vmem>>, %arg18: memref<1x6xf32, #tpu.memory_space<vmem>>, %arg19: memref<312x256xf32, #tpu.memory_space<vmem>>, %arg20: memref<1x6x256xf32, #tpu.memory_space<vmem>>, %arg21: memref<100x32xf32, #tpu.memory_space<vmem>>, %arg22: memref<36x16xf32, #tpu.memory_space<vmem>>, %arg23: memref<16x8xf32, #tpu.memory_space<vmem>>, %arg24: memref<36x16xf32, #tpu.memory_space<vmem>>, %arg25: memref<100x32xf32, #tpu.memory_space<vmem>>, %arg26: memref<286x32xf32, #tpu.memory_space<vmem>>, %arg27: memref<78x16xf32, #tpu.memory_space<vmem>>, %arg28: memref<22x8xf32, #tpu.memory_space<vmem>>) attributes {dimension_semantics = [#tpu.dimension_semantics<parallel>], iteration_bounds = array<i64: 1>, scalar_prefetch = 0 : i64, scratch_operands = 8 : i64, tpu.core_type = #tpu.core_type<tc>, window_params = [{transform_indices = @transform_0, window_bounds = array<i64: 1, 324, 6>}, {pipeline_mode = #tpu.pipeline_mode<synchronous>, transform_indices = @transform_1, window_bounds = array<i64: 9, 6, 32>}, {pipeline_mode = #tpu.pipeline_mode<synchronous>, transform_indices = @transform_2, window_bounds = array<i64: 1, 32>}, {pipeline_mode = #tpu.pipeline_mode<synchronous>, transform_indices = @transform_3, window_bounds = array<i64: 78, 267>}, {pipeline_mode = #tpu.pipeline_mode<synchronous>, transform_indices = @transform_4, window_bounds = array<i64: 9, 32, 16>}, {pipeline_mode = #tpu.pipeline_mode<synchronous>, transform_indices = @transform_5, window_bounds = array<i64: 1, 16>}, {pipeline_mode = #tpu.pipeline_mode<synchronous>, transform_indices = @transform_6, window_bounds = array<i64: 22, 67>}, {pipeline_mode = #tpu.pipeline_mode<synchronous>, transform_indices = @transform_7, window_bounds = array<i64: 9, 16, 8>}, {pipeline_mode = #tpu.pipeline_mode<synchronous>, transform_indices = @transform_8, window_bounds = array<i64: 1, 8>}, {pipeline_mode = #tpu.pipeline_mode<synchronous>, transform_indices = @transform_9, window_bounds = array<i64: 6, 15>}, {pipeline_mode = #tpu.pipeline_mode<synchronous>, transform_indices = @transform_10, window_bounds = array<i64: 9, 8, 16>}, {pipeline_mode = #tpu.pipeline_mode<synchronous>, transform_indices = @transform_11, window_bounds = array<i64: 1, 16>}, {pipeline_mode = #tpu.pipeline_mode<synchronous>, transform_indices = @transform_12, window_bounds = array<i64: 22, 24>}, {pipeline_mode = #tpu.pipeline_mode<synchronous>, transform_indices = @transform_13, window_bounds = array<i64: 9, 16, 32>}, {pipeline_mode = #tpu.pipeline_mode<synchronous>, transform_indices = @transform_14, window_bounds = array<i64: 1, 32>}, {pipeline_mode = #tpu.pipeline_mode<synchronous>, transform_indices = @transform_15, window_bounds = array<i64: 78, 88>}, {pipeline_mode = #tpu.pipeline_mode<synchronous>, transform_indices = @transform_16, window_bounds = array<i64: 9, 32, 6>}, {pipeline_mode = #tpu.pipeline_mode<synchronous>, transform_indices = @transform_17, window_bounds = array<i64: 1, 6>}, {pipeline_mode = #tpu.pipeline_mode<synchronous>, transform_indices = @transform_18, window_bounds = array<i64: 312, 256>}, {transform_indices = @transform_19, window_bounds = array<i64: 1, 6, 256>}]} {
    %cst = arith.constant 0.000000e+00 : f32
    %0 = vector.broadcast %cst : f32 to vector<11x32xf32>
    %c0 = arith.constant 0 : index
    %c0_0 = arith.constant 0 : index
    %1 = vector.load %arg21[%c0, %c0_0] : memref<100x32xf32, #tpu.memory_space<vmem>>, vector<11x32xf32>
    tpu.vector_store %arg21[%c0, %c0_0], %0 {strides = array<i32>} : memref<100x32xf32, #tpu.memory_space<vmem>>, vector<11x32xf32>,
    %cst_1 = arith.constant 0.000000e+00 : f32
    %2 = vector.broadcast %cst_1 : f32 to vector<11x32xf32>
    %c89 = arith.constant 89 : index
    %c0_2 = arith.constant 0 : index
    %3 = vector.load %arg21[%c89, %c0_2] : memref<100x32xf32, #tpu.memory_space<vmem>>, vector<11x32xf32>
    tpu.vector_store %arg21[%c89, %c0_2], %2 {strides = array<i32>} : memref<100x32xf32, #tpu.memory_space<vmem>>, vector<11x32xf32>,
    %cst_3 = arith.constant 0.000000e+00 : f32
    %4 = vector.broadcast %cst_3 : f32 to vector<7x16xf32>
    %c0_4 = arith.constant 0 : index
    %c0_5 = arith.constant 0 : index
    %5 = vector.load %arg22[%c0_4, %c0_5] : memref<36x16xf32, #tpu.memory_space<vmem>>, vector<7x16xf32>
    tpu.vector_store %arg22[%c0_4, %c0_5], %4 {strides = array<i32>} : memref<36x16xf32, #tpu.memory_space<vmem>>, vector<7x16xf32>,
    %cst_6 = arith.constant 0.000000e+00 : f32
    %6 = vector.broadcast %cst_6 : f32 to vector<7x16xf32>
    %c29 = arith.constant 29 : index
    %c0_7 = arith.constant 0 : index
    %7 = vector.load %arg22[%c29, %c0_7] : memref<36x16xf32, #tpu.memory_space<vmem>>, vector<7x16xf32>
    tpu.vector_store %arg22[%c29, %c0_7], %6 {strides = array<i32>} : memref<36x16xf32, #tpu.memory_space<vmem>>, vector<7x16xf32>,
    %cst_8 = arith.constant 0.000000e+00 : f32
    %8 = vector.broadcast %cst_8 : f32 to vector<5x8xf32>
    %c0_9 = arith.constant 0 : index
    %c0_10 = arith.constant 0 : index
    %9 = vector.load %arg23[%c0_9, %c0_10] : memref<16x8xf32, #tpu.memory_space<vmem>>, vector<5x8xf32>
    tpu.vector_store %arg23[%c0_9, %c0_10], %8 {strides = array<i32>} : memref<16x8xf32, #tpu.memory_space<vmem>>, vector<5x8xf32>,
    %cst_11 = arith.constant 0.000000e+00 : f32
    %10 = vector.broadcast %cst_11 : f32 to vector<5x8xf32>
    %c11 = arith.constant 11 : index
    %c0_12 = arith.constant 0 : index
    %11 = vector.load %arg23[%c11, %c0_12] : memref<16x8xf32, #tpu.memory_space<vmem>>, vector<5x8xf32>
    tpu.vector_store %arg23[%c11, %c0_12], %10 {strides = array<i32>} : memref<16x8xf32, #tpu.memory_space<vmem>>, vector<5x8xf32>,
    %cst_13 = arith.constant 0.000000e+00 : f32
    %12 = vector.broadcast %cst_13 : f32 to vector<7x16xf32>
    %c0_14 = arith.constant 0 : index
    %c0_15 = arith.constant 0 : index
    %13 = vector.load %arg24[%c0_14, %c0_15] : memref<36x16xf32, #tpu.memory_space<vmem>>, vector<7x16xf32>
    tpu.vector_store %arg24[%c0_14, %c0_15], %12 {strides = array<i32>} : memref<36x16xf32, #tpu.memory_space<vmem>>, vector<7x16xf32>,
    %cst_16 = arith.constant 0.000000e+00 : f32
    %14 = vector.broadcast %cst_16 : f32 to vector<7x16xf32>
    %c29_17 = arith.constant 29 : index
    %c0_18 = arith.constant 0 : index
    %15 = vector.load %arg24[%c29_17, %c0_18] : memref<36x16xf32, #tpu.memory_space<vmem>>, vector<7x16xf32>
    tpu.vector_store %arg24[%c29_17, %c0_18], %14 {strides = array<i32>} : memref<36x16xf32, #tpu.memory_space<vmem>>, vector<7x16xf32>,
    %cst_19 = arith.constant 0.000000e+00 : f32
    %16 = vector.broadcast %cst_19 : f32 to vector<11x32xf32>
    %c0_20 = arith.constant 0 : index
    %c0_21 = arith.constant 0 : index
    %17 = vector.load %arg25[%c0_20, %c0_21] : memref<100x32xf32, #tpu.memory_space<vmem>>, vector<11x32xf32>
    tpu.vector_store %arg25[%c0_20, %c0_21], %16 {strides = array<i32>} : memref<100x32xf32, #tpu.memory_space<vmem>>, vector<11x32xf32>,
    %cst_22 = arith.constant 0.000000e+00 : f32
    %18 = vector.broadcast %cst_22 : f32 to vector<11x32xf32>
    %c89_23 = arith.constant 89 : index
    %c0_24 = arith.constant 0 : index
    %19 = vector.load %arg25[%c89_23, %c0_24] : memref<100x32xf32, #tpu.memory_space<vmem>>, vector<11x32xf32>
    tpu.vector_store %arg25[%c89_23, %c0_24], %18 {strides = array<i32>} : memref<100x32xf32, #tpu.memory_space<vmem>>, vector<11x32xf32>,
    %c0_25 = arith.constant 0 : index
    %c0_26 = arith.constant 0 : index
    %c0_27 = arith.constant 0 : index
    %20 = vector.load %arg1[%c0_25, %c0_26, %c0_27] : memref<1x324x6xf32, #tpu.memory_space<vmem>>, vector<1x286x6xf32>
    %21 = vector.shape_cast %20 : vector<1x286x6xf32> to vector<286x6xf32>
    %c0_28 = arith.constant 0 : index
    %c0_29 = arith.constant 0 : index
    %c0_30 = arith.constant 0 : index
    %22 = vector.load %arg2[%c0_28, %c0_29, %c0_30] : memref<9x6x32xf32, #tpu.memory_space<vmem>>, vector<1x6x32xf32>
    %23 = vector.shape_cast %22 : vector<1x6x32xf32> to vector<6x32xf32>
    %cst_31 = arith.constant dense<0.000000e+00> : vector<286x32xf32>
    %24 = tpu.matmul %21, %23, %cst_31 {dimension_numbers = #tpu.dot_dimension_numbers<[1], [0], [0], [1], [0, 0, 1, 1], [], []>} : vector<286x6xf32>, vector<6x32xf32>, vector<286x32xf32> -> vector<286x32xf32>
    %c0_32 = arith.constant 0 : index
    %c1 = arith.constant 1 : index
    %c0_33 = arith.constant 0 : index
    %25 = vector.load %arg1[%c0_32, %c1, %c0_33] : memref<1x324x6xf32, #tpu.memory_space<vmem>>, vector<1x286x6xf32>
    %26 = vector.shape_cast %25 : vector<1x286x6xf32> to vector<286x6xf32>
    %c1_34 = arith.constant 1 : index
    %c0_35 = arith.constant 0 : index
    %c0_36 = arith.constant 0 : index
    %27 = vector.load %arg2[%c1_34, %c0_35, %c0_36] : memref<9x6x32xf32, #tpu.memory_space<vmem>>, vector<1x6x32xf32>
    %28 = vector.shape_cast %27 : vector<1x6x32xf32> to vector<6x32xf32>
    %cst_37 = arith.constant dense<0.000000e+00> : vector<286x32xf32>
    %29 = tpu.matmul %26, %28, %cst_37 {dimension_numbers = #tpu.dot_dimension_numbers<[1], [0], [0], [1], [0, 0, 1, 1], [], []>} : vector<286x6xf32>, vector<6x32xf32>, vector<286x32xf32> -> vector<286x32xf32>
    %30 = arith.addf %24, %29 : vector<286x32xf32>
    %c0_38 = arith.constant 0 : index
    %c2 = arith.constant 2 : index
    %c0_39 = arith.constant 0 : index
    %31 = vector.load %arg1[%c0_38, %c2, %c0_39] : memref<1x324x6xf32, #tpu.memory_space<vmem>>, vector<1x286x6xf32>
    %32 = vector.shape_cast %31 : vector<1x286x6xf32> to vector<286x6xf32>
    %c2_40 = arith.constant 2 : index
    %c0_41 = arith.constant 0 : index
    %c0_42 = arith.constant 0 : index
    %33 = vector.load %arg2[%c2_40, %c0_41, %c0_42] : memref<9x6x32xf32, #tpu.memory_space<vmem>>, vector<1x6x32xf32>
    %34 = vector.shape_cast %33 : vector<1x6x32xf32> to vector<6x32xf32>
    %cst_43 = arith.constant dense<0.000000e+00> : vector<286x32xf32>
    %35 = tpu.matmul %32, %34, %cst_43 {dimension_numbers = #tpu.dot_dimension_numbers<[1], [0], [0], [1], [0, 0, 1, 1], [], []>} : vector<286x6xf32>, vector<6x32xf32>, vector<286x32xf32> -> vector<286x32xf32>
    %36 = arith.addf %30, %35 : vector<286x32xf32>
    %c0_44 = arith.constant 0 : index
    %c18 = arith.constant 18 : index
    %c0_45 = arith.constant 0 : index
    %37 = vector.load %arg1[%c0_44, %c18, %c0_45] : memref<1x324x6xf32, #tpu.memory_space<vmem>>, vector<1x286x6xf32>
    %38 = vector.shape_cast %37 : vector<1x286x6xf32> to vector<286x6xf32>
    %c3 = arith.constant 3 : index
    %c0_46 = arith.constant 0 : index
    %c0_47 = arith.constant 0 : index
    %39 = vector.load %arg2[%c3, %c0_46, %c0_47] : memref<9x6x32xf32, #tpu.memory_space<vmem>>, vector<1x6x32xf32>
    %40 = vector.shape_cast %39 : vector<1x6x32xf32> to vector<6x32xf32>
    %cst_48 = arith.constant dense<0.000000e+00> : vector<286x32xf32>
    %41 = tpu.matmul %38, %40, %cst_48 {dimension_numbers = #tpu.dot_dimension_numbers<[1], [0], [0], [1], [0, 0, 1, 1], [], []>} : vector<286x6xf32>, vector<6x32xf32>, vector<286x32xf32> -> vector<286x32xf32>
    %42 = arith.addf %36, %41 : vector<286x32xf32>
    %c0_49 = arith.constant 0 : index
    %c19 = arith.constant 19 : index
    %c0_50 = arith.constant 0 : index
    %43 = vector.load %arg1[%c0_49, %c19, %c0_50] : memref<1x324x6xf32, #tpu.memory_space<vmem>>, vector<1x286x6xf32>
    %44 = vector.shape_cast %43 : vector<1x286x6xf32> to vector<286x6xf32>
    %c4 = arith.constant 4 : index
    %c0_51 = arith.constant 0 : index
    %c0_52 = arith.constant 0 : index
    %45 = vector.load %arg2[%c4, %c0_51, %c0_52] : memref<9x6x32xf32, #tpu.memory_space<vmem>>, vector<1x6x32xf32>
    %46 = vector.shape_cast %45 : vector<1x6x32xf32> to vector<6x32xf32>
    %cst_53 = arith.constant dense<0.000000e+00> : vector<286x32xf32>
    %47 = tpu.matmul %44, %46, %cst_53 {dimension_numbers = #tpu.dot_dimension_numbers<[1], [0], [0], [1], [0, 0, 1, 1], [], []>} : vector<286x6xf32>, vector<6x32xf32>, vector<286x32xf32> -> vector<286x32xf32>
    %48 = arith.addf %42, %47 : vector<286x32xf32>
    %c0_54 = arith.constant 0 : index
    %c20 = arith.constant 20 : index
    %c0_55 = arith.constant 0 : index
    %49 = vector.load %arg1[%c0_54, %c20, %c0_55] : memref<1x324x6xf32, #tpu.memory_space<vmem>>, vector<1x286x6xf32>
    %50 = vector.shape_cast %49 : vector<1x286x6xf32> to vector<286x6xf32>
    %c5 = arith.constant 5 : index
    %c0_56 = arith.constant 0 : index
    %c0_57 = arith.constant 0 : index
    %51 = vector.load %arg2[%c5, %c0_56, %c0_57] : memref<9x6x32xf32, #tpu.memory_space<vmem>>, vector<1x6x32xf32>
    %52 = vector.shape_cast %51 : vector<1x6x32xf32> to vector<6x32xf32>
    %cst_58 = arith.constant dense<0.000000e+00> : vector<286x32xf32>
    %53 = tpu.matmul %50, %52, %cst_58 {dimension_numbers = #tpu.dot_dimension_numbers<[1], [0], [0], [1], [0, 0, 1, 1], [], []>} : vector<286x6xf32>, vector<6x32xf32>, vector<286x32xf32> -> vector<286x32xf32>
    %54 = arith.addf %48, %53 : vector<286x32xf32>
    %c0_59 = arith.constant 0 : index
    %c36 = arith.constant 36 : index
    %c0_60 = arith.constant 0 : index
    %55 = vector.load %arg1[%c0_59, %c36, %c0_60] : memref<1x324x6xf32, #tpu.memory_space<vmem>>, vector<1x286x6xf32>
    %56 = vector.shape_cast %55 : vector<1x286x6xf32> to vector<286x6xf32>
    %c6 = arith.constant 6 : index
    %c0_61 = arith.constant 0 : index
    %c0_62 = arith.constant 0 : index
    %57 = vector.load %arg2[%c6, %c0_61, %c0_62] : memref<9x6x32xf32, #tpu.memory_space<vmem>>, vector<1x6x32xf32>
    %58 = vector.shape_cast %57 : vector<1x6x32xf32> to vector<6x32xf32>
    %cst_63 = arith.constant dense<0.000000e+00> : vector<286x32xf32>
    %59 = tpu.matmul %56, %58, %cst_63 {dimension_numbers = #tpu.dot_dimension_numbers<[1], [0], [0], [1], [0, 0, 1, 1], [], []>} : vector<286x6xf32>, vector<6x32xf32>, vector<286x32xf32> -> vector<286x32xf32>
    %60 = arith.addf %54, %59 : vector<286x32xf32>
    %c0_64 = arith.constant 0 : index
    %c37 = arith.constant 37 : index
    %c0_65 = arith.constant 0 : index
    %61 = vector.load %arg1[%c0_64, %c37, %c0_65] : memref<1x324x6xf32, #tpu.memory_space<vmem>>, vector<1x286x6xf32>
    %62 = vector.shape_cast %61 : vector<1x286x6xf32> to vector<286x6xf32>
    %c7 = arith.constant 7 : index
    %c0_66 = arith.constant 0 : index
    %c0_67 = arith.constant 0 : index
    %63 = vector.load %arg2[%c7, %c0_66, %c0_67] : memref<9x6x32xf32, #tpu.memory_space<vmem>>, vector<1x6x32xf32>
    %64 = vector.shape_cast %63 : vector<1x6x32xf32> to vector<6x32xf32>
    %cst_68 = arith.constant dense<0.000000e+00> : vector<286x32xf32>
    %65 = tpu.matmul %62, %64, %cst_68 {dimension_numbers = #tpu.dot_dimension_numbers<[1], [0], [0], [1], [0, 0, 1, 1], [], []>} : vector<286x6xf32>, vector<6x32xf32>, vector<286x32xf32> -> vector<286x32xf32>
    %66 = arith.addf %60, %65 : vector<286x32xf32>
    %c0_69 = arith.constant 0 : index
    %c38 = arith.constant 38 : index
    %c0_70 = arith.constant 0 : index
    %67 = vector.load %arg1[%c0_69, %c38, %c0_70] : memref<1x324x6xf32, #tpu.memory_space<vmem>>, vector<1x286x6xf32>
    %68 = vector.shape_cast %67 : vector<1x286x6xf32> to vector<286x6xf32>
    %c8 = arith.constant 8 : index
    %c0_71 = arith.constant 0 : index
    %c0_72 = arith.constant 0 : index
    %69 = vector.load %arg2[%c8, %c0_71, %c0_72] : memref<9x6x32xf32, #tpu.memory_space<vmem>>, vector<1x6x32xf32>
    %70 = vector.shape_cast %69 : vector<1x6x32xf32> to vector<6x32xf32>
    %cst_73 = arith.constant dense<0.000000e+00> : vector<286x32xf32>
    %71 = tpu.matmul %68, %70, %cst_73 {dimension_numbers = #tpu.dot_dimension_numbers<[1], [0], [0], [1], [0, 0, 1, 1], [], []>} : vector<286x6xf32>, vector<6x32xf32>, vector<286x32xf32> -> vector<286x32xf32>
    %72 = arith.addf %66, %71 : vector<286x32xf32>
    %c0_74 = arith.constant 0 : index
    %c0_75 = arith.constant 0 : index
    %73 = vector.load %arg3[%c0_74, %c0_75] : memref<1x32xf32, #tpu.memory_space<vmem>>, vector<1x32xf32>
    %74 = vector.broadcast %73 : vector<1x32xf32> to vector<286x32xf32>
    %75 = arith.addf %72, %74 : vector<286x32xf32>
    %cst_76 = arith.constant 0.000000e+00 : f32
    %76 = vector.broadcast %cst_76 : f32 to vector<286x32xf32>
    %77 = arith.maximumf %75, %76 : vector<286x32xf32>
    %c0_77 = arith.constant 0 : index
    %c0_78 = arith.constant 0 : index
    %78 = vector.load %arg26[%c0_77, %c0_78] : memref<286x32xf32, #tpu.memory_space<vmem>>, vector<286x32xf32>
    tpu.vector_store %arg26[%c0_77, %c0_78], %77 {strides = array<i32>} : memref<286x32xf32, #tpu.memory_space<vmem>>, vector<286x32xf32>,
    %c0_79 = arith.constant 0 : index
    %c0_80 = arith.constant 0 : index
    %79 = vector.load %arg26[%c0_79, %c0_80] : memref<286x32xf32, #tpu.memory_space<vmem>>, vector<267x32xf32>
    %c1_81 = arith.constant 1 : index
    %c0_82 = arith.constant 0 : index
    %80 = vector.load %arg26[%c1_81, %c0_82] : memref<286x32xf32, #tpu.memory_space<vmem>>, vector<267x32xf32>
    %81 = arith.maximumf %79, %80 : vector<267x32xf32>
    %c18_83 = arith.constant 18 : index
    %c0_84 = arith.constant 0 : index
    %82 = vector.load %arg26[%c18_83, %c0_84] : memref<286x32xf32, #tpu.memory_space<vmem>>, vector<267x32xf32>
    %c19_85 = arith.constant 19 : index
    %c0_86 = arith.constant 0 : index
    %83 = vector.load %arg26[%c19_85, %c0_86] : memref<286x32xf32, #tpu.memory_space<vmem>>, vector<267x32xf32>
    %84 = arith.maximumf %82, %83 : vector<267x32xf32>
    %85 = arith.maximumf %81, %84 : vector<267x32xf32>
    %c0_87 = arith.constant 0 : index
    %c0_88 = arith.constant 0 : index
    %86 = vector.load %arg4[%c0_87, %c0_88] : memref<78x267xf32, #tpu.memory_space<vmem>>, vector<78x267xf32>
    %cst_89 = arith.constant dense<0.000000e+00> : vector<78x32xf32>
    %87 = tpu.matmul %86, %85, %cst_89 {dimension_numbers = #tpu.dot_dimension_numbers<[1], [0], [0], [1], [0, 0, 1, 1], [], []>} : vector<78x267xf32>, vector<267x32xf32>, vector<78x32xf32> -> vector<78x32xf32>
    %c11_90 = arith.constant 11 : index
    %c0_91 = arith.constant 0 : index
    %88 = vector.load %arg21[%c11_90, %c0_91] : memref<100x32xf32, #tpu.memory_space<vmem>>, vector<78x32xf32>
    tpu.vector_store %arg21[%c11_90, %c0_91], %87 {strides = array<i32>} : memref<100x32xf32, #tpu.memory_space<vmem>>, vector<78x32xf32>,
    %c0_92 = arith.constant 0 : index
    %c0_93 = arith.constant 0 : index
    %89 = vector.load %arg21[%c0_92, %c0_93] : memref<100x32xf32, #tpu.memory_space<vmem>>, vector<78x32xf32>
    %c0_94 = arith.constant 0 : index
    %c0_95 = arith.constant 0 : index
    %c0_96 = arith.constant 0 : index
    %90 = vector.load %arg5[%c0_94, %c0_95, %c0_96] : memref<9x32x16xf32, #tpu.memory_space<vmem>>, vector<1x32x16xf32>
    %91 = vector.shape_cast %90 : vector<1x32x16xf32> to vector<32x16xf32>
    %cst_97 = arith.constant dense<0.000000e+00> : vector<78x16xf32>
    %92 = tpu.matmul %89, %91, %cst_97 {dimension_numbers = #tpu.dot_dimension_numbers<[1], [0], [0], [1], [0, 0, 1, 1], [], []>} : vector<78x32xf32>, vector<32x16xf32>, vector<78x16xf32> -> vector<78x16xf32>
    %c1_98 = arith.constant 1 : index
    %c0_99 = arith.constant 0 : index
    %93 = vector.load %arg21[%c1_98, %c0_99] : memref<100x32xf32, #tpu.memory_space<vmem>>, vector<78x32xf32>
    %c1_100 = arith.constant 1 : index
    %c0_101 = arith.constant 0 : index
    %c0_102 = arith.constant 0 : index
    %94 = vector.load %arg5[%c1_100, %c0_101, %c0_102] : memref<9x32x16xf32, #tpu.memory_space<vmem>>, vector<1x32x16xf32>
    %95 = vector.shape_cast %94 : vector<1x32x16xf32> to vector<32x16xf32>
    %cst_103 = arith.constant dense<0.000000e+00> : vector<78x16xf32>
    %96 = tpu.matmul %93, %95, %cst_103 {dimension_numbers = #tpu.dot_dimension_numbers<[1], [0], [0], [1], [0, 0, 1, 1], [], []>} : vector<78x32xf32>, vector<32x16xf32>, vector<78x16xf32> -> vector<78x16xf32>
    %97 = arith.addf %92, %96 : vector<78x16xf32>
    %c2_104 = arith.constant 2 : index
    %c0_105 = arith.constant 0 : index
    %98 = vector.load %arg21[%c2_104, %c0_105] : memref<100x32xf32, #tpu.memory_space<vmem>>, vector<78x32xf32>
    %c2_106 = arith.constant 2 : index
    %c0_107 = arith.constant 0 : index
    %c0_108 = arith.constant 0 : index
    %99 = vector.load %arg5[%c2_106, %c0_107, %c0_108] : memref<9x32x16xf32, #tpu.memory_space<vmem>>, vector<1x32x16xf32>
    %100 = vector.shape_cast %99 : vector<1x32x16xf32> to vector<32x16xf32>
    %cst_109 = arith.constant dense<0.000000e+00> : vector<78x16xf32>
    %101 = tpu.matmul %98, %100, %cst_109 {dimension_numbers = #tpu.dot_dimension_numbers<[1], [0], [0], [1], [0, 0, 1, 1], [], []>} : vector<78x32xf32>, vector<32x16xf32>, vector<78x16xf32> -> vector<78x16xf32>
    %102 = arith.addf %97, %101 : vector<78x16xf32>
    %c10 = arith.constant 10 : index
    %c0_110 = arith.constant 0 : index
    %103 = vector.load %arg21[%c10, %c0_110] : memref<100x32xf32, #tpu.memory_space<vmem>>, vector<78x32xf32>
    %c3_111 = arith.constant 3 : index
    %c0_112 = arith.constant 0 : index
    %c0_113 = arith.constant 0 : index
    %104 = vector.load %arg5[%c3_111, %c0_112, %c0_113] : memref<9x32x16xf32, #tpu.memory_space<vmem>>, vector<1x32x16xf32>
    %105 = vector.shape_cast %104 : vector<1x32x16xf32> to vector<32x16xf32>
    %cst_114 = arith.constant dense<0.000000e+00> : vector<78x16xf32>
    %106 = tpu.matmul %103, %105, %cst_114 {dimension_numbers = #tpu.dot_dimension_numbers<[1], [0], [0], [1], [0, 0, 1, 1], [], []>} : vector<78x32xf32>, vector<32x16xf32>, vector<78x16xf32> -> vector<78x16xf32>
    %107 = arith.addf %102, %106 : vector<78x16xf32>
    %c11_115 = arith.constant 11 : index
    %c0_116 = arith.constant 0 : index
    %108 = vector.load %arg21[%c11_115, %c0_116] : memref<100x32xf32, #tpu.memory_space<vmem>>, vector<78x32xf32>
    %c4_117 = arith.constant 4 : index
    %c0_118 = arith.constant 0 : index
    %c0_119 = arith.constant 0 : index
    %109 = vector.load %arg5[%c4_117, %c0_118, %c0_119] : memref<9x32x16xf32, #tpu.memory_space<vmem>>, vector<1x32x16xf32>
    %110 = vector.shape_cast %109 : vector<1x32x16xf32> to vector<32x16xf32>
    %cst_120 = arith.constant dense<0.000000e+00> : vector<78x16xf32>
    %111 = tpu.matmul %108, %110, %cst_120 {dimension_numbers = #tpu.dot_dimension_numbers<[1], [0], [0], [1], [0, 0, 1, 1], [], []>} : vector<78x32xf32>, vector<32x16xf32>, vector<78x16xf32> -> vector<78x16xf32>
    %112 = arith.addf %107, %111 : vector<78x16xf32>
    %c12 = arith.constant 12 : index
    %c0_121 = arith.constant 0 : index
    %113 = vector.load %arg21[%c12, %c0_121] : memref<100x32xf32, #tpu.memory_space<vmem>>, vector<78x32xf32>
    %c5_122 = arith.constant 5 : index
    %c0_123 = arith.constant 0 : index
    %c0_124 = arith.constant 0 : index
    %114 = vector.load %arg5[%c5_122, %c0_123, %c0_124] : memref<9x32x16xf32, #tpu.memory_space<vmem>>, vector<1x32x16xf32>
    %115 = vector.shape_cast %114 : vector<1x32x16xf32> to vector<32x16xf32>
    %cst_125 = arith.constant dense<0.000000e+00> : vector<78x16xf32>
    %116 = tpu.matmul %113, %115, %cst_125 {dimension_numbers = #tpu.dot_dimension_numbers<[1], [0], [0], [1], [0, 0, 1, 1], [], []>} : vector<78x32xf32>, vector<32x16xf32>, vector<78x16xf32> -> vector<78x16xf32>
    %117 = arith.addf %112, %116 : vector<78x16xf32>
    %c20_126 = arith.constant 20 : index
    %c0_127 = arith.constant 0 : index
    %118 = vector.load %arg21[%c20_126, %c0_127] : memref<100x32xf32, #tpu.memory_space<vmem>>, vector<78x32xf32>
    %c6_128 = arith.constant 6 : index
    %c0_129 = arith.constant 0 : index
    %c0_130 = arith.constant 0 : index
    %119 = vector.load %arg5[%c6_128, %c0_129, %c0_130] : memref<9x32x16xf32, #tpu.memory_space<vmem>>, vector<1x32x16xf32>
    %120 = vector.shape_cast %119 : vector<1x32x16xf32> to vector<32x16xf32>
    %cst_131 = arith.constant dense<0.000000e+00> : vector<78x16xf32>
    %121 = tpu.matmul %118, %120, %cst_131 {dimension_numbers = #tpu.dot_dimension_numbers<[1], [0], [0], [1], [0, 0, 1, 1], [], []>} : vector<78x32xf32>, vector<32x16xf32>, vector<78x16xf32> -> vector<78x16xf32>
    %122 = arith.addf %117, %121 : vector<78x16xf32>
    %c21 = arith.constant 21 : index
    %c0_132 = arith.constant 0 : index
    %123 = vector.load %arg21[%c21, %c0_132] : memref<100x32xf32, #tpu.memory_space<vmem>>, vector<78x32xf32>
    %c7_133 = arith.constant 7 : index
    %c0_134 = arith.constant 0 : index
    %c0_135 = arith.constant 0 : index
    %124 = vector.load %arg5[%c7_133, %c0_134, %c0_135] : memref<9x32x16xf32, #tpu.memory_space<vmem>>, vector<1x32x16xf32>
    %125 = vector.shape_cast %124 : vector<1x32x16xf32> to vector<32x16xf32>
    %cst_136 = arith.constant dense<0.000000e+00> : vector<78x16xf32>
    %126 = tpu.matmul %123, %125, %cst_136 {dimension_numbers = #tpu.dot_dimension_numbers<[1], [0], [0], [1], [0, 0, 1, 1], [], []>} : vector<78x32xf32>, vector<32x16xf32>, vector<78x16xf32> -> vector<78x16xf32>
    %127 = arith.addf %122, %126 : vector<78x16xf32>
    %c22 = arith.constant 22 : index
    %c0_137 = arith.constant 0 : index
    %128 = vector.load %arg21[%c22, %c0_137] : memref<100x32xf32, #tpu.memory_space<vmem>>, vector<78x32xf32>
    %c8_138 = arith.constant 8 : index
    %c0_139 = arith.constant 0 : index
    %c0_140 = arith.constant 0 : index
    %129 = vector.load %arg5[%c8_138, %c0_139, %c0_140] : memref<9x32x16xf32, #tpu.memory_space<vmem>>, vector<1x32x16xf32>
    %130 = vector.shape_cast %129 : vector<1x32x16xf32> to vector<32x16xf32>
    %cst_141 = arith.constant dense<0.000000e+00> : vector<78x16xf32>
    %131 = tpu.matmul %128, %130, %cst_141 {dimension_numbers = #tpu.dot_dimension_numbers<[1], [0], [0], [1], [0, 0, 1, 1], [], []>} : vector<78x32xf32>, vector<32x16xf32>, vector<78x16xf32> -> vector<78x16xf32>
    %132 = arith.addf %127, %131 : vector<78x16xf32>
    %c0_142 = arith.constant 0 : index
    %c0_143 = arith.constant 0 : index
    %133 = vector.load %arg6[%c0_142, %c0_143] : memref<1x16xf32, #tpu.memory_space<vmem>>, vector<1x16xf32>
    %134 = vector.broadcast %133 : vector<1x16xf32> to vector<78x16xf32>
    %135 = arith.addf %132, %134 : vector<78x16xf32>
    %cst_144 = arith.constant 0.000000e+00 : f32
    %136 = vector.broadcast %cst_144 : f32 to vector<78x16xf32>
    %137 = arith.maximumf %135, %136 : vector<78x16xf32>
    %c0_145 = arith.constant 0 : index
    %c0_146 = arith.constant 0 : index
    %138 = vector.load %arg27[%c0_145, %c0_146] : memref<78x16xf32, #tpu.memory_space<vmem>>, vector<78x16xf32>
    tpu.vector_store %arg27[%c0_145, %c0_146], %137 {strides = array<i32>} : memref<78x16xf32, #tpu.memory_space<vmem>>, vector<78x16xf32>,
    %c0_147 = arith.constant 0 : index
    %c0_148 = arith.constant 0 : index
    %139 = vector.load %arg27[%c0_147, %c0_148] : memref<78x16xf32, #tpu.memory_space<vmem>>, vector<67x16xf32>
    %c1_149 = arith.constant 1 : index
    %c0_150 = arith.constant 0 : index
    %140 = vector.load %arg27[%c1_149, %c0_150] : memref<78x16xf32, #tpu.memory_space<vmem>>, vector<67x16xf32>
    %141 = arith.maximumf %139, %140 : vector<67x16xf32>
    %c10_151 = arith.constant 10 : index
    %c0_152 = arith.constant 0 : index
    %142 = vector.load %arg27[%c10_151, %c0_152] : memref<78x16xf32, #tpu.memory_space<vmem>>, vector<67x16xf32>
    %c11_153 = arith.constant 11 : index
    %c0_154 = arith.constant 0 : index
    %143 = vector.load %arg27[%c11_153, %c0_154] : memref<78x16xf32, #tpu.memory_space<vmem>>, vector<67x16xf32>
    %144 = arith.maximumf %142, %143 : vector<67x16xf32>
    %145 = arith.maximumf %141, %144 : vector<67x16xf32>
    %c0_155 = arith.constant 0 : index
    %c0_156 = arith.constant 0 : index
    %146 = vector.load %arg7[%c0_155, %c0_156] : memref<22x67xf32, #tpu.memory_space<vmem>>, vector<22x67xf32>
    %cst_157 = arith.constant dense<0.000000e+00> : vector<22x16xf32>
    %147 = tpu.matmul %146, %145, %cst_157 {dimension_numbers = #tpu.dot_dimension_numbers<[1], [0], [0], [1], [0, 0, 1, 1], [], []>} : vector<22x67xf32>, vector<67x16xf32>, vector<22x16xf32> -> vector<22x16xf32>
    %c7_158 = arith.constant 7 : index
    %c0_159 = arith.constant 0 : index
    %148 = vector.load %arg22[%c7_158, %c0_159] : memref<36x16xf32, #tpu.memory_space<vmem>>, vector<22x16xf32>
    tpu.vector_store %arg22[%c7_158, %c0_159], %147 {strides = array<i32>} : memref<36x16xf32, #tpu.memory_space<vmem>>, vector<22x16xf32>,
    %c0_160 = arith.constant 0 : index
    %c0_161 = arith.constant 0 : index
    %149 = vector.load %arg22[%c0_160, %c0_161] : memref<36x16xf32, #tpu.memory_space<vmem>>, vector<22x16xf32>
    %c0_162 = arith.constant 0 : index
    %c0_163 = arith.constant 0 : index
    %c0_164 = arith.constant 0 : index
    %150 = vector.load %arg8[%c0_162, %c0_163, %c0_164] : memref<9x16x8xf32, #tpu.memory_space<vmem>>, vector<1x16x8xf32>
    %151 = vector.shape_cast %150 : vector<1x16x8xf32> to vector<16x8xf32>
    %cst_165 = arith.constant dense<0.000000e+00> : vector<22x8xf32>
    %152 = tpu.matmul %149, %151, %cst_165 {dimension_numbers = #tpu.dot_dimension_numbers<[1], [0], [0], [1], [0, 0, 1, 1], [], []>} : vector<22x16xf32>, vector<16x8xf32>, vector<22x8xf32> -> vector<22x8xf32>
    %c1_166 = arith.constant 1 : index
    %c0_167 = arith.constant 0 : index
    %153 = vector.load %arg22[%c1_166, %c0_167] : memref<36x16xf32, #tpu.memory_space<vmem>>, vector<22x16xf32>
    %c1_168 = arith.constant 1 : index
    %c0_169 = arith.constant 0 : index
    %c0_170 = arith.constant 0 : index
    %154 = vector.load %arg8[%c1_168, %c0_169, %c0_170] : memref<9x16x8xf32, #tpu.memory_space<vmem>>, vector<1x16x8xf32>
    %155 = vector.shape_cast %154 : vector<1x16x8xf32> to vector<16x8xf32>
    %cst_171 = arith.constant dense<0.000000e+00> : vector<22x8xf32>
    %156 = tpu.matmul %153, %155, %cst_171 {dimension_numbers = #tpu.dot_dimension_numbers<[1], [0], [0], [1], [0, 0, 1, 1], [], []>} : vector<22x16xf32>, vector<16x8xf32>, vector<22x8xf32> -> vector<22x8xf32>
    %157 = arith.addf %152, %156 : vector<22x8xf32>
    %c2_172 = arith.constant 2 : index
    %c0_173 = arith.constant 0 : index
    %158 = vector.load %arg22[%c2_172, %c0_173] : memref<36x16xf32, #tpu.memory_space<vmem>>, vector<22x16xf32>
    %c2_174 = arith.constant 2 : index
    %c0_175 = arith.constant 0 : index
    %c0_176 = arith.constant 0 : index
    %159 = vector.load %arg8[%c2_174, %c0_175, %c0_176] : memref<9x16x8xf32, #tpu.memory_space<vmem>>, vector<1x16x8xf32>
    %160 = vector.shape_cast %159 : vector<1x16x8xf32> to vector<16x8xf32>
    %cst_177 = arith.constant dense<0.000000e+00> : vector<22x8xf32>
    %161 = tpu.matmul %158, %160, %cst_177 {dimension_numbers = #tpu.dot_dimension_numbers<[1], [0], [0], [1], [0, 0, 1, 1], [], []>} : vector<22x16xf32>, vector<16x8xf32>, vector<22x8xf32> -> vector<22x8xf32>
    %162 = arith.addf %157, %161 : vector<22x8xf32>
    %c6_178 = arith.constant 6 : index
    %c0_179 = arith.constant 0 : index
    %163 = vector.load %arg22[%c6_178, %c0_179] : memref<36x16xf32, #tpu.memory_space<vmem>>, vector<22x16xf32>
    %c3_180 = arith.constant 3 : index
    %c0_181 = arith.constant 0 : index
    %c0_182 = arith.constant 0 : index
    %164 = vector.load %arg8[%c3_180, %c0_181, %c0_182] : memref<9x16x8xf32, #tpu.memory_space<vmem>>, vector<1x16x8xf32>
    %165 = vector.shape_cast %164 : vector<1x16x8xf32> to vector<16x8xf32>
    %cst_183 = arith.constant dense<0.000000e+00> : vector<22x8xf32>
    %166 = tpu.matmul %163, %165, %cst_183 {dimension_numbers = #tpu.dot_dimension_numbers<[1], [0], [0], [1], [0, 0, 1, 1], [], []>} : vector<22x16xf32>, vector<16x8xf32>, vector<22x8xf32> -> vector<22x8xf32>
    %167 = arith.addf %162, %166 : vector<22x8xf32>
    %c7_184 = arith.constant 7 : index
    %c0_185 = arith.constant 0 : index
    %168 = vector.load %arg22[%c7_184, %c0_185] : memref<36x16xf32, #tpu.memory_space<vmem>>, vector<22x16xf32>
    %c4_186 = arith.constant 4 : index
    %c0_187 = arith.constant 0 : index
    %c0_188 = arith.constant 0 : index
    %169 = vector.load %arg8[%c4_186, %c0_187, %c0_188] : memref<9x16x8xf32, #tpu.memory_space<vmem>>, vector<1x16x8xf32>
    %170 = vector.shape_cast %169 : vector<1x16x8xf32> to vector<16x8xf32>
    %cst_189 = arith.constant dense<0.000000e+00> : vector<22x8xf32>
    %171 = tpu.matmul %168, %170, %cst_189 {dimension_numbers = #tpu.dot_dimension_numbers<[1], [0], [0], [1], [0, 0, 1, 1], [], []>} : vector<22x16xf32>, vector<16x8xf32>, vector<22x8xf32> -> vector<22x8xf32>
    %172 = arith.addf %167, %171 : vector<22x8xf32>
    %c8_190 = arith.constant 8 : index
    %c0_191 = arith.constant 0 : index
    %173 = vector.load %arg22[%c8_190, %c0_191] : memref<36x16xf32, #tpu.memory_space<vmem>>, vector<22x16xf32>
    %c5_192 = arith.constant 5 : index
    %c0_193 = arith.constant 0 : index
    %c0_194 = arith.constant 0 : index
    %174 = vector.load %arg8[%c5_192, %c0_193, %c0_194] : memref<9x16x8xf32, #tpu.memory_space<vmem>>, vector<1x16x8xf32>
    %175 = vector.shape_cast %174 : vector<1x16x8xf32> to vector<16x8xf32>
    %cst_195 = arith.constant dense<0.000000e+00> : vector<22x8xf32>
    %176 = tpu.matmul %173, %175, %cst_195 {dimension_numbers = #tpu.dot_dimension_numbers<[1], [0], [0], [1], [0, 0, 1, 1], [], []>} : vector<22x16xf32>, vector<16x8xf32>, vector<22x8xf32> -> vector<22x8xf32>
    %177 = arith.addf %172, %176 : vector<22x8xf32>
    %c12_196 = arith.constant 12 : index
    %c0_197 = arith.constant 0 : index
    %178 = vector.load %arg22[%c12_196, %c0_197] : memref<36x16xf32, #tpu.memory_space<vmem>>, vector<22x16xf32>
    %c6_198 = arith.constant 6 : index
    %c0_199 = arith.constant 0 : index
    %c0_200 = arith.constant 0 : index
    %179 = vector.load %arg8[%c6_198, %c0_199, %c0_200] : memref<9x16x8xf32, #tpu.memory_space<vmem>>, vector<1x16x8xf32>
    %180 = vector.shape_cast %179 : vector<1x16x8xf32> to vector<16x8xf32>
    %cst_201 = arith.constant dense<0.000000e+00> : vector<22x8xf32>
    %181 = tpu.matmul %178, %180, %cst_201 {dimension_numbers = #tpu.dot_dimension_numbers<[1], [0], [0], [1], [0, 0, 1, 1], [], []>} : vector<22x16xf32>, vector<16x8xf32>, vector<22x8xf32> -> vector<22x8xf32>
    %182 = arith.addf %177, %181 : vector<22x8xf32>
    %c13 = arith.constant 13 : index
    %c0_202 = arith.constant 0 : index
    %183 = vector.load %arg22[%c13, %c0_202] : memref<36x16xf32, #tpu.memory_space<vmem>>, vector<22x16xf32>
    %c7_203 = arith.constant 7 : index
    %c0_204 = arith.constant 0 : index
    %c0_205 = arith.constant 0 : index
    %184 = vector.load %arg8[%c7_203, %c0_204, %c0_205] : memref<9x16x8xf32, #tpu.memory_space<vmem>>, vector<1x16x8xf32>
    %185 = vector.shape_cast %184 : vector<1x16x8xf32> to vector<16x8xf32>
    %cst_206 = arith.constant dense<0.000000e+00> : vector<22x8xf32>
    %186 = tpu.matmul %183, %185, %cst_206 {dimension_numbers = #tpu.dot_dimension_numbers<[1], [0], [0], [1], [0, 0, 1, 1], [], []>} : vector<22x16xf32>, vector<16x8xf32>, vector<22x8xf32> -> vector<22x8xf32>
    %187 = arith.addf %182, %186 : vector<22x8xf32>
    %c14 = arith.constant 14 : index
    %c0_207 = arith.constant 0 : index
    %188 = vector.load %arg22[%c14, %c0_207] : memref<36x16xf32, #tpu.memory_space<vmem>>, vector<22x16xf32>
    %c8_208 = arith.constant 8 : index
    %c0_209 = arith.constant 0 : index
    %c0_210 = arith.constant 0 : index
    %189 = vector.load %arg8[%c8_208, %c0_209, %c0_210] : memref<9x16x8xf32, #tpu.memory_space<vmem>>, vector<1x16x8xf32>
    %190 = vector.shape_cast %189 : vector<1x16x8xf32> to vector<16x8xf32>
    %cst_211 = arith.constant dense<0.000000e+00> : vector<22x8xf32>
    %191 = tpu.matmul %188, %190, %cst_211 {dimension_numbers = #tpu.dot_dimension_numbers<[1], [0], [0], [1], [0, 0, 1, 1], [], []>} : vector<22x16xf32>, vector<16x8xf32>, vector<22x8xf32> -> vector<22x8xf32>
    %192 = arith.addf %187, %191 : vector<22x8xf32>
    %c0_212 = arith.constant 0 : index
    %c0_213 = arith.constant 0 : index
    %193 = vector.load %arg9[%c0_212, %c0_213] : memref<1x8xf32, #tpu.memory_space<vmem>>, vector<1x8xf32>
    %194 = vector.broadcast %193 : vector<1x8xf32> to vector<22x8xf32>
    %195 = arith.addf %192, %194 : vector<22x8xf32>
    %cst_214 = arith.constant 0.000000e+00 : f32
    %196 = vector.broadcast %cst_214 : f32 to vector<22x8xf32>
    %197 = arith.maximumf %195, %196 : vector<22x8xf32>
    %c0_215 = arith.constant 0 : index
    %c0_216 = arith.constant 0 : index
    %198 = vector.load %arg28[%c0_215, %c0_216] : memref<22x8xf32, #tpu.memory_space<vmem>>, vector<22x8xf32>
    tpu.vector_store %arg28[%c0_215, %c0_216], %197 {strides = array<i32>} : memref<22x8xf32, #tpu.memory_space<vmem>>, vector<22x8xf32>,
    %c0_217 = arith.constant 0 : index
    %c0_218 = arith.constant 0 : index
    %199 = vector.load %arg28[%c0_217, %c0_218] : memref<22x8xf32, #tpu.memory_space<vmem>>, vector<15x8xf32>
    %c1_219 = arith.constant 1 : index
    %c0_220 = arith.constant 0 : index
    %200 = vector.load %arg28[%c1_219, %c0_220] : memref<22x8xf32, #tpu.memory_space<vmem>>, vector<15x8xf32>
    %201 = arith.maximumf %199, %200 : vector<15x8xf32>
    %c6_221 = arith.constant 6 : index
    %c0_222 = arith.constant 0 : index
    %202 = vector.load %arg28[%c6_221, %c0_222] : memref<22x8xf32, #tpu.memory_space<vmem>>, vector<15x8xf32>
    %c7_223 = arith.constant 7 : index
    %c0_224 = arith.constant 0 : index
    %203 = vector.load %arg28[%c7_223, %c0_224] : memref<22x8xf32, #tpu.memory_space<vmem>>, vector<15x8xf32>
    %204 = arith.maximumf %202, %203 : vector<15x8xf32>
    %205 = arith.maximumf %201, %204 : vector<15x8xf32>
    %c0_225 = arith.constant 0 : index
    %c0_226 = arith.constant 0 : index
    %206 = vector.load %arg10[%c0_225, %c0_226] : memref<6x15xf32, #tpu.memory_space<vmem>>, vector<6x15xf32>
    %cst_227 = arith.constant dense<0.000000e+00> : vector<6x8xf32>
    %207 = tpu.matmul %206, %205, %cst_227 {dimension_numbers = #tpu.dot_dimension_numbers<[1], [0], [0], [1], [0, 0, 1, 1], [], []>} : vector<6x15xf32>, vector<15x8xf32>, vector<6x8xf32> -> vector<6x8xf32>
    %c5_228 = arith.constant 5 : index
    %c0_229 = arith.constant 0 : index
    %208 = vector.load %arg23[%c5_228, %c0_229] : memref<16x8xf32, #tpu.memory_space<vmem>>, vector<6x8xf32>
    tpu.vector_store %arg23[%c5_228, %c0_229], %207 {strides = array<i32>} : memref<16x8xf32, #tpu.memory_space<vmem>>, vector<6x8xf32>,
    %c5_230 = arith.constant 5 : index
    %c0_231 = arith.constant 0 : index
    %209 = vector.load %arg23[%c5_230, %c0_231] : memref<16x8xf32, #tpu.memory_space<vmem>>, vector<6x8xf32>
    %c6_232 = arith.constant 6 : index
    %c0_233 = arith.constant 0 : index
    %210 = vector.load %arg23[%c6_232, %c0_233] : memref<16x8xf32, #tpu.memory_space<vmem>>, vector<6x8xf32>
    %c9 = arith.constant 9 : index
    %c0_234 = arith.constant 0 : index
    %211 = vector.load %arg23[%c9, %c0_234] : memref<16x8xf32, #tpu.memory_space<vmem>>, vector<6x8xf32>
    %c10_235 = arith.constant 10 : index
    %c0_236 = arith.constant 0 : index
    %212 = vector.load %arg23[%c10_235, %c0_236] : memref<16x8xf32, #tpu.memory_space<vmem>>, vector<6x8xf32>
    %c4_237 = arith.constant 4 : index
    %c0_238 = arith.constant 0 : index
    %c0_239 = arith.constant 0 : index
    %213 = vector.load %arg11[%c4_237, %c0_238, %c0_239] : memref<9x8x16xf32, #tpu.memory_space<vmem>>, vector<1x8x16xf32>
    %214 = vector.shape_cast %213 : vector<1x8x16xf32> to vector<8x16xf32>
    %cst_240 = arith.constant dense<0.000000e+00> : vector<6x16xf32>
    %215 = tpu.matmul %209, %214, %cst_240 {dimension_numbers = #tpu.dot_dimension_numbers<[1], [0], [0], [1], [0, 0, 1, 1], [], []>} : vector<6x8xf32>, vector<8x16xf32>, vector<6x16xf32> -> vector<6x16xf32>
    %c0_241 = arith.constant 0 : index
    %c0_242 = arith.constant 0 : index
    %216 = vector.load %arg12[%c0_241, %c0_242] : memref<1x16xf32, #tpu.memory_space<vmem>>, vector<1x16xf32>
    %217 = vector.broadcast %216 : vector<1x16xf32> to vector<6x16xf32>
    %218 = arith.addf %215, %217 : vector<6x16xf32>
    %c5_243 = arith.constant 5 : index
    %c0_244 = arith.constant 0 : index
    %c0_245 = arith.constant 0 : index
    %219 = vector.load %arg11[%c5_243, %c0_244, %c0_245] : memref<9x8x16xf32, #tpu.memory_space<vmem>>, vector<1x8x16xf32>
    %220 = vector.shape_cast %219 : vector<1x8x16xf32> to vector<8x16xf32>
    %cst_246 = arith.constant dense<0.000000e+00> : vector<6x16xf32>
    %221 = tpu.matmul %209, %220, %cst_246 {dimension_numbers = #tpu.dot_dimension_numbers<[1], [0], [0], [1], [0, 0, 1, 1], [], []>} : vector<6x8xf32>, vector<8x16xf32>, vector<6x16xf32> -> vector<6x16xf32>
    %c3_247 = arith.constant 3 : index
    %c0_248 = arith.constant 0 : index
    %c0_249 = arith.constant 0 : index
    %222 = vector.load %arg11[%c3_247, %c0_248, %c0_249] : memref<9x8x16xf32, #tpu.memory_space<vmem>>, vector<1x8x16xf32>
    %223 = vector.shape_cast %222 : vector<1x8x16xf32> to vector<8x16xf32>
    %cst_250 = arith.constant dense<0.000000e+00> : vector<6x16xf32>
    %224 = tpu.matmul %210, %223, %cst_250 {dimension_numbers = #tpu.dot_dimension_numbers<[1], [0], [0], [1], [0, 0, 1, 1], [], []>} : vector<6x8xf32>, vector<8x16xf32>, vector<6x16xf32> -> vector<6x16xf32>
    %225 = arith.addf %221, %224 : vector<6x16xf32>
    %c0_251 = arith.constant 0 : index
    %c0_252 = arith.constant 0 : index
    %226 = vector.load %arg12[%c0_251, %c0_252] : memref<1x16xf32, #tpu.memory_space<vmem>>, vector<1x16xf32>
    %227 = vector.broadcast %226 : vector<1x16xf32> to vector<6x16xf32>
    %228 = arith.addf %225, %227 : vector<6x16xf32>
    %c7_253 = arith.constant 7 : index
    %c0_254 = arith.constant 0 : index
    %c0_255 = arith.constant 0 : index
    %229 = vector.load %arg11[%c7_253, %c0_254, %c0_255] : memref<9x8x16xf32, #tpu.memory_space<vmem>>, vector<1x8x16xf32>
    %230 = vector.shape_cast %229 : vector<1x8x16xf32> to vector<8x16xf32>
    %cst_256 = arith.constant dense<0.000000e+00> : vector<6x16xf32>
    %231 = tpu.matmul %209, %230, %cst_256 {dimension_numbers = #tpu.dot_dimension_numbers<[1], [0], [0], [1], [0, 0, 1, 1], [], []>} : vector<6x8xf32>, vector<8x16xf32>, vector<6x16xf32> -> vector<6x16xf32>
    %c1_257 = arith.constant 1 : index
    %c0_258 = arith.constant 0 : index
    %c0_259 = arith.constant 0 : index
    %232 = vector.load %arg11[%c1_257, %c0_258, %c0_259] : memref<9x8x16xf32, #tpu.memory_space<vmem>>, vector<1x8x16xf32>
    %233 = vector.shape_cast %232 : vector<1x8x16xf32> to vector<8x16xf32>
    %cst_260 = arith.constant dense<0.000000e+00> : vector<6x16xf32>
    %234 = tpu.matmul %211, %233, %cst_260 {dimension_numbers = #tpu.dot_dimension_numbers<[1], [0], [0], [1], [0, 0, 1, 1], [], []>} : vector<6x8xf32>, vector<8x16xf32>, vector<6x16xf32> -> vector<6x16xf32>
    %235 = arith.addf %231, %234 : vector<6x16xf32>
    %c0_261 = arith.constant 0 : index
    %c0_262 = arith.constant 0 : index
    %236 = vector.load %arg12[%c0_261, %c0_262] : memref<1x16xf32, #tpu.memory_space<vmem>>, vector<1x16xf32>
    %237 = vector.broadcast %236 : vector<1x16xf32> to vector<6x16xf32>
    %238 = arith.addf %235, %237 : vector<6x16xf32>
    %c8_263 = arith.constant 8 : index
    %c0_264 = arith.constant 0 : index
    %c0_265 = arith.constant 0 : index
    %239 = vector.load %arg11[%c8_263, %c0_264, %c0_265] : memref<9x8x16xf32, #tpu.memory_space<vmem>>, vector<1x8x16xf32>
    %240 = vector.shape_cast %239 : vector<1x8x16xf32> to vector<8x16xf32>
    %cst_266 = arith.constant dense<0.000000e+00> : vector<6x16xf32>
    %241 = tpu.matmul %209, %240, %cst_266 {dimension_numbers = #tpu.dot_dimension_numbers<[1], [0], [0], [1], [0, 0, 1, 1], [], []>} : vector<6x8xf32>, vector<8x16xf32>, vector<6x16xf32> -> vector<6x16xf32>
    %c6_267 = arith.constant 6 : index
    %c0_268 = arith.constant 0 : index
    %c0_269 = arith.constant 0 : index
    %242 = vector.load %arg11[%c6_267, %c0_268, %c0_269] : memref<9x8x16xf32, #tpu.memory_space<vmem>>, vector<1x8x16xf32>
    %243 = vector.shape_cast %242 : vector<1x8x16xf32> to vector<8x16xf32>
    %cst_270 = arith.constant dense<0.000000e+00> : vector<6x16xf32>
    %244 = tpu.matmul %210, %243, %cst_270 {dimension_numbers = #tpu.dot_dimension_numbers<[1], [0], [0], [1], [0, 0, 1, 1], [], []>} : vector<6x8xf32>, vector<8x16xf32>, vector<6x16xf32> -> vector<6x16xf32>
    %245 = arith.addf %241, %244 : vector<6x16xf32>
    %c2_271 = arith.constant 2 : index
    %c0_272 = arith.constant 0 : index
    %c0_273 = arith.constant 0 : index
    %246 = vector.load %arg11[%c2_271, %c0_272, %c0_273] : memref<9x8x16xf32, #tpu.memory_space<vmem>>, vector<1x8x16xf32>
    %247 = vector.shape_cast %246 : vector<1x8x16xf32> to vector<8x16xf32>
    %cst_274 = arith.constant dense<0.000000e+00> : vector<6x16xf32>
    %248 = tpu.matmul %211, %247, %cst_274 {dimension_numbers = #tpu.dot_dimension_numbers<[1], [0], [0], [1], [0, 0, 1, 1], [], []>} : vector<6x8xf32>, vector<8x16xf32>, vector<6x16xf32> -> vector<6x16xf32>
    %249 = arith.addf %245, %248 : vector<6x16xf32>
    %c0_275 = arith.constant 0 : index
    %c0_276 = arith.constant 0 : index
    %c0_277 = arith.constant 0 : index
    %250 = vector.load %arg11[%c0_275, %c0_276, %c0_277] : memref<9x8x16xf32, #tpu.memory_space<vmem>>, vector<1x8x16xf32>
    %251 = vector.shape_cast %250 : vector<1x8x16xf32> to vector<8x16xf32>
    %cst_278 = arith.constant dense<0.000000e+00> : vector<6x16xf32>
    %252 = tpu.matmul %212, %251, %cst_278 {dimension_numbers = #tpu.dot_dimension_numbers<[1], [0], [0], [1], [0, 0, 1, 1], [], []>} : vector<6x8xf32>, vector<8x16xf32>, vector<6x16xf32> -> vector<6x16xf32>
    %253 = arith.addf %249, %252 : vector<6x16xf32>
    %c0_279 = arith.constant 0 : index
    %c0_280 = arith.constant 0 : index
    %254 = vector.load %arg12[%c0_279, %c0_280] : memref<1x16xf32, #tpu.memory_space<vmem>>, vector<1x16xf32>
    %255 = vector.broadcast %254 : vector<1x16xf32> to vector<6x16xf32>
    %256 = arith.addf %253, %255 : vector<6x16xf32>
    %257 = tpu.concatenate %218, %228, %238, %256 in 0 : vector<6x16xf32>, vector<6x16xf32>, vector<6x16xf32>, vector<6x16xf32> -> vector<24x16xf32>
    %c0_281 = arith.constant 0 : index
    %c0_282 = arith.constant 0 : index
    %258 = vector.load %arg13[%c0_281, %c0_282] : memref<22x24xf32, #tpu.memory_space<vmem>>, vector<22x24xf32>
    %cst_283 = arith.constant dense<0.000000e+00> : vector<22x16xf32>
    %259 = tpu.matmul %258, %257, %cst_283 {dimension_numbers = #tpu.dot_dimension_numbers<[1], [0], [0], [1], [0, 0, 1, 1], [], []>} : vector<22x24xf32>, vector<24x16xf32>, vector<22x16xf32> -> vector<22x16xf32>
    %cst_284 = arith.constant 0.000000e+00 : f32
    %260 = vector.broadcast %cst_284 : f32 to vector<22x16xf32>
    %261 = arith.maximumf %259, %260 : vector<22x16xf32>
    %c7_285 = arith.constant 7 : index
    %c0_286 = arith.constant 0 : index
    %262 = vector.load %arg24[%c7_285, %c0_286] : memref<36x16xf32, #tpu.memory_space<vmem>>, vector<22x16xf32>
    tpu.vector_store %arg24[%c7_285, %c0_286], %261 {strides = array<i32>} : memref<36x16xf32, #tpu.memory_space<vmem>>, vector<22x16xf32>,
    %c7_287 = arith.constant 7 : index
    %c0_288 = arith.constant 0 : index
    %263 = vector.load %arg24[%c7_287, %c0_288] : memref<36x16xf32, #tpu.memory_space<vmem>>, vector<22x16xf32>
    %c8_289 = arith.constant 8 : index
    %c0_290 = arith.constant 0 : index
    %264 = vector.load %arg24[%c8_289, %c0_290] : memref<36x16xf32, #tpu.memory_space<vmem>>, vector<22x16xf32>
    %c13_291 = arith.constant 13 : index
    %c0_292 = arith.constant 0 : index
    %265 = vector.load %arg24[%c13_291, %c0_292] : memref<36x16xf32, #tpu.memory_space<vmem>>, vector<22x16xf32>
    %c14_293 = arith.constant 14 : index
    %c0_294 = arith.constant 0 : index
    %266 = vector.load %arg24[%c14_293, %c0_294] : memref<36x16xf32, #tpu.memory_space<vmem>>, vector<22x16xf32>
    %c4_295 = arith.constant 4 : index
    %c0_296 = arith.constant 0 : index
    %c0_297 = arith.constant 0 : index
    %267 = vector.load %arg14[%c4_295, %c0_296, %c0_297] : memref<9x16x32xf32, #tpu.memory_space<vmem>>, vector<1x16x32xf32>
    %268 = vector.shape_cast %267 : vector<1x16x32xf32> to vector<16x32xf32>
    %cst_298 = arith.constant dense<0.000000e+00> : vector<22x32xf32>
    %269 = tpu.matmul %263, %268, %cst_298 {dimension_numbers = #tpu.dot_dimension_numbers<[1], [0], [0], [1], [0, 0, 1, 1], [], []>} : vector<22x16xf32>, vector<16x32xf32>, vector<22x32xf32> -> vector<22x32xf32>
    %c0_299 = arith.constant 0 : index
    %c0_300 = arith.constant 0 : index
    %270 = vector.load %arg15[%c0_299, %c0_300] : memref<1x32xf32, #tpu.memory_space<vmem>>, vector<1x32xf32>
    %271 = vector.broadcast %270 : vector<1x32xf32> to vector<22x32xf32>
    %272 = arith.addf %269, %271 : vector<22x32xf32>
    %c5_301 = arith.constant 5 : index
    %c0_302 = arith.constant 0 : index
    %c0_303 = arith.constant 0 : index
    %273 = vector.load %arg14[%c5_301, %c0_302, %c0_303] : memref<9x16x32xf32, #tpu.memory_space<vmem>>, vector<1x16x32xf32>
    %274 = vector.shape_cast %273 : vector<1x16x32xf32> to vector<16x32xf32>
    %cst_304 = arith.constant dense<0.000000e+00> : vector<22x32xf32>
    %275 = tpu.matmul %263, %274, %cst_304 {dimension_numbers = #tpu.dot_dimension_numbers<[1], [0], [0], [1], [0, 0, 1, 1], [], []>} : vector<22x16xf32>, vector<16x32xf32>, vector<22x32xf32> -> vector<22x32xf32>
    %c3_305 = arith.constant 3 : index
    %c0_306 = arith.constant 0 : index
    %c0_307 = arith.constant 0 : index
    %276 = vector.load %arg14[%c3_305, %c0_306, %c0_307] : memref<9x16x32xf32, #tpu.memory_space<vmem>>, vector<1x16x32xf32>
    %277 = vector.shape_cast %276 : vector<1x16x32xf32> to vector<16x32xf32>
    %cst_308 = arith.constant dense<0.000000e+00> : vector<22x32xf32>
    %278 = tpu.matmul %264, %277, %cst_308 {dimension_numbers = #tpu.dot_dimension_numbers<[1], [0], [0], [1], [0, 0, 1, 1], [], []>} : vector<22x16xf32>, vector<16x32xf32>, vector<22x32xf32> -> vector<22x32xf32>
    %279 = arith.addf %275, %278 : vector<22x32xf32>
    %c0_309 = arith.constant 0 : index
    %c0_310 = arith.constant 0 : index
    %280 = vector.load %arg15[%c0_309, %c0_310] : memref<1x32xf32, #tpu.memory_space<vmem>>, vector<1x32xf32>
    %281 = vector.broadcast %280 : vector<1x32xf32> to vector<22x32xf32>
    %282 = arith.addf %279, %281 : vector<22x32xf32>
    %c7_311 = arith.constant 7 : index
    %c0_312 = arith.constant 0 : index
    %c0_313 = arith.constant 0 : index
    %283 = vector.load %arg14[%c7_311, %c0_312, %c0_313] : memref<9x16x32xf32, #tpu.memory_space<vmem>>, vector<1x16x32xf32>
    %284 = vector.shape_cast %283 : vector<1x16x32xf32> to vector<16x32xf32>
    %cst_314 = arith.constant dense<0.000000e+00> : vector<22x32xf32>
    %285 = tpu.matmul %263, %284, %cst_314 {dimension_numbers = #tpu.dot_dimension_numbers<[1], [0], [0], [1], [0, 0, 1, 1], [], []>} : vector<22x16xf32>, vector<16x32xf32>, vector<22x32xf32> -> vector<22x32xf32>
    %c1_315 = arith.constant 1 : index
    %c0_316 = arith.constant 0 : index
    %c0_317 = arith.constant 0 : index
    %286 = vector.load %arg14[%c1_315, %c0_316, %c0_317] : memref<9x16x32xf32, #tpu.memory_space<vmem>>, vector<1x16x32xf32>
    %287 = vector.shape_cast %286 : vector<1x16x32xf32> to vector<16x32xf32>
    %cst_318 = arith.constant dense<0.000000e+00> : vector<22x32xf32>
    %288 = tpu.matmul %265, %287, %cst_318 {dimension_numbers = #tpu.dot_dimension_numbers<[1], [0], [0], [1], [0, 0, 1, 1], [], []>} : vector<22x16xf32>, vector<16x32xf32>, vector<22x32xf32> -> vector<22x32xf32>
    %289 = arith.addf %285, %288 : vector<22x32xf32>
    %c0_319 = arith.constant 0 : index
    %c0_320 = arith.constant 0 : index
    %290 = vector.load %arg15[%c0_319, %c0_320] : memref<1x32xf32, #tpu.memory_space<vmem>>, vector<1x32xf32>
    %291 = vector.broadcast %290 : vector<1x32xf32> to vector<22x32xf32>
    %292 = arith.addf %289, %291 : vector<22x32xf32>
    %c8_321 = arith.constant 8 : index
    %c0_322 = arith.constant 0 : index
    %c0_323 = arith.constant 0 : index
    %293 = vector.load %arg14[%c8_321, %c0_322, %c0_323] : memref<9x16x32xf32, #tpu.memory_space<vmem>>, vector<1x16x32xf32>
    %294 = vector.shape_cast %293 : vector<1x16x32xf32> to vector<16x32xf32>
    %cst_324 = arith.constant dense<0.000000e+00> : vector<22x32xf32>
    %295 = tpu.matmul %263, %294, %cst_324 {dimension_numbers = #tpu.dot_dimension_numbers<[1], [0], [0], [1], [0, 0, 1, 1], [], []>} : vector<22x16xf32>, vector<16x32xf32>, vector<22x32xf32> -> vector<22x32xf32>
    %c6_325 = arith.constant 6 : index
    %c0_326 = arith.constant 0 : index
    %c0_327 = arith.constant 0 : index
    %296 = vector.load %arg14[%c6_325, %c0_326, %c0_327] : memref<9x16x32xf32, #tpu.memory_space<vmem>>, vector<1x16x32xf32>
    %297 = vector.shape_cast %296 : vector<1x16x32xf32> to vector<16x32xf32>
    %cst_328 = arith.constant dense<0.000000e+00> : vector<22x32xf32>
    %298 = tpu.matmul %264, %297, %cst_328 {dimension_numbers = #tpu.dot_dimension_numbers<[1], [0], [0], [1], [0, 0, 1, 1], [], []>} : vector<22x16xf32>, vector<16x32xf32>, vector<22x32xf32> -> vector<22x32xf32>
    %299 = arith.addf %295, %298 : vector<22x32xf32>
    %c2_329 = arith.constant 2 : index
    %c0_330 = arith.constant 0 : index
    %c0_331 = arith.constant 0 : index
    %300 = vector.load %arg14[%c2_329, %c0_330, %c0_331] : memref<9x16x32xf32, #tpu.memory_space<vmem>>, vector<1x16x32xf32>
    %301 = vector.shape_cast %300 : vector<1x16x32xf32> to vector<16x32xf32>
    %cst_332 = arith.constant dense<0.000000e+00> : vector<22x32xf32>
    %302 = tpu.matmul %265, %301, %cst_332 {dimension_numbers = #tpu.dot_dimension_numbers<[1], [0], [0], [1], [0, 0, 1, 1], [], []>} : vector<22x16xf32>, vector<16x32xf32>, vector<22x32xf32> -> vector<22x32xf32>
    %303 = arith.addf %299, %302 : vector<22x32xf32>
    %c0_333 = arith.constant 0 : index
    %c0_334 = arith.constant 0 : index
    %c0_335 = arith.constant 0 : index
    %304 = vector.load %arg14[%c0_333, %c0_334, %c0_335] : memref<9x16x32xf32, #tpu.memory_space<vmem>>, vector<1x16x32xf32>
    %305 = vector.shape_cast %304 : vector<1x16x32xf32> to vector<16x32xf32>
    %cst_336 = arith.constant dense<0.000000e+00> : vector<22x32xf32>
    %306 = tpu.matmul %266, %305, %cst_336 {dimension_numbers = #tpu.dot_dimension_numbers<[1], [0], [0], [1], [0, 0, 1, 1], [], []>} : vector<22x16xf32>, vector<16x32xf32>, vector<22x32xf32> -> vector<22x32xf32>
    %307 = arith.addf %303, %306 : vector<22x32xf32>
    %c0_337 = arith.constant 0 : index
    %c0_338 = arith.constant 0 : index
    %308 = vector.load %arg15[%c0_337, %c0_338] : memref<1x32xf32, #tpu.memory_space<vmem>>, vector<1x32xf32>
    %309 = vector.broadcast %308 : vector<1x32xf32> to vector<22x32xf32>
    %310 = arith.addf %307, %309 : vector<22x32xf32>
    %311 = tpu.concatenate %272, %282, %292, %310 in 0 : vector<22x32xf32>, vector<22x32xf32>, vector<22x32xf32>, vector<22x32xf32> -> vector<88x32xf32>
    %c0_339 = arith.constant 0 : index
    %c0_340 = arith.constant 0 : index
    %312 = vector.load %arg16[%c0_339, %c0_340] : memref<78x88xf32, #tpu.memory_space<vmem>>, vector<78x88xf32>
    %cst_341 = arith.constant dense<0.000000e+00> : vector<78x32xf32>
    %313 = tpu.matmul %312, %311, %cst_341 {dimension_numbers = #tpu.dot_dimension_numbers<[1], [0], [0], [1], [0, 0, 1, 1], [], []>} : vector<78x88xf32>, vector<88x32xf32>, vector<78x32xf32> -> vector<78x32xf32>
    %cst_342 = arith.constant 0.000000e+00 : f32
    %314 = vector.broadcast %cst_342 : f32 to vector<78x32xf32>
    %315 = arith.maximumf %313, %314 : vector<78x32xf32>
    %c11_343 = arith.constant 11 : index
    %c0_344 = arith.constant 0 : index
    %316 = vector.load %arg25[%c11_343, %c0_344] : memref<100x32xf32, #tpu.memory_space<vmem>>, vector<78x32xf32>
    tpu.vector_store %arg25[%c11_343, %c0_344], %315 {strides = array<i32>} : memref<100x32xf32, #tpu.memory_space<vmem>>, vector<78x32xf32>,
    %c11_345 = arith.constant 11 : index
    %c0_346 = arith.constant 0 : index
    %317 = vector.load %arg25[%c11_345, %c0_346] : memref<100x32xf32, #tpu.memory_space<vmem>>, vector<78x32xf32>
    %c12_347 = arith.constant 12 : index
    %c0_348 = arith.constant 0 : index
    %318 = vector.load %arg25[%c12_347, %c0_348] : memref<100x32xf32, #tpu.memory_space<vmem>>, vector<78x32xf32>
    %c21_349 = arith.constant 21 : index
    %c0_350 = arith.constant 0 : index
    %319 = vector.load %arg25[%c21_349, %c0_350] : memref<100x32xf32, #tpu.memory_space<vmem>>, vector<78x32xf32>
    %c22_351 = arith.constant 22 : index
    %c0_352 = arith.constant 0 : index
    %320 = vector.load %arg25[%c22_351, %c0_352] : memref<100x32xf32, #tpu.memory_space<vmem>>, vector<78x32xf32>
    %c4_353 = arith.constant 4 : index
    %c0_354 = arith.constant 0 : index
    %c0_355 = arith.constant 0 : index
    %321 = vector.load %arg17[%c4_353, %c0_354, %c0_355] : memref<9x32x6xf32, #tpu.memory_space<vmem>>, vector<1x32x6xf32>
    %322 = vector.shape_cast %321 : vector<1x32x6xf32> to vector<32x6xf32>
    %cst_356 = arith.constant dense<0.000000e+00> : vector<78x6xf32>
    %323 = tpu.matmul %317, %322, %cst_356 {dimension_numbers = #tpu.dot_dimension_numbers<[1], [0], [0], [1], [0, 0, 1, 1], [], []>} : vector<78x32xf32>, vector<32x6xf32>, vector<78x6xf32> -> vector<78x6xf32>
    %c0_357 = arith.constant 0 : index
    %c0_358 = arith.constant 0 : index
    %324 = vector.load %arg18[%c0_357, %c0_358] : memref<1x6xf32, #tpu.memory_space<vmem>>, vector<1x6xf32>
    %325 = vector.broadcast %324 : vector<1x6xf32> to vector<78x6xf32>
    %326 = arith.addf %323, %325 : vector<78x6xf32>
    %c5_359 = arith.constant 5 : index
    %c0_360 = arith.constant 0 : index
    %c0_361 = arith.constant 0 : index
    %327 = vector.load %arg17[%c5_359, %c0_360, %c0_361] : memref<9x32x6xf32, #tpu.memory_space<vmem>>, vector<1x32x6xf32>
    %328 = vector.shape_cast %327 : vector<1x32x6xf32> to vector<32x6xf32>
    %cst_362 = arith.constant dense<0.000000e+00> : vector<78x6xf32>
    %329 = tpu.matmul %317, %328, %cst_362 {dimension_numbers = #tpu.dot_dimension_numbers<[1], [0], [0], [1], [0, 0, 1, 1], [], []>} : vector<78x32xf32>, vector<32x6xf32>, vector<78x6xf32> -> vector<78x6xf32>
    %c3_363 = arith.constant 3 : index
    %c0_364 = arith.constant 0 : index
    %c0_365 = arith.constant 0 : index
    %330 = vector.load %arg17[%c3_363, %c0_364, %c0_365] : memref<9x32x6xf32, #tpu.memory_space<vmem>>, vector<1x32x6xf32>
    %331 = vector.shape_cast %330 : vector<1x32x6xf32> to vector<32x6xf32>
    %cst_366 = arith.constant dense<0.000000e+00> : vector<78x6xf32>
    %332 = tpu.matmul %318, %331, %cst_366 {dimension_numbers = #tpu.dot_dimension_numbers<[1], [0], [0], [1], [0, 0, 1, 1], [], []>} : vector<78x32xf32>, vector<32x6xf32>, vector<78x6xf32> -> vector<78x6xf32>
    %333 = arith.addf %329, %332 : vector<78x6xf32>
    %c0_367 = arith.constant 0 : index
    %c0_368 = arith.constant 0 : index
    %334 = vector.load %arg18[%c0_367, %c0_368] : memref<1x6xf32, #tpu.memory_space<vmem>>, vector<1x6xf32>
    %335 = vector.broadcast %334 : vector<1x6xf32> to vector<78x6xf32>
    %336 = arith.addf %333, %335 : vector<78x6xf32>
    %c7_369 = arith.constant 7 : index
    %c0_370 = arith.constant 0 : index
    %c0_371 = arith.constant 0 : index
    %337 = vector.load %arg17[%c7_369, %c0_370, %c0_371] : memref<9x32x6xf32, #tpu.memory_space<vmem>>, vector<1x32x6xf32>
    %338 = vector.shape_cast %337 : vector<1x32x6xf32> to vector<32x6xf32>
    %cst_372 = arith.constant dense<0.000000e+00> : vector<78x6xf32>
    %339 = tpu.matmul %317, %338, %cst_372 {dimension_numbers = #tpu.dot_dimension_numbers<[1], [0], [0], [1], [0, 0, 1, 1], [], []>} : vector<78x32xf32>, vector<32x6xf32>, vector<78x6xf32> -> vector<78x6xf32>
    %c1_373 = arith.constant 1 : index
    %c0_374 = arith.constant 0 : index
    %c0_375 = arith.constant 0 : index
    %340 = vector.load %arg17[%c1_373, %c0_374, %c0_375] : memref<9x32x6xf32, #tpu.memory_space<vmem>>, vector<1x32x6xf32>
    %341 = vector.shape_cast %340 : vector<1x32x6xf32> to vector<32x6xf32>
    %cst_376 = arith.constant dense<0.000000e+00> : vector<78x6xf32>
    %342 = tpu.matmul %319, %341, %cst_376 {dimension_numbers = #tpu.dot_dimension_numbers<[1], [0], [0], [1], [0, 0, 1, 1], [], []>} : vector<78x32xf32>, vector<32x6xf32>, vector<78x6xf32> -> vector<78x6xf32>
    %343 = arith.addf %339, %342 : vector<78x6xf32>
    %c0_377 = arith.constant 0 : index
    %c0_378 = arith.constant 0 : index
    %344 = vector.load %arg18[%c0_377, %c0_378] : memref<1x6xf32, #tpu.memory_space<vmem>>, vector<1x6xf32>
    %345 = vector.broadcast %344 : vector<1x6xf32> to vector<78x6xf32>
    %346 = arith.addf %343, %345 : vector<78x6xf32>
    %c8_379 = arith.constant 8 : index
    %c0_380 = arith.constant 0 : index
    %c0_381 = arith.constant 0 : index
    %347 = vector.load %arg17[%c8_379, %c0_380, %c0_381] : memref<9x32x6xf32, #tpu.memory_space<vmem>>, vector<1x32x6xf32>
    %348 = vector.shape_cast %347 : vector<1x32x6xf32> to vector<32x6xf32>
    %cst_382 = arith.constant dense<0.000000e+00> : vector<78x6xf32>
    %349 = tpu.matmul %317, %348, %cst_382 {dimension_numbers = #tpu.dot_dimension_numbers<[1], [0], [0], [1], [0, 0, 1, 1], [], []>} : vector<78x32xf32>, vector<32x6xf32>, vector<78x6xf32> -> vector<78x6xf32>
    %c6_383 = arith.constant 6 : index
    %c0_384 = arith.constant 0 : index
    %c0_385 = arith.constant 0 : index
    %350 = vector.load %arg17[%c6_383, %c0_384, %c0_385] : memref<9x32x6xf32, #tpu.memory_space<vmem>>, vector<1x32x6xf32>
    %351 = vector.shape_cast %350 : vector<1x32x6xf32> to vector<32x6xf32>
    %cst_386 = arith.constant dense<0.000000e+00> : vector<78x6xf32>
    %352 = tpu.matmul %318, %351, %cst_386 {dimension_numbers = #tpu.dot_dimension_numbers<[1], [0], [0], [1], [0, 0, 1, 1], [], []>} : vector<78x32xf32>, vector<32x6xf32>, vector<78x6xf32> -> vector<78x6xf32>
    %353 = arith.addf %349, %352 : vector<78x6xf32>
    %c2_387 = arith.constant 2 : index
    %c0_388 = arith.constant 0 : index
    %c0_389 = arith.constant 0 : index
    %354 = vector.load %arg17[%c2_387, %c0_388, %c0_389] : memref<9x32x6xf32, #tpu.memory_space<vmem>>, vector<1x32x6xf32>
    %355 = vector.shape_cast %354 : vector<1x32x6xf32> to vector<32x6xf32>
    %cst_390 = arith.constant dense<0.000000e+00> : vector<78x6xf32>
    %356 = tpu.matmul %319, %355, %cst_390 {dimension_numbers = #tpu.dot_dimension_numbers<[1], [0], [0], [1], [0, 0, 1, 1], [], []>} : vector<78x32xf32>, vector<32x6xf32>, vector<78x6xf32> -> vector<78x6xf32>
    %357 = arith.addf %353, %356 : vector<78x6xf32>
    %c0_391 = arith.constant 0 : index
    %c0_392 = arith.constant 0 : index
    %c0_393 = arith.constant 0 : index
    %358 = vector.load %arg17[%c0_391, %c0_392, %c0_393] : memref<9x32x6xf32, #tpu.memory_space<vmem>>, vector<1x32x6xf32>
    %359 = vector.shape_cast %358 : vector<1x32x6xf32> to vector<32x6xf32>
    %cst_394 = arith.constant dense<0.000000e+00> : vector<78x6xf32>
    %360 = tpu.matmul %320, %359, %cst_394 {dimension_numbers = #tpu.dot_dimension_numbers<[1], [0], [0], [1], [0, 0, 1, 1], [], []>} : vector<78x32xf32>, vector<32x6xf32>, vector<78x6xf32> -> vector<78x6xf32>
    %361 = arith.addf %357, %360 : vector<78x6xf32>
    %c0_395 = arith.constant 0 : index
    %c0_396 = arith.constant 0 : index
    %362 = vector.load %arg18[%c0_395, %c0_396] : memref<1x6xf32, #tpu.memory_space<vmem>>, vector<1x6xf32>
    %363 = vector.broadcast %362 : vector<1x6xf32> to vector<78x6xf32>
    %364 = arith.addf %361, %363 : vector<78x6xf32>
    %365 = tpu.concatenate %326, %336, %346, %364 in 0 : vector<78x6xf32>, vector<78x6xf32>, vector<78x6xf32>, vector<78x6xf32> -> vector<312x6xf32>
    %366 = tpu.transpose %365, [1, 0] : vector<312x6xf32> -> vector<6x312xf32>
    %c0_397 = arith.constant 0 : index
    %c0_398 = arith.constant 0 : index
    %367 = vector.load %arg19[%c0_397, %c0_398] : memref<312x256xf32, #tpu.memory_space<vmem>>, vector<312x256xf32>
    %cst_399 = arith.constant dense<0.000000e+00> : vector<6x256xf32>
    %368 = tpu.matmul %366, %367, %cst_399 {dimension_numbers = #tpu.dot_dimension_numbers<[1], [0], [0], [1], [0, 0, 1, 1], [], []>} : vector<6x312xf32>, vector<312x256xf32>, vector<6x256xf32> -> vector<6x256xf32>
    %369 = math.absf %368 : vector<6x256xf32>
    %cst_400 = arith.constant 0.000000e+00 : f32
    %370 = vector.broadcast %cst_400 : f32 to vector<6x256xf32>
    %371 = arith.subf %370, %369 : vector<6x256xf32>
    %372 = math.exp %371 : vector<6x256xf32>
    %cst_401 = arith.constant 1.000000e+00 : f32
    %373 = vector.broadcast %cst_401 : f32 to vector<6x256xf32>
    %374 = arith.addf %373, %372 : vector<6x256xf32>
    %375 = tpu.reciprocal %374 {approx = true} : vector<6x256xf32> -> vector<6x256xf32>
    %376 = arith.mulf %374, %375 : vector<6x256xf32>
    %cst_402 = arith.constant 2.000000e+00 : f32
    %377 = vector.broadcast %cst_402 : f32 to vector<6x256xf32>
    %378 = arith.subf %377, %376 : vector<6x256xf32>
    %379 = arith.mulf %375, %378 : vector<6x256xf32>
    %380 = arith.mulf %374, %379 : vector<6x256xf32>
    %cst_403 = arith.constant 2.000000e+00 : f32
    %381 = vector.broadcast %cst_403 : f32 to vector<6x256xf32>
    %382 = arith.subf %381, %380 : vector<6x256xf32>
    %383 = arith.mulf %379, %382 : vector<6x256xf32>
    %cst_404 = arith.constant 0.000000e+00 : f32
    %384 = vector.broadcast %cst_404 : f32 to vector<6x256xf32>
    %385 = arith.cmpf oge, %368, %384 : vector<6x256xf32>
    %cst_405 = arith.constant 1.000000e+00 : f32
    %386 = vector.broadcast %cst_405 : f32 to vector<6x256xf32>
    %387 = arith.subf %386, %383 : vector<6x256xf32>
    %388 = arith.select %385, %383, %387 : vector<6x256xi1>, vector<6x256xf32>
    %c0_406 = arith.constant 0 : index
    %c0_407 = arith.constant 0 : index
    %c0_408 = arith.constant 0 : index
    %389 = vector.load %arg20[%c0_406, %c0_407, %c0_408] : memref<1x6x256xf32, #tpu.memory_space<vmem>>, vector<1x6x256xf32>
    %390 = vector.shape_cast %389 : vector<1x6x256xf32> to vector<6x256xf32>
    %391 = vector.shape_cast %388 : vector<6x256xf32> to vector<1x6x256xf32>
    tpu.vector_store %arg20[%c0_406, %c0_407, %c0_408], %391 {strides = array<i32>} : memref<1x6x256xf32, #tpu.memory_space<vmem>>, vector<1x6x256xf32>,
    return
  }
  func.func @transform_0(%arg0: i32) -> (i32, i32, i32) {
    %c0_i32 = arith.constant 0 : i32
    %c0_i32_0 = arith.constant 0 : i32
    %c0_i32_1 = arith.constant 0 : i32
    return %arg0, %c0_i32, %c0_i32_0 : i32, i32, i32
  }
  func.func @transform_1(%arg0: i32) -> (i32, i32, i32) {
    %c0_i32 = arith.constant 0 : i32
    %c0_i32_0 = arith.constant 0 : i32
    %c0_i32_1 = arith.constant 0 : i32
    %c0_i32_2 = arith.constant 0 : i32
    return %c0_i32, %c0_i32_0, %c0_i32_1 : i32, i32, i32
  }
  func.func @transform_2(%arg0: i32) -> (i32, i32) {
    %c0_i32 = arith.constant 0 : i32
    %c0_i32_0 = arith.constant 0 : i32
    %c0_i32_1 = arith.constant 0 : i32
    return %c0_i32, %c0_i32_0 : i32, i32
  }
  func.func @transform_3(%arg0: i32) -> (i32, i32) {
    %c0_i32 = arith.constant 0 : i32
    %c0_i32_0 = arith.constant 0 : i32
    %c0_i32_1 = arith.constant 0 : i32
    return %c0_i32, %c0_i32_0 : i32, i32
  }
  func.func @transform_4(%arg0: i32) -> (i32, i32, i32) {
    %c0_i32 = arith.constant 0 : i32
    %c0_i32_0 = arith.constant 0 : i32
    %c0_i32_1 = arith.constant 0 : i32
    %c0_i32_2 = arith.constant 0 : i32
    return %c0_i32, %c0_i32_0, %c0_i32_1 : i32, i32, i32
  }
  func.func @transform_5(%arg0: i32) -> (i32, i32) {
    %c0_i32 = arith.constant 0 : i32
    %c0_i32_0 = arith.constant 0 : i32
    %c0_i32_1 = arith.constant 0 : i32
    return %c0_i32, %c0_i32_0 : i32, i32
  }
  func.func @transform_6(%arg0: i32) -> (i32, i32) {
    %c0_i32 = arith.constant 0 : i32
    %c0_i32_0 = arith.constant 0 : i32
    %c0_i32_1 = arith.constant 0 : i32
    return %c0_i32, %c0_i32_0 : i32, i32
  }
  func.func @transform_7(%arg0: i32) -> (i32, i32, i32) {
    %c0_i32 = arith.constant 0 : i32
    %c0_i32_0 = arith.constant 0 : i32
    %c0_i32_1 = arith.constant 0 : i32
    %c0_i32_2 = arith.constant 0 : i32
    return %c0_i32, %c0_i32_0, %c0_i32_1 : i32, i32, i32
  }
  func.func @transform_8(%arg0: i32) -> (i32, i32) {
    %c0_i32 = arith.constant 0 : i32
    %c0_i32_0 = arith.constant 0 : i32
    %c0_i32_1 = arith.constant 0 : i32
    return %c0_i32, %c0_i32_0 : i32, i32
  }
  func.func @transform_9(%arg0: i32) -> (i32, i32) {
    %c0_i32 = arith.constant 0 : i32
    %c0_i32_0 = arith.constant 0 : i32
    %c0_i32_1 = arith.constant 0 : i32
    return %c0_i32, %c0_i32_0 : i32, i32
  }
  func.func @transform_10(%arg0: i32) -> (i32, i32, i32) {
    %c0_i32 = arith.constant 0 : i32
    %c0_i32_0 = arith.constant 0 : i32
    %c0_i32_1 = arith.constant 0 : i32
    %c0_i32_2 = arith.constant 0 : i32
    return %c0_i32, %c0_i32_0, %c0_i32_1 : i32, i32, i32
  }
  func.func @transform_11(%arg0: i32) -> (i32, i32) {
    %c0_i32 = arith.constant 0 : i32
    %c0_i32_0 = arith.constant 0 : i32
    %c0_i32_1 = arith.constant 0 : i32
    return %c0_i32, %c0_i32_0 : i32, i32
  }
  func.func @transform_12(%arg0: i32) -> (i32, i32) {
    %c0_i32 = arith.constant 0 : i32
    %c0_i32_0 = arith.constant 0 : i32
    %c0_i32_1 = arith.constant 0 : i32
    return %c0_i32, %c0_i32_0 : i32, i32
  }
  func.func @transform_13(%arg0: i32) -> (i32, i32, i32) {
    %c0_i32 = arith.constant 0 : i32
    %c0_i32_0 = arith.constant 0 : i32
    %c0_i32_1 = arith.constant 0 : i32
    %c0_i32_2 = arith.constant 0 : i32
    return %c0_i32, %c0_i32_0, %c0_i32_1 : i32, i32, i32
  }
  func.func @transform_14(%arg0: i32) -> (i32, i32) {
    %c0_i32 = arith.constant 0 : i32
    %c0_i32_0 = arith.constant 0 : i32
    %c0_i32_1 = arith.constant 0 : i32
    return %c0_i32, %c0_i32_0 : i32, i32
  }
  func.func @transform_15(%arg0: i32) -> (i32, i32) {
    %c0_i32 = arith.constant 0 : i32
    %c0_i32_0 = arith.constant 0 : i32
    %c0_i32_1 = arith.constant 0 : i32
    return %c0_i32, %c0_i32_0 : i32, i32
  }
  func.func @transform_16(%arg0: i32) -> (i32, i32, i32) {
    %c0_i32 = arith.constant 0 : i32
    %c0_i32_0 = arith.constant 0 : i32
    %c0_i32_1 = arith.constant 0 : i32
    %c0_i32_2 = arith.constant 0 : i32
    return %c0_i32, %c0_i32_0, %c0_i32_1 : i32, i32, i32
  }
  func.func @transform_17(%arg0: i32) -> (i32, i32) {
    %c0_i32 = arith.constant 0 : i32
    %c0_i32_0 = arith.constant 0 : i32
    %c0_i32_1 = arith.constant 0 : i32
    return %c0_i32, %c0_i32_0 : i32, i32
  }
  func.func @transform_18(%arg0: i32) -> (i32, i32) {
    %c0_i32 = arith.constant 0 : i32
    %c0_i32_0 = arith.constant 0 : i32
    %c0_i32_1 = arith.constant 0 : i32
    return %c0_i32, %c0_i32_0 : i32, i32
  }
  func.func @transform_19(%arg0: i32) -> (i32, i32, i32) {
    %c0_i32 = arith.constant 0 : i32
    %c0_i32_0 = arith.constant 0 : i32
    %c0_i32_1 = arith.constant 0 : i32
    return %arg0, %c0_i32, %c0_i32_0 : i32, i32, i32
  }
}

</mosaic_0001>

<bundles_post_ra>
// kernel: autoencoder_forward.1
= control target key start
LH: loop header
LB: loop body
LE: loop exit
PB: predicated region body
PF: predicated region fallthrough
CT: control target
= control target key end

     0   :  { %vm264_vm0 = vcmask 1045504   ;;  %vm155_vm1 = vcmask 48128   ;;  %vm62_vm2 = vcmask 261120   ;;  %vm3993_vm3 = vcmask 259072   ;;  %s17504_s1 = inlined_call_operand.vmem [shape: f32[9,6,32], index: 1, kind: input, shape index: {}]   ;;  %s17505_s0 = inlined_call_operand.vmem [shape: f32[1,324,6], index: 0, kind: input, shape index: {}]   ;;  %s17506_s3 = inlined_call_operand.vmem [shape: f32[78,267], index: 3, kind: input, shape index: {}]   ;;  %s17507_s2 = inlined_call_operand.vmem [shape: f32[1,32], index: 2, kind: input, shape index: {}]   ;;  %s17508_s4 = inlined_call_operand.vmem [shape: f32[9,32,16], index: 4, kind: input, shape index: {}]   ;;  %s17509_s5 = inlined_call_operand.vmem [shape: f32[1,16], index: 5, kind: input, shape index: {}]   ;;  %s17510_s6 = inlined_call_operand.vmem [shape: f32[22,67], index: 6, kind: input, shape index: {}]   ;;  %s17511_s7 = inlined_call_operand.vmem [shape: f32[9,16,8], index: 7, kind: input, shape index: {}]   ;;  %s17512_s8 = inlined_call_operand.vmem [shape: f32[1,8], index: 8, kind: input, shape index: {}]   ;;  %s17513_s9 = inlined_call_operand.vmem [shape: f32[6,15], index: 9, kind: input, shape index: {}]   ;;  %s17514_s10 = inlined_call_operand.vmem [shape: f32[9,8,16], index: 10, kind: input, shape index: {}]   ;;  %s17515_s11 = inlined_call_operand.vmem [shape: f32[1,16], index: 11, kind: input, shape index: {}]   ;;  %s17516_s12 = inlined_call_operand.vmem [shape: f32[22,24], index: 12, kind: input, shape index: {}]   ;;  %s17517_s13 = inlined_call_operand.vmem [shape: f32[9,16,32], index: 13, kind: input, shape index: {}]   ;;  %s17518_s15 = inlined_call_operand.vmem [shape: f32[78,88], index: 15, kind: input, shape index: {}]   ;;  %s17519_s14 = inlined_call_operand.vmem [shape: f32[1,32], index: 14, kind: input, shape index: {}]   ;;  %s17520_s16 = inlined_call_operand.vmem [shape: f32[9,32,6], index: 16, kind: input, shape index: {}]   ;;  %s17521_s18 = inlined_call_operand.vmem [shape: f32[312,256], index: 18, kind: input, shape index: {}]   ;;  %s17522_s17 = inlined_call_operand.vmem [shape: f32[1,6], index: 17, kind: input, shape index: {}]   ;;  %s17523_s19 = inlined_call_operand.vmem [shape: f32[1,6,256], index: 19, kind: output, shape index: {}]  }
   0x1   :  { %17527 = sst [smem:[#allocation10_spill]] %s17504_s1  ;;  %vm4294_vm4 = vcmask 1042432   ;;  %vm14483_vm5 = vmmov 1   ;;  %vm4263_vm7 = vcmask 89088   ;;  %vm64_vm8 = vcmask 256000  }
   0x2   :  { %17528 = sst [smem:[#allocation11_spill]] %s17505_s0  ;;  %s17531_s20 = sld [smem:[#allocation10_spill]]  ;;  %vm13696_vm6 = vmpackc.low %vm4294_vm4, %vm14483_vm5  ;;  %vm14486_vm9 = vmmov 0   ;;  %vm6074_vm10 = vcmask 130048   ;;  %vm6084_vm11 = vcmask 128000   ;;  %vm6152_vm12 = vcmask 547840  }
   0x3   :  { %17529 = sst [smem:[#allocation12_spill]] %s17506_s3  ;;  %s17532_s22 = sld [smem:[#allocation11_spill]]  ;;  %vm68_vm13 = vcmask 129024   ;;  %vm7136_vm14 = vcmask 64512   ;;  %vm7139_vm15 = vcmask 62464  }
   0x4   :  { %17530 = sst [smem:[#allocation13_spill]] %s17507_s2  ;;  %s17533_s23 = sld [smem:[#allocation12_spill]] }
   0x5   :  { %s17534_s25 = sld [smem:[#allocation13_spill]] }
   0x8   :  { %v10827_v0 = vld [vmem:[%s17531_s20 + $0x8] sm:$0x3f]  ;;  %v116_v4 = vld [vmem:[%s17531_s20] sm:$0x3f]  ;;  %v14634_v11 = vld [vmem:[%s17531_s20 + $0x10] sm:$0x3f] }
   0x9   :  { %v117_v1 = vld [vmem:[%s17532_s22 + $0x1] sm:$0xff]  ;;  %v118_v2 = vld [vmem:[%s17532_s22 + $0x9] sm:$0xff]  ;;  %12361 = vmatprep.subr.msk.mxu0 %vm264_vm0, %v10827_v0  ;;  %v119_v3 = vld [vmem:[%s17532_s22 + $0x11] sm:$0xff] }
   0xa   :  { %12363 = vmatprep.mubr.msk.f32.mxu0 %vm155_vm1, %v117_v1  ;;  %12362 = vmatpush3.msk.msra.mxu0 %vm264_vm0, %v10827_v0  ;;  %v120_v5 = vld [vmem:[%s17532_s22 + $0x19] sm:$0xff]  ;;  %v121_v6 = vld [vmem:[%s17532_s22 + $0x21] sm:$0xff]  ;;  %v122_v7 = vld [vmem:[%s17532_s22 + $0x29] sm:$0xff] }
   0xb   :  { %12364 = vmatmul.mubr.msk.f32.vlgmr.msra.gmra.mrb[0].mxu0 %vm155_vm1, %v118_v2  ;;  %12417 = vmatprep.subr.msk.mxu0 %vm264_vm0, %v116_v4  ;;  %v123_v8 = vld [vmem:[%s17532_s22 + $0x31] sm:$0xff]  ;;  %v124_v9 = vld [vmem:[%s17532_s22 + $0x39] sm:$0xff]  ;;  %v125_v10 = vld [vmem:[%s17532_s22 + $0x41] sm:$0xff] }
   0xc   :  { %12366 = vmatprep.mubr.msk.f32.mxu0 %vm155_vm1, %v119_v3  ;;  %12418 = vmatpush3.msk.msra.mxu0 %vm264_vm0, %v116_v4  ;;  %v126_v12 = vld [vmem:[%s17532_s22 + $0x49] sm:$0xff]  ;;  %v127_v13 = vld [vmem:[%s17532_s22 + $0x51] sm:$0xff]  ;;  %v128_v14 = vld [vmem:[%s17532_s22 + $0x59] sm:$0xff] }
   0xd   :  { %12473 = vmatprep.subr.msk.mxu0 %vm264_vm0, %v14634_v11  ;;  %v129_v15 = vld [vmem:[%s17532_s22 + $0x61] sm:$0xff]  ;;  %v130_v16 = vld [vmem:[%s17532_s22 + $0x69] sm:$0xff]  ;;  %v131_v17 = vld [vmem:[%s17532_s22 + $0x71] sm:$0xff] }
   0xe   :  { %v132_v18 = vld [vmem:[%s17532_s22 + $0x79] sm:$0xff]  ;;  %v133_v19 = vld [vmem:[%s17532_s22 + $0x81] sm:$0xff]  ;;  %v134_v20 = vld [vmem:[%s17532_s22 + $0x89] sm:$0xff] }
   0xf   :  { %12367 = vmatmul.mubr.msk.f32.gmra.mrb[2].mxu0 %vm155_vm1, %v120_v5  ;;  %v135_v21 = vld [vmem:[%s17532_s22 + $0x91] sm:$0xff]  ;;  %v136_v22 = vld [vmem:[%s17532_s22 + $0x99] sm:$0xff]  ;;  %v137_v23 = vld [vmem:[%s17532_s22 + $0xa1] sm:$0xff] }
  0x10   :  { %12369 = vmatprep.mubr.msk.f32.mxu0 %vm155_vm1, %v121_v6  ;;  %v138_v24 = vld [vmem:[%s17532_s22 + $0xa9] sm:$0xff]  ;;  %v139_v25 = vld [vmem:[%s17532_s22 + $0xb1] sm:$0xff]  ;;  %v140_v26 = vld [vmem:[%s17532_s22 + $0xb9] sm:$0xff] }
  0x11   :  { %v141_v27 = vld [vmem:[%s17532_s22 + $0xc1] sm:$0xff]  ;;  %v142_v28 = vld [vmem:[%s17532_s22 + $0xc9] sm:$0xff]  ;;  %v143_v29 = vld [vmem:[%s17532_s22 + $0xd1] sm:$0xff] }
  0x12   :  { %v144_v30 = vld [vmem:[%s17532_s22 + $0xd9] sm:$0xff]  ;;  %v145_v31 = vld [vmem:[%s17532_s22 + $0xe1] sm:$0xff]  ;;  %v146_v32 = vld [vmem:[%s17532_s22 + $0xe9] sm:$0xff] }
  0x13   :  { %12370 = vmatmul.mubr.msk.f32.gmra.mrb[4].mxu0 %vm155_vm1, %v122_v7  ;;  %v147_v33 = vld [vmem:[%s17532_s22 + $0xf1] sm:$0xff]  ;;  %v148_v34 = vld [vmem:[%s17532_s22 + $0xf9] sm:$0xff]  ;;  %v149_v35 = vld [vmem:[%s17532_s22 + $0x101] sm:$0xff] }
  0x14   :  { %12372 = vmatprep.mubr.msk.f32.mxu0 %vm155_vm1, %v123_v8  ;;  %v150_v36 = vld [vmem:[%s17532_s22 + $0x109] sm:$0xff]  ;;  %v151_v37 = vld [vmem:[%s17532_s22 + $0x111] sm:$0xff]  ;;  %v152_v38 = vld [vmem:[%s17532_s22 + $0x119] sm:$0x3f] }
  0x15   :  { %v80_v39 = vld [vmem:[%s17532_s22] sm:$0xff]  ;;  %v81_v40 = vld [vmem:[%s17532_s22 + $0x8] sm:$0xff]  ;;  %v82_v41 = vld [vmem:[%s17532_s22 + $0x10] sm:$0xff] }
  0x16   :  { %v14761_v42 = vld [vmem:[%s17531_s20 + $0x18] sm:$0x3f]  ;;  %v84_v44 = vld [vmem:[%s17532_s22 + $0x20] sm:$0xff]  ;;  %v85_v45 = vld [vmem:[%s17532_s22 + $0x28] sm:$0xff] }
  0x17   :  { %12373 = vmatmul.mubr.msk.f32.gmra.mrb[6].mxu0 %vm155_vm1, %v124_v9  ;;  %v83_v43 = vld [vmem:[%s17532_s22 + $0x18] sm:$0xff]  ;;  %v86_v46 = vld [vmem:[%s17532_s22 + $0x30] sm:$0xff]  ;;  %v88_v48 = vld [vmem:[%s17532_s22 + $0x40] sm:$0xff] }
  0x18   :  { %12375 = vmatprep.mubr.msk.f32.mxu0 %vm155_vm1, %v125_v10  ;;  %v87_v47 = vld [vmem:[%s17532_s22 + $0x38] sm:$0xff]  ;;  %v89_v49 = vld [vmem:[%s17532_s22 + $0x48] sm:$0xff]  ;;  %v90_v50 = vld [vmem:[%s17532_s22 + $0x50] sm:$0xff] }
  0x19   :  { %v91_v51 = vld [vmem:[%s17532_s22 + $0x58] sm:$0xff]  ;;  %v92_v52 = vld [vmem:[%s17532_s22 + $0x60] sm:$0xff]  ;;  %v93_v53 = vld [vmem:[%s17532_s22 + $0x68] sm:$0xff] }
  0x1a   :  { %v94_v54 = vld [vmem:[%s17532_s22 + $0x70] sm:$0xff]  ;;  %v95_v55 = vld [vmem:[%s17532_s22 + $0x78] sm:$0xff]  ;;  %v96_v56 = vld [vmem:[%s17532_s22 + $0x80] sm:$0xff] }
  0x1b   :  { %12376 = vmatmul.mubr.msk.f32.gmra.mrb[8].mxu0 %vm155_vm1, %v126_v12  ;;  %v97_v57 = vld [vmem:[%s17532_s22 + $0x88] sm:$0xff]  ;;  %v98_v58 = vld [vmem:[%s17532_s22 + $0x90] sm:$0xff]  ;;  %v99_v59 = vld [vmem:[%s17532_s22 + $0x98] sm:$0xff] }
  0x1c   :  { %12378 = vmatprep.mubr.msk.f32.mxu0 %vm155_vm1, %v127_v13  ;;  %v100_v60 = vld [vmem:[%s17532_s22 + $0xa0] sm:$0xff]  ;;  %v101_v61 = vld [vmem:[%s17532_s22 + $0xa8] sm:$0xff]  ;;  %v102_v62 = vld [vmem:[%s17532_s22 + $0xb0] sm:$0xff] }
  0x1d   :  { %v103_v63 = vld [vmem:[%s17532_s22 + $0xb8] sm:$0xff]  ;;  %v104_v0 = vld [vmem:[%s17532_s22 + $0xc0] sm:$0xff]  ;;  %v105_v1 = vld [vmem:[%s17532_s22 + $0xc8] sm:$0xff] }
  0x1e   :  { %v106_v2 = vld [vmem:[%s17532_s22 + $0xd0] sm:$0xff]  ;;  %v107_v3 = vld [vmem:[%s17532_s22 + $0xd8] sm:$0xff]  ;;  %v108_v4 = vld [vmem:[%s17532_s22 + $0xe0] sm:$0xff] }
  0x1f   :  { %12379 = vmatmul.mubr.msk.f32.gmra.mrb[10].mxu0 %vm155_vm1, %v128_v14  ;;  %v109_v5 = vld [vmem:[%s17532_s22 + $0xe8] sm:$0xff]  ;;  %v110_v6 = vld [vmem:[%s17532_s22 + $0xf0] sm:$0xff]  ;;  %v111_v7 = vld [vmem:[%s17532_s22 + $0xf8] sm:$0xff] }
  0x20   :  { %12381 = vmatprep.mubr.msk.f32.mxu0 %vm155_vm1, %v129_v15  ;;  %v112_v8 = vld [vmem:[%s17532_s22 + $0x100] sm:$0xff]  ;;  %v113_v9 = vld [vmem:[%s17532_s22 + $0x108] sm:$0xff]  ;;  %v114_v10 = vld [vmem:[%s17532_s22 + $0x110] sm:$0xff] }
  0x21   :  { %v869_v12 = vld [vmem:[%s17532_s22 + $0x2] sm:$0xff]  ;;  %v870_v13 = vld [vmem:[%s17532_s22 + $0xa] sm:$0xff]  ;;  %v14911_v14 = vld [vmem:[%s17532_s22 + $0x12] sm:$0xff] }
  0x22   :  { %v14916_v15 = vld [vmem:[%s17531_s20 + $0x20] sm:$0x3f] }
  0x23   :  { %12382 = vmatmul.mubr.msk.f32.gmra.mrb[12].mxu0 %vm155_vm1, %v130_v16  ;;  %v14924_v16 = vld [vmem:[%s17532_s22 + $0x1a] sm:$0xff] }
  0x24   :  { %12384 = vmatprep.mubr.msk.f32.mxu0 %vm155_vm1, %v131_v17  ;;  %v14931_v17 = vld [vmem:[%s17532_s22 + $0x22] sm:$0xff] }
  0x27   :  { %12385 = vmatmul.mubr.msk.f32.gmra.mrb[14].mxu0 %vm155_vm1, %v132_v18  ;;  %v14942_v18 = vld [vmem:[%s17532_s22 + $0x2a] sm:$0xff] }
  0x28   :  { %12387 = vmatprep.mubr.msk.f32.mxu0 %vm155_vm1, %v133_v19  ;;  %v14947_v19 = vld [vmem:[%s17532_s22 + $0x32] sm:$0xff] }
  0x2b   :  { %12388 = vmatmul.mubr.msk.f32.gmra.mrb[16].mxu0 %vm155_vm1, %v134_v20  ;;  %v14956_v20 = vld [vmem:[%s17532_s22 + $0x3a] sm:$0xff] }
  0x2c   :  { %12390 = vmatprep.mubr.msk.f32.mxu0 %vm155_vm1, %v135_v21  ;;  %v14961_v21 = vld [vmem:[%s17532_s22 + $0x42] sm:$0xff] }
  0x2f   :  { %12391 = vmatmul.mubr.msk.f32.gmra.mrb[18].mxu0 %vm155_vm1, %v136_v22  ;;  %v14970_v22 = vld [vmem:[%s17532_s22 + $0x4a] sm:$0xff] }
  0x30   :  { %12393 = vmatprep.mubr.msk.f32.mxu0 %vm155_vm1, %v137_v23  ;;  %v14975_v23 = vld [vmem:[%s17532_s22 + $0x52] sm:$0xff] }
  0x33   :  { %12394 = vmatmul.mubr.msk.f32.gmra.mrb[20].mxu0 %vm155_vm1, %v138_v24  ;;  %v880_v24 = vld [vmem:[%s17532_s22 + $0x5a] sm:$0xff] }
  0x34   :  { %12396 = vmatprep.mubr.msk.f32.mxu0 %vm155_vm1, %v139_v25  ;;  %v881_v25 = vld [vmem:[%s17532_s22 + $0x62] sm:$0xff] }
  0x37   :  { %12397 = vmatmul.mubr.msk.f32.gmra.mrb[22].mxu0 %vm155_vm1, %v140_v26  ;;  %v882_v26 = vld [vmem:[%s17532_s22 + $0x6a] sm:$0xff] }
  0x38   :  { %12399 = vmatprep.mubr.msk.f32.mxu0 %vm155_vm1, %v141_v27  ;;  %v883_v27 = vld [vmem:[%s17532_s22 + $0x72] sm:$0xff] }
  0x3b   :  { %12400 = vmatmul.mubr.msk.f32.gmra.mrb[24].mxu0 %vm155_vm1, %v142_v28  ;;  %v884_v28 = vld [vmem:[%s17532_s22 + $0x7a] sm:$0xff] }
  0x3c   :  { %12402 = vmatprep.mubr.msk.f32.mxu0 %vm155_vm1, %v143_v29  ;;  %v885_v29 = vld [vmem:[%s17532_s22 + $0x82] sm:$0xff] }
  0x3f   :  { %12403 = vmatmul.mubr.msk.f32.gmra.mrb[26].mxu0 %vm155_vm1, %v144_v30  ;;  %v886_v30 = vld [vmem:[%s17532_s22 + $0x8a] sm:$0xff] }
  0x40   :  { %12405 = vmatprep.mubr.msk.f32.mxu0 %vm155_vm1, %v145_v31  ;;  %v887_v31 = vld [vmem:[%s17532_s22 + $0x92] sm:$0xff] }
  0x43   :  { %12406 = vmatmul.mubr.msk.f32.gmra.mrb[28].mxu0 %vm155_vm1, %v146_v32  ;;  %v888_v32 = vld [vmem:[%s17532_s22 + $0x9a] sm:$0xff] }
  0x44   :  { %12408 = vmatprep.mubr.msk.f32.mxu0 %vm155_vm1, %v147_v33  ;;  %v889_v33 = vld [vmem:[%s17532_s22 + $0xa2] sm:$0xff] }
  0x47   :  { %12409 = vmatmul.mubr.msk.f32.gmra.mrb[30].mxu0 %vm155_vm1, %v148_v34  ;;  %v890_v34 = vld [vmem:[%s17532_s22 + $0xaa] sm:$0xff] }
  0x48   :  { %12411 = vmatprep.mubr.msk.f32.mxu0 %vm155_vm1, %v149_v35  ;;  %v891_v35 = vld [vmem:[%s17532_s22 + $0xb2] sm:$0xff] }
  0x4b   :  { %12412 = vmatmul.mubr.msk.f32.gmra.mrb[32].mxu0 %vm155_vm1, %v150_v36  ;;  %v892_v36 = vld [vmem:[%s17532_s22 + $0xba] sm:$0xff] }
  0x4c   :  { %12414 = vmatprep.mubr.msk.f32.mxu0 %vm155_vm1, %v151_v37  ;;  %v893_v37 = vld [vmem:[%s17532_s22 + $0xc2] sm:$0xff] }
  0x4f   :  { %12415 = vmatmul.mubr.msk.f32.gmra.mrb[34].mxu0 %vm155_vm1, %v152_v38  ;;  %v894_v38 = vld [vmem:[%s17532_s22 + $0xca] sm:$0xff] }
  0x50   :  { %12419 = vmatprep.mubr.msk.f32.mxu0 %vm155_vm1, %v80_v39  ;;  %v895_v39 = vld [vmem:[%s17532_s22 + $0xd2] sm:$0xff] }
  0x53   :  { %12420 = vmatmul.mubr.msk.f32.vlgmr.msra.gmra.mrb[0].mxu0 %vm155_vm1, %v81_v40  ;;  %v896_v40 = vld [vmem:[%s17532_s22 + $0xda] sm:$0xff] }
  0x54   :  { %12422 = vmatprep.mubr.msk.f32.mxu0 %vm155_vm1, %v82_v41  ;;  %12474 = vmatpush3.msk.msra.mxu0 %vm264_vm0, %v14634_v11  ;;  %v115_v11 = vld [vmem:[%s17532_s22 + $0x118] sm:$0x3f]  ;;  %v897_v41 = vld [vmem:[%s17532_s22 + $0xe2] sm:$0xff] }
  0x55   :  { %12529 = vmatprep.subr.msk.mxu0 %vm264_vm0, %v14761_v42 }
  0x57   :  { %12423 = vmatmul.mubr.msk.f32.gmra.mrb[2].mxu0 %vm155_vm1, %v83_v43  ;;  %v899_v43 = vld [vmem:[%s17532_s22 + $0xf2] sm:$0xff] }
  0x58   :  { %12425 = vmatprep.mubr.msk.f32.mxu0 %vm155_vm1, %v84_v44  ;;  %v900_v44 = vld [vmem:[%s17532_s22 + $0xfa] sm:$0xff] }
  0x5b   :  { %12426 = vmatmul.mubr.msk.f32.gmra.mrb[4].mxu0 %vm155_vm1, %v85_v45  ;;  %v901_v45 = vld [vmem:[%s17532_s22 + $0x102] sm:$0xff] }
  0x5c   :  { %12428 = vmatprep.mubr.msk.f32.mxu0 %vm155_vm1, %v86_v46  ;;  %v902_v46 = vld [vmem:[%s17532_s22 + $0x10a] sm:$0xff] }
  0x5f   :  { %12429 = vmatmul.mubr.msk.f32.gmra.mrb[6].mxu0 %vm155_vm1, %v87_v47  ;;  %v903_v47 = vld [vmem:[%s17532_s22 + $0x112] sm:$0xff] }
  0x60   :  { %12431 = vmatprep.mubr.msk.f32.mxu0 %vm155_vm1, %v88_v48  ;;  %v904_v48 = vld [vmem:[%s17532_s22 + $0x11a] sm:$0x3f] }
  0x63   :  { %12432 = vmatmul.mubr.msk.f32.gmra.mrb[8].mxu0 %vm155_vm1, %v89_v49  ;;  %v11016_v49 = vld [vmem:[%s17531_s20 + $0x28] sm:$0x3f] }
  0x64   :  { %12434 = vmatprep.mubr.msk.f32.mxu0 %vm155_vm1, %v90_v50  ;;  %v1332_v50 = vld [vmem:[%s17532_s22 + $0x11a] sm:$0xff] }
  0x67   :  { %12435 = vmatmul.mubr.msk.f32.gmra.mrb[10].mxu0 %vm155_vm1, %v91_v51  ;;  %v1333_v51 = vld [vmem:[%s17532_s22 + $0x122] sm:$0xff] }
  0x68   :  { %12437 = vmatprep.mubr.msk.f32.mxu0 %vm155_vm1, %v92_v52  ;;  %v1334_v52 = vld [vmem:[%s17532_s22 + $0x12a] sm:$0x3f] }
  0x6b   :  { %12438 = vmatmul.mubr.msk.f32.gmra.mrb[12].mxu0 %vm155_vm1, %v93_v53  ;;  %v1729_v53 = vld [vmem:[%s17532_s22 + $0x13] sm:$0xff] }
  0x6c   :  { %12440 = vmatprep.mubr.msk.f32.mxu0 %vm155_vm1, %v94_v54  ;;  %v1730_v54 = vld [vmem:[%s17532_s22 + $0x1b] sm:$0xff] }
  0x6f   :  { %12441 = vmatmul.mubr.msk.f32.gmra.mrb[14].mxu0 %vm155_vm1, %v95_v55  ;;  %v1731_v55 = vld [vmem:[%s17532_s22 + $0x23] sm:$0xff] }
  0x70   :  { %12443 = vmatprep.mubr.msk.f32.mxu0 %vm155_vm1, %v96_v56  ;;  %v15154_v56 = vld [vmem:[%s17531_s20 + $0x30] sm:$0x3f] }
  0x73   :  { %12444 = vmatmul.mubr.msk.f32.gmra.mrb[16].mxu0 %vm155_vm1, %v97_v57  ;;  %v1732_v57 = vld [vmem:[%s17532_s22 + $0x2b] sm:$0xff] }
  0x74   :  { %12446 = vmatprep.mubr.msk.f32.mxu0 %vm155_vm1, %v98_v58  ;;  %v1733_v58 = vld [vmem:[%s17532_s22 + $0x33] sm:$0xff] }
  0x77   :  { %12447 = vmatmul.mubr.msk.f32.gmra.mrb[18].mxu0 %vm155_vm1, %v99_v59  ;;  %v1734_v59 = vld [vmem:[%s17532_s22 + $0x3b] sm:$0xff] }
  0x78   :  { %12449 = vmatprep.mubr.msk.f32.mxu0 %vm155_vm1, %v100_v60  ;;  %v1735_v60 = vld [vmem:[%s17532_s22 + $0x43] sm:$0xff] }
  0x7b   :  { %12450 = vmatmul.mubr.msk.f32.gmra.mrb[20].mxu0 %vm155_vm1, %v101_v61  ;;  %v1736_v61 = vld [vmem:[%s17532_s22 + $0x4b] sm:$0xff] }
  0x7c   :  { %12452 = vmatprep.mubr.msk.f32.mxu0 %vm155_vm1, %v102_v62  ;;  %v1737_v62 = vld [vmem:[%s17532_s22 + $0x53] sm:$0xff] }
  0x7f   :  { %12453 = vmatmul.mubr.msk.f32.gmra.mrb[22].mxu0 %vm155_vm1, %v103_v63  ;;  %v1738_v63 = vld [vmem:[%s17532_s22 + $0x5b] sm:$0xff] }
  0x80   :  { %12455 = vmatprep.mubr.msk.f32.mxu0 %vm155_vm1, %v104_v0  ;;  %v1739_v0 = vld [vmem:[%s17532_s22 + $0x63] sm:$0xff] }
  0x83   :  { %12456 = vmatmul.mubr.msk.f32.gmra.mrb[24].mxu0 %vm155_vm1, %v105_v1  ;;  %v1740_v1 = vld [vmem:[%s17532_s22 + $0x6b] sm:$0xff] }
  0x84   :  { %12458 = vmatprep.mubr.msk.f32.mxu0 %vm155_vm1, %v106_v2  ;;  %v1741_v2 = vld [vmem:[%s17532_s22 + $0x73] sm:$0xff] }
  0x87   :  { %12459 = vmatmul.mubr.msk.f32.gmra.mrb[26].mxu0 %vm155_vm1, %v107_v3  ;;  %v1742_v3 = vld [vmem:[%s17532_s22 + $0x7b] sm:$0xff] }
  0x88   :  { %12461 = vmatprep.mubr.msk.f32.mxu0 %vm155_vm1, %v108_v4  ;;  %v1743_v4 = vld [vmem:[%s17532_s22 + $0x83] sm:$0xff] }
  0x8b   :  { %12462 = vmatmul.mubr.msk.f32.gmra.mrb[28].mxu0 %vm155_vm1, %v109_v5  ;;  %v1744_v5 = vld [vmem:[%s17532_s22 + $0x8b] sm:$0xff] }
  0x8c   :  { %12464 = vmatprep.mubr.msk.f32.mxu0 %vm155_vm1, %v110_v6  ;;  %v1745_v6 = vld [vmem:[%s17532_s22 + $0x93] sm:$0xff] }
  0x8f   :  { %12465 = vmatmul.mubr.msk.f32.gmra.mrb[30].mxu0 %vm155_vm1, %v111_v7  ;;  %v1746_v7 = vld [vmem:[%s17532_s22 + $0x9b] sm:$0xff] }
  0x90   :  { %12467 = vmatprep.mubr.msk.f32.mxu0 %vm155_vm1, %v112_v8  ;;  %v1747_v8 = vld [vmem:[%s17532_s22 + $0xa3] sm:$0xff] }
  0x93   :  { %12468 = vmatmul.mubr.msk.f32.gmra.mrb[32].mxu0 %vm155_vm1, %v113_v9  ;;  %v1748_v9 = vld [vmem:[%s17532_s22 + $0xab] sm:$0xff] }
  0x94   :  { %12470 = vmatprep.mubr.msk.f32.mxu0 %vm155_vm1, %v114_v10  ;;  %v1749_v10 = vld [vmem:[%s17532_s22 + $0xb3] sm:$0xff] }
  0x97   :  { %12471 = vmatmul.mubr.msk.f32.gmra.mrb[34].mxu0 %vm155_vm1, %v115_v11  ;;  %v1750_v11 = vld [vmem:[%s17532_s22 + $0xbb] sm:$0xff] }
  0x98   :  { %12475 = vmatprep.mubr.msk.f32.mxu0 %vm155_vm1, %v869_v12  ;;  %v1751_v12 = vld [vmem:[%s17532_s22 + $0xc3] sm:$0xff] }
  0x9b   :  { %12476 = vmatmul.mubr.msk.f32.vlgmr.msra.gmra.mrb[0].mxu0 %vm155_vm1, %v870_v13  ;;  %v1752_v13 = vld [vmem:[%s17532_s22 + $0xcb] sm:$0xff] }
  0x9c   :  { %12478 = vmatprep.mubr.msk.f32.mxu0 %vm155_vm1, %v14911_v14  ;;  %12530 = vmatpush3.msk.msra.mxu0 %vm264_vm0, %v14761_v42  ;;  %v898_v42 = vld [vmem:[%s17532_s22 + $0xea] sm:$0xff] }
  0x9d   :  { %12585 = vmatprep.subr.msk.mxu0 %vm264_vm0, %v14916_v15 }
  0x9f   :  { %12479 = vmatmul.mubr.msk.f32.gmra.mrb[2].mxu0 %vm155_vm1, %v14924_v16 }
  0xa0   :  { %12481 = vmatprep.mubr.msk.f32.mxu0 %vm155_vm1, %v14931_v17 }
  0xa3   :  { %12482 = vmatmul.mubr.msk.f32.gmra.mrb[4].mxu0 %vm155_vm1, %v14942_v18 }
  0xa4   :  { %12484 = vmatprep.mubr.msk.f32.mxu0 %vm155_vm1, %v14947_v19 }
  0xa7   :  { %12485 = vmatmul.mubr.msk.f32.gmra.mrb[6].mxu0 %vm155_vm1, %v14956_v20 }
  0xa8   :  { %12487 = vmatprep.mubr.msk.f32.mxu0 %vm155_vm1, %v14961_v21 }
  0xab   :  { %12488 = vmatmul.mubr.msk.f32.gmra.mrb[8].mxu0 %vm155_vm1, %v14970_v22 }
  0xac   :  { %12490 = vmatprep.mubr.msk.f32.mxu0 %vm155_vm1, %v14975_v23 }
  0xaf   :  { %12491 = vmatmul.mubr.msk.f32.gmra.mrb[10].mxu0 %vm155_vm1, %v880_v24 }
  0xb0   :  { %12493 = vmatprep.mubr.msk.f32.mxu0 %vm155_vm1, %v881_v25 }
  0xb3   :  { %12494 = vmatmul.mubr.msk.f32.gmra.mrb[12].mxu0 %vm155_vm1, %v882_v26 }
  0xb4   :  { %12496 = vmatprep.mubr.msk.f32.mxu0 %vm155_vm1, %v883_v27 }
  0xb7   :  { %12497 = vmatmul.mubr.msk.f32.gmra.mrb[14].mxu0 %vm155_vm1, %v884_v28 }
  0xb8   :  { %12499 = vmatprep.mubr.msk.f32.mxu0 %vm155_vm1, %v885_v29 }
  0xbb   :  { %12500 = vmatmul.mubr.msk.f32.gmra.mrb[16].mxu0 %vm155_vm1, %v886_v30 }
  0xbc   :  { %12502 = vmatprep.mubr.msk.f32.mxu0 %vm155_vm1, %v887_v31 }
  0xbf   :  { %12503 = vmatmul.mubr.msk.f32.gmra.mrb[18].mxu0 %vm155_vm1, %v888_v32 }
  0xc0   :  { %12505 = vmatprep.mubr.msk.f32.mxu0 %vm155_vm1, %v889_v33 }
  0xc3   :  { %12506 = vmatmul.mubr.msk.f32.gmra.mrb[20].mxu0 %vm155_vm1, %v890_v34 }
  0xc4   :  { %12508 = vmatprep.mubr.msk.f32.mxu0 %vm155_vm1, %v891_v35 }
  0xc7   :  { %12509 = vmatmul.mubr.msk.f32.gmra.mrb[22].mxu0 %vm155_vm1, %v892_v36 }
  0xc8   :  { %12511 = vmatprep.mubr.msk.f32.mxu0 %vm155_vm1, %v893_v37 }
  0xcb   :  { %12512 = vmatmul.mubr.msk.f32.gmra.mrb[24].mxu0 %vm155_vm1, %v894_v38 }
  0xcc   :  { %12514 = vmatprep.mubr.msk.f32.mxu0 %vm155_vm1, %v895_v39 }
  0xcf   :  { %12515 = vmatmul.mubr.msk.f32.gmra.mrb[26].mxu0 %vm155_vm1, %v896_v40 }
  0xd0   :  { %12517 = vmatprep.mubr.msk.f32.mxu0 %vm155_vm1, %v897_v41 }
  0xd3   :  { %12518 = vmatmul.mubr.msk.f32.gmra.mrb[28].mxu0 %vm155_vm1, %v898_v42 }
  0xd4   :  { %12520 = vmatprep.mubr.msk.f32.mxu0 %vm155_vm1, %v899_v43 }
  0xd7   :  { %12521 = vmatmul.mubr.msk.f32.gmra.mrb[30].mxu0 %vm155_vm1, %v900_v44 }
  0xd8   :  { %12523 = vmatprep.mubr.msk.f32.mxu0 %vm155_vm1, %v901_v45 }
  0xdb   :  { %12524 = vmatmul.mubr.msk.f32.gmra.mrb[32].mxu0 %vm155_vm1, %v902_v46 }
  0xdc   :  { %12526 = vmatprep.mubr.msk.f32.mxu0 %vm155_vm1, %v903_v47 }
  0xdf   :  { %12527 = vmatmul.mubr.msk.f32.gmra.mrb[34].mxu0 %vm155_vm1, %v904_v48  ;;  %v2180_v48 = vld [vmem:[%s17532_s22 + $0xbc] sm:$0xff] }
  0xe0   :  { %12531 = vmatprep.mubr.msk.f32.mxu0 %vm155_vm1, %v14911_v14  ;;  %v1753_v14 = vld [vmem:[%s17532_s22 + $0xd3] sm:$0xff] }
  0xe3   :  { %12532 = vmatmul.mubr.msk.f32.vlgmr.msra.gmra.mrb[0].mxu0 %vm155_vm1, %v14924_v16  ;;  %v1755_v16 = vld [vmem:[%s17532_s22 + $0xe3] sm:$0xff] }
  0xe4   :  { %12534 = vmatprep.mubr.msk.f32.mxu0 %vm155_vm1, %v14931_v17  ;;  %12586 = vmatpush3.msk.msra.mxu0 %vm264_vm0, %v14916_v15  ;;  %v1754_v15 = vld [vmem:[%s17532_s22 + $0xdb] sm:$0xff]  ;;  %v1756_v17 = vld [vmem:[%s17532_s22 + $0xeb] sm:$0xff] }
  0xe5   :  { %12641 = vmatprep.subr.msk.mxu0 %vm264_vm0, %v11016_v49 }
  0xe7   :  { %12535 = vmatmul.mubr.msk.f32.gmra.mrb[2].mxu0 %vm155_vm1, %v14942_v18  ;;  %v1757_v18 = vld [vmem:[%s17532_s22 + $0xf3] sm:$0xff] }
  0xe8   :  { %12537 = vmatprep.mubr.msk.f32.mxu0 %vm155_vm1, %v14947_v19  ;;  %v1758_v19 = vld [vmem:[%s17532_s22 + $0xfb] sm:$0xff] }
  0xeb   :  { %12538 = vmatmul.mubr.msk.f32.gmra.mrb[4].mxu0 %vm155_vm1, %v14956_v20  ;;  %v1759_v20 = vld [vmem:[%s17532_s22 + $0x103] sm:$0xff] }
  0xec   :  { %12540 = vmatprep.mubr.msk.f32.mxu0 %vm155_vm1, %v14961_v21  ;;  %v1760_v21 = vld [vmem:[%s17532_s22 + $0x10b] sm:$0xff] }
  0xef   :  { %12541 = vmatmul.mubr.msk.f32.gmra.mrb[6].mxu0 %vm155_vm1, %v14970_v22  ;;  %v1761_v22 = vld [vmem:[%s17532_s22 + $0x113] sm:$0xff] }
  0xf0   :  { %12543 = vmatprep.mubr.msk.f32.mxu0 %vm155_vm1, %v14975_v23  ;;  %v1762_v23 = vld [vmem:[%s17532_s22 + $0x11b] sm:$0xff] }
  0xf3   :  { %12544 = vmatmul.mubr.msk.f32.gmra.mrb[8].mxu0 %vm155_vm1, %v880_v24  ;;  %v1763_v24 = vld [vmem:[%s17532_s22 + $0x123] sm:$0xff] }
  0xf4   :  { %12546 = vmatprep.mubr.msk.f32.mxu0 %vm155_vm1, %v881_v25  ;;  %v1764_v25 = vld [vmem:[%s17532_s22 + $0x12b] sm:$0x3f] }
  0xf7   :  { %12547 = vmatmul.mubr.msk.f32.gmra.mrb[10].mxu0 %vm155_vm1, %v882_v26  ;;  %v2159_v26 = vld [vmem:[%s17532_s22 + $0x14] sm:$0xff] }
  0xf8   :  { %12549 = vmatprep.mubr.msk.f32.mxu0 %vm155_vm1, %v883_v27  ;;  %v2160_v27 = vld [vmem:[%s17532_s22 + $0x1c] sm:$0xff] }
  0xfb   :  { %12550 = vmatmul.mubr.msk.f32.gmra.mrb[12].mxu0 %vm155_vm1, %v884_v28  ;;  %v15303_v28 = vld [vmem:[%s17532_s22 + $0x24] sm:$0xff] }
  0xfc   :  { %12552 = vmatprep.mubr.msk.f32.mxu0 %vm155_vm1, %v885_v29  ;;  %v15308_v29 = vld [vmem:[%s17531_s20 + $0x38] sm:$0x3f] }
  0xff   :  { %12553 = vmatmul.mubr.msk.f32.gmra.mrb[14].mxu0 %vm155_vm1, %v886_v30  ;;  %v15316_v30 = vld [vmem:[%s17532_s22 + $0x2c] sm:$0xff] }
 0x100   :  { %12555 = vmatprep.mubr.msk.f32.mxu0 %vm155_vm1, %v887_v31  ;;  %v15323_v31 = vld [vmem:[%s17532_s22 + $0x34] sm:$0xff] }
 0x103   :  { %12556 = vmatmul.mubr.msk.f32.gmra.mrb[16].mxu0 %vm155_vm1, %v888_v32  ;;  %v15334_v32 = vld [vmem:[%s17532_s22 + $0x3c] sm:$0xff] }
 0x104   :  { %12558 = vmatprep.mubr.msk.f32.mxu0 %vm155_vm1, %v889_v33  ;;  %v15339_v33 = vld [vmem:[%s17532_s22 + $0x44] sm:$0xff] }
 0x107   :  { %12559 = vmatmul.mubr.msk.f32.gmra.mrb[18].mxu0 %vm155_vm1, %v890_v34  ;;  %v15348_v34 = vld [vmem:[%s17532_s22 + $0x4c] sm:$0xff] }
 0x108   :  { %12561 = vmatprep.mubr.msk.f32.mxu0 %vm155_vm1, %v891_v35  ;;  %v15353_v35 = vld [vmem:[%s17532_s22 + $0x54] sm:$0xff] }
 0x10b   :  { %12562 = vmatmul.mubr.msk.f32.gmra.mrb[20].mxu0 %vm155_vm1, %v892_v36  ;;  %v15362_v36 = vld [vmem:[%s17532_s22 + $0x5c] sm:$0xff] }
 0x10c   :  { %12564 = vmatprep.mubr.msk.f32.mxu0 %vm155_vm1, %v893_v37  ;;  %v15367_v37 = vld [vmem:[%s17532_s22 + $0x64] sm:$0xff] }
 0x10f   :  { %12565 = vmatmul.mubr.msk.f32.gmra.mrb[22].mxu0 %vm155_vm1, %v894_v38  ;;  %v2170_v38 = vld [vmem:[%s17532_s22 + $0x6c] sm:$0xff] }
 0x110   :  { %12567 = vmatprep.mubr.msk.f32.mxu0 %vm155_vm1, %v895_v39  ;;  %v2171_v39 = vld [vmem:[%s17532_s22 + $0x74] sm:$0xff] }
 0x113   :  { %12568 = vmatmul.mubr.msk.f32.gmra.mrb[24].mxu0 %vm155_vm1, %v896_v40  ;;  %v2172_v40 = vld [vmem:[%s17532_s22 + $0x7c] sm:$0xff] }
 0x114   :  { %12570 = vmatprep.mubr.msk.f32.mxu0 %vm155_vm1, %v897_v41  ;;  %v2173_v41 = vld [vmem:[%s17532_s22 + $0x84] sm:$0xff] }
 0x117   :  { %12571 = vmatmul.mubr.msk.f32.gmra.mrb[26].mxu0 %vm155_vm1, %v898_v42  ;;  %v2174_v42 = vld [vmem:[%s17532_s22 + $0x8c] sm:$0xff] }
 0x118   :  { %12573 = vmatprep.mubr.msk.f32.mxu0 %vm155_vm1, %v899_v43  ;;  %v2175_v43 = vld [vmem:[%s17532_s22 + $0x94] sm:$0xff] }
 0x11b   :  { %12574 = vmatmul.mubr.msk.f32.gmra.mrb[28].mxu0 %vm155_vm1, %v900_v44  ;;  %v2176_v44 = vld [vmem:[%s17532_s22 + $0x9c] sm:$0xff] }
 0x11c   :  { %12576 = vmatprep.mubr.msk.f32.mxu0 %vm155_vm1, %v901_v45  ;;  %v2177_v45 = vld [vmem:[%s17532_s22 + $0xa4] sm:$0xff] }
 0x11f   :  { %12577 = vmatmul.mubr.msk.f32.gmra.mrb[30].mxu0 %vm155_vm1, %v902_v46  ;;  %v2178_v46 = vld [vmem:[%s17532_s22 + $0xac] sm:$0xff] }
 0x120   :  { %12579 = vmatprep.mubr.msk.f32.mxu0 %vm155_vm1, %v903_v47  ;;  %v2179_v47 = vld [vmem:[%s17532_s22 + $0xb4] sm:$0xff] }
 0x123   :  { %12580 = vmatmul.mubr.msk.f32.gmra.mrb[32].mxu0 %vm155_vm1, %v1332_v50  ;;  %v2182_v50 = vld [vmem:[%s17532_s22 + $0xcc] sm:$0xff] }
 0x124   :  { %12582 = vmatprep.mubr.msk.f32.mxu0 %vm155_vm1, %v1333_v51  ;;  %v2183_v51 = vld [vmem:[%s17532_s22 + $0xd4] sm:$0xff] }
 0x127   :  { %12583 = vmatmul.mubr.msk.f32.gmra.mrb[34].mxu0 %vm155_vm1, %v1334_v52  ;;  %v2184_v52 = vld [vmem:[%s17532_s22 + $0xdc] sm:$0xff] }
 0x128   :  { %12587 = vmatprep.mubr.msk.f32.mxu0 %vm155_vm1, %v1729_v53  ;;  %v2185_v53 = vld [vmem:[%s17532_s22 + $0xe4] sm:$0xff] }
 0x12b   :  { %12588 = vmatmul.mubr.msk.f32.vlgmr.msra.gmra.mrb[0].mxu0 %vm155_vm1, %v1730_v54  ;;  %v2186_v54 = vld [vmem:[%s17532_s22 + $0xec] sm:$0xff] }
 0x12c   :  { %12590 = vmatprep.mubr.msk.f32.mxu0 %vm155_vm1, %v1731_v55  ;;  %12642 = vmatpush3.msk.msra.mxu0 %vm264_vm0, %v11016_v49  ;;  %v2181_v49 = vld [vmem:[%s17532_s22 + $0xc4] sm:$0xff]  ;;  %v2187_v55 = vld [vmem:[%s17532_s22 + $0xf4] sm:$0xff] }
 0x12d   :  { %12697 = vmatprep.subr.msk.mxu0 %vm264_vm0, %v15154_v56 }
 0x12f   :  { %12591 = vmatmul.mubr.msk.f32.gmra.mrb[2].mxu0 %vm155_vm1, %v1732_v57  ;;  %v2189_v57 = vld [vmem:[%s17532_s22 + $0x104] sm:$0xff] }
 0x130   :  { %12593 = vmatprep.mubr.msk.f32.mxu0 %vm155_vm1, %v1733_v58  ;;  %v2190_v58 = vld [vmem:[%s17532_s22 + $0x10c] sm:$0xff] }
 0x133   :  { %12594 = vmatmul.mubr.msk.f32.gmra.mrb[4].mxu0 %vm155_vm1, %v1734_v59  ;;  %v2191_v59 = vld [vmem:[%s17532_s22 + $0x114] sm:$0xff] }
 0x134   :  { %12596 = vmatprep.mubr.msk.f32.mxu0 %vm155_vm1, %v1735_v60  ;;  %v2192_v60 = vld [vmem:[%s17532_s22 + $0x11c] sm:$0xff] }
 0x137   :  { %12597 = vmatmul.mubr.msk.f32.gmra.mrb[6].mxu0 %vm155_vm1, %v1736_v61  ;;  %v2193_v61 = vld [vmem:[%s17532_s22 + $0x124] sm:$0xff] }
 0x138   :  { %12599 = vmatprep.mubr.msk.f32.mxu0 %vm155_vm1, %v1737_v62  ;;  %v2194_v62 = vld [vmem:[%s17532_s22 + $0x12c] sm:$0x3f] }
 0x13b   :  { %12600 = vmatmul.mubr.msk.f32.gmra.mrb[8].mxu0 %vm155_vm1, %v1738_v63  ;;  %v11130_v63 = vld [vmem:[%s17531_s20 + $0x40] sm:$0x3f] }
 0x13c   :  { %12602 = vmatprep.mubr.msk.f32.mxu0 %vm155_vm1, %v1739_v0  ;;  %v2622_v0 = vld [vmem:[%s17532_s22 + $0x12c] sm:$0xff] }
 0x13f   :  { %12603 = vmatmul.mubr.msk.f32.gmra.mrb[10].mxu0 %vm155_vm1, %v1740_v1  ;;  %v2623_v1 = vld [vmem:[%s17532_s22 + $0x134] sm:$0xff] }
 0x140   :  { %12605 = vmatprep.mubr.msk.f32.mxu0 %vm155_vm1, %v1741_v2  ;;  %v2624_v2 = vld [vmem:[%s17532_s22 + $0x13c] sm:$0x3f] }
 0x143   :  { %12606 = vmatmul.mubr.msk.f32.gmra.mrb[12].mxu0 %vm155_vm1, %v1742_v3  ;;  %v3019_v3 = vld [vmem:[%s17532_s22 + $0x25] sm:$0xff] }
 0x144   :  { %12608 = vmatprep.mubr.msk.f32.mxu0 %vm155_vm1, %v1743_v4  ;;  %v3020_v4 = vld [vmem:[%s17532_s22 + $0x2d] sm:$0xff] }
 0x147   :  { %12609 = vmatmul.mubr.msk.f32.gmra.mrb[14].mxu0 %vm155_vm1, %v1744_v5  ;;  %v3021_v5 = vld [vmem:[%s17532_s22 + $0x35] sm:$0xff] }
 0x148   :  { %12611 = vmatprep.mubr.msk.f32.mxu0 %vm155_vm1, %v1745_v6  ;;  %v3022_v6 = vld [vmem:[%s17532_s22 + $0x3d] sm:$0xff] }
 0x14b   :  { %12612 = vmatmul.mubr.msk.f32.gmra.mrb[16].mxu0 %vm155_vm1, %v1746_v7  ;;  %v3023_v7 = vld [vmem:[%s17532_s22 + $0x45] sm:$0xff] }
 0x14c   :  { %12614 = vmatprep.mubr.msk.f32.mxu0 %vm155_vm1, %v1747_v8  ;;  %v3024_v8 = vld [vmem:[%s17532_s22 + $0x4d] sm:$0xff] }
 0x14f   :  { %12615 = vmatmul.mubr.msk.f32.gmra.mrb[18].mxu0 %vm155_vm1, %v1748_v9  ;;  %v3025_v9 = vld [vmem:[%s17532_s22 + $0x55] sm:$0xff] }
 0x150   :  { %12617 = vmatprep.mubr.msk.f32.mxu0 %vm155_vm1, %v1749_v10  ;;  %v3026_v10 = vld [vmem:[%s17532_s22 + $0x5d] sm:$0xff] }
 0x153   :  { %12618 = vmatmul.mubr.msk.f32.gmra.mrb[20].mxu0 %vm155_vm1, %v1750_v11  ;;  %v3027_v11 = vld [vmem:[%s17532_s22 + $0x65] sm:$0xff] }
 0x154   :  { %12620 = vmatprep.mubr.msk.f32.mxu0 %vm155_vm1, %v1751_v12  ;;  %v3028_v12 = vld [vmem:[%s17532_s22 + $0x6d] sm:$0xff] }
 0x157   :  { %12621 = vmatmul.mubr.msk.f32.gmra.mrb[22].mxu0 %vm155_vm1, %v1752_v13  ;;  %v3029_v13 = vld [vmem:[%s17532_s22 + $0x75] sm:$0xff] }
 0x158   :  { %12623 = vmatprep.mubr.msk.f32.mxu0 %vm155_vm1, %v1753_v14  ;;  %v3030_v14 = vld [vmem:[%s17532_s22 + $0x7d] sm:$0xff] }
 0x15b   :  { %12624 = vmatmul.mubr.msk.f32.gmra.mrb[24].mxu0 %vm155_vm1, %v1754_v15  ;;  %v3031_v15 = vld [vmem:[%s17532_s22 + $0x85] sm:$0xff] }
 0x15c   :  { %12626 = vmatprep.mubr.msk.f32.mxu0 %vm155_vm1, %v1755_v16  ;;  %v3032_v16 = vld [vmem:[%s17532_s22 + $0x8d] sm:$0xff] }
 0x15f   :  { %12627 = vmatmul.mubr.msk.f32.gmra.mrb[26].mxu0 %vm155_vm1, %v1756_v17  ;;  %v3033_v17 = vld [vmem:[%s17532_s22 + $0x95] sm:$0xff] }
 0x160   :  { %12629 = vmatprep.mubr.msk.f32.mxu0 %vm155_vm1, %v1757_v18  ;;  %v3034_v18 = vld [vmem:[%s17532_s22 + $0x9d] sm:$0xff] }
 0x163   :  { %12630 = vmatmul.mubr.msk.f32.gmra.mrb[28].mxu0 %vm155_vm1, %v1758_v19  ;;  %v3035_v19 = vld [vmem:[%s17532_s22 + $0xa5] sm:$0xff] }
 0x164   :  { %12632 = vmatprep.mubr.msk.f32.mxu0 %vm155_vm1, %v1759_v20  ;;  %v3036_v20 = vld [vmem:[%s17532_s22 + $0xad] sm:$0xff] }
 0x167   :  { %12633 = vmatmul.mubr.msk.f32.gmra.mrb[30].mxu0 %vm155_vm1, %v1760_v21  ;;  %v3037_v21 = vld [vmem:[%s17532_s22 + $0xb5] sm:$0xff] }
 0x168   :  { %12635 = vmatprep.mubr.msk.f32.mxu0 %vm155_vm1, %v1761_v22  ;;  %v3038_v22 = vld [vmem:[%s17532_s22 + $0xbd] sm:$0xff] }
 0x16b   :  { %12636 = vmatmul.mubr.msk.f32.gmra.mrb[32].mxu0 %vm155_vm1, %v1762_v23  ;;  %v3039_v23 = vld [vmem:[%s17532_s22 + $0xc5] sm:$0xff] }
 0x16c   :  { %12638 = vmatprep.mubr.msk.f32.mxu0 %vm155_vm1, %v1763_v24  ;;  %v3040_v24 = vld [vmem:[%s17532_s22 + $0xcd] sm:$0xff] }
 0x16f   :  { %12639 = vmatmul.mubr.msk.f32.gmra.mrb[34].mxu0 %vm155_vm1, %v1764_v25  ;;  %v3041_v25 = vld [vmem:[%s17532_s22 + $0xd5] sm:$0xff] }
 0x170   :  { %12643 = vmatprep.mubr.msk.f32.mxu0 %vm155_vm1, %v2159_v26  ;;  %v3042_v26 = vld [vmem:[%s17532_s22 + $0xdd] sm:$0xff] }
 0x173   :  { %12644 = vmatmul.mubr.msk.f32.vlgmr.msra.gmra.mrb[0].mxu0 %vm155_vm1, %v2160_v27  ;;  %v3043_v27 = vld [vmem:[%s17532_s22 + $0xe5] sm:$0xff] }
 0x174   :  { %12646 = vmatprep.mubr.msk.f32.mxu0 %vm155_vm1, %v15303_v28  ;;  %12698 = vmatpush3.msk.msra.mxu0 %vm264_vm0, %v15154_v56  ;;  %v2188_v56 = vld [vmem:[%s17532_s22 + $0xfc] sm:$0xff] }
 0x175   :  { %12753 = vmatprep.subr.msk.mxu0 %vm264_vm0, %v15308_v29 }
 0x177   :  { %12647 = vmatmul.mubr.msk.f32.gmra.mrb[2].mxu0 %vm155_vm1, %v15316_v30 }
 0x178   :  { %12649 = vmatprep.mubr.msk.f32.mxu0 %vm155_vm1, %v15323_v31 }
 0x17b   :  { %12650 = vmatmul.mubr.msk.f32.gmra.mrb[4].mxu0 %vm155_vm1, %v15334_v32 }
 0x17c   :  { %12652 = vmatprep.mubr.msk.f32.mxu0 %vm155_vm1, %v15339_v33 }
 0x17f   :  { %12653 = vmatmul.mubr.msk.f32.gmra.mrb[6].mxu0 %vm155_vm1, %v15348_v34 }
 0x180   :  { %12655 = vmatprep.mubr.msk.f32.mxu0 %vm155_vm1, %v15353_v35 }
 0x183   :  { %12656 = vmatmul.mubr.msk.f32.gmra.mrb[8].mxu0 %vm155_vm1, %v15362_v36 }
 0x184   :  { %12658 = vmatprep.mubr.msk.f32.mxu0 %vm155_vm1, %v15367_v37 }
 0x187   :  { %12659 = vmatmul.mubr.msk.f32.gmra.mrb[10].mxu0 %vm155_vm1, %v2170_v38 }
 0x188   :  { %12661 = vmatprep.mubr.msk.f32.mxu0 %vm155_vm1, %v2171_v39 }
 0x18b   :  { %12662 = vmatmul.mubr.msk.f32.gmra.mrb[12].mxu0 %vm155_vm1, %v2172_v40 }
 0x18c   :  { %12664 = vmatprep.mubr.msk.f32.mxu0 %vm155_vm1, %v2173_v41 }
 0x18f   :  { %12665 = vmatmul.mubr.msk.f32.gmra.mrb[14].mxu0 %vm155_vm1, %v2174_v42 }
 0x190   :  { %12667 = vmatprep.mubr.msk.f32.mxu0 %vm155_vm1, %v2175_v43 }
 0x193   :  { %12668 = vmatmul.mubr.msk.f32.gmra.mrb[16].mxu0 %vm155_vm1, %v2176_v44 }
 0x194   :  { %12670 = vmatprep.mubr.msk.f32.mxu0 %vm155_vm1, %v2177_v45 }
 0x197   :  { %12671 = vmatmul.mubr.msk.f32.gmra.mrb[18].mxu0 %vm155_vm1, %v2178_v46 }
 0x198   :  { %12673 = vmatprep.mubr.msk.f32.mxu0 %vm155_vm1, %v2179_v47 }
 0x19b   :  { %12674 = vmatmul.mubr.msk.f32.gmra.mrb[20].mxu0 %vm155_vm1, %v2180_v48 }
 0x19c   :  { %12676 = vmatprep.mubr.msk.f32.mxu0 %vm155_vm1, %v2181_v49 }
 0x19f   :  { %12677 = vmatmul.mubr.msk.f32.gmra.mrb[22].mxu0 %vm155_vm1, %v2182_v50 }
 0x1a0   :  { %12679 = vmatprep.mubr.msk.f32.mxu0 %vm155_vm1, %v2183_v51 }
 0x1a3   :  { %12680 = vmatmul.mubr.msk.f32.gmra.mrb[24].mxu0 %vm155_vm1, %v2184_v52 }
 0x1a4   :  { %12682 = vmatprep.mubr.msk.f32.mxu0 %vm155_vm1, %v2185_v53 }
 0x1a7   :  { %12683 = vmatmul.mubr.msk.f32.gmra.mrb[26].mxu0 %vm155_vm1, %v2186_v54 }
 0x1a8   :  { %12685 = vmatprep.mubr.msk.f32.mxu0 %vm155_vm1, %v2187_v55 }
 0x1ab   :  { %12686 = vmatmul.mubr.msk.f32.gmra.mrb[28].mxu0 %vm155_vm1, %v2188_v56 }
 0x1ac   :  { %12688 = vmatprep.mubr.msk.f32.mxu0 %vm155_vm1, %v2189_v57 }
 0x1af   :  { %12689 = vmatmul.mubr.msk.f32.gmra.mrb[30].mxu0 %vm155_vm1, %v2190_v58 }
 0x1b0   :  { %12691 = vmatprep.mubr.msk.f32.mxu0 %vm155_vm1, %v2191_v59 }
 0x1b3   :  { %12692 = vmatmul.mubr.msk.f32.gmra.mrb[32].mxu0 %vm155_vm1, %v2192_v60 }
 0x1b4   :  { %12694 = vmatprep.mubr.msk.f32.mxu0 %vm155_vm1, %v2193_v61 }
 0x1b7   :  { %12695 = vmatmul.mubr.msk.f32.gmra.mrb[34].mxu0 %vm155_vm1, %v2194_v62  ;;  %v3472_v62 = vld [vmem:[%s17532_s22 + $0xde] sm:$0xff] }
 0x1b8   :  { %12699 = vmatprep.mubr.msk.f32.mxu0 %vm155_vm1, %v15303_v28  ;;  %v3044_v28 = vld [vmem:[%s17532_s22 + $0xed] sm:$0xff] }
 0x1bb   :  { %12700 = vmatmul.mubr.msk.f32.vlgmr.msra.gmra.mrb[0].mxu0 %vm155_vm1, %v15316_v30  ;;  %v3046_v30 = vld [vmem:[%s17532_s22 + $0xfd] sm:$0xff] }
 0x1bc   :  { %12702 = vmatprep.mubr.msk.f32.mxu0 %vm155_vm1, %v15323_v31  ;;  %12754 = vmatpush3.msk.msra.mxu0 %vm264_vm0, %v15308_v29  ;;  %v3045_v29 = vld [vmem:[%s17532_s22 + $0xf5] sm:$0xff]  ;;  %v3047_v31 = vld [vmem:[%s17532_s22 + $0x105] sm:$0xff] }
 0x1bd   :  { %12809 = vmatprep.subr.msk.mxu0 %vm264_vm0, %v11130_v63 }
 0x1bf   :  { %12703 = vmatmul.mubr.msk.f32.gmra.mrb[2].mxu0 %vm155_vm1, %v15334_v32  ;;  %v3048_v32 = vld [vmem:[%s17532_s22 + $0x10d] sm:$0xff] }
 0x1c0   :  { %12705 = vmatprep.mubr.msk.f32.mxu0 %vm155_vm1, %v15339_v33  ;;  %v3049_v33 = vld [vmem:[%s17532_s22 + $0x115] sm:$0xff] }
 0x1c3   :  { %12706 = vmatmul.mubr.msk.f32.gmra.mrb[4].mxu0 %vm155_vm1, %v15348_v34  ;;  %v3050_v34 = vld [vmem:[%s17532_s22 + $0x11d] sm:$0xff] }
 0x1c4   :  { %12708 = vmatprep.mubr.msk.f32.mxu0 %vm155_vm1, %v15353_v35  ;;  %v3051_v35 = vld [vmem:[%s17532_s22 + $0x125] sm:$0xff] }
 0x1c7   :  { %12709 = vmatmul.mubr.msk.f32.gmra.mrb[6].mxu0 %vm155_vm1, %v15362_v36  ;;  %v3052_v36 = vld [vmem:[%s17532_s22 + $0x12d] sm:$0xff] }
 0x1c8   :  { %12711 = vmatprep.mubr.msk.f32.mxu0 %vm155_vm1, %v15367_v37  ;;  %v3053_v37 = vld [vmem:[%s17532_s22 + $0x135] sm:$0xff] }
 0x1cb   :  { %12712 = vmatmul.mubr.msk.f32.gmra.mrb[8].mxu0 %vm155_vm1, %v2170_v38  ;;  %v3054_v38 = vld [vmem:[%s17532_s22 + $0x13d] sm:$0x3f] }
 0x1cc   :  { %12714 = vmatprep.mubr.msk.f32.mxu0 %vm155_vm1, %v2171_v39  ;;  %v3449_v39 = vld [vmem:[%s17532_s22 + $0x26] sm:$0xff] }
 0x1cf   :  { %12715 = vmatmul.mubr.msk.f32.gmra.mrb[10].mxu0 %vm155_vm1, %v2172_v40  ;;  %v3450_v40 = vld [vmem:[%s17532_s22 + $0x2e] sm:$0xff] }
 0x1d0   :  { %12717 = vmatprep.mubr.msk.f32.mxu0 %vm155_vm1, %v2173_v41  ;;  %v3451_v41 = vld [vmem:[%s17532_s22 + $0x36] sm:$0xff] }
 0x1d3   :  { %12718 = vmatmul.mubr.msk.f32.gmra.mrb[12].mxu0 %vm155_vm1, %v2174_v42  ;;  %v3452_v42 = vld [vmem:[%s17532_s22 + $0x3e] sm:$0xff] }
 0x1d4   :  { %12720 = vmatprep.mubr.msk.f32.mxu0 %vm155_vm1, %v2175_v43  ;;  %v3453_v43 = vld [vmem:[%s17532_s22 + $0x46] sm:$0xff] }
 0x1d7   :  { %12721 = vmatmul.mubr.msk.f32.gmra.mrb[14].mxu0 %vm155_vm1, %v2176_v44  ;;  %v3454_v44 = vld [vmem:[%s17532_s22 + $0x4e] sm:$0xff] }
 0x1d8   :  { %12723 = vmatprep.mubr.msk.f32.mxu0 %vm155_vm1, %v2177_v45  ;;  %v3455_v45 = vld [vmem:[%s17532_s22 + $0x56] sm:$0xff] }
 0x1db   :  { %12724 = vmatmul.mubr.msk.f32.gmra.mrb[16].mxu0 %vm155_vm1, %v2178_v46  ;;  %v3456_v46 = vld [vmem:[%s17532_s22 + $0x5e] sm:$0xff] }
 0x1dc   :  { %12726 = vmatprep.mubr.msk.f32.mxu0 %vm155_vm1, %v2179_v47  ;;  %v3457_v47 = vld [vmem:[%s17532_s22 + $0x66] sm:$0xff] }
 0x1df   :  { %12727 = vmatmul.mubr.msk.f32.gmra.mrb[18].mxu0 %vm155_vm1, %v2180_v48  ;;  %v3458_v48 = vld [vmem:[%s17532_s22 + $0x6e] sm:$0xff] }
 0x1e0   :  { %12729 = vmatprep.mubr.msk.f32.mxu0 %vm155_vm1, %v2181_v49  ;;  %v3459_v49 = vld [vmem:[%s17532_s22 + $0x76] sm:$0xff] }
 0x1e3   :  { %12730 = vmatmul.mubr.msk.f32.gmra.mrb[20].mxu0 %vm155_vm1, %v2182_v50  ;;  %v3460_v50 = vld [vmem:[%s17532_s22 + $0x7e] sm:$0xff] }
 0x1e4   :  { %12732 = vmatprep.mubr.msk.f32.mxu0 %vm155_vm1, %v2183_v51  ;;  %v3461_v51 = vld [vmem:[%s17532_s22 + $0x86] sm:$0xff] }
 0x1e7   :  { %12733 = vmatmul.mubr.msk.f32.gmra.mrb[22].mxu0 %vm155_vm1, %v2184_v52  ;;  %v3462_v52 = vld [vmem:[%s17532_s22 + $0x8e] sm:$0xff] }
 0x1e8   :  { %12735 = vmatprep.mubr.msk.f32.mxu0 %vm155_vm1, %v2185_v53  ;;  %v3463_v53 = vld [vmem:[%s17532_s22 + $0x96] sm:$0xff] }
 0x1eb   :  { %12736 = vmatmul.mubr.msk.f32.gmra.mrb[24].mxu0 %vm155_vm1, %v2186_v54  ;;  %v3464_v54 = vld [vmem:[%s17532_s22 + $0x9e] sm:$0xff] }
 0x1ec   :  { %12738 = vmatprep.mubr.msk.f32.mxu0 %vm155_vm1, %v2187_v55  ;;  %v3465_v55 = vld [vmem:[%s17532_s22 + $0xa6] sm:$0xff] }
 0x1ef   :  { %12739 = vmatmul.mubr.msk.f32.gmra.mrb[26].mxu0 %vm155_vm1, %v2188_v56  ;;  %v3466_v56 = vld [vmem:[%s17532_s22 + $0xae] sm:$0xff] }
 0x1f0   :  { %12741 = vmatprep.mubr.msk.f32.mxu0 %vm155_vm1, %v2189_v57  ;;  %v3467_v57 = vld [vmem:[%s17532_s22 + $0xb6] sm:$0xff] }
 0x1f3   :  { %12742 = vmatmul.mubr.msk.f32.gmra.mrb[28].mxu0 %vm155_vm1, %v2190_v58  ;;  %v3468_v58 = vld [vmem:[%s17532_s22 + $0xbe] sm:$0xff] }
 0x1f4   :  { %12744 = vmatprep.mubr.msk.f32.mxu0 %vm155_vm1, %v2191_v59  ;;  %v3469_v59 = vld [vmem:[%s17532_s22 + $0xc6] sm:$0xff] }
 0x1f7   :  { %12745 = vmatmul.mubr.msk.f32.gmra.mrb[30].mxu0 %vm155_vm1, %v2192_v60  ;;  %v3470_v60 = vld [vmem:[%s17532_s22 + $0xce] sm:$0xff] }
 0x1f8   :  { %12747 = vmatprep.mubr.msk.f32.mxu0 %vm155_vm1, %v2193_v61  ;;  %v3471_v61 = vld [vmem:[%s17532_s22 + $0xd6] sm:$0xff] }
 0x1fb   :  { %12748 = vmatmul.mubr.msk.f32.gmra.mrb[32].mxu0 %vm155_vm1, %v2622_v0  ;;  %v3474_v0 = vld [vmem:[%s17532_s22 + $0xee] sm:$0xff] }
 0x1fc   :  { %12750 = vmatprep.mubr.msk.f32.mxu0 %vm155_vm1, %v2623_v1  ;;  %v3475_v1 = vld [vmem:[%s17532_s22 + $0xf6] sm:$0xff] }
 0x1ff   :  { %12751 = vmatmul.mubr.msk.f32.gmra.mrb[34].mxu0 %vm155_vm1, %v2624_v2  ;;  %v3476_v2 = vld [vmem:[%s17532_s22 + $0xfe] sm:$0xff] }
 0x200   :  { %12755 = vmatprep.mubr.msk.f32.mxu0 %vm155_vm1, %v3019_v3  ;;  %v3477_v3 = vld [vmem:[%s17532_s22 + $0x106] sm:$0xff] }
 0x203   :  { %12756 = vmatmul.mubr.msk.f32.vlgmr.msra.gmra.mrb[0].mxu0 %vm155_vm1, %v3020_v4  ;;  %v3478_v4 = vld [vmem:[%s17532_s22 + $0x10e] sm:$0xff] }
 0x204   :  { %12758 = vmatprep.mubr.msk.f32.mxu0 %vm155_vm1, %v3021_v5  ;;  %12810 = vmatpush3.msk.msra.mxu0 %vm264_vm0, %v11130_v63  ;;  %v3473_v63 = vld [vmem:[%s17532_s22 + $0xe6] sm:$0xff]  ;;  %v3479_v5 = vld [vmem:[%s17532_s22 + $0x116] sm:$0xff] }
 0x207   :  { %12759 = vmatmul.mubr.msk.f32.gmra.mrb[2].mxu0 %vm155_vm1, %v3022_v6  ;;  %v3480_v6 = vld [vmem:[%s17532_s22 + $0x11e] sm:$0xff] }
 0x208   :  { %12761 = vmatprep.mubr.msk.f32.mxu0 %vm155_vm1, %v3023_v7  ;;  %v3481_v7 = vld [vmem:[%s17532_s22 + $0x126] sm:$0xff] }
 0x20b   :  { %12762 = vmatmul.mubr.msk.f32.gmra.mrb[4].mxu0 %vm155_vm1, %v3024_v8  ;;  %v3482_v8 = vld [vmem:[%s17532_s22 + $0x12e] sm:$0xff] }
 0x20c   :  { %12764 = vmatprep.mubr.msk.f32.mxu0 %vm155_vm1, %v3025_v9  ;;  %v3483_v9 = vld [vmem:[%s17532_s22 + $0x136] sm:$0xff] }
 0x20f   :  { %12765 = vmatmul.mubr.msk.f32.gmra.mrb[6].mxu0 %vm155_vm1, %v3026_v10  ;;  %v3484_v10 = vld [vmem:[%s17532_s22 + $0x13e] sm:$0x3f] }
 0x210   :  { %12767 = vmatprep.mubr.msk.f32.mxu0 %vm155_vm1, %v3027_v11  ;;  %v4234_v11 = vld [vmem:[%s17533_s23 + $0x8] sm:$0xff] }
 0x211   :  { %4362 = vmatprep.mubr.f32.mxu1 %v4234_v11 }
 0x213   :  { %12768 = vmatmul.mubr.msk.f32.gmra.mrb[8].mxu0 %vm155_vm1, %v3028_v12  ;;  %v15828_v12 = vld [vmem:[%s17534_s25] ss:$0 sm:$0xff] }
 0x214   :  { %12770 = vmatprep.mubr.msk.f32.mxu0 %vm155_vm1, %v3029_v13 }
 0x217   :  { %12771 = vmatmul.mubr.msk.f32.gmra.mrb[10].mxu0 %vm155_vm1, %v3030_v14 }
 0x218   :  { %12773 = vmatprep.mubr.msk.f32.mxu0 %vm155_vm1, %v3031_v15 }
 0x21b   :  { %12774 = vmatmul.mubr.msk.f32.gmra.mrb[12].mxu0 %vm155_vm1, %v3032_v16 }
 0x21c   :  { %12776 = vmatprep.mubr.msk.f32.mxu0 %vm155_vm1, %v3033_v17 }
 0x21f   :  { %12777 = vmatmul.mubr.msk.f32.gmra.mrb[14].mxu0 %vm155_vm1, %v3034_v18 }
 0x220   :  { %12779 = vmatprep.mubr.msk.f32.mxu0 %vm155_vm1, %v3035_v19 }
 0x223   :  { %12780 = vmatmul.mubr.msk.f32.gmra.mrb[16].mxu0 %vm155_vm1, %v3036_v20 }
 0x224   :  { %12782 = vmatprep.mubr.msk.f32.mxu0 %vm155_vm1, %v3037_v21 }
 0x227   :  { %12783 = vmatmul.mubr.msk.f32.gmra.mrb[18].mxu0 %vm155_vm1, %v3038_v22 }
 0x228   :  { %12785 = vmatprep.mubr.msk.f32.mxu0 %vm155_vm1, %v3039_v23 }
 0x22b   :  { %12786 = vmatmul.mubr.msk.f32.gmra.mrb[20].mxu0 %vm155_vm1, %v3040_v24 }
 0x22c   :  { %12788 = vmatprep.mubr.msk.f32.mxu0 %vm155_vm1, %v3041_v25 }
 0x22f   :  { %12789 = vmatmul.mubr.msk.f32.gmra.mrb[22].mxu0 %vm155_vm1, %v3042_v26 }
 0x230   :  { %12791 = vmatprep.mubr.msk.f32.mxu0 %vm155_vm1, %v3043_v27 }
 0x233   :  { %12792 = vmatmul.mubr.msk.f32.gmra.mrb[24].mxu0 %vm155_vm1, %v3044_v28 }
 0x234   :  { %12794 = vmatprep.mubr.msk.f32.mxu0 %vm155_vm1, %v3045_v29 }
 0x237   :  { %12795 = vmatmul.mubr.msk.f32.gmra.mrb[26].mxu0 %vm155_vm1, %v3046_v30 }
 0x238   :  { %12797 = vmatprep.mubr.msk.f32.mxu0 %vm155_vm1, %v3047_v31 }
 0x23b   :  { %12798 = vmatmul.mubr.msk.f32.gmra.mrb[28].mxu0 %vm155_vm1, %v3048_v32 }
 0x23c   :  { %12800 = vmatprep.mubr.msk.f32.mxu0 %vm155_vm1, %v3049_v33 }
 0x23f   :  { %12801 = vmatmul.mubr.msk.f32.gmra.mrb[30].mxu0 %vm155_vm1, %v3050_v34 }
 0x240   :  { %12803 = vmatprep.mubr.msk.f32.mxu0 %vm155_vm1, %v3051_v35 }
 0x243   :  { %12804 = vmatmul.mubr.msk.f32.gmra.mrb[32].mxu0 %vm155_vm1, %v3052_v36 }
 0x244   :  { %12806 = vmatprep.mubr.msk.f32.mxu0 %vm155_vm1, %v3053_v37 }
 0x247   :  { %12807 = vmatmul.mubr.msk.f32.gmra.mrb[34].mxu0 %vm155_vm1, %v3054_v38 }
 0x248   :  { %12811 = vmatprep.mubr.msk.f32.mxu0 %vm155_vm1, %v3449_v39 }
 0x24b   :  { %12812 = vmatmul.mubr.msk.f32.vlgmr.msra.gmra.mrb[0].mxu0 %vm155_vm1, %v3450_v40 }
 0x24c   :  { %12814 = vmatprep.mubr.msk.f32.mxu0 %vm155_vm1, %v3451_v41 }
 0x24f   :  { %12815 = vmatmul.mubr.msk.f32.gmra.mrb[2].mxu0 %vm155_vm1, %v3452_v42 }
 0x250   :  { %12817 = vmatprep.mubr.msk.f32.mxu0 %vm155_vm1, %v3453_v43 }
 0x253   :  { %12818 = vmatmul.mubr.msk.f32.gmra.mrb[4].mxu0 %vm155_vm1, %v3454_v44 }
 0x254   :  { %12820 = vmatprep.mubr.msk.f32.mxu0 %vm155_vm1, %v3455_v45 }
 0x257   :  { %12821 = vmatmul.mubr.msk.f32.gmra.mrb[6].mxu0 %vm155_vm1, %v3456_v46 }
 0x258   :  { %12823 = vmatprep.mubr.msk.f32.mxu0 %vm155_vm1, %v3457_v47 }
 0x25b   :  { %12824 = vmatmul.mubr.msk.f32.gmra.mrb[8].mxu0 %vm155_vm1, %v3458_v48 }
 0x25c   :  { %12826 = vmatprep.mubr.msk.f32.mxu0 %vm155_vm1, %v3459_v49 }
 0x25f   :  { %12827 = vmatmul.mubr.msk.f32.gmra.mrb[10].mxu0 %vm155_vm1, %v3460_v50 }
 0x260   :  { %12829 = vmatprep.mubr.msk.f32.mxu0 %vm155_vm1, %v3461_v51 }
 0x263   :  { %12830 = vmatmul.mubr.msk.f32.gmra.mrb[12].mxu0 %vm155_vm1, %v3462_v52 }
 0x264   :  { %12832 = vmatprep.mubr.msk.f32.mxu0 %vm155_vm1, %v3463_v53 }
 0x267   :  { %12833 = vmatmul.mubr.msk.f32.gmra.mrb[14].mxu0 %vm155_vm1, %v3464_v54 }
 0x268   :  { %12835 = vmatprep.mubr.msk.f32.mxu0 %vm155_vm1, %v3465_v55 }
 0x26b   :  { %12836 = vmatmul.mubr.msk.f32.gmra.mrb[16].mxu0 %vm155_vm1, %v3466_v56 }
 0x26c   :  { %12838 = vmatprep.mubr.msk.f32.mxu0 %vm155_vm1, %v3467_v57 }
 0x26f   :  { %12839 = vmatmul.mubr.msk.f32.gmra.mrb[18].mxu0 %vm155_vm1, %v3468_v58 }
 0x270   :  { %12841 = vmatprep.mubr.msk.f32.mxu0 %vm155_vm1, %v3469_v59 }
 0x273   :  { %12842 = vmatmul.mubr.msk.f32.gmra.mrb[20].mxu0 %vm155_vm1, %v3470_v60 }
 0x274   :  { %12844 = vmatprep.mubr.msk.f32.mxu0 %vm155_vm1, %v3471_v61 }
 0x277   :  { %12845 = vmatmul.mubr.msk.f32.gmra.mrb[22].mxu0 %vm155_vm1, %v3472_v62 }
 0x278   :  { %12847 = vmatprep.mubr.msk.f32.mxu0 %vm155_vm1, %v3473_v63 }
 0x27b   :  { %12848 = vmatmul.mubr.msk.f32.gmra.mrb[24].mxu0 %vm155_vm1, %v3474_v0 }
 0x27c   :  { %12850 = vmatprep.mubr.msk.f32.mxu0 %vm155_vm1, %v3475_v1 }
 0x27f   :  { %12851 = vmatmul.mubr.msk.f32.gmra.mrb[26].mxu0 %vm155_vm1, %v3476_v2 }
 0x280   :  { %12853 = vmatprep.mubr.msk.f32.mxu0 %vm155_vm1, %v3477_v3 }
 0x283   :  { %12854 = vmatmul.mubr.msk.f32.gmra.mrb[28].mxu0 %vm155_vm1, %v3478_v4 }
 0x284   :  { %12856 = vmatprep.mubr.msk.f32.mxu0 %vm155_vm1, %v3479_v5 }
 0x287   :  { %12857 = vmatmul.mubr.msk.f32.gmra.mrb[30].mxu0 %vm155_vm1, %v3480_v6 }
 0x288   :  { %12859 = vmatprep.mubr.msk.f32.mxu0 %vm155_vm1, %v3481_v7 }
 0x28b   :  { %12860 = vmatmul.mubr.msk.f32.gmra.mrb[32].mxu0 %vm155_vm1, %v3482_v8 }
 0x28c   :  { %12862 = vmatprep.mubr.msk.f32.mxu0 %vm155_vm1, %v3483_v9 }
 0x28f   :  { %12863 = vmatmul.mubr.msk.f32.gmra.mrb[34].mxu0 %vm155_vm1, %v3484_v10  ;;  %vm7160_vm1 = vcmask 1046528  }
 0x31e   :  { %v12813_v13 = vpop.f32.mrb[0].mxu0 }
 0x31f   :  { %v3887_v14 = vadd.f32 %v12813_v13, %v15828_v12  ;;  %v3664_v15 = vpop.f32.mrb[1].mxu0 }
 0x320   :  { %v3886_v16 = vadd.f32 %v15828_v12, %v3664_v15 }
 0x321   :  { %v3923_v17 = vmax.f32 %v3887_v14, 0.0 }
 0x322   :  { %v3922_v18 = vmax.f32 %v3886_v16, 0.0  ;;  %v12816_v19 = vpop.f32.mrb[2].mxu0 }
 0x323   :  { %3959 = vst.msk [vmem:[#allocation7 + $0x8] sm:$0xff] %vm62_vm2, %v3923_v17  ;;  %v3889_v20 = vadd.f32 %v12816_v19, %v15828_v12  ;;  %v3674_v21 = vpop.f32.mrb[3].mxu0 }
 0x324   :  { %3958 = vst.msk [vmem:[#allocation7] sm:$0xff] %vm62_vm2, %v3922_v18  ;;  %v3888_v22 = vadd.f32 %v15828_v12, %v3674_v21 }
 0x325   :  { %v3925_v23 = vmax.f32 %v3889_v20, 0.0 }
 0x326   :  { %v3924_v24 = vmax.f32 %v3888_v22, 0.0  ;;  %v12819_v25 = vpop.f32.mrb[4].mxu0 }
 0x327   :  { %3961 = vst.msk [vmem:[#allocation7 + $0x18] sm:$0xff] %vm62_vm2, %v3925_v23  ;;  %v3891_v26 = vadd.f32 %v12819_v25, %v15828_v12  ;;  %v3684_v27 = vpop.f32.mrb[5].mxu0 }
 0x328   :  { %3960 = vst.msk [vmem:[#allocation7 + $0x10] sm:$0xff] %vm62_vm2, %v3924_v24  ;;  %v3890_v28 = vadd.f32 %v15828_v12, %v3684_v27 }
 0x329   :  { %v3927_v29 = vmax.f32 %v3891_v26, 0.0 }
 0x32a   :  { %v3926_v30 = vmax.f32 %v3890_v28, 0.0  ;;  %v12822_v31 = vpop.f32.mrb[6].mxu0  ;;  %v3996_v25 = vld [vmem:[#allocation7 + $0x8] sm:$0xff] }
 0x32b   :  { %3963 = vst.msk [vmem:[#allocation7 + $0x28] sm:$0xff] %vm62_vm2, %v3927_v29  ;;  %v3893_v32 = vadd.f32 %v12822_v31, %v15828_v12  ;;  %v3694_v33 = vpop.f32.mrb[7].mxu0  ;;  %v3995_v24 = vld [vmem:[#allocation7] sm:$0xff] }
 0x32c   :  { %3962 = vst.msk [vmem:[#allocation7 + $0x20] sm:$0xff] %vm62_vm2, %v3926_v30  ;;  %v3892_v34 = vadd.f32 %v15828_v12, %v3694_v33  ;;  %v4029_v28 = vld [vmem:[#allocation7 + $0x1] sm:$0xff] }
 0x32d   :  { %v3929_v35 = vmax.f32 %v3893_v32, 0.0 }
 0x32e   :  { %v3928_v36 = vmax.f32 %v3892_v34, 0.0  ;;  %v12825_v37 = vpop.f32.mrb[8].mxu0 }
 0x32f   :  { %3965 = vst.msk [vmem:[#allocation7 + $0x38] sm:$0xff] %vm62_vm2, %v3929_v35  ;;  %v3895_v38 = vadd.f32 %v12825_v37, %v15828_v12  ;;  %v3704_v39 = vpop.f32.mrb[9].mxu0  ;;  %v4097_v21 = vld [vmem:[#allocation7 + $0x12] sm:$0xff]  ;;  %v4030_v26 = vld [vmem:[#allocation7 + $0x9] sm:$0xff] }
 0x330   :  { %3964 = vst.msk [vmem:[#allocation7 + $0x30] sm:$0xff] %vm62_vm2, %v3928_v36  ;;  %v3894_v40 = vadd.f32 %v15828_v12, %v3704_v39  ;;  %v4131_v22 = vld [vmem:[#allocation7 + $0x13] sm:$0xff] }
 0x331   :  { %v3931_v41 = vmax.f32 %v3895_v38, 0.0  ;;  %v3997_v30 = vld [vmem:[#allocation7 + $0x10] sm:$0xff]  ;;  %v4165_v34 = vmax.f32 %v4097_v21, %v4131_v22 }
 0x332   :  { %v3930_v42 = vmax.f32 %v3894_v40, 0.0  ;;  %v12828_v43 = vpop.f32.mrb[10].mxu0  ;;  %v4031_v31 = vld [vmem:[#allocation7 + $0x11] sm:$0xff] }
 0x333   :  { %3967 = vst.msk [vmem:[#allocation7 + $0x48] sm:$0xff] %vm62_vm2, %v3931_v41  ;;  %v3897_v44 = vadd.f32 %v12828_v43, %v15828_v12  ;;  %v3714_v45 = vpop.f32.mrb[11].mxu0  ;;  %v4098_v17 = vld [vmem:[#allocation7 + $0x1a] sm:$0xff]  ;;  %v4099_v36 = vld [vmem:[#allocation7 + $0x22] sm:$0xff] }
 0x334   :  { %3966 = vst.msk [vmem:[#allocation7 + $0x40] sm:$0xff] %vm62_vm2, %v3930_v42  ;;  %v3896_v46 = vadd.f32 %v15828_v12, %v3714_v45  ;;  %v4132_v18 = vld [vmem:[#allocation7 + $0x1b] sm:$0xff]  ;;  %v4133_v37 = vld [vmem:[#allocation7 + $0x23] sm:$0xff]  ;;  %v4064_v42 = vmax.f32 %v3996_v25, %v4030_v26  ;;  %v4063_v45 = vmax.f32 %v3995_v24, %v4029_v28 }
 0x335   :  { %v3933_v47 = vmax.f32 %v3897_v44, 0.0  ;;  %v4166_v29 = vmax.f32 %v4098_v17, %v4132_v18  ;;  %v15876_v35 = vld [vmem:[#allocation7 + $0x19] sm:$0xff]  ;;  %v15899_v17 = vld [vmem:[#allocation7 + $0x28] sm:$0xff] }
 0x336   :  { %v3932_v48 = vmax.f32 %v3896_v46, 0.0  ;;  %v12831_v49 = vpop.f32.mrb[12].mxu0  ;;  %v15880_v43 = vld [vmem:[#allocation7 + $0x20] sm:$0xff]  ;;  %v3998_v46 = vld [vmem:[#allocation7 + $0x18] sm:$0xff] }
 0x337   :  { %3969 = vst.msk [vmem:[#allocation7 + $0x58] sm:$0xff] %vm62_vm2, %v3933_v47  ;;  %v3899_v50 = vadd.f32 %v12831_v49, %v15828_v12  ;;  %v3724_v51 = vpop.f32.mrb[13].mxu0  ;;  %v4100_v47 = vld [vmem:[#allocation7 + $0x2a] sm:$0xff]  ;;  %v15884_v49 = vld [vmem:[#allocation7 + $0x21] sm:$0xff] }
 0x338   :  { %3968 = vst.msk [vmem:[#allocation7 + $0x50] sm:$0xff] %vm62_vm2, %v3932_v48  ;;  %v3898_v52 = vadd.f32 %v15828_v12, %v3724_v51  ;;  %v4134_v48 = vld [vmem:[#allocation7 + $0x2b] sm:$0xff] }
 0x339   :  { %v3935_v53 = vmax.f32 %v3899_v50, 0.0  ;;  %v15901_v18 = vld [vmem:[#allocation7 + $0x30] sm:$0xff] }
 0x33a   :  { %v3934_v54 = vmax.f32 %v3898_v52, 0.0  ;;  %v12834_v55 = vpop.f32.mrb[14].mxu0 }
 0x33b   :  { %3971 = vst.msk [vmem:[#allocation7 + $0x68] sm:$0xff] %vm62_vm2, %v3935_v53  ;;  %v3901_v56 = vadd.f32 %v12834_v55, %v15828_v12  ;;  %v3734_v57 = vpop.f32.mrb[15].mxu0  ;;  %v4167_v55 = vmax.f32 %v4099_v36, %v4133_v37  ;;  %v15909_v24 = vld [vmem:[#allocation7 + $0x3a] sm:$0xff] }
 0x33c   :  { %3970 = vst.msk [vmem:[#allocation7 + $0x60] sm:$0xff] %vm62_vm2, %v3934_v54  ;;  %v3900_v58 = vadd.f32 %v15828_v12, %v3734_v57  ;;  %v15886_v54 = vmax.f32 %v4064_v42, %v4166_v29  ;;  %v15911_v25 = vld [vmem:[#allocation7 + $0x3b] sm:$0xff] }
 0x33d   :  { %v3937_v59 = vmax.f32 %v3901_v56, 0.0 }
 0x33e   :  { %v3936_v60 = vmax.f32 %v3900_v58, 0.0  ;;  %v12837_v61 = vpop.f32.mrb[16].mxu0 }
 0x33f   :  { %3973 = vst.msk [vmem:[#allocation7 + $0x78] sm:$0xff] %vm62_vm2, %v3937_v59  ;;  %v3903_v62 = vadd.f32 %v12837_v61, %v15828_v12  ;;  %v3744_v63 = vpop.f32.mrb[17].mxu0  ;;  %v4065_v61 = vmax.f32 %v3997_v30, %v4031_v31 }
 0x340   :  { %3972 = vst.msk [vmem:[#allocation7 + $0x70] sm:$0xff] %vm62_vm2, %v3936_v60  ;;  %v3902_v0 = vadd.f32 %v15828_v12, %v3744_v63  ;;  %v15888_v60 = vmax.f32 %v4063_v45, %v4165_v34  ;;  %v4101_v63 = vld [vmem:[#allocation7 + $0x32] sm:$0xff]  ;;  %v15915_v34 = vld [vmem:[#allocation7 + $0x43] sm:$0xff] }
 0x341   :  { %v3939_v1 = vmax.f32 %v3903_v62, 0.0  ;;  %v15890_v62 = vld [vmem:[#allocation7 + $0x29] sm:$0xff] }
 0x342   :  { %v3938_v2 = vmax.f32 %v3902_v0, 0.0  ;;  %v12840_v3 = vpop.f32.mrb[18].mxu0  ;;  %v4135_v0 = vld [vmem:[#allocation7 + $0x33] sm:$0xff]  ;;  %v13665_v21 = vpack.c.bf16 %v15886_v54, %v15888_v60  ;;  %v4068_v42 = vmax.f32 %v15899_v17, %v15890_v62 }
 0x343   :  { %3975 = vst.msk [vmem:[#allocation7 + $0x88] sm:$0xff] %vm62_vm2, %v3939_v1  ;;  %v3905_v4 = vadd.f32 %v12840_v3, %v15828_v12  ;;  %v3754_v5 = vpop.f32.mrb[19].mxu0  ;;  %v4169_v26 = vmax.f32 %v4101_v63, %v4135_v0  ;;  %v15929_v54 = vld [vmem:[#allocation7 + $0x39] sm:$0xff]  ;;  %v4104_v63 = vld [vmem:[#allocation7 + $0x4a] sm:$0xff] }
 0x344   :  { %3974 = vst.msk [vmem:[#allocation7 + $0x80] sm:$0xff] %vm62_vm2, %v3938_v2  ;;  %v3904_v6 = vadd.f32 %v15828_v12, %v3754_v5  ;;  %v4002_v62 = vld [vmem:[#allocation7 + $0x38] sm:$0xff]  ;;  %v4138_v0 = vld [vmem:[#allocation7 + $0x4b] sm:$0xff] }
 0x345   :  { %v3941_v7 = vmax.f32 %v3905_v4, 0.0 }
 0x346   :  { %v3940_v8 = vmax.f32 %v3904_v6, 0.0  ;;  %v12843_v9 = vpop.f32.mrb[20].mxu0  ;;  %v4066_v6 = vmax.f32 %v3998_v46, %v15876_v35 }
 0x347   :  { %3977 = vst.msk [vmem:[#allocation7 + $0x98] sm:$0xff] %vm62_vm2, %v3941_v7  ;;  %v3907_v10 = vadd.f32 %v12843_v9, %v15828_v12  ;;  %v3764_v11 = vpop.f32.mrb[21].mxu0  ;;  %v4168_v7 = vmax.f32 %v4100_v47, %v4134_v48 }
 0x348   :  { %3976 = vst.msk [vmem:[#allocation7 + $0x90] sm:$0xff] %vm62_vm2, %v3940_v8  ;;  %v3906_v13 = vadd.f32 %v15828_v12, %v3764_v11  ;;  %v4067_v8 = vmax.f32 %v15880_v43, %v15884_v49 }
 0x349   :  { %v3943_v14 = vmax.f32 %v3907_v10, 0.0 }
 0x34a   :  { %v3942_v15 = vmax.f32 %v3906_v13, 0.0  ;;  %v12846_v16 = vpop.f32.mrb[22].mxu0  ;;  %v4012_v58 = vld [vmem:[#allocation7 + $0x88] sm:$0xff] }
 0x34b   :  { %3979 = vst.msk [vmem:[#allocation7 + $0xa8] sm:$0xff] %vm62_vm2, %v3943_v14  ;;  %v3909_v19 = vadd.f32 %v12846_v16, %v15828_v12  ;;  %v3774_v20 = vpop.f32.mrb[23].mxu0  ;;  %v4011_v51 = vld [vmem:[#allocation7 + $0x80] sm:$0xff] }
 0x34c   :  { %3978 = vst.msk [vmem:[#allocation7 + $0xa0] sm:$0xff] %vm62_vm2, %v3942_v15  ;;  %v3908_v23 = vadd.f32 %v15828_v12, %v3774_v20  ;;  %v4045_v52 = vld [vmem:[#allocation7 + $0x81] sm:$0xff] }
 0x34d   :  { %v3945_v27 = vmax.f32 %v3909_v19, 0.0  ;;  %v4079_v10 = vmax.f32 %v4011_v51, %v4045_v52  ;;  %v15903_v19 = vld [vmem:[#allocation7 + $0x31] sm:$0xff]  ;;  %v4170_v52 = vmax.f32 %v15909_v24, %v15911_v25 }
 0x34e   :  { %v3944_v32 = vmax.f32 %v3908_v23, 0.0  ;;  %v12849_v33 = vpop.f32.mrb[24].mxu0  ;;  %v15907_v23 = vmax.f32 %v4065_v61, %v4167_v55  ;;  %v4014_v31 = vld [vmem:[#allocation7 + $0x98] sm:$0xff]  ;;  %v4069_v55 = vmax.f32 %v15901_v18, %v15903_v19 }
 0x34f   :  { %3981 = vst.msk [vmem:[#allocation7 + $0xb8] sm:$0xff] %vm62_vm2, %v3945_v27  ;;  %v3911_v38 = vadd.f32 %v12849_v33, %v15828_v12  ;;  %v3784_v39 = vpop.f32.mrb[25].mxu0  ;;  %v4113_v40 = vld [vmem:[#allocation7 + $0x92] sm:$0xff]  ;;  %v4046_v53 = vld [vmem:[#allocation7 + $0x89] sm:$0xff] }
 0x350   :  { %v4147_v41 = vld [vmem:[#allocation7 + $0x93] sm:$0xff]  ;;  %3980 = vst.msk [vmem:[#allocation7 + $0xb0] sm:$0xff] %vm62_vm2, %v3944_v32  ;;  %v3910_v44 = vadd.f32 %v15828_v12, %v3784_v39  ;;  %v4080_v11 = vmax.f32 %v4012_v58, %v4046_v53  ;;  %v15913_v33 = vld [vmem:[#allocation7 + $0x42] sm:$0xff]  ;;  %v15927_v53 = vmax.f32 %v4067_v8, %v4169_v26 }
 0x351   :  { %v3947_v50 = vmax.f32 %v3911_v38, 0.0  ;;  %v4181_v59 = vmax.f32 %v4113_v40, %v4147_v41  ;;  %v4013_v5 = vld [vmem:[#allocation7 + $0x90] sm:$0xff]  ;;  %v15919_v40 = vmax.f32 %v4066_v6, %v4168_v7 }
 0x352   :  { %v3946_v56 = vmax.f32 %v3910_v44, 0.0  ;;  %v12852_v57 = vpop.f32.mrb[26].mxu0  ;;  %v4047_v14 = vld [vmem:[#allocation7 + $0x91] sm:$0xff]  ;;  %v4016_v60 = vld [vmem:[#allocation7 + $0xa8] sm:$0xff] }
 0x353   :  { %3983 = vst.msk [vmem:[#allocation7 + $0xc8] sm:$0xff] %vm62_vm2, %v3947_v50  ;;  %v3913_v1 = vadd.f32 %v12852_v57, %v15828_v12  ;;  %v3794_v2 = vpop.f32.mrb[27].mxu0  ;;  %v4114_v3 = vld [vmem:[#allocation7 + $0x9a] sm:$0xff]  ;;  %v4115_v15 = vld [vmem:[#allocation7 + $0xa2] sm:$0xff]  ;;  %v4215_v29 = vmax.f32 %v4079_v10, %v4181_v59  ;;  %v4081_v37 = vmax.f32 %v4013_v5, %v4047_v14  ;;  %v13669_v5 = vpack.c.bf16 %v15919_v40, %v15907_v23 }
 0x354   :  { %v4148_v4 = vld [vmem:[#allocation7 + $0x9b] sm:$0xff]  ;;  %3982 = vst.msk [vmem:[#allocation7 + $0xc0] sm:$0xff] %vm62_vm2, %v3946_v56  ;;  %v3912_v9 = vadd.f32 %v15828_v12, %v3794_v2  ;;  %v4149_v16 = vld [vmem:[#allocation7 + $0xa3] sm:$0xff]  ;;  %v4171_v10 = vmax.f32 %v15913_v33, %v15915_v34  ;;  %v4172_v23 = vmax.f32 %v4104_v63, %v4138_v0  ;;  %v15950_v33 = vld [vmem:[#allocation7 + $0x53] sm:$0xff] }
 0x355   :  { %v4182_v13 = vmax.f32 %v4114_v3, %v4148_v4  ;;  %v3949_v20 = vmax.f32 %v3913_v1, 0.0  ;;  %v4048_v22 = vld [vmem:[#allocation7 + $0x99] sm:$0xff]  ;;  %v4183_v32 = vmax.f32 %v4115_v15, %v4149_v16  ;;  %v4049_v47 = vld [vmem:[#allocation7 + $0xa1] sm:$0xff]  ;;  %v15965_v0 = vld [vmem:[#allocation7 + $0x6a] sm:$0xff] }
 0x356   :  { %v3948_v27 = vmax.f32 %v3912_v9, 0.0  ;;  %v12855_v28 = vpop.f32.mrb[28].mxu0  ;;  %v4015_v41 = vld [vmem:[#allocation7 + $0xa0] sm:$0xff]  ;;  %v4082_v45 = vmax.f32 %v4014_v31, %v4048_v22  ;;  %v4070_v22 = vmax.f32 %v4002_v62, %v15929_v54  ;;  %v15948_v31 = vld [vmem:[#allocation7 + $0x52] sm:$0xff]  ;;  %v15954_v40 = vmax.f32 %v4069_v55, %v4171_v10  ;;  %v4004_v55 = vld [vmem:[#allocation7 + $0x48] sm:$0xff] }
 0x357   :  { %v4216_v30 = vmax.f32 %v4080_v11, %v4182_v13  ;;  %3985 = vst.msk [vmem:[#allocation7 + $0xd8] sm:$0xff] %vm62_vm2, %v3949_v20  ;;  %v3915_v35 = vadd.f32 %v12855_v28, %v15828_v12  ;;  %v3804_v36 = vpop.f32.mrb[29].mxu0  ;;  %v4116_v38 = vld [vmem:[#allocation7 + $0xaa] sm:$0xff]  ;;  %v4117_v48 = vld [vmem:[#allocation7 + $0xb2] sm:$0xff]  ;;  %v4217_v58 = vmax.f32 %v4081_v37, %v4183_v32  ;;  %v15933_v1 = vld [vmem:[#allocation7 + $0x40] sm:$0xff]  ;;  %v4083_v6 = vmax.f32 %v4015_v41, %v4049_v47 }
 0x358   :  { %v4150_v39 = vld [vmem:[#allocation7 + $0xab] sm:$0xff]  ;;  %3984 = vst.msk [vmem:[#allocation7 + $0xd0] sm:$0xff] %vm62_vm2, %v3948_v27  ;;  %v3914_v43 = vadd.f32 %v15828_v12, %v3804_v36  ;;  %v4151_v49 = vld [vmem:[#allocation7 + $0xb3] sm:$0xff]  ;;  %v15935_v2 = vld [vmem:[#allocation7 + $0x41] sm:$0xff]  ;;  %v4204_v20 = vmax.f32 %v4068_v42, %v4170_v52  ;;  %v4206_v52 = vmax.f32 %v4070_v22, %v4172_v23  ;;  %v4173_v10 = vmax.f32 %v15948_v31, %v15950_v33 }
 0x359   :  { %v13663_v44 = vpack.c.bf16 %v4216_v30, %v4215_v29  ;;  %v4184_v46 = vmax.f32 %v4116_v38, %v4150_v39  ;;  %v3951_v50 = vmax.f32 %v3915_v35, 0.0  ;;  %v4050_v51 = vld [vmem:[#allocation7 + $0xa9] sm:$0xff]  ;;  %v4185_v61 = vmax.f32 %v4117_v48, %v4151_v49  ;;  %v4051_v16 = vld [vmem:[#allocation7 + $0xb1] sm:$0xff]  ;;  %v4106_v32 = vld [vmem:[#allocation7 + $0x5a] sm:$0xff] }
 0x35a   :  { %v3950_v56 = vmax.f32 %v3914_v43, 0.0  ;;  %v12858_v57 = vpop.f32.mrb[30].mxu0  ;;  %v4017_v9 = vld [vmem:[#allocation7 + $0xb0] sm:$0xff]  ;;  %v4084_v14 = vmax.f32 %v4016_v60, %v4050_v51  ;;  %v4018_v28 = vld [vmem:[#allocation7 + $0xb8] sm:$0xff]  ;;  %v4071_v42 = vmax.f32 %v15933_v1, %v15935_v2  ;;  %v13673_v51 = vpack.c.bf16 %v4204_v20, %v15927_v53  ;;  %v15963_v63 = vld [vmem:[#allocation7 + $0x62] sm:$0xff] }
 0x35b   :  { %13664 = vmatprep.subr.bf16.mxu1 %v13663_v44  ;;  %v4218_v59 = vmax.f32 %v4082_v45, %v4184_v46  ;;  %3987 = vst.msk [vmem:[#allocation7 + $0xe8] sm:$0xff] %vm62_vm2, %v3951_v50  ;;  %v3917_v3 = vadd.f32 %v12858_v57, %v15828_v12  ;;  %v3814_v4 = vpop.f32.mrb[31].mxu0  ;;  %v4118_v7 = vld [vmem:[#allocation7 + $0xba] sm:$0xff]  ;;  %v4119_v17 = vld [vmem:[#allocation7 + $0xc2] sm:$0xff]  ;;  %v4219_v26 = vmax.f32 %v4083_v6, %v4185_v61  ;;  %v4039_v20 = vld [vmem:[#allocation7 + $0x51] sm:$0xff] }
 0x35c   :  { %13666 = vmatpush3.bf16.msra.mxu1 %v13665_v21  ;;  %v4152_v8 = vld [vmem:[#allocation7 + $0xbb] sm:$0xff]  ;;  %3986 = vst.msk [vmem:[#allocation7 + $0xe0] sm:$0xff] %vm62_vm2, %v3950_v56  ;;  %v3916_v11 = vadd.f32 %v15828_v12, %v3814_v4  ;;  %v4153_v18 = vld [vmem:[#allocation7 + $0xc3] sm:$0xff]  ;;  %v4085_v37 = vmax.f32 %v4017_v9, %v4051_v16  ;;  %v13677_v23 = vpack.c.bf16 %v4206_v52, %v15954_v40  ;;  %v15996_v1 = vld [vmem:[#allocation7 + $0x71] sm:$0xff] }
 0x35d   :  { %v13667_v13 = vpack.c.bf16 %v4218_v59, %v4217_v58  ;;  %v4186_v15 = vmax.f32 %v4118_v7, %v4152_v8  ;;  %v3953_v19 = vmax.f32 %v3917_v3, 0.0  ;;  %v4052_v21 = vld [vmem:[#allocation7 + $0xb9] sm:$0xff]  ;;  %v4187_v29 = vmax.f32 %v4119_v17, %v4153_v18  ;;  %v15946_v30 = vld [vmem:[#allocation7 + $0x49] sm:$0xff]  ;;  %v4053_v47 = vld [vmem:[#allocation7 + $0xc1] sm:$0xff] }
 0x35e   :  { %v3952_v24 = vmax.f32 %v3916_v11, 0.0  ;;  %v12861_v25 = vpop.f32.mrb[32].mxu0  ;;  %v4140_v34 = vld [vmem:[#allocation7 + $0x5b] sm:$0xff]  ;;  %v4086_v45 = vmax.f32 %v4018_v28, %v4052_v21  ;;  %v15967_v3 = vld [vmem:[#allocation7 + $0x6b] sm:$0xff]  ;;  %v4072_v9 = vmax.f32 %v4004_v55, %v15946_v30  ;;  %v4141_v21 = vld [vmem:[#allocation7 + $0x63] sm:$0xff] }
 0x35f   :  { %13668 = vmatprep.subr.bf16.mxu1 %v13667_v13  ;;  %v4220_v27 = vmax.f32 %v4084_v14, %v4186_v15  ;;  %3989 = vst.msk [vmem:[#allocation7 + $0xf8] sm:$0xff] %vm62_vm2, %v3953_v19  ;;  %v3919_v35 = vadd.f32 %v12861_v25, %v15828_v12  ;;  %v3824_v36 = vpop.f32.mrb[33].mxu0  ;;  %v4120_v38 = vld [vmem:[#allocation7 + $0xca] sm:$0xff]  ;;  %v4019_v41 = vld [vmem:[#allocation7 + $0xc0] sm:$0xff]  ;;  %v4121_v48 = vld [vmem:[#allocation7 + $0xd2] sm:$0xff]  ;;  %v4174_v56 = vmax.f32 %v4106_v32, %v4140_v34 }
 0x360   :  { %13670 = vmatpush3.bf16.msra.mxu1 %v13669_v5  ;;  %v4154_v39 = vld [vmem:[#allocation7 + $0xcb] sm:$0xff]  ;;  %3988 = vst.msk [vmem:[#allocation7 + $0xf0] sm:$0xff] %vm62_vm2, %v3952_v24  ;;  %v3918_v43 = vadd.f32 %v15828_v12, %v3824_v36  ;;  %v4155_v49 = vld [vmem:[#allocation7 + $0xd3] sm:$0xff]  ;;  %v4221_v59 = vmax.f32 %v4085_v37, %v4187_v29  ;;  %v4087_v6 = vmax.f32 %v4019_v41, %v4053_v47  ;;  %v15981_v33 = vld [vmem:[#allocation7 + $0x60] sm:$0xff] }
 0x361   :  { %v13671_v44 = vpack.c.bf16 %v4220_v27, %v4219_v26  ;;  %v4188_v46 = vmax.f32 %v4120_v38, %v4154_v39  ;;  %v3955_v50 = vmax.f32 %v3919_v35, 0.0  ;;  %v4054_v54 = vld [vmem:[#allocation7 + $0xc9] sm:$0xff]  ;;  %v4189_v61 = vmax.f32 %v4121_v48, %v4155_v49  ;;  %v15961_v62 = vld [vmem:[#allocation7 + $0x59] sm:$0xff]  ;;  %v4055_v26 = vld [vmem:[#allocation7 + $0xd1] sm:$0xff] }
 0x362   :  { %v3954_v57 = vmax.f32 %v3918_v43, 0.0  ;;  %v12864_v58 = vpop.f32.mrb[34].mxu0  ;;  %v4020_v5 = vld [vmem:[#allocation7 + $0xc8] sm:$0xff]  ;;  %v4005_v18 = vld [vmem:[#allocation7 + $0x50] sm:$0xff]  ;;  %v4006_v19 = vld [vmem:[#allocation7 + $0x58] sm:$0xff]  ;;  %v4208_v24 = vmax.f32 %v4072_v9, %v4174_v56  ;;  %v4176_v28 = vmax.f32 %v15965_v0, %v15967_v3  ;;  %v4207_v39 = vmax.f32 %v4071_v42, %v4173_v10 }
 0x363   :  { %13672 = vmatprep.subr.bf16.mxu1 %v13671_v44  ;;  %v4222_v60 = vmax.f32 %v4086_v45, %v4188_v46  ;;  %3991 = vst.msk [vmem:[#allocation7 + $0x108] sm:$0xff] %vm62_vm2, %v3955_v50  ;;  %v3921_v53 = vadd.f32 %v12864_v58, %v15828_v12  ;;  %v3834_v4 = vpop.f32.mrb[35].mxu0  ;;  %v4122_v7 = vld [vmem:[#allocation7 + $0xda] sm:$0xff]  ;;  %v4088_v14 = vmax.f32 %v4020_v5, %v4054_v54  ;;  %v4123_v16 = vld [vmem:[#allocation7 + $0xe2] sm:$0xff]  ;;  %v4021_v25 = vld [vmem:[#allocation7 + $0xd0] sm:$0xff] }
 0x364   :  { %13674 = vmatpush3.bf16.msra.mxu1 %v13673_v51  ;;  %v4156_v8 = vld [vmem:[#allocation7 + $0xdb] sm:$0xff]  ;;  %3990 = vst.msk [vmem:[#allocation7 + $0x100] sm:$0xff] %vm62_vm2, %v3954_v57  ;;  %v3920_v11 = vadd.f32 %v15828_v12, %v3834_v4  ;;  %v4157_v17 = vld [vmem:[#allocation7 + $0xe3] sm:$0xff]  ;;  %v15979_v12 = vld [vmem:[#allocation7 + $0x72] sm:$0xff]  ;;  %v4223_v30 = vmax.f32 %v4087_v6, %v4189_v61  ;;  %v4074_v44 = vmax.f32 %v4006_v19, %v15961_v62 }
 0x365   :  { %v13675_v13 = vpack.c.bf16 %v4222_v60, %v4221_v59  ;;  %v4190_v15 = vmax.f32 %v4122_v7, %v4156_v8  ;;  %v3957_v22 = vmax.f32 %v3921_v53, 0.0  ;;  %v4056_v27 = vld [vmem:[#allocation7 + $0xd9] sm:$0xff]  ;;  %v4191_v32 = vmax.f32 %v4123_v16, %v4157_v17  ;;  %v15983_v34 = vld [vmem:[#allocation7 + $0x61] sm:$0xff]  ;;  %v4042_v35 = vld [vmem:[#allocation7 + $0x69] sm:$0xff] }
 0x366   :  { %v3956_v29 = vmax.f32 %v3920_v11, 0.0  ;;  %v4110_v36 = vld [vmem:[#allocation7 + $0x7a] sm:$0xff]  ;;  %v4175_v45 = vmax.f32 %v15963_v63, %v4141_v21  ;;  %v4089_v47 = vmax.f32 %v4021_v25, %v4055_v26  ;;  %v4008_v52 = vld [vmem:[#allocation7 + $0x68] sm:$0xff]  ;;  %v15994_v54 = vld [vmem:[#allocation7 + $0x70] sm:$0xff]  ;;  %v13681_v42 = vpack.c.bf16 %v4208_v24, %v4207_v39 }
 0x367   :  { %13676 = vmatprep.subr.bf16.mxu1 %v13675_v13  ;;  %v4224_v31 = vmax.f32 %v4088_v14, %v4190_v15  ;;  %v15985_v37 = vld [vmem:[#allocation7 + $0x73] sm:$0xff]  ;;  %v4144_v38 = vld [vmem:[#allocation7 + $0x7b] sm:$0xff]  ;;  %3994 = vst.msk [vmem:[#allocation7 + $0x118] sm:$0x3f] %vm3993_vm3, %v3957_v22  ;;  %v4124_v41 = vld [vmem:[#allocation7 + $0xea] sm:$0xff]  ;;  %v4073_v55 = vmax.f32 %v4005_v18, %v4039_v20  ;;  %v4210_v56 = vmax.f32 %v4074_v44, %v4176_v28 }
 0x368   :  { %13678 = vmatpush3.bf16.msra.mxu1 %v13677_v23  ;;  %v4022_v40 = vld [vmem:[#allocation7 + $0xd8] sm:$0xff]  ;;  %v4158_v43 = vld [vmem:[#allocation7 + $0xeb] sm:$0xff]  ;;  %3992 = vst.msk [vmem:[#allocation7 + $0x110] sm:$0xff] %vm62_vm2, %v3956_v29  ;;  %v4023_v57 = vld [vmem:[#allocation7 + $0xe0] sm:$0xff]  ;;  %v4178_v60 = vmax.f32 %v4110_v36, %v4144_v38  ;;  %v4225_v61 = vmax.f32 %v4089_v47, %v4191_v32  ;;  %v4177_v3 = vmax.f32 %v15979_v12, %v15985_v37 }
 0x369   :  { %v13679_v46 = vpack.c.bf16 %v4224_v31, %v4223_v30  ;;  %v4090_v48 = vmax.f32 %v4022_v40, %v4056_v27  ;;  %v4192_v49 = vmax.f32 %v4124_v41, %v4158_v43  ;;  %v4125_v50 = vld [vmem:[#allocation7 + $0xf2] sm:$0xff]  ;;  %v15998_v2 = vld [vmem:[#allocation7 + $0x8a] sm:$0xff]  ;;  %v4057_v58 = vld [vmem:[#allocation7 + $0xe1] sm:$0xff]  ;;  %v4209_v8 = vmax.f32 %v4073_v55, %v4175_v45 }
 0x36a   :  { %v4159_v51 = vld [vmem:[#allocation7 + $0xf3] sm:$0xff]  ;;  %v4058_v59 = vld [vmem:[#allocation7 + $0xe9] sm:$0xff]  ;;  %v4075_v11 = vmax.f32 %v15981_v33, %v15983_v34  ;;  %v4076_v13 = vmax.f32 %v4008_v52, %v4042_v35  ;;  %v4091_v16 = vmax.f32 %v4023_v57, %v4057_v58  ;;  %v4077_v27 = vmax.f32 %v15994_v54, %v15996_v1 }
 0x36b   :  { %13680 = vmatprep.subr.bf16.mxu1 %v13679_v46  ;;  %v4226_v62 = vmax.f32 %v4090_v48, %v4192_v49  ;;  %v4024_v63 = vld [vmem:[#allocation7 + $0xe8] sm:$0xff]  ;;  %v4193_v0 = vmax.f32 %v4125_v50, %v4159_v51  ;;  %v4025_v53 = vld [vmem:[#allocation7 + $0xf0] sm:$0xff]  ;;  %v4044_v4 = vld [vmem:[#allocation7 + $0x79] sm:$0xff]  ;;  %v13685_v23 = vpack.c.bf16 %v4210_v56, %v4209_v8 }
 0x36c   :  { %v4111_v5 = vld [vmem:[#allocation7 + $0x82] sm:$0xff]  ;;  %v4146_v7 = vld [vmem:[#allocation7 + $0x8b] sm:$0xff]  ;;  %13682 = vmatpush3.bf16.msra.mxu1 %v13681_v42  ;;  %v4126_v9 = vld [vmem:[#allocation7 + $0xfa] sm:$0xff]  ;;  %v4092_v17 = vmax.f32 %v4024_v63, %v4058_v59  ;;  %v4212_v24 = vmax.f32 %v4076_v13, %v4178_v60  ;;  %v4211_v32 = vmax.f32 %v4075_v11, %v4177_v3 }
 0x36d   :  { %v4145_v6 = vld [vmem:[#allocation7 + $0x83] sm:$0xff]  ;;  %v4160_v10 = vld [vmem:[#allocation7 + $0xfb] sm:$0xff]  ;;  %v4059_v14 = vld [vmem:[#allocation7 + $0xf1] sm:$0xff]  ;;  %v13683_v15 = vpack.c.bf16 %v4226_v62, %v4225_v61  ;;  %v4180_v28 = vmax.f32 %v15998_v2, %v4146_v7  ;;  %v4227_v30 = vmax.f32 %v4091_v16, %v4193_v0 }
 0x36e   :  { %v4194_v18 = vmax.f32 %v4126_v9, %v4160_v10  ;;  %v4127_v19 = vld [vmem:[#allocation7 + $0x102] sm:$0xff]  ;;  %v4010_v21 = vld [vmem:[#allocation7 + $0x78] sm:$0xff]  ;;  %v4093_v37 = vmax.f32 %v4025_v53, %v4059_v14  ;;  %v4179_v41 = vmax.f32 %v4111_v5, %v4145_v6  ;;  %v13689_v50 = vpack.c.bf16 %v4212_v24, %v4211_v32  ;;  %v4233_v60 = vld [vmem:[%s17533_s23] sm:$0xff] }
 0x36f   :  { %v4161_v20 = vld [vmem:[#allocation7 + $0x103] sm:$0xff]  ;;  %v4026_v25 = vld [vmem:[#allocation7 + $0xf8] sm:$0xff]  ;;  %13684 = vmatprep.subr.bf16.mxu1 %v13683_v15  ;;  %v4162_v39 = vld [vmem:[#allocation7 + $0x10b] sm:$0xff]  ;;  %v4078_v40 = vmax.f32 %v4010_v21, %v4044_v4 }
 0x370   :  { %v4028_v22 = vld [vmem:[#allocation7 + $0x108] sm:$0x7]  ;;  %v4060_v26 = vld [vmem:[#allocation7 + $0xf9] sm:$0xff]  ;;  %v4228_v31 = vmax.f32 %v4092_v17, %v4194_v18  ;;  %v4195_v33 = vmax.f32 %v4127_v19, %v4161_v20  ;;  %13686 = vmatpush3.bf16.msra.mxu1 %v13685_v23  ;;  %v4213_v55 = vmax.f32 %v4077_v27, %v4179_v41  ;;  %v4237_v61 = vld [vmem:[%s17533_s23 + $0x20] sm:$0xff] }
 0x371   :  { %v4027_v12 = vld [vmem:[#allocation7 + $0x100] sm:$0xff]  ;;  %v4062_v29 = vld [vmem:[#allocation7 + $0x109] sm:$0x7]  ;;  %v4130_v35 = vld [vmem:[#allocation7 + $0x11a] sm:$0x7]  ;;  %v4094_v46 = vmax.f32 %v4026_v25, %v4060_v26  ;;  %v4214_v51 = vmax.f32 %v4078_v40, %v4180_v28 }
 0x372   :  { %v4061_v34 = vld [vmem:[#allocation7 + $0x101] sm:$0xff]  ;;  %v4164_v36 = vld [vmem:[#allocation7 + $0x11b] sm:$0x7]  ;;  %v4128_v38 = vld [vmem:[#allocation7 + $0x10a] sm:$0xff]  ;;  %v13687_v45 = vpack.c.bf16 %v4228_v31, %v4227_v30  ;;  %v4096_v48 = vmax.f32 %v4028_v22, %v4062_v29  ;;  %v4229_v1 = vmax.f32 %v4093_v37, %v4195_v33  ;;  %v14484_v29 = vmov 0.0  }
 0x373   :  { %v4129_v43 = vld [vmem:[#allocation7 + $0x112] sm:$0xff]  ;;  %v4198_v44 = vmax.f32 %v4130_v35, %v4164_v36  ;;  %v4196_v47 = vmax.f32 %v4128_v38, %v4162_v39  ;;  %v4095_v52 = vmax.f32 %v4027_v12, %v4061_v34  ;;  %v13693_v58 = vpack.c.bf16 %v4214_v51, %v4213_v55  ;;  %v4236_v62 = vld [vmem:[%s17533_s23 + $0x18] sm:$0xff]  ;;  %v4239_v0 = vld [vmem:[%s17533_s23 + $0x30] sm:$0xff]  ;;  %63 = vst.msk [vmem:[#allocation2] sm:$0xff] %vm62_vm2, %v14484_v29 }
 0x374   :  { %v4163_v49 = vld [vmem:[#allocation7 + $0x113] sm:$0xff]  ;;  %13688 = vmatprep.subr.bf16.mxu1 %v13687_v45  ;;  %v4240_v63 = vld [vmem:[%s17533_s23 + $0x38] sm:$0xff]  ;;  %v4243_v3 = vld [vmem:[%s17533_s23 + $0x50] sm:$0xff]  ;;  %65 = vst.msk [vmem:[#allocation2 + $0x8] sm:$0x7] %vm64_vm8, %v14484_v29 }
 0x375   :  { %v4197_v54 = vmax.f32 %v4129_v43, %v4163_v49  ;;  %v4230_v2 = vmax.f32 %v4094_v46, %v4196_v47  ;;  %v4232_v42 = vmax.f32 %v4096_v48, %v4198_v44  ;;  %13690 = vmatpush3.bf16.msra.mxu1 %v13689_v50  ;;  %v4242_v53 = vld [vmem:[%s17533_s23 + $0x48] sm:$0xff]  ;;  %v4245_v5 = vld [vmem:[%s17533_s23 + $0x60] sm:$0xff]  ;;  %v4248_v7 = vld [vmem:[%s17533_s23 + $0x78] sm:$0xff]  ;;  %66 = vst.msk [vmem:[#allocation2 + $0x59] sm:$0xff] %vm62_vm2, %v14484_v29 }
 0x376   :  { %v4246_v4 = vld [vmem:[%s17533_s23 + $0x68] sm:$0xff]  ;;  %v4249_v6 = vld [vmem:[%s17533_s23 + $0x80] sm:$0xff]  ;;  %v4252_v8 = vld [vmem:[%s17533_s23 + $0x98] sm:$0xff]  ;;  %67 = vst.msk [vmem:[#allocation2 + $0x61] sm:$0x7] %vm64_vm8, %v14484_v29 }
 0x377   :  { %v4231_v56 = vmax.f32 %v4095_v52, %v4197_v54  ;;  %v13691_v57 = vpack.c.bf16 %v4230_v2, %v4229_v1  ;;  %v4251_v9 = vld [vmem:[%s17533_s23 + $0x90] sm:$0xff]  ;;  %v4254_v11 = vld [vmem:[%s17533_s23 + $0xa8] sm:$0xff]  ;;  %v4257_v14 = vld [vmem:[%s17533_s23 + $0xc0] sm:$0xff]  ;;  %78 = vst.msk [vmem:[#allocation6 + $0x59] sm:$0xff] %vm62_vm2, %v14484_v29 }
 0x378   :  { %v4255_v10 = vld [vmem:[%s17533_s23 + $0xb0] sm:$0xff]  ;;  %v4258_v13 = vld [vmem:[%s17533_s23 + $0xc8] sm:$0xff]  ;;  %v4261_v15 = vld [vmem:[%s17533_s23 + $0xe0] sm:$0x3f]  ;;  %79 = vst.msk [vmem:[#allocation6 + $0x61] sm:$0x7] %vm64_vm8, %v14484_v29 }
 0x379   :  { %13692 = vmatprep.subr.bf16.mxu1 %v13691_v57  ;;  %v13695_v59 = vpack.c.bf16 %v4232_v42, %v4231_v56  ;;  %v4260_v16 = vld [vmem:[%s17533_s23 + $0xd8] sm:$0x3f]  ;;  %v4235_v17 = vld [vmem:[%s17533_s23 + $0x10] sm:$0xff]  ;;  %v4238_v18 = vld [vmem:[%s17533_s23 + $0x28] sm:$0xff]  ;;  %69 = vst.msk [vmem:[#allocation3] sm:$0x7f] %vm68_vm13, %v14484_v29 }
 0x37a   :  { %13694 = vmatpush3.bf16.msra.mxu1 %v13693_v58  ;;  %v4241_v19 = vld [vmem:[%s17533_s23 + $0x40] sm:$0xff]  ;;  %v4244_v20 = vld [vmem:[%s17533_s23 + $0x58] sm:$0xff]  ;;  %v4247_v21 = vld [vmem:[%s17533_s23 + $0x70] sm:$0xff]  ;;  %70 = vst.msk [vmem:[#allocation3 + $0x1d] sm:$0x7f] %vm68_vm13, %v14484_v29  ;;  %vm7922_vm8 = vcmask 1041408  }
 0x37b   :  { %13697 = vmatprep.subr.msk.bf16.mxu1 %vm13696_vm6, %v13695_v59  ;;  %v4250_v22 = vld [vmem:[%s17533_s23 + $0x88] sm:$0xff]  ;;  %v4253_v23 = vld [vmem:[%s17533_s23 + $0xa0] sm:$0xff]  ;;  %v4256_v24 = vld [vmem:[%s17533_s23 + $0xb8] sm:$0xff]  ;;  %75 = vst.msk [vmem:[#allocation5 + $0x1d] sm:$0x7f] %vm68_vm13, %v14484_v29 }
 0x37c   :  { %v4259_v25 = vld [vmem:[%s17533_s23 + $0xd0] sm:$0xff]  ;;  %v4262_v26 = vld [vmem:[%s17533_s23 + $0xe8] sm:$0x3f]  ;;  %v11180_v27 = vld [vmem:[%s17508_s4 + $0x20] sm:$0xff] }
 0x37d   :  { %4363 = vmatmul.mubr.f32.vlgmr.msra.gmra.mrb[0].mxu1 %v4233_v60  ;;  %v11181_v28 = vld [vmem:[%s17508_s4 + $0x28] sm:$0xff]  ;;  %v11182_v30 = vld [vmem:[%s17508_s4 + $0x30] sm:$0xff]  ;;  %v11183_v31 = vld [vmem:[%s17508_s4 + $0x38] sm:$0xff] }
 0x37e   :  { %13700 = vmatpush3.bf16.msk.msra.mxu1 %vm13696_vm6, %v13695_v59  ;;  %4367 = vmatprep.mubr.f32.mxu1 %v4237_v61  ;;  %v13701_v12 = vpack.c.bf16 %v11181_v28, %v11180_v27  ;;  %v13705_v32 = vpack.c.bf16 %v11183_v31, %v11182_v30  ;;  %v4552_v33 = vld [vmem:[#allocation2 + $0x1] sm:$0xff]  ;;  %vm7156_vm6 = vcmask 121856  }
 0x37f   :  { %v4548_v34 = vld [vmem:[%s17508_s4] sm:$0xff]  ;;  %v4549_v35 = vld [vmem:[%s17508_s4 + $0x8] sm:$0xff] }
 0x380   :  { %13702 = vmatprep.subr.bf16.mxu1 %v13701_v12  ;;  %v13709_v36 = vpack.c.bf16 %v4549_v35, %v4548_v34 }
 0x381   :  { %4368 = vmatmul.mubr.f32.gmra.mrb[2].mxu1 %v4236_v62 }
 0x382   :  { %4372 = vmatprep.mubr.f32.mxu1 %v4240_v63 }
 0x385   :  { %4373 = vmatmul.mubr.f32.gmra.mrb[4].mxu1 %v4239_v0 }
 0x386   :  { %4377 = vmatprep.mubr.f32.mxu1 %v4243_v3 }
 0x389   :  { %4378 = vmatmul.mubr.f32.gmra.mrb[6].mxu1 %v4242_v53 }
 0x38a   :  { %4382 = vmatprep.mubr.f32.mxu1 %v4246_v4 }
 0x38d   :  { %4383 = vmatmul.mubr.f32.gmra.mrb[8].mxu1 %v4245_v5 }
 0x38e   :  { %4387 = vmatprep.mubr.f32.mxu1 %v4249_v6 }
 0x391   :  { %4388 = vmatmul.mubr.f32.gmra.mrb[10].mxu1 %v4248_v7 }
 0x392   :  { %4392 = vmatprep.mubr.f32.mxu1 %v4252_v8 }
 0x395   :  { %4393 = vmatmul.mubr.f32.gmra.mrb[12].mxu1 %v4251_v9 }
 0x396   :  { %4397 = vmatprep.mubr.f32.mxu1 %v4255_v10 }
 0x399   :  { %4398 = vmatmul.mubr.f32.gmra.mrb[14].mxu1 %v4254_v11  ;;  %v4550_v11 = vld [vmem:[%s17508_s4 + $0x10] sm:$0xff] }
 0x39a   :  { %4402 = vmatprep.mubr.f32.mxu1 %v4258_v13  ;;  %v4551_v13 = vld [vmem:[%s17508_s4 + $0x18] sm:$0xff] }
 0x39d   :  { %4403 = vmatmul.mubr.f32.gmra.mrb[16].mxu1 %v4257_v14 }
 0x39e   :  { %4407 = vmatprep.mubr.f32.mxu1 %v4261_v15 }
 0x3a1   :  { %4408 = vmatmul.mubr.f32.gmra.mrb[18].mxu1 %v4260_v16 }
 0x3a2   :  { %12869 = vmatprep.mubr.msk.f32.mxu1 %vm4263_vm7, %v4235_v17 }
 0x3a5   :  { %12870 = vmatmul.mubr.msk.f32.vlgmr.msra.gmra.mrb[20].mxu1 %vm4263_vm7, %v4238_v18  ;;  %v13713_v18 = vpack.c.bf16 %v4551_v13, %v4550_v11  ;;  %v11247_v11 = vld [vmem:[%s17508_s4 + $0xa8] sm:$0xff] }
 0x3a6   :  { %12872 = vmatprep.mubr.msk.f32.mxu1 %vm4263_vm7, %v4241_v19  ;;  %13704 = vmatpush3.bf16.msra.mxu1 %v13701_v12  ;;  %v11204_v19 = vld [vmem:[%s17508_s4 + $0x40] sm:$0xff] }
 0x3a7   :  { %13706 = vmatprep.subr.bf16.mxu1 %v13705_v32 }
 0x3a9   :  { %12873 = vmatmul.mubr.msk.f32.gmra.mrb[22].mxu1 %vm4263_vm7, %v4244_v20 }
 0x3aa   :  { %12875 = vmatprep.mubr.msk.f32.mxu1 %vm4263_vm7, %v4247_v21  ;;  %13708 = vmatpush3.bf16.msra.mxu1 %v13705_v32 }
 0x3ab   :  { %13710 = vmatprep.subr.bf16.mxu1 %v13709_v36 }
 0x3ad   :  { %12876 = vmatmul.mubr.msk.f32.gmra.mrb[24].mxu1 %vm4263_vm7, %v4250_v22  ;;  %v11205_v22 = vld [vmem:[%s17508_s4 + $0x48] sm:$0xff] }
 0x3ae   :  { %12878 = vmatprep.mubr.msk.f32.mxu1 %vm4263_vm7, %v4253_v23  ;;  %v13717_v27 = vpack.c.bf16 %v11205_v22, %v11204_v19  ;;  %v11261_v22 = vld [vmem:[%s17508_s4 + $0xc8] sm:$0xff] }
 0x3b1   :  { %12879 = vmatmul.mubr.msk.f32.gmra.mrb[26].mxu1 %vm4263_vm7, %v4256_v24 }
 0x3b2   :  { %12881 = vmatprep.mubr.msk.f32.mxu1 %vm4263_vm7, %v4259_v25 }
 0x3b5   :  { %12882 = vmatmul.mubr.msk.f32.gmra.mrb[28].mxu1 %vm4263_vm7, %v4262_v26  ;;  %vm7920_vm7 = vcmask 1043456  }
 0x3b6   :  { %12892 = vmatprep.mubr.msk.f32.mxu1 %vm62_vm2, %v4552_v33 }
 0x450   :  { %v11917_v37 = vpop.f32.mrb[0].mxu1 }
 0x451   :  { %v11918_v38 = vpop.f32.mrb[1].mxu1 }
 0x452   :  { %v11919_v39 = vadd.f32 %v11918_v38, %v11917_v37  ;;  %v4538_v38 = vld [vmem:[#allocation2] sm:$0xff] }
 0x454   :  { %v11920_v40 = vpop.f32.mrb[2].mxu1 }
 0x455   :  { %v11921_v41 = vpop.f32.mrb[3].mxu1 }
 0x456   :  { %v11922_v43 = vadd.f32 %v11921_v41, %v11920_v40  ;;  %v11206_v40 = vld [vmem:[%s17508_s4 + $0x50] sm:$0xff]  ;;  %v11207_v41 = vld [vmem:[%s17508_s4 + $0x58] sm:$0xff] }
 0x458   :  { %v11923_v44 = vpop.f32.mrb[4].mxu1 }
 0x459   :  { %v11924_v45 = vpop.f32.mrb[5].mxu1 }
 0x45a   :  { %v11925_v46 = vadd.f32 %v11924_v45, %v11923_v44  ;;  %v11218_v45 = vld [vmem:[%s17508_s4 + $0x60] sm:$0xff] }
 0x45c   :  { %v11926_v47 = vpop.f32.mrb[6].mxu1 }
 0x45d   :  { %v11927_v48 = vpop.f32.mrb[7].mxu1 }
 0x45e   :  { %v11928_v49 = vadd.f32 %v11927_v48, %v11926_v47 }
 0x460   :  { %v11929_v50 = vpop.f32.mrb[8].mxu1 }
 0x461   :  { %v11930_v51 = vpop.f32.mrb[9].mxu1 }
 0x462   :  { %v11931_v52 = vadd.f32 %v11930_v51, %v11929_v50 }
 0x464   :  { %v11932_v54 = vpop.f32.mrb[10].mxu1 }
 0x465   :  { %v11933_v1 = vpop.f32.mrb[11].mxu1 }
 0x466   :  { %v11934_v2 = vadd.f32 %v11933_v1, %v11932_v54 }
 0x468   :  { %v11935_v42 = vpop.f32.mrb[12].mxu1 }
 0x469   :  { %v11936_v55 = vpop.f32.mrb[13].mxu1 }
 0x46a   :  { %v11937_v56 = vadd.f32 %v11936_v55, %v11935_v42  ;;  %v11220_v55 = vld [vmem:[%s17508_s4 + $0x70] sm:$0xff] }
 0x46c   :  { %v11938_v57 = vpop.f32.mrb[14].mxu1 }
 0x46d   :  { %v11939_v58 = vpop.f32.mrb[15].mxu1 }
 0x46e   :  { %v11940_v59 = vadd.f32 %v11939_v58, %v11938_v57 }
 0x470   :  { %v11941_v60 = vpop.f32.mrb[16].mxu1 }
 0x471   :  { %v11942_v61 = vpop.f32.mrb[17].mxu1 }
 0x472   :  { %v11943_v62 = vadd.f32 %v11942_v61, %v11941_v60  ;;  %v11233_v60 = vld [vmem:[%s17508_s4 + $0x88] sm:$0xff] }
 0x474   :  { %v11944_v63 = vpop.f32.mrb[18].mxu1 }
 0x475   :  { %v11945_v0 = vpop.f32.mrb[19].mxu1 }
 0x476   :  { %v11946_v3 = vadd.f32 %v11945_v0, %v11944_v63 }
 0x478   :  { %v12871_v53 = vpop.f32.mrb[20].mxu1 }
 0x479   :  { %v4485_v4 = vadd.f32 %v12871_v53, %v11922_v43  ;;  %v4479_v5 = vpop.f32.mrb[21].mxu1  ;;  %v13721_v43 = vpack.c.bf16 %v11207_v41, %v11206_v40 }
 0x47a   :  { %v4480_v6 = vadd.f32 %v11919_v39, %v4479_v5 }
 0x47b   :  { %4529 = vst.msk [vmem:[#allocation2 + $0x13] sm:$0xff] %vm62_vm2, %v4485_v4 }
 0x47c   :  { %4528 = vst.msk [vmem:[#allocation2 + $0xb] sm:$0xff] %vm62_vm2, %v4480_v6  ;;  %v12874_v7 = vpop.f32.mrb[22].mxu1 }
 0x47d   :  { %v4495_v8 = vadd.f32 %v12874_v7, %v11928_v49  ;;  %v4489_v9 = vpop.f32.mrb[23].mxu1  ;;  %v11234_v7 = vld [vmem:[%s17508_s4 + $0x90] sm:$0xff] }
 0x47e   :  { %v4490_v10 = vadd.f32 %v11925_v46, %v4489_v9  ;;  %v11219_v46 = vld [vmem:[%s17508_s4 + $0x68] sm:$0xff] }
 0x47f   :  { %4531 = vst.msk [vmem:[#allocation2 + $0x23] sm:$0xff] %vm62_vm2, %v4495_v8  ;;  %v13725_v48 = vpack.c.bf16 %v11219_v46, %v11218_v45  ;;  %v11235_v8 = vld [vmem:[%s17508_s4 + $0x98] sm:$0xff] }
 0x480   :  { %4530 = vst.msk [vmem:[#allocation2 + $0x1b] sm:$0xff] %vm62_vm2, %v4490_v10  ;;  %v12877_v14 = vpop.f32.mrb[24].mxu1  ;;  %v13737_v9 = vpack.c.bf16 %v11235_v8, %v11234_v7  ;;  %v11246_v10 = vld [vmem:[%s17508_s4 + $0xa0] sm:$0xff] }
 0x481   :  { %v4505_v15 = vadd.f32 %v12877_v14, %v11934_v2  ;;  %v4499_v16 = vpop.f32.mrb[25].mxu1  ;;  %v4857_v2 = vld [vmem:[#allocation2 + $0x2] sm:$0xff]  ;;  %v13741_v13 = vpack.c.bf16 %v11247_v11, %v11246_v10 }
 0x482   :  { %v4500_v17 = vadd.f32 %v11931_v52, %v4499_v16  ;;  %v11248_v16 = vld [vmem:[%s17508_s4 + $0xb0] sm:$0xff] }
 0x483   :  { %4533 = vst.msk [vmem:[#allocation2 + $0x33] sm:$0xff] %vm62_vm2, %v4505_v15  ;;  %v4553_v20 = vld [vmem:[#allocation2 + $0x9] sm:$0xff]  ;;  %v4554_v21 = vld [vmem:[#allocation2 + $0x11] sm:$0xff] }
 0x484   :  { %4532 = vst.msk [vmem:[#allocation2 + $0x2b] sm:$0xff] %vm62_vm2, %v4500_v17  ;;  %v12880_v23 = vpop.f32.mrb[26].mxu1  ;;  %12893 = vmatmul.mubr.msk.f32.vlgmr.msra.gmra.mrb[30].mxu1 %vm62_vm2, %v4553_v20  ;;  %v4539_v44 = vld [vmem:[#allocation2 + $0x8] sm:$0xff]  ;;  %v4540_v47 = vld [vmem:[#allocation2 + $0x10] sm:$0xff]  ;;  %v11249_v17 = vld [vmem:[%s17508_s4 + $0xb8] sm:$0xff] }
 0x485   :  { %v4515_v24 = vadd.f32 %v12880_v23, %v11940_v59  ;;  %v4509_v25 = vpop.f32.mrb[27].mxu1  ;;  %12895 = vmatprep.mubr.msk.f32.mxu1 %vm62_vm2, %v4554_v21  ;;  %13712 = vmatpush3.bf16.msra.mxu1 %v13709_v36  ;;  %v4858_v58 = vld [vmem:[#allocation2 + $0xa] sm:$0xff]  ;;  %v11232_v59 = vld [vmem:[%s17508_s4 + $0x80] sm:$0xff]  ;;  %v4859_v61 = vld [vmem:[#allocation2 + $0x12] sm:$0xff]  ;;  %v13745_v19 = vpack.c.bf16 %v11249_v17, %v11248_v16  ;;  %v14485_v16 = vmov 0.0|0.0  }
 0x486   :  { %v4510_v26 = vadd.f32 %v11937_v56, %v4509_v25  ;;  %13714 = vmatprep.subr.bf16.mxu1 %v13713_v18  ;;  %v11221_v56 = vld [vmem:[%s17508_s4 + $0x78] sm:$0xff]  ;;  %v11260_v21 = vld [vmem:[%s17508_s4 + $0xc0] sm:$0xff] }
 0x487   :  { %4535 = vst.msk [vmem:[#allocation2 + $0x43] sm:$0xff] %vm62_vm2, %v4515_v24  ;;  %v4555_v28 = vld [vmem:[#allocation2 + $0x19] sm:$0xff]  ;;  %v4556_v12 = vld [vmem:[#allocation2 + $0x21] sm:$0xff]  ;;  %v13729_v57 = vpack.c.bf16 %v11221_v56, %v11220_v55  ;;  %v13749_v24 = vpack.c.bf16 %v11261_v22, %v11260_v21  ;;  %v11290_v55 = vld [vmem:[%s17508_s4 + $0x110] sm:$0xff] }
 0x488   :  { %4534 = vst.msk [vmem:[#allocation2 + $0x3b] sm:$0xff] %vm62_vm2, %v4510_v26  ;;  %v12883_v30 = vpop.f32.mrb[28].mxu1  ;;  %12896 = vmatmul.mubr.msk.f32.gmra.mrb[32].mxu1 %vm62_vm2, %v4555_v28  ;;  %v4541_v49 = vld [vmem:[#allocation2 + $0x18] sm:$0xff]  ;;  %v4542_v50 = vld [vmem:[#allocation2 + $0x20] sm:$0xff] }
 0x489   :  { %v4525_v31 = vadd.f32 %v12883_v30, %v11946_v3  ;;  %v4519_v32 = vpop.f32.mrb[29].mxu1  ;;  %12898 = vmatprep.mubr.msk.f32.mxu1 %vm62_vm2, %v4556_v12  ;;  %13716 = vmatpush3.bf16.msra.mxu1 %v13713_v18  ;;  %v4860_v63 = vld [vmem:[#allocation2 + $0x1a] sm:$0xff]  ;;  %v4861_v0 = vld [vmem:[#allocation2 + $0x22] sm:$0xff]  ;;  %v5197_v18 = vld [vmem:[#allocation2 + $0xb] sm:$0xff] }
 0x48a   :  { %v4520_v33 = vadd.f32 %v11943_v62, %v4519_v32  ;;  %13718 = vmatprep.subr.bf16.mxu1 %v13717_v27  ;;  %v13733_v62 = vpack.c.bf16 %v11233_v60, %v11232_v59  ;;  %v5198_v20 = vld [vmem:[#allocation2 + $0x13] sm:$0xff]  ;;  %v5199_v23 = vld [vmem:[#allocation2 + $0x1b] sm:$0xff]  ;;  %v5200_v25 = vld [vmem:[#allocation2 + $0x23] sm:$0xff] }
 0x48b   :  { %4537 = vst.msk [vmem:[#allocation2 + $0x53] sm:$0x3f] %vm3993_vm3, %v4525_v31  ;;  %v4557_v34 = vld [vmem:[#allocation2 + $0x29] sm:$0xff]  ;;  %v4558_v35 = vld [vmem:[#allocation2 + $0x31] sm:$0xff]  ;;  %v5708_v59 = vld [vmem:[#allocation2 + $0x1d] sm:$0xff] }
 0x48c   :  { %4536 = vst.msk [vmem:[#allocation2 + $0x4b] sm:$0xff] %vm62_vm2, %v4520_v33  ;;  %12899 = vmatmul.mubr.msk.f32.gmra.mrb[34].mxu1 %vm62_vm2, %v4557_v34  ;;  %v4543_v51 = vld [vmem:[#allocation2 + $0x28] sm:$0xff]  ;;  %v4544_v52 = vld [vmem:[#allocation2 + $0x30] sm:$0xff]  ;;  %v11263_v33 = vld [vmem:[%s17508_s4 + $0xd8] sm:$0xff] }
 0x48d   :  { %12901 = vmatprep.mubr.msk.f32.mxu1 %vm62_vm2, %v4558_v35  ;;  %v4862_v3 = vld [vmem:[#allocation2 + $0x2a] sm:$0xff]  ;;  %v4863_v53 = vld [vmem:[#allocation2 + $0x32] sm:$0xff]  ;;  %v11302_v17 = vld [vmem:[%s17509_s5] ss:$0 sm:$0xff] }
 0x48e   :  { %v5201_v26 = vld [vmem:[#allocation2 + $0x2b] sm:$0xff]  ;;  %v5204_v12 = vld [vmem:[#allocation2 + $0x43] sm:$0xff]  ;;  %v11291_v56 = vld [vmem:[%s17508_s4 + $0x118] sm:$0xff] }
 0x48f   :  { %v4559_v36 = vld [vmem:[#allocation2 + $0x39] sm:$0xff]  ;;  %v4560_v37 = vld [vmem:[#allocation2 + $0x41] sm:$0xff]  ;;  %v11262_v32 = vld [vmem:[%s17508_s4 + $0xd0] sm:$0xff] }
 0x490   :  { %12902 = vmatmul.mubr.msk.f32.gmra.mrb[36].mxu1 %vm62_vm2, %v4559_v36  ;;  %v4545_v54 = vld [vmem:[#allocation2 + $0x38] sm:$0xff]  ;;  %v4546_v1 = vld [vmem:[#allocation2 + $0x40] sm:$0xff]  ;;  %v5367_v34 = vld [vmem:[#allocation2 + $0xc] sm:$0xff]  ;;  %v13753_v35 = vpack.c.bf16 %v11263_v33, %v11262_v32 }
 0x491   :  { %12904 = vmatprep.mubr.msk.f32.mxu1 %vm62_vm2, %v4560_v37  ;;  %v4864_v4 = vld [vmem:[#allocation2 + $0x3a] sm:$0xff]  ;;  %v4865_v5 = vld [vmem:[#allocation2 + $0x42] sm:$0xff]  ;;  %v5880_v8 = vld [vmem:[#allocation2 + $0x2e] sm:$0xff] }
 0x492   :  { %v5203_v28 = vld [vmem:[#allocation2 + $0x3b] sm:$0xff]  ;;  %v5206_v31 = vld [vmem:[#allocation2 + $0x53] sm:$0x3f]  ;;  %v5370_v41 = vld [vmem:[#allocation2 + $0x24] sm:$0xff] }
 0x493   :  { %v4561_v39 = vld [vmem:[#allocation2 + $0x49] sm:$0x3f]  ;;  %v5036_v15 = vld [vmem:[#allocation2 + $0x52] sm:$0x3f]  ;;  %v11274_v37 = vld [vmem:[%s17508_s4 + $0xe0] sm:$0xff] }
 0x494   :  { %12905 = vmatmul.mubr.msk.f32.gmra.mrb[38].mxu1 %vm62_vm2, %v4561_v39  ;;  %v4547_v42 = vld [vmem:[#allocation2 + $0x48] sm:$0x3f]  ;;  %v5368_v36 = vld [vmem:[#allocation2 + $0x14] sm:$0xff]  ;;  %v5369_v39 = vld [vmem:[#allocation2 + $0x1c] sm:$0xff] }
 0x495   :  { %12915 = vmatprep.mubr.msk.f32.mxu1 %vm62_vm2, %v4538_v38  ;;  %v4866_v6 = vld [vmem:[#allocation2 + $0x4a] sm:$0x3f]  ;;  %v5373_v45 = vld [vmem:[#allocation2 + $0x3c] sm:$0xff] }
 0x496   :  { %v5035_v14 = vld [vmem:[#allocation2 + $0x4a] sm:$0xff]  ;;  %v5882_v10 = vld [vmem:[#allocation2 + $0x3e] sm:$0xff] }
 0x497   :  { %v5205_v30 = vld [vmem:[#allocation2 + $0x4b] sm:$0xff] }
 0x498   :  { %12916 = vmatmul.mubr.msk.f32.vlgmr.msra.gmra.mrb[30].mxu1 %vm62_vm2, %v4539_v44  ;;  %v11275_v38 = vld [vmem:[%s17508_s4 + $0xe8] sm:$0xff]  ;;  %v5372_v44 = vld [vmem:[#allocation2 + $0x34] sm:$0xff] }
 0x499   :  { %12918 = vmatprep.mubr.msk.f32.mxu1 %vm62_vm2, %v4540_v47  ;;  %13720 = vmatpush3.bf16.msra.mxu1 %v13717_v27  ;;  %v5202_v27 = vld [vmem:[#allocation2 + $0x33] sm:$0xff]  ;;  %v13757_v40 = vpack.c.bf16 %v11275_v38, %v11274_v37  ;;  %v5374_v46 = vld [vmem:[#allocation2 + $0x44] sm:$0xff] }
 0x49a   :  { %13722 = vmatprep.subr.bf16.mxu1 %v13721_v43  ;;  %v5375_v47 = vld [vmem:[#allocation2 + $0x4c] sm:$0xff] }
 0x49b   :  { %v5709_v60 = vld [vmem:[#allocation2 + $0x25] sm:$0xff] }
 0x49c   :  { %12919 = vmatmul.mubr.msk.f32.gmra.mrb[32].mxu1 %vm62_vm2, %v4541_v49  ;;  %v11276_v49 = vld [vmem:[%s17508_s4 + $0xf0] sm:$0xff]  ;;  %v5879_v7 = vld [vmem:[#allocation2 + $0x26] sm:$0xff] }
 0x49d   :  { %12921 = vmatprep.mubr.msk.f32.mxu1 %vm62_vm2, %v4542_v50  ;;  %13724 = vmatpush3.bf16.msra.mxu1 %v13721_v43  ;;  %v5371_v43 = vld [vmem:[#allocation2 + $0x2c] sm:$0xff]  ;;  %v11277_v50 = vld [vmem:[%s17508_s4 + $0xf8] sm:$0xff] }
 0x49e   :  { %13726 = vmatprep.subr.bf16.mxu1 %v13725_v48  ;;  %v5883_v11 = vld [vmem:[#allocation2 + $0x46] sm:$0xff] }
 0x4a0   :  { %12922 = vmatmul.mubr.msk.f32.gmra.mrb[34].mxu1 %vm62_vm2, %v4543_v51  ;;  %v13761_v51 = vpack.c.bf16 %v11277_v50, %v11276_v49 }
 0x4a1   :  { %12924 = vmatprep.mubr.msk.f32.mxu1 %vm62_vm2, %v4544_v52  ;;  %v11288_v52 = vld [vmem:[%s17508_s4 + $0x100] sm:$0xff] }
 0x4a4   :  { %12925 = vmatmul.mubr.msk.f32.gmra.mrb[36].mxu1 %vm62_vm2, %v4545_v54  ;;  %v11289_v54 = vld [vmem:[%s17508_s4 + $0x108] sm:$0xff] }
 0x4a5   :  { %12927 = vmatprep.mubr.msk.f32.mxu1 %vm62_vm2, %v4546_v1  ;;  %v13765_v1 = vpack.c.bf16 %v11289_v54, %v11288_v52 }
 0x4a8   :  { %12928 = vmatmul.mubr.msk.f32.gmra.mrb[38].mxu1 %vm62_vm2, %v4547_v42  ;;  %v5546_v42 = vld [vmem:[#allocation2 + $0x5c] sm:$0x3f] }
 0x4a9   :  { %12938 = vmatprep.mubr.msk.f32.mxu1 %vm62_vm2, %v4857_v2  ;;  %v5545_v2 = vld [vmem:[#allocation2 + $0x54] sm:$0xff] }
 0x4ac   :  { %12939 = vmatmul.mubr.msk.f32.vlgmr.msra.gmra.mrb[30].mxu1 %vm62_vm2, %v4858_v58 }
 0x4ad   :  { %12941 = vmatprep.mubr.msk.f32.mxu1 %vm62_vm2, %v4859_v61  ;;  %13728 = vmatpush3.bf16.msra.mxu1 %v13725_v48  ;;  %v5376_v48 = vld [vmem:[#allocation2 + $0x54] sm:$0x3f] }
 0x4ae   :  { %13730 = vmatprep.subr.bf16.mxu1 %v13729_v57 }
 0x4b0   :  { %12942 = vmatmul.mubr.msk.f32.gmra.mrb[32].mxu1 %vm62_vm2, %v4860_v63 }
 0x4b1   :  { %12944 = vmatprep.mubr.msk.f32.mxu1 %vm62_vm2, %v4861_v0  ;;  %13732 = vmatpush3.bf16.msra.mxu1 %v13729_v57  ;;  %v5707_v57 = vld [vmem:[#allocation2 + $0x15] sm:$0xff] }
 0x4b2   :  { %13734 = vmatprep.subr.bf16.mxu1 %v13733_v62 }
 0x4b4   :  { %12945 = vmatmul.mubr.msk.f32.gmra.mrb[34].mxu1 %vm62_vm2, %v4862_v3 }
 0x4b5   :  { %12947 = vmatprep.mubr.msk.f32.mxu1 %vm62_vm2, %v4863_v53 }
 0x4b8   :  { %12948 = vmatmul.mubr.msk.f32.gmra.mrb[36].mxu1 %vm62_vm2, %v4864_v4 }
 0x4b9   :  { %12950 = vmatprep.mubr.msk.f32.mxu1 %vm62_vm2, %v4865_v5 }
 0x4bc   :  { %12951 = vmatmul.mubr.msk.f32.gmra.mrb[38].mxu1 %vm62_vm2, %v4866_v6  ;;  %v5878_v6 = vld [vmem:[#allocation2 + $0x1e] sm:$0xff] }
 0x4bd   :  { %12961 = vmatprep.mubr.msk.f32.mxu1 %vm62_vm2, %v4858_v58  ;;  %v13769_v58 = vpack.c.bf16 %v11291_v56, %v11290_v55 }
 0x4c0   :  { %12962 = vmatmul.mubr.msk.f32.vlgmr.msra.gmra.mrb[30].mxu1 %vm62_vm2, %v4859_v61  ;;  %v5710_v61 = vld [vmem:[#allocation2 + $0x2d] sm:$0xff] }
 0x4c1   :  { %12964 = vmatprep.mubr.msk.f32.mxu1 %vm62_vm2, %v4860_v63  ;;  %13736 = vmatpush3.bf16.msra.mxu1 %v13733_v62  ;;  %v5711_v62 = vld [vmem:[#allocation2 + $0x35] sm:$0xff]  ;;  %v5712_v63 = vld [vmem:[#allocation2 + $0x3d] sm:$0xff] }
 0x4c2   :  { %13738 = vmatprep.subr.bf16.mxu1 %v13737_v9 }
 0x4c4   :  { %12965 = vmatmul.mubr.msk.f32.gmra.mrb[32].mxu1 %vm62_vm2, %v4861_v0  ;;  %v5713_v0 = vld [vmem:[#allocation2 + $0x45] sm:$0xff] }
 0x4c5   :  { %12967 = vmatprep.mubr.msk.f32.mxu1 %vm62_vm2, %v4862_v3  ;;  %13740 = vmatpush3.bf16.msra.mxu1 %v13737_v9  ;;  %v5714_v3 = vld [vmem:[#allocation2 + $0x4d] sm:$0xff]  ;;  %v5881_v9 = vld [vmem:[#allocation2 + $0x36] sm:$0xff] }
 0x4c6   :  { %13742 = vmatprep.subr.bf16.mxu1 %v13741_v13 }
 0x4c8   :  { %12968 = vmatmul.mubr.msk.f32.gmra.mrb[34].mxu1 %vm62_vm2, %v4863_v53  ;;  %v5715_v53 = vld [vmem:[#allocation2 + $0x55] sm:$0xff] }
 0x4c9   :  { %12970 = vmatprep.mubr.msk.f32.mxu1 %vm62_vm2, %v4864_v4  ;;  %v5716_v4 = vld [vmem:[#allocation2 + $0x5d] sm:$0x3f] }
 0x4cc   :  { %12971 = vmatmul.mubr.msk.f32.gmra.mrb[36].mxu1 %vm62_vm2, %v4865_v5  ;;  %v5877_v5 = vld [vmem:[#allocation2 + $0x16] sm:$0xff] }
 0x4cd   :  { %12973 = vmatprep.mubr.msk.f32.mxu1 %vm62_vm2, %v5035_v14  ;;  %v5885_v14 = vld [vmem:[#allocation2 + $0x56] sm:$0xff] }
 0x4d0   :  { %12974 = vmatmul.mubr.msk.f32.gmra.mrb[38].mxu1 %vm62_vm2, %v5036_v15  ;;  %v5886_v15 = vld [vmem:[#allocation2 + $0x5e] sm:$0x3f] }
 0x4d1   :  { %12984 = vmatprep.mubr.msk.f32.mxu1 %vm62_vm2, %v5197_v18 }
 0x4d4   :  { %12985 = vmatmul.mubr.msk.f32.vlgmr.msra.gmra.mrb[30].mxu1 %vm62_vm2, %v5198_v20 }
 0x4d5   :  { %12987 = vmatprep.mubr.msk.f32.mxu1 %vm62_vm2, %v5199_v23  ;;  %13744 = vmatpush3.bf16.msra.mxu1 %v13741_v13  ;;  %v5884_v13 = vld [vmem:[#allocation2 + $0x4e] sm:$0xff] }
 0x4d6   :  { %13746 = vmatprep.subr.bf16.mxu1 %v13745_v19 }
 0x4d8   :  { %12988 = vmatmul.mubr.msk.f32.gmra.mrb[32].mxu1 %vm62_vm2, %v5200_v25 }
 0x4d9   :  { %12990 = vmatprep.mubr.msk.f32.mxu1 %vm62_vm2, %v5201_v26  ;;  %13748 = vmatpush3.bf16.msra.mxu1 %v13745_v19 }
 0x4da   :  { %13750 = vmatprep.subr.bf16.mxu1 %v13749_v24 }
 0x4dc   :  { %12991 = vmatmul.mubr.msk.f32.gmra.mrb[34].mxu1 %vm62_vm2, %v5202_v27 }
 0x4dd   :  { %12993 = vmatprep.mubr.msk.f32.mxu1 %vm62_vm2, %v5203_v28 }
 0x4e0   :  { %12994 = vmatmul.mubr.msk.f32.gmra.mrb[36].mxu1 %vm62_vm2, %v5204_v12 }
 0x4e1   :  { %12996 = vmatprep.mubr.msk.f32.mxu1 %vm62_vm2, %v5205_v30 }
 0x4e4   :  { %12997 = vmatmul.mubr.msk.f32.gmra.mrb[38].mxu1 %vm62_vm2, %v5206_v31 }
 0x4e5   :  { %13007 = vmatprep.mubr.msk.f32.mxu1 %vm62_vm2, %v5367_v34 }
 0x4e8   :  { %13008 = vmatmul.mubr.msk.f32.vlgmr.msra.gmra.mrb[30].mxu1 %vm62_vm2, %v5368_v36 }
 0x4e9   :  { %13010 = vmatprep.mubr.msk.f32.mxu1 %vm62_vm2, %v5369_v39  ;;  %13752 = vmatpush3.bf16.msra.mxu1 %v13749_v24 }
 0x4ea   :  { %13754 = vmatprep.subr.bf16.mxu1 %v13753_v35 }
 0x4ec   :  { %13011 = vmatmul.mubr.msk.f32.gmra.mrb[32].mxu1 %vm62_vm2, %v5370_v41 }
 0x4ed   :  { %13013 = vmatprep.mubr.msk.f32.mxu1 %vm62_vm2, %v5371_v43  ;;  %13756 = vmatpush3.bf16.msra.mxu1 %v13753_v35 }
 0x4ee   :  { %13758 = vmatprep.subr.bf16.mxu1 %v13757_v40 }
 0x4f0   :  { %13014 = vmatmul.mubr.msk.f32.gmra.mrb[34].mxu1 %vm62_vm2, %v5372_v44 }
 0x4f1   :  { %13016 = vmatprep.mubr.msk.f32.mxu1 %vm62_vm2, %v5373_v45 }
 0x4f4   :  { %13017 = vmatmul.mubr.msk.f32.gmra.mrb[36].mxu1 %vm62_vm2, %v5374_v46 }
 0x4f5   :  { %13019 = vmatprep.mubr.msk.f32.mxu1 %vm62_vm2, %v5375_v47 }
 0x4f8   :  { %13020 = vmatmul.mubr.msk.f32.gmra.mrb[38].mxu1 %vm62_vm2, %v5376_v48 }
 0x4f9   :  { %13030 = vmatprep.mubr.msk.f32.mxu1 %vm62_vm2, %v5368_v36 }
 0x4fc   :  { %13031 = vmatmul.mubr.msk.f32.vlgmr.msra.gmra.mrb[30].mxu1 %vm62_vm2, %v5369_v39 }
 0x4fd   :  { %13033 = vmatprep.mubr.msk.f32.mxu1 %vm62_vm2, %v5370_v41  ;;  %13760 = vmatpush3.bf16.msra.mxu1 %v13757_v40 }
 0x4fe   :  { %13762 = vmatprep.subr.bf16.mxu1 %v13761_v51 }
 0x500   :  { %13034 = vmatmul.mubr.msk.f32.gmra.mrb[32].mxu1 %vm62_vm2, %v5371_v43 }
 0x501   :  { %13036 = vmatprep.mubr.msk.f32.mxu1 %vm62_vm2, %v5372_v44  ;;  %13764 = vmatpush3.bf16.msra.mxu1 %v13761_v51 }
 0x502   :  { %13766 = vmatprep.subr.bf16.mxu1 %v13765_v1 }
 0x504   :  { %13037 = vmatmul.mubr.msk.f32.gmra.mrb[34].mxu1 %vm62_vm2, %v5373_v45 }
 0x505   :  { %13039 = vmatprep.mubr.msk.f32.mxu1 %vm62_vm2, %v5374_v46 }
 0x508   :  { %13040 = vmatmul.mubr.msk.f32.gmra.mrb[36].mxu1 %vm62_vm2, %v5375_v47 }
 0x509   :  { %13042 = vmatprep.mubr.msk.f32.mxu1 %vm62_vm2, %v5545_v2 }
 0x50c   :  { %13043 = vmatmul.mubr.msk.f32.gmra.mrb[38].mxu1 %vm62_vm2, %v5546_v42 }
 0x50d   :  { %13053 = vmatprep.mubr.msk.f32.mxu1 %vm62_vm2, %v5707_v57 }
 0x510   :  { %13054 = vmatmul.mubr.msk.f32.vlgmr.msra.gmra.mrb[30].mxu1 %vm62_vm2, %v5708_v59 }
 0x511   :  { %13056 = vmatprep.mubr.msk.f32.mxu1 %vm62_vm2, %v5709_v60  ;;  %13768 = vmatpush3.bf16.msra.mxu1 %v13765_v1 }
 0x512   :  { %13770 = vmatprep.subr.bf16.mxu1 %v13769_v58 }
 0x514   :  { %13057 = vmatmul.mubr.msk.f32.gmra.mrb[32].mxu1 %vm62_vm2, %v5710_v61 }
 0x515   :  { %13059 = vmatprep.mubr.msk.f32.mxu1 %vm62_vm2, %v5711_v62  ;;  %13772 = vmatpush3.bf16.msra.mxu1 %v13769_v58 }
 0x516   :  { %13773 = vmatprep.subr.bf16.mxu1 %v14485_v16 }
 0x518   :  { %13060 = vmatmul.mubr.msk.f32.gmra.mrb[34].mxu1 %vm62_vm2, %v5712_v63 }
 0x519   :  { %13062 = vmatprep.mubr.msk.f32.mxu1 %vm62_vm2, %v5713_v0 }
 0x51c   :  { %13063 = vmatmul.mubr.msk.f32.gmra.mrb[36].mxu1 %vm62_vm2, %v5714_v3 }
 0x51d   :  { %13065 = vmatprep.mubr.msk.f32.mxu1 %vm62_vm2, %v5715_v53 }
 0x520   :  { %13066 = vmatmul.mubr.msk.f32.gmra.mrb[38].mxu1 %vm62_vm2, %v5716_v4 }
 0x521   :  { %13076 = vmatprep.mubr.msk.f32.mxu1 %vm62_vm2, %v5877_v5 }
 0x524   :  { %13077 = vmatmul.mubr.msk.f32.vlgmr.msra.gmra.mrb[30].mxu1 %vm62_vm2, %v5878_v6 }
 0x525   :  { %13079 = vmatprep.mubr.msk.f32.mxu1 %vm62_vm2, %v5879_v7 }
 0x528   :  { %13080 = vmatmul.mubr.msk.f32.gmra.mrb[32].mxu1 %vm62_vm2, %v5880_v8 }
 0x529   :  { %13082 = vmatprep.mubr.msk.f32.mxu1 %vm62_vm2, %v5881_v9 }
 0x52c   :  { %13083 = vmatmul.mubr.msk.f32.gmra.mrb[34].mxu1 %vm62_vm2, %v5882_v10 }
 0x52d   :  { %13085 = vmatprep.mubr.msk.f32.mxu1 %vm62_vm2, %v5883_v11 }
 0x530   :  { %13086 = vmatmul.mubr.msk.f32.gmra.mrb[36].mxu1 %vm62_vm2, %v5884_v13 }
 0x531   :  { %13088 = vmatprep.mubr.msk.f32.mxu1 %vm62_vm2, %v5885_v14 }
 0x534   :  { %13089 = vmatmul.mubr.msk.f32.gmra.mrb[38].mxu1 %vm62_vm2, %v5886_v15 }
 0x535   :  { %13109 = vmatprep.mubr.msk.f32.mxu1 %vm14486_vm9, %v14484_v29 }
 0x5f7   :  { %v13078_v18 = vpop.f32.mrb[30].mxu1 }
 0x5f8   :  { %v6055_v19 = vadd.f32 %v13078_v18, %v11302_v17  ;;  %v5988_v20 = vpop.f32.mrb[31].mxu1 }
 0x5f9   :  { %v6054_v21 = vadd.f32 %v11302_v17, %v5988_v20 }
 0x5fa   :  { %v6065_v22 = vmax.f32 %v6055_v19, 0.0 }
 0x5fb   :  { %v6064_v23 = vmax.f32 %v6054_v21, 0.0  ;;  %v13081_v24 = vpop.f32.mrb[32].mxu1 }
 0x5fc   :  { %6076 = vst.msk [vmem:[#allocation8 + $0x8] sm:$0xff] %vm6074_vm10, %v6065_v22  ;;  %v6057_v25 = vadd.f32 %v13081_v24, %v11302_v17  ;;  %v5998_v26 = vpop.f32.mrb[33].mxu1 }
 0x5fd   :  { %6075 = vst.msk [vmem:[#allocation8] sm:$0xff] %vm6074_vm10, %v6064_v23  ;;  %v6056_v27 = vadd.f32 %v11302_v17, %v5998_v26 }
 0x5fe   :  { %v6067_v28 = vmax.f32 %v6057_v25, 0.0 }
 0x5ff   :  { %v6066_v12 = vmax.f32 %v6056_v27, 0.0  ;;  %v13084_v30 = vpop.f32.mrb[34].mxu1 }
 0x600   :  { %6078 = vst.msk [vmem:[#allocation8 + $0x18] sm:$0xff] %vm6074_vm10, %v6067_v28  ;;  %v6059_v31 = vadd.f32 %v13084_v30, %v11302_v17  ;;  %v6008_v32 = vpop.f32.mrb[35].mxu1 }
 0x601   :  { %6077 = vst.msk [vmem:[#allocation8 + $0x10] sm:$0xff] %vm6074_vm10, %v6066_v12  ;;  %v6058_v33 = vadd.f32 %v11302_v17, %v6008_v32 }
 0x602   :  { %v6069_v34 = vmax.f32 %v6059_v31, 0.0 }
 0x603   :  { %v6068_v35 = vmax.f32 %v6058_v33, 0.0  ;;  %v13087_v36 = vpop.f32.mrb[36].mxu1  ;;  %v6087_v45 = vld [vmem:[#allocation8 + $0x8] sm:$0xff] }
 0x604   :  { %6080 = vst.msk [vmem:[#allocation8 + $0x28] sm:$0xff] %vm6074_vm10, %v6069_v34  ;;  %v6061_v37 = vadd.f32 %v13087_v36, %v11302_v17  ;;  %v6018_v38 = vpop.f32.mrb[37].mxu1  ;;  %v6086_v44 = vld [vmem:[#allocation8] sm:$0xff] }
 0x605   :  { %6079 = vst.msk [vmem:[#allocation8 + $0x20] sm:$0xff] %vm6074_vm10, %v6068_v35  ;;  %v6060_v39 = vadd.f32 %v11302_v17, %v6018_v38  ;;  %v6095_v46 = vld [vmem:[#allocation8 + $0x1] sm:$0xff] }
 0x606   :  { %v6071_v40 = vmax.f32 %v6061_v37, 0.0  ;;  %v6104_v55 = vmax.f32 %v6086_v44, %v6095_v46 }
 0x607   :  { %v6070_v41 = vmax.f32 %v6060_v39, 0.0  ;;  %v13090_v43 = vpop.f32.mrb[38].mxu1  ;;  %v6089_v60 = vld [vmem:[#allocation8 + $0x18] sm:$0xff] }
 0x608   :  { %6082 = vst.msk [vmem:[#allocation8 + $0x38] sm:$0xff] %vm6074_vm10, %v6071_v40  ;;  %v6063_v47 = vadd.f32 %v13090_v43, %v11302_v17  ;;  %v6028_v48 = vpop.f32.mrb[39].mxu1  ;;  %v6096_v49 = vld [vmem:[#allocation8 + $0x9] sm:$0xff]  ;;  %v6114_v51 = vld [vmem:[#allocation8 + $0x12] sm:$0xff] }
 0x609   :  { %v6113_v50 = vld [vmem:[#allocation8 + $0xa] sm:$0xff]  ;;  %6081 = vst.msk [vmem:[#allocation8 + $0x30] sm:$0xff] %vm6074_vm10, %v6070_v41  ;;  %v6062_v52 = vadd.f32 %v11302_v17, %v6028_v48  ;;  %v6105_v54 = vmax.f32 %v6087_v45, %v6096_v49  ;;  %v6123_v2 = vld [vmem:[#allocation8 + $0x13] sm:$0xff] }
 0x60a   :  { %v6122_v1 = vld [vmem:[#allocation8 + $0xb] sm:$0xff]  ;;  %v6073_v42 = vmax.f32 %v6063_v47, 0.0  ;;  %v6132_v57 = vmax.f32 %v6114_v51, %v6123_v2  ;;  %v6150_v2 = vld [vmem:[%s17510_s6 + $0x8] sm:$0xff] }
 0x60b   :  { %v6131_v56 = vmax.f32 %v6113_v50, %v6122_v1  ;;  %v6072_v58 = vmax.f32 %v6062_v52, 0.0  ;;  %v6088_v59 = vld [vmem:[#allocation8 + $0x10] sm:$0xff]  ;;  %v6091_v13 = vld [vmem:[#allocation8 + $0x28] sm:$0xff] }
 0x60c   :  { %v6097_v61 = vld [vmem:[#allocation8 + $0x11] sm:$0xff]  ;;  %6085 = vst.msk [vmem:[#allocation8 + $0x48] sm:$0x3f] %vm6084_vm11, %v6073_v42  ;;  %v6141_v63 = vmax.f32 %v6105_v54, %v6132_v57  ;;  %v6098_v0 = vld [vmem:[#allocation8 + $0x19] sm:$0xff]  ;;  %v6116_v53 = vld [vmem:[#allocation8 + $0x22] sm:$0xff] }
 0x60d   :  { %v6140_v62 = vmax.f32 %v6104_v55, %v6131_v56  ;;  %v6115_v3 = vld [vmem:[#allocation8 + $0x1a] sm:$0xff]  ;;  %6083 = vst.msk [vmem:[#allocation8 + $0x40] sm:$0xff] %vm6074_vm10, %v6072_v58  ;;  %v6107_v4 = vmax.f32 %v6089_v60, %v6098_v0  ;;  %v6125_v6 = vld [vmem:[#allocation8 + $0x23] sm:$0xff]  ;;  %v6106_v8 = vmax.f32 %v6088_v59, %v6097_v61  ;;  %v6149_v1 = vld [vmem:[%s17510_s6] sm:$0xff] }
 0x60e   :  { %v6124_v5 = vld [vmem:[#allocation8 + $0x1b] sm:$0xff]  ;;  %v6134_v10 = vmax.f32 %v6116_v53, %v6125_v6  ;;  %v11308_v56 = vld [vmem:[%s17511_s7 + $0x18] sm:$0xff]  ;;  %v6251_v60 = vld [vmem:[%s17511_s7] sm:$0xff] }
 0x60f   :  { %v13774_v7 = vpack.c.bf16 %v6141_v63, %v6140_v62  ;;  %v6133_v9 = vmax.f32 %v6115_v3, %v6124_v5  ;;  %v6090_v11 = vld [vmem:[#allocation8 + $0x20] sm:$0xff]  ;;  %v6093_v12 = vld [vmem:[#allocation8 + $0x38] sm:$0xff]  ;;  %v11315_v6 = vld [vmem:[%s17511_s7 + $0x20] sm:$0xff] }
 0x610   :  { %v6099_v14 = vld [vmem:[#allocation8 + $0x21] sm:$0xff]  ;;  %v6143_v17 = vmax.f32 %v6107_v4, %v6134_v10  ;;  %v6100_v18 = vld [vmem:[#allocation8 + $0x29] sm:$0xff]  ;;  %v6118_v20 = vld [vmem:[#allocation8 + $0x32] sm:$0xff] }
 0x611   :  { %13775 = vmatpush3.bf16.msra.mxu1 %v13774_v7  ;;  %v6142_v15 = vmax.f32 %v6106_v8, %v6133_v9  ;;  %v6117_v19 = vld [vmem:[#allocation8 + $0x2a] sm:$0xff]  ;;  %v6109_v21 = vmax.f32 %v6091_v13, %v6100_v18  ;;  %v6127_v23 = vld [vmem:[#allocation8 + $0x33] sm:$0xff]  ;;  %v6108_v25 = vmax.f32 %v6090_v11, %v6099_v14  ;;  %v6151_v42 = vld [vmem:[%s17510_s6 + $0x10] sm:$0x3f] }
 0x612   :  { %13776 = vmatprep.subr.bf16.mxu1 %v14485_v16  ;;  %v6126_v22 = vld [vmem:[#allocation8 + $0x2b] sm:$0xff]  ;;  %v6136_v27 = vmax.f32 %v6118_v20, %v6127_v23  ;;  %v11307_v55 = vld [vmem:[%s17511_s7 + $0x10] sm:$0xff]  ;;  %v6252_v61 = vld [vmem:[%s17511_s7 + $0x8] sm:$0xff] }
 0x613   :  { %v13777_v24 = vpack.c.bf16 %v6143_v17, %v6142_v15  ;;  %v6135_v26 = vmax.f32 %v6117_v19, %v6126_v22  ;;  %v6092_v28 = vld [vmem:[#allocation8 + $0x30] sm:$0xff]  ;;  %v6121_v44 = vld [vmem:[#allocation8 + $0x4a] sm:$0x7]  ;;  %v13786_v57 = vpack.c.bf16 %v11308_v56, %v11307_v55  ;;  %v13789_v0 = vpack.c.bf16 %v6252_v61, %v6251_v60  ;;  %v11316_v7 = vld [vmem:[%s17511_s7 + $0x28] sm:$0xff] }
 0x614   :  { %v6101_v30 = vld [vmem:[#allocation8 + $0x31] sm:$0xff]  ;;  %v6145_v32 = vmax.f32 %v6109_v21, %v6136_v27  ;;  %v6102_v33 = vld [vmem:[#allocation8 + $0x39] sm:$0xff]  ;;  %v6120_v35 = vld [vmem:[#allocation8 + $0x42] sm:$0xff]  ;;  %v13792_v9 = vpack.c.bf16 %v11316_v7, %v11315_v6 }
 0x615   :  { %13778 = vmatpush3.bf16.msra.mxu1 %v13777_v24  ;;  %v6144_v31 = vmax.f32 %v6108_v25, %v6135_v26  ;;  %v6119_v34 = vld [vmem:[#allocation8 + $0x3a] sm:$0xff]  ;;  %v6111_v36 = vmax.f32 %v6093_v12, %v6102_v33  ;;  %v6129_v38 = vld [vmem:[#allocation8 + $0x43] sm:$0xff]  ;;  %v6110_v40 = vmax.f32 %v6092_v28, %v6101_v30  ;;  %v6130_v47 = vld [vmem:[#allocation8 + $0x4b] sm:$0x7] }
 0x616   :  { %13779 = vmatprep.subr.bf16.mxu1 %v14485_v16  ;;  %v6128_v37 = vld [vmem:[#allocation8 + $0x3b] sm:$0xff]  ;;  %v6138_v43 = vmax.f32 %v6120_v35, %v6129_v38  ;;  %v6139_v52 = vmax.f32 %v6121_v44, %v6130_v47  ;;  %v11321_v14 = vld [vmem:[%s17511_s7 + $0x38] sm:$0xff]  ;;  %v11325_v20 = vld [vmem:[%s17511_s7 + $0x40] sm:$0xff] }
 0x617   :  { %v13780_v39 = vpack.c.bf16 %v6145_v32, %v6144_v31  ;;  %v6137_v41 = vmax.f32 %v6119_v34, %v6128_v37  ;;  %v6094_v45 = vld [vmem:[#allocation8 + $0x40] sm:$0x7]  ;;  %v11326_v21 = vld [vmem:[%s17511_s7 + $0x48] sm:$0xff]  ;;  %v11331_v27 = vld [vmem:[%s17511_s7 + $0x58] sm:$0xff] }
 0x618   :  { %v6103_v46 = vld [vmem:[#allocation8 + $0x41] sm:$0x7]  ;;  %v6147_v49 = vmax.f32 %v6111_v36, %v6138_v43  ;;  %v13798_v23 = vpack.c.bf16 %v11326_v21, %v11325_v20  ;;  %v11335_v32 = vld [vmem:[%s17511_s7 + $0x60] sm:$0xff]  ;;  %v11336_v33 = vld [vmem:[%s17511_s7 + $0x68] sm:$0xff] }
 0x619   :  { %13781 = vmatpush3.bf16.msra.mxu1 %v13780_v39  ;;  %v6146_v48 = vmax.f32 %v6110_v40, %v6137_v41  ;;  %v6112_v51 = vmax.f32 %v6094_v45, %v6103_v46  ;;  %v11320_v13 = vld [vmem:[%s17511_s7 + $0x30] sm:$0xff]  ;;  %v13804_v35 = vpack.c.bf16 %v11336_v33, %v11335_v32  ;;  %v11341_v38 = vld [vmem:[%s17511_s7 + $0x78] sm:$0xff]  ;;  %v11345_v44 = vld [vmem:[%s17511_s7 + $0x80] sm:$0xff] }
 0x61a   :  { %13782 = vmatprep.subr.bf16.mxu1 %v14485_v16  ;;  %v13795_v17 = vpack.c.bf16 %v11321_v14, %v11320_v13  ;;  %v11330_v26 = vld [vmem:[%s17511_s7 + $0x50] sm:$0xff]  ;;  %v11346_v45 = vld [vmem:[%s17511_s7 + $0x88] sm:$0xff] }
 0x61b   :  { %v13783_v50 = vpack.c.bf16 %v6147_v49, %v6146_v48  ;;  %v6148_v54 = vmax.f32 %v6112_v51, %v6139_v52  ;;  %v13801_v12 = vpack.c.bf16 %v11331_v27, %v11330_v26  ;;  %v11340_v37 = vld [vmem:[%s17511_s7 + $0x70] sm:$0xff]  ;;  %v13810_v47 = vpack.c.bf16 %v11346_v45, %v11345_v44  ;;  %v7027_v52 = vld [vmem:[#allocation3 + $0x1e] sm:$0x3f] }
 0x61c   :  { %v13807_v40 = vpack.c.bf16 %v11341_v38, %v11340_v37 }
 0x61d   :  { %13784 = vmatpush3.bf16.msra.mxu1 %v13783_v50  ;;  %v6929_v50 = vld [vmem:[#allocation3 + $0x1d] sm:$0x3f] }
 0x61e   :  { %13107 = vmatprep.subr.mxu1 %v14484_v29 }
 0x621   :  { %13108 = vmatpush3.msk.msra.mxu1 %vm4294_vm4, %v6148_v54  ;;  %vm13814_vm4 = vmpackc.low %vm7160_vm1, %vm14483_vm5  ;;  %vm71_vm5 = vcmask 61440  }
 0x622   :  { %13110 = vmatmul.mubr.msk.f32.vlgmr.msra.gmra.mrb[40].mxu1 %vm6152_vm12, %v6149_v1  ;;  %13785 = vmatprep.subr.bf16.mxu1 %v14485_v16  ;;  %73 = vst.msk [vmem:[#allocation4 + $0xb] sm:$0x1f] %vm71_vm5, %v14484_v29 }
 0x623   :  { %13112 = vmatprep.mubr.msk.f32.mxu1 %vm14486_vm9, %v14484_v29  ;;  %13787 = vmatpush3.bf16.msra.mxu1 %v13786_v57 }
 0x624   :  { %13788 = vmatprep.subr.bf16.mxu1 %v14485_v16 }
 0x626   :  { %13113 = vmatmul.mubr.msk.f32.gmra.mrb[42].mxu1 %vm6152_vm12, %v6150_v2 }
 0x627   :  { %13115 = vmatprep.mubr.msk.f32.mxu1 %vm14486_vm9, %v14484_v29 }
 0x62a   :  { %13116 = vmatmul.mubr.msk.f32.gmra.mrb[44].mxu1 %vm6152_vm12, %v6151_v42  ;;  %vm7927_vm12 = vcmask 195584  }
 0x62b   :  { %13122 = vmatprep.mubr.msk.f32.mxu1 %vm14486_vm9, %v14484_v29 }
 0x6f5   :  { %v6231_v58 = vpop.f32.mrb[40].mxu1 }
 0x6f6   :  { %6245 = vst.msk [vmem:[#allocation3 + $0x7] sm:$0xff] %vm6074_vm10, %v6231_v58  ;;  %v13111_v59 = vpop.f32.mrb[41].mxu1 }
 0x6f9   :  { %v6236_v62 = vpop.f32.mrb[42].mxu1 }
 0x6fa   :  { %6246 = vst.msk [vmem:[#allocation3 + $0xf] sm:$0xff] %vm6074_vm10, %v6236_v62  ;;  %v13114_v63 = vpop.f32.mrb[43].mxu1 }
 0x6fd   :  { %v6241_v3 = vpop.f32.mrb[44].mxu1  ;;  %v6253_v53 = vld [vmem:[#allocation3 + $0x1] sm:$0xff] }
 0x6fe   :  { %6247 = vst.msk [vmem:[#allocation3 + $0x17] sm:$0x3f] %vm6084_vm11, %v6241_v3  ;;  %13123 = vmatmul.mubr.msk.f32.vlgmr.msra.gmra.mrb[46].mxu1 %vm6074_vm10, %v6253_v53  ;;  %v13117_v4 = vpop.f32.mrb[45].mxu1  ;;  %v6248_v10 = vld [vmem:[#allocation3] sm:$0xff] }
 0x6ff   :  { %13125 = vmatprep.mubr.msk.f32.mxu1 %vm14486_vm9, %v14484_v29  ;;  %13790 = vmatpush3.bf16.msra.mxu1 %v13789_v0  ;;  %v6437_v18 = vld [vmem:[#allocation3 + $0x2] sm:$0xff] }
 0x700   :  { %13791 = vmatprep.subr.bf16.mxu1 %v14485_v16  ;;  %v6535_v24 = vld [vmem:[#allocation3 + $0x6] sm:$0xff] }
 0x701   :  { %v6254_v5 = vld [vmem:[#allocation3 + $0x9] sm:$0xff]  ;;  %v6255_v8 = vld [vmem:[#allocation3 + $0x11] sm:$0x3f] }
 0x702   :  { %13126 = vmatmul.mubr.msk.f32.gmra.mrb[48].mxu1 %vm6074_vm10, %v6254_v5  ;;  %v6249_v11 = vld [vmem:[#allocation3 + $0x8] sm:$0xff]  ;;  %v6250_v15 = vld [vmem:[#allocation3 + $0x10] sm:$0x3f] }
 0x703   :  { %13128 = vmatprep.mubr.msk.f32.mxu1 %vm14486_vm9, %v14484_v29  ;;  %v6438_v19 = vld [vmem:[#allocation3 + $0xa] sm:$0xff] }
 0x704   :  { %v6536_v25 = vld [vmem:[#allocation3 + $0xe] sm:$0xff] }
 0x705   :  { %v6439_v22 = vld [vmem:[#allocation3 + $0x12] sm:$0x3f]  ;;  %v6633_v30 = vld [vmem:[#allocation3 + $0x7] sm:$0xff]  ;;  %v6733_v39 = vld [vmem:[#allocation3 + $0x18] sm:$0x3f] }
 0x706   :  { %13129 = vmatmul.mubr.msk.f32.gmra.mrb[50].mxu1 %vm6074_vm10, %v6255_v8  ;;  %v6537_v28 = vld [vmem:[#allocation3 + $0x16] sm:$0x3f]  ;;  %v6829_v41 = vld [vmem:[#allocation3 + $0xc] sm:$0xff]  ;;  %v6831_v46 = vld [vmem:[#allocation3 + $0x1c] sm:$0x3f] }
 0x707   :  { %13135 = vmatprep.mubr.msk.f32.mxu1 %vm14486_vm9, %v14484_v29  ;;  %v6634_v31 = vld [vmem:[#allocation3 + $0xf] sm:$0xff]  ;;  %v6635_v34 = vld [vmem:[#allocation3 + $0x17] sm:$0x3f] }
 0x708   :  { %v6732_v36 = vld [vmem:[#allocation3 + $0x10] sm:$0xff] }
 0x709   :  { %v6830_v43 = vld [vmem:[#allocation3 + $0x14] sm:$0xff] }
 0x70a   :  { %13136 = vmatmul.mubr.msk.f32.vlgmr.msra.gmra.mrb[52].mxu1 %vm6074_vm10, %v6248_v10  ;;  %v6927_v48 = vld [vmem:[#allocation3 + $0xd] sm:$0xff]  ;;  %v6928_v49 = vld [vmem:[#allocation3 + $0x15] sm:$0xff] }
 0x70b   :  { %13138 = vmatprep.mubr.msk.f32.mxu1 %vm14486_vm9, %v14484_v29  ;;  %13793 = vmatpush3.bf16.msra.mxu1 %v13792_v9  ;;  %v7026_v51 = vld [vmem:[#allocation3 + $0x16] sm:$0xff] }
 0x70c   :  { %13794 = vmatprep.subr.bf16.mxu1 %v14485_v16 }
 0x70e   :  { %13139 = vmatmul.mubr.msk.f32.gmra.mrb[54].mxu1 %vm6074_vm10, %v6249_v11 }
 0x70f   :  { %13141 = vmatprep.mubr.msk.f32.mxu1 %vm14486_vm9, %v14484_v29 }
 0x712   :  { %13142 = vmatmul.mubr.msk.f32.gmra.mrb[56].mxu1 %vm6074_vm10, %v6250_v15 }
 0x713   :  { %13148 = vmatprep.mubr.msk.f32.mxu1 %vm14486_vm9, %v14484_v29 }
 0x716   :  { %13149 = vmatmul.mubr.msk.f32.vlgmr.msra.gmra.mrb[58].mxu1 %vm6074_vm10, %v6437_v18 }
 0x717   :  { %13151 = vmatprep.mubr.msk.f32.mxu1 %vm14486_vm9, %v14484_v29  ;;  %13796 = vmatpush3.bf16.msra.mxu1 %v13795_v17 }
 0x718   :  { %13797 = vmatprep.subr.bf16.mxu1 %v14485_v16 }
 0x71a   :  { %13152 = vmatmul.mubr.msk.f32.gmra.mrb[60].mxu1 %vm6074_vm10, %v6438_v19 }
 0x71b   :  { %13154 = vmatprep.mubr.msk.f32.mxu1 %vm14486_vm9, %v14484_v29 }
 0x71e   :  { %13155 = vmatmul.mubr.msk.f32.gmra.mrb[62].mxu1 %vm6074_vm10, %v6439_v22 }
 0x71f   :  { %13161 = vmatprep.mubr.msk.f32.mxu1 %vm14486_vm9, %v14484_v29 }
 0x722   :  { %13162 = vmatmul.mubr.msk.f32.vlgmr.msra.gmra.mrb[64].mxu1 %vm6074_vm10, %v6535_v24 }
 0x723   :  { %13164 = vmatprep.mubr.msk.f32.mxu1 %vm14486_vm9, %v14484_v29  ;;  %13799 = vmatpush3.bf16.msra.mxu1 %v13798_v23 }
 0x724   :  { %13800 = vmatprep.subr.bf16.mxu1 %v14485_v16 }
 0x726   :  { %13165 = vmatmul.mubr.msk.f32.gmra.mrb[66].mxu1 %vm6074_vm10, %v6536_v25 }
 0x727   :  { %13167 = vmatprep.mubr.msk.f32.mxu1 %vm14486_vm9, %v14484_v29 }
 0x72a   :  { %13168 = vmatmul.mubr.msk.f32.gmra.mrb[68].mxu1 %vm6074_vm10, %v6537_v28 }
 0x72b   :  { %13174 = vmatprep.mubr.msk.f32.mxu1 %vm14486_vm9, %v14484_v29 }
 0x72e   :  { %13175 = vmatmul.mubr.msk.f32.vlgmr.msra.gmra.mrb[70].mxu1 %vm6074_vm10, %v6633_v30 }
 0x72f   :  { %13177 = vmatprep.mubr.msk.f32.mxu1 %vm14486_vm9, %v14484_v29  ;;  %13802 = vmatpush3.bf16.msra.mxu1 %v13801_v12 }
 0x730   :  { %13803 = vmatprep.subr.bf16.mxu1 %v14485_v16 }
 0x732   :  { %13178 = vmatmul.mubr.msk.f32.gmra.mrb[72].mxu1 %vm6074_vm10, %v6634_v31 }
 0x733   :  { %13180 = vmatprep.mubr.msk.f32.mxu1 %vm14486_vm9, %v14484_v29 }
 0x736   :  { %13181 = vmatmul.mubr.msk.f32.gmra.mrb[74].mxu1 %vm6074_vm10, %v6635_v34 }
 0x737   :  { %13187 = vmatprep.mubr.msk.f32.mxu1 %vm14486_vm9, %v14484_v29 }
 0x73a   :  { %13188 = vmatmul.mubr.msk.f32.vlgmr.msra.gmra.mrb[76].mxu1 %vm6074_vm10, %v6249_v11 }
 0x73b   :  { %13190 = vmatprep.mubr.msk.f32.mxu1 %vm14486_vm9, %v14484_v29  ;;  %13805 = vmatpush3.bf16.msra.mxu1 %v13804_v35 }
 0x73c   :  { %13806 = vmatprep.subr.bf16.mxu1 %v14485_v16 }
 0x73e   :  { %13191 = vmatmul.mubr.msk.f32.gmra.mrb[78].mxu1 %vm6074_vm10, %v6732_v36 }
 0x73f   :  { %13193 = vmatprep.mubr.msk.f32.mxu1 %vm14486_vm9, %v14484_v29 }
 0x742   :  { %13194 = vmatmul.mubr.msk.f32.gmra.mrb[80].mxu1 %vm6074_vm10, %v6733_v39 }
 0x743   :  { %13200 = vmatprep.mubr.msk.f32.mxu1 %vm14486_vm9, %v14484_v29 }
 0x746   :  { %13201 = vmatmul.mubr.msk.f32.vlgmr.msra.gmra.mrb[82].mxu1 %vm6074_vm10, %v6829_v41 }
 0x747   :  { %13203 = vmatprep.mubr.msk.f32.mxu1 %vm14486_vm9, %v14484_v29  ;;  %13808 = vmatpush3.bf16.msra.mxu1 %v13807_v40 }
 0x748   :  { %13809 = vmatprep.subr.bf16.mxu1 %v14485_v16 }
 0x74a   :  { %13204 = vmatmul.mubr.msk.f32.gmra.mrb[84].mxu1 %vm6074_vm10, %v6830_v43 }
 0x74b   :  { %13206 = vmatprep.mubr.msk.f32.mxu1 %vm14486_vm9, %v14484_v29 }
 0x74e   :  { %13207 = vmatmul.mubr.msk.f32.gmra.mrb[86].mxu1 %vm6074_vm10, %v6831_v46 }
 0x74f   :  { %13213 = vmatprep.mubr.msk.f32.mxu1 %vm14486_vm9, %v14484_v29 }
 0x752   :  { %13214 = vmatmul.mubr.msk.f32.vlgmr.msra.gmra.mrb[88].mxu1 %vm6074_vm10, %v6927_v48 }
 0x753   :  { %13216 = vmatprep.mubr.msk.f32.mxu1 %vm14486_vm9, %v14484_v29  ;;  %13811 = vmatpush3.bf16.msra.mxu1 %v13810_v47 }
 0x754   :  { %13812 = vmatprep.subr.bf16.mxu1 %v14485_v16 }
 0x756   :  { %13217 = vmatmul.mubr.msk.f32.gmra.mrb[90].mxu1 %vm6074_vm10, %v6928_v49 }
 0x757   :  { %13219 = vmatprep.mubr.msk.f32.mxu1 %vm14486_vm9, %v14484_v29 }
 0x75a   :  { %13220 = vmatmul.mubr.msk.f32.gmra.mrb[92].mxu1 %vm6074_vm10, %v6929_v50 }
 0x75b   :  { %13226 = vmatprep.mubr.msk.f32.mxu1 %vm14486_vm9, %v14484_v29 }
 0x75e   :  { %13227 = vmatmul.mubr.msk.f32.vlgmr.msra.gmra.mrb[94].mxu1 %vm6074_vm10, %v6536_v25 }
 0x75f   :  { %13229 = vmatprep.mubr.msk.f32.mxu1 %vm14486_vm9, %v14484_v29 }
 0x762   :  { %13230 = vmatmul.mubr.msk.f32.gmra.mrb[96].mxu1 %vm6074_vm10, %v7026_v51 }
 0x763   :  { %13232 = vmatprep.mubr.msk.f32.mxu1 %vm14486_vm9, %v14484_v29 }
 0x766   :  { %13233 = vmatmul.mubr.msk.f32.gmra.mrb[98].mxu1 %vm6074_vm10, %v7027_v52 }
 0x767   :  { %13239 = vmatprep.mubr.msk.f32.mxu1 %vm14486_vm9, %v14484_v29 }
 0x7d1   :  { %v6334_v54 = vpop.f32.mrb[46].mxu1 }
 0x7d2   :  { %v13124_v1 = vpop.f32.mrb[47].mxu1 }
 0x7d5   :  { %v6339_v2 = vpop.f32.mrb[48].mxu1 }
 0x7d6   :  { %v13127_v42 = vpop.f32.mrb[49].mxu1 }
 0x7d9   :  { %v6344_v55 = vpop.f32.mrb[50].mxu1 }
 0x7da   :  { %v13130_v56 = vpop.f32.mrb[51].mxu1 }
 0x7dd   :  { %v6423_v57 = vpop.f32.mrb[52].mxu1 }
 0x7de   :  { %v6424_v58 = vadd.f32 %v6423_v57, %v6334_v54  ;;  %v13137_v59 = vpop.f32.mrb[53].mxu1 }
 0x7df   :  { %v11350_v59 = vld [vmem:[%s17512_s8] ss:$0 sm:$0xff] }
 0x7e1   :  { %v6428_v60 = vpop.f32.mrb[54].mxu1 }
 0x7e2   :  { %v6429_v61 = vadd.f32 %v6428_v60, %v6339_v2  ;;  %v13140_v62 = vpop.f32.mrb[55].mxu1 }
 0x7e5   :  { %v6433_v63 = vpop.f32.mrb[56].mxu1 }
 0x7e6   :  { %v6434_v0 = vadd.f32 %v6433_v63, %v6344_v55  ;;  %v13143_v3 = vpop.f32.mrb[57].mxu1 }
 0x7e9   :  { %v6518_v53 = vpop.f32.mrb[58].mxu1 }
 0x7ea   :  { %v6532_v4 = vadd.f32 %v6518_v53, %v6424_v58  ;;  %v13150_v5 = vpop.f32.mrb[59].mxu1 }
 0x7ed   :  { %v6523_v6 = vpop.f32.mrb[60].mxu1 }
 0x7ee   :  { %v6533_v7 = vadd.f32 %v6523_v6, %v6429_v61  ;;  %v13153_v8 = vpop.f32.mrb[61].mxu1 }
 0x7f1   :  { %v6528_v9 = vpop.f32.mrb[62].mxu1 }
 0x7f2   :  { %v6534_v10 = vadd.f32 %v6528_v9, %v6434_v0  ;;  %v13156_v11 = vpop.f32.mrb[63].mxu1 }
 0x7f5   :  { %v6616_v13 = vpop.f32.mrb[64].mxu1 }
 0x7f6   :  { %v6630_v14 = vadd.f32 %v6616_v13, %v6532_v4  ;;  %v13163_v15 = vpop.f32.mrb[65].mxu1 }
 0x7f9   :  { %v6621_v17 = vpop.f32.mrb[66].mxu1 }
 0x7fa   :  { %v6631_v18 = vadd.f32 %v6621_v17, %v6533_v7  ;;  %v13166_v19 = vpop.f32.mrb[67].mxu1 }
 0x7fd   :  { %v6626_v20 = vpop.f32.mrb[68].mxu1 }
 0x7fe   :  { %v6632_v21 = vadd.f32 %v6626_v20, %v6534_v10  ;;  %v13169_v22 = vpop.f32.mrb[69].mxu1 }
 0x801   :  { %v6714_v23 = vpop.f32.mrb[70].mxu1 }
 0x802   :  { %v6728_v24 = vadd.f32 %v6714_v23, %v6630_v14  ;;  %v13176_v25 = vpop.f32.mrb[71].mxu1 }
 0x805   :  { %v6719_v26 = vpop.f32.mrb[72].mxu1 }
 0x806   :  { %v6729_v27 = vadd.f32 %v6719_v26, %v6631_v18  ;;  %v13179_v28 = vpop.f32.mrb[73].mxu1 }
 0x807   :  { %v7155_v28 = vld [vmem:[%s17513_s9] sm:$0x3f] }
 0x809   :  { %v6724_v12 = vpop.f32.mrb[74].mxu1 }
 0x80a   :  { %v6730_v30 = vadd.f32 %v6724_v12, %v6632_v21  ;;  %v13182_v31 = vpop.f32.mrb[75].mxu1  ;;  %v11353_v12 = vld [vmem:[%s17514_s10 + $0x20] sm:$0xff] }
 0x80d   :  { %v6812_v32 = vpop.f32.mrb[76].mxu1 }
 0x80e   :  { %v6826_v33 = vadd.f32 %v6812_v32, %v6728_v24  ;;  %v13189_v34 = vpop.f32.mrb[77].mxu1  ;;  %v11357_v32 = vld [vmem:[%s17514_s10 + $0x18] sm:$0xff] }
 0x80f   :  { %v11356_v34 = vld [vmem:[%s17514_s10 + $0x28] sm:$0xff] }
 0x811   :  { %v6817_v35 = vpop.f32.mrb[78].mxu1 }
 0x812   :  { %v6827_v36 = vadd.f32 %v6817_v35, %v6729_v27  ;;  %v13192_v37 = vpop.f32.mrb[79].mxu1 }
 0x813   :  { %v11360_v37 = vld [vmem:[%s17514_s10 + $0x38] sm:$0xff] }
 0x815   :  { %v6822_v38 = vpop.f32.mrb[80].mxu1 }
 0x816   :  { %v6828_v39 = vadd.f32 %v6822_v38, %v6730_v30  ;;  %v13195_v40 = vpop.f32.mrb[81].mxu1 }
 0x817   :  { %v11364_v40 = vld [vmem:[%s17514_s10 + $0x40] sm:$0xff] }
 0x819   :  { %v6910_v41 = vpop.f32.mrb[82].mxu1 }
 0x81a   :  { %v6924_v43 = vadd.f32 %v6910_v41, %v6826_v33  ;;  %v13202_v44 = vpop.f32.mrb[83].mxu1  ;;  %v11368_v41 = vld [vmem:[%s17514_s10 + $0x10] sm:$0xff] }
 0x81d   :  { %v6915_v45 = vpop.f32.mrb[84].mxu1 }
 0x81e   :  { %v6925_v46 = vadd.f32 %v6915_v45, %v6827_v36  ;;  %v13205_v47 = vpop.f32.mrb[85].mxu1  ;;  %v11361_v36 = vld [vmem:[%s17514_s10 + $0x8] sm:$0xff] }
 0x821   :  { %v6920_v48 = vpop.f32.mrb[86].mxu1 }
 0x822   :  { %v6926_v49 = vadd.f32 %v6920_v48, %v6828_v39  ;;  %v13208_v50 = vpop.f32.mrb[87].mxu1  ;;  %v11365_v39 = vld [vmem:[%s17514_s10 + $0x30] sm:$0xff] }
 0x825   :  { %v7008_v51 = vpop.f32.mrb[88].mxu1 }
 0x826   :  { %v7022_v52 = vadd.f32 %v7008_v51, %v6924_v43  ;;  %v13215_v54 = vpop.f32.mrb[89].mxu1  ;;  %v7834_v43 = vld [vmem:[%s17514_s10] sm:$0xff] }
 0x829   :  { %v7013_v1 = vpop.f32.mrb[90].mxu1 }
 0x82a   :  { %v7023_v2 = vadd.f32 %v7013_v1, %v6925_v46  ;;  %v13218_v42 = vpop.f32.mrb[91].mxu1 }
 0x82d   :  { %v7018_v55 = vpop.f32.mrb[92].mxu1 }
 0x82e   :  { %v7024_v56 = vadd.f32 %v7018_v55, %v6926_v49  ;;  %v13221_v57 = vpop.f32.mrb[93].mxu1 }
 0x831   :  { %v7106_v58 = vpop.f32.mrb[94].mxu1 }
 0x832   :  { %v7120_v60 = vadd.f32 %v7106_v58, %v7022_v52  ;;  %v13228_v61 = vpop.f32.mrb[95].mxu1  ;;  %v11354_v52 = vld [vmem:[%s17515_s11] ss:$0 sm:$0xff] }
 0x834   :  { %v7130_v62 = vadd.f32 %v11350_v59, %v7120_v60 }
 0x835   :  { %v7111_v63 = vpop.f32.mrb[96].mxu1 }
 0x836   :  { %v7133_v0 = vmax.f32 %v7130_v62, 0.0  ;;  %v7121_v3 = vadd.f32 %v7111_v63, %v7023_v2  ;;  %v13231_v53 = vpop.f32.mrb[97].mxu1 }
 0x838   :  { %7137 = vst.msk [vmem:[#allocation9] sm:$0xff] %vm7136_vm14, %v7133_v0  ;;  %v7131_v4 = vadd.f32 %v11350_v59, %v7121_v3 }
 0x839   :  { %v7116_v5 = vpop.f32.mrb[98].mxu1 }
 0x83a   :  { %v7134_v6 = vmax.f32 %v7131_v4, 0.0  ;;  %v7122_v7 = vadd.f32 %v7116_v5, %v7024_v56  ;;  %v13234_v8 = vpop.f32.mrb[99].mxu1 }
 0x83c   :  { %7138 = vst.msk [vmem:[#allocation9 + $0x8] sm:$0xff] %vm7136_vm14, %v7134_v6  ;;  %v7132_v9 = vadd.f32 %v11350_v59, %v7122_v7 }
 0x83e   :  { %v7135_v10 = vmax.f32 %v7132_v9, 0.0 }
 0x83f   :  { %v7141_v15 = vld [vmem:[#allocation9] sm:$0xff] }
 0x840   :  { %7140 = vst.msk [vmem:[#allocation9 + $0x10] sm:$0x3f] %vm7139_vm15, %v7135_v10 }
 0x843   :  { %v7143_v11 = vld [vmem:[#allocation9 + $0x1] sm:$0xff]  ;;  %v7144_v18 = vld [vmem:[#allocation9 + $0x9] sm:$0x7f] }
 0x844   :  { %v7147_v13 = vld [vmem:[#allocation9 + $0x6] sm:$0xff]  ;;  %v7145_v19 = vmax.f32 %v7141_v15, %v7143_v11 }
 0x845   :  { %v7149_v14 = vld [vmem:[#allocation9 + $0x7] sm:$0xff] }
 0x846   :  { %v7142_v17 = vld [vmem:[#allocation9 + $0x8] sm:$0x7f]  ;;  %v7151_v20 = vmax.f32 %v7147_v13, %v7149_v14  ;;  %v7924_v15 = vld [vmem:[%s17516_s12] sm:$0xff] }
 0x847   :  { %v7148_v21 = vld [vmem:[#allocation9 + $0xe] sm:$0x7f]  ;;  %v7146_v23 = vmax.f32 %v7142_v17, %v7144_v18 }
 0x848   :  { %v7150_v22 = vld [vmem:[#allocation9 + $0xf] sm:$0x7f]  ;;  %v7153_v25 = vmax.f32 %v7145_v19, %v7151_v20  ;;  %v11374_v20 = vld [vmem:[%s17517_s13 + $0x40] sm:$0xff] }
 0x849   :  { %v7152_v24 = vmax.f32 %v7148_v21, %v7150_v22  ;;  %v7925_v18 = vld [vmem:[%s17516_s12 + $0x8] sm:$0xff]  ;;  %v7926_v19 = vld [vmem:[%s17516_s12 + $0x10] sm:$0x3f] }
 0x84a   :  { %v11375_v21 = vld [vmem:[%s17517_s13 + $0x48] sm:$0xff] }
 0x84b   :  { %v7154_v26 = vmax.f32 %v7146_v23, %v7152_v24  ;;  %v13820_v22 = vpack.c.bf16 %v11375_v21, %v11374_v20 }
 0x84d   :  { %v13813_v27 = vpack.c.bf16 %v7154_v26, %v7153_v25 }
 0x84f   :  { %13815 = vmatpush3.bf16.msk.msra.mxu1 %vm13814_vm4, %v13813_v27 }
 0x850   :  { %13242 = vmatprep.subr.mxu1 %v14484_v29 }
 0x852   :  { %13240 = vmatmul.mubr.msk.f32.vlgmr.msra.gmra.mrb[100].mxu1 %vm7156_vm6, %v7155_v28 }
 0x853   :  { %13244 = vmatprep.mubr.msk.f32.mxu1 %vm14486_vm9, %v14484_v29  ;;  %13243 = vmatpush3.msra.mxu1 %v11353_v12  ;;  %v11382_v12 = vld [vmem:[%s17517_s13 + $0x30] sm:$0xff] }
 0x854   :  { %13247 = vmatprep.subr.mxu1 %v14484_v29 }
 0x925   :  { %v7230_v30 = vpop.f32.mrb[100].mxu1 }
 0x926   :  { %7234 = vst.msk [vmem:[#allocation4 + $0x5] sm:$0x3f] %vm7139_vm15, %v7230_v30  ;;  %v13241_v31 = vpop.f32.mrb[101].mxu1  ;;  %v11383_v30 = vld [vmem:[%s17517_s13 + $0x38] sm:$0xff] }
 0x92d   :  { %v7235_v33 = vld [vmem:[#allocation4 + $0x5] sm:$0x3f] }
 0x92e   :  { %13245 = vmatmul.mubr.msk.f32.vlgmr.msra.gmra.mrb[102].mxu1 %vm7136_vm14, %v7235_v33  ;;  %v7236_v35 = vld [vmem:[#allocation4 + $0x6] sm:$0x3f] }
 0x92f   :  { %13248 = vmatpush3.msra.mxu1 %v11357_v32  ;;  %13249 = vmatprep.mubr.msk.f32.mxu1 %vm14486_vm9, %v14484_v29  ;;  %v7237_v38 = vld [vmem:[#allocation4 + $0x9] sm:$0x3f]  ;;  %v13823_v32 = vpack.c.bf16 %v11383_v30, %v11382_v12 }
 0x930   :  { %13252 = vmatprep.subr.mxu1 %v14484_v29  ;;  %v7238_v44 = vld [vmem:[#allocation4 + $0xa] sm:$0x3f] }
 0x932   :  { %13250 = vmatmul.mubr.msk.f32.vlgmr.msra.gmra.mrb[104].mxu1 %vm7136_vm14, %v7236_v35 }
 0x933   :  { %13253 = vmatpush3.msra.mxu1 %v11356_v34  ;;  %13254 = vmatprep.mubr.msk.f32.mxu1 %vm14486_vm9, %v14484_v29 }
 0x934   :  { %13257 = vmatprep.subr.mxu1 %v14484_v29 }
 0x936   :  { %13255 = vmatmul.mubr.msk.f32.vlgmr.msra.gmra.mrb[106].mxu1 %vm7136_vm14, %v7235_v33 }
 0x937   :  { %13258 = vmatpush3.msra.mxu1 %v11361_v36  ;;  %13259 = vmatprep.mubr.msk.f32.mxu1 %vm14486_vm9, %v14484_v29 }
 0x938   :  { %13262 = vmatprep.subr.mxu1 %v14484_v29 }
 0x93a   :  { %13260 = vmatmul.mubr.msk.f32.vlgmr.msra.gmra.mrb[108].mxu1 %vm7136_vm14, %v7237_v38 }
 0x93b   :  { %13263 = vmatpush3.msra.mxu1 %v11360_v37  ;;  %13264 = vmatprep.mubr.msk.f32.mxu1 %vm14486_vm9, %v14484_v29  ;;  %v11380_v37 = vld [vmem:[%s17517_s13 + $0x50] sm:$0xff] }
 0x93c   :  { %13267 = vmatprep.subr.mxu1 %v14484_v29 }
 0x93e   :  { %13265 = vmatmul.mubr.msk.f32.vlgmr.msra.gmra.mrb[110].mxu1 %vm7136_vm14, %v7235_v33 }
 0x93f   :  { %13268 = vmatpush3.msra.mxu1 %v11365_v39  ;;  %13269 = vmatprep.mubr.msk.f32.mxu1 %vm14486_vm9, %v14484_v29 }
 0x940   :  { %13272 = vmatprep.subr.mxu1 %v14484_v29 }
 0x942   :  { %13270 = vmatmul.mubr.msk.f32.vlgmr.msra.gmra.mrb[112].mxu1 %vm7136_vm14, %v7236_v35 }
 0x943   :  { %13273 = vmatpush3.msra.mxu1 %v11364_v40  ;;  %13274 = vmatprep.mubr.msk.f32.mxu1 %vm14486_vm9, %v14484_v29 }
 0x944   :  { %13277 = vmatprep.subr.mxu1 %v14484_v29 }
 0x946   :  { %13275 = vmatmul.mubr.msk.f32.vlgmr.msra.gmra.mrb[114].mxu1 %vm7136_vm14, %v7235_v33 }
 0x947   :  { %13278 = vmatpush3.msra.mxu1 %v11368_v41  ;;  %13279 = vmatprep.mubr.msk.f32.mxu1 %vm14486_vm9, %v14484_v29 }
 0x948   :  { %13282 = vmatprep.subr.mxu1 %v14484_v29 }
 0x94a   :  { %13280 = vmatmul.mubr.msk.f32.vlgmr.msra.gmra.mrb[116].mxu1 %vm7136_vm14, %v7237_v38  ;;  %v11381_v38 = vld [vmem:[%s17517_s13 + $0x58] sm:$0xff] }
 0x94b   :  { %13283 = vmatpush3.msra.mxu1 %v7834_v43  ;;  %13284 = vmatprep.mubr.msk.f32.mxu1 %vm14486_vm9, %v14484_v29  ;;  %v13826_v40 = vpack.c.bf16 %v11381_v38, %v11380_v37 }
 0x94c   :  { %13816 = vmatprep.subr.bf16.mxu1 %v14485_v16 }
 0x94e   :  { %13285 = vmatmul.mubr.msk.f32.vlgmr.msra.gmra.mrb[118].mxu1 %vm7136_vm14, %v7238_v44  ;;  %v11392_v44 = vld [vmem:[%s17517_s13 + $0x10] sm:$0xff] }
 0x94f   :  { %13293 = vmatprep.mubr.msk.f32.mxu1 %vm14486_vm9, %v14484_v29 }
 0xa01   :  { %v7317_v45 = vpop.f32.mrb[102].mxu1 }
 0xa02   :  { %v13246_v46 = vpop.f32.mrb[103].mxu1  ;;  %v7318_v2 = vadd.f32 %v11354_v52, %v7317_v45  ;;  %v11393_v45 = vld [vmem:[%s17517_s13 + $0x18] sm:$0xff] }
 0xa05   :  { %v7394_v47 = vpop.f32.mrb[104].mxu1 }
 0xa06   :  { %v13251_v48 = vpop.f32.mrb[105].mxu1 }
 0xa07   :  { %v11390_v48 = vld [vmem:[%s17517_s13 + $0x70] sm:$0xff] }
 0xa09   :  { %v7464_v49 = vpop.f32.mrb[106].mxu1 }
 0xa0a   :  { %v7465_v50 = vadd.f32 %v7464_v49, %v7394_v47  ;;  %v13256_v51 = vpop.f32.mrb[107].mxu1  ;;  %v13829_v47 = vpack.c.bf16 %v11393_v45, %v11392_v44  ;;  %v11391_v49 = vld [vmem:[%s17517_s13 + $0x78] sm:$0xff] }
 0xa0c   :  { %v7468_v54 = vadd.f32 %v11354_v52, %v7465_v50  ;;  %v13832_v50 = vpack.c.bf16 %v11391_v49, %v11390_v48 }
 0xa0d   :  { %v7542_v1 = vpop.f32.mrb[108].mxu1 }
 0xa0e   :  { %v7911_v42 = vrot.slane %v7468_v54, 2  ;;  %v13261_v55 = vpop.f32.mrb[109].mxu1  ;;  %v8031_v54 = vld [vmem:[#allocation5 + $0x1d] sm:$0x3f] }
 0xa0f   :  { %v11400_v55 = vld [vmem:[%s17517_s13 + $0x80] sm:$0xff] }
 0xa10   :  { %v7919_v56 = vsel %vm264_vm0, %v7318_v2, %v7911_v42  ;;  %v11403_v2 = vld [vmem:[%s17517_s13 + $0x68] sm:$0xff] }
 0xa11   :  { %v7612_v57 = vpop.f32.mrb[110].mxu1 }
 0xa12   :  { %v7613_v58 = vadd.f32 %v7612_v57, %v7542_v1  ;;  %v13266_v59 = vpop.f32.mrb[111].mxu1  ;;  %v11402_v1 = vld [vmem:[%s17517_s13 + $0x60] sm:$0xff] }
 0xa13   :  { %v11411_v59 = vld [vmem:[%s17517_s13 + $0x28] sm:$0xff] }
 0xa14   :  { %v7616_v60 = vadd.f32 %v11354_v52, %v7613_v58  ;;  %v11410_v58 = vld [vmem:[%s17517_s13 + $0x20] sm:$0xff] }
 0xa15   :  { %v7687_v61 = vpop.f32.mrb[112].mxu1 }
 0xa16   :  { %v7914_v62 = vrot.slane %v7616_v60, 4  ;;  %v13271_v63 = vpop.f32.mrb[113].mxu1  ;;  %v13841_v60 = vpack.c.bf16 %v11411_v59, %v11410_v58 }
 0xa18   :  { %v7921_v0 = vsel %vm7920_vm7, %v7911_v42, %v7914_v62  ;;  %v13835_v42 = vpack.c.bf16 %v11403_v2, %v11402_v1 }
 0xa19   :  { %v7757_v3 = vpop.f32.mrb[114].mxu1  ;;  %v13817_v53 = vpack.c.bf16 %v7921_v0, %v7919_v56  ;;  %v11401_v56 = vld [vmem:[%s17517_s13 + $0x88] sm:$0xff] }
 0xa1a   :  { %v7758_v4 = vadd.f32 %v7757_v3, %v7687_v61  ;;  %v13276_v5 = vpop.f32.mrb[115].mxu1  ;;  %v13838_v57 = vpack.c.bf16 %v11401_v56, %v11400_v55  ;;  %v8742_v61 = vld [vmem:[%s17517_s13] sm:$0xff] }
 0xa1b   :  { %13818 = vmatpush3.bf16.msra.mxu1 %v13817_v53  ;;  %v8034_v3 = vld [vmem:[#allocation5 + $0x1e] sm:$0x3f] }
 0xa1c   :  { %13291 = vmatprep.subr.mxu1 %v14484_v29  ;;  %v8877_v53 = vld [vmem:[%s17518_s15] sm:$0xff] }
 0xa1d   :  { %v7829_v6 = vpop.f32.mrb[116].mxu1 }
 0xa1e   :  { %v7833_v7 = vadd.f32 %v7829_v6, %v7758_v4  ;;  %v13281_v8 = vpop.f32.mrb[117].mxu1  ;;  %v16780_v6 = vld [vmem:[%s17519_s14] ss:$0 sm:$0xff] }
 0xa21   :  { %v7904_v9 = vpop.f32.mrb[118].mxu1 }
 0xa22   :  { %v7908_v10 = vadd.f32 %v7904_v9, %v7833_v7  ;;  %v13286_v11 = vpop.f32.mrb[119].mxu1 }
 0xa23   :  { %v11503_v11 = vld [vmem:[%s17520_s16 + $0xc0] sm:$0xff] }
 0xa24   :  { %v7909_v13 = vadd.f32 %v11354_v52, %v7908_v10 }
 0xa26   :  { %v7917_v14 = vrot.slane %v7909_v13, 6  ;;  %v11504_v13 = vld [vmem:[%s17520_s16 + $0xc8] sm:$0xff] }
 0xa28   :  { %v7923_v17 = vsel %vm7922_vm8, %v7914_v62, %v7917_v14  ;;  %v8743_v62 = vld [vmem:[%s17517_s13 + $0x8] sm:$0xff]  ;;  %v11505_v14 = vld [vmem:[%s17520_s16 + $0xd0] sm:$0xff] }
 0xa29   :  { %13292 = vmatpush3.msra.mxu1 %v7923_v17  ;;  %v11506_v17 = vld [vmem:[%s17520_s16 + $0xd8] sm:$0xff] }
 0xa2a   :  { %13294 = vmatmul.mubr.msk.f32.vlgmr.msra.gmra.mrb[120].mxu1 %vm7927_vm12, %v7924_v15  ;;  %13819 = vmatprep.subr.bf16.mxu1 %v14485_v16  ;;  %v13906_v15 = vpack.c.bf16 %v11504_v13, %v11503_v11 }
 0xa2b   :  { %13296 = vmatprep.mubr.msk.f32.mxu1 %vm14486_vm9, %v14484_v29  ;;  %13821 = vmatpush3.bf16.msra.mxu1 %v13820_v22 }
 0xa2c   :  { %13822 = vmatprep.subr.bf16.mxu1 %v14485_v16  ;;  %13907 = vmatprep.subr.bf16.mxu0 %v13906_v15 }
 0xa2d   :  { %13909 = vmatpush3.bf16.msra.mxu0 %v13906_v15 }
 0xa2e   :  { %13297 = vmatmul.mubr.msk.f32.gmra.mrb[122].mxu1 %vm7927_vm12, %v7925_v18 }
 0xa2f   :  { %13299 = vmatprep.mubr.msk.f32.mxu1 %vm14486_vm9, %v14484_v29 }
 0xa32   :  { %13300 = vmatmul.mubr.msk.f32.gmra.mrb[124].mxu1 %vm7927_vm12, %v7926_v19  ;;  %v13910_v19 = vpack.c.bf16 %v11506_v17, %v11505_v14 }
 0xa33   :  { %13306 = vmatprep.mubr.msk.f32.mxu1 %vm14486_vm9, %v14484_v29 }
 0xa34   :  { %13911 = vmatprep.subr.bf16.mxu0 %v13910_v19 }
 0xa35   :  { %13913 = vmatpush3.bf16.msra.mxu0 %v13910_v19 }
 0xafd   :  { %v8003_v23 = vpop.f32.mrb[120].mxu1 }
 0xafe   :  { %v8017_v24 = vmax.f32 %v8003_v23, 0.0  ;;  %v13295_v25 = vpop.f32.mrb[121].mxu1 }
 0xb00   :  { %8020 = vst.msk [vmem:[#allocation5 + $0x7] sm:$0xff] %vm6074_vm10, %v8017_v24 }
 0xb01   :  { %v8008_v26 = vpop.f32.mrb[122].mxu1 }
 0xb02   :  { %v8018_v27 = vmax.f32 %v8008_v26, 0.0  ;;  %v13298_v28 = vpop.f32.mrb[123].mxu1 }
 0xb04   :  { %8021 = vst.msk [vmem:[#allocation5 + $0xf] sm:$0xff] %vm6074_vm10, %v8018_v27 }
 0xb05   :  { %v8013_v31 = vpop.f32.mrb[124].mxu1 }
 0xb06   :  { %v8019_v33 = vmax.f32 %v8013_v31, 0.0  ;;  %v13301_v34 = vpop.f32.mrb[125].mxu1 }
 0xb07   :  { %v16626_v35 = vld [vmem:[#allocation5 + $0x7] sm:$0xff] }
 0xb08   :  { %8022 = vst.msk [vmem:[#allocation5 + $0x17] sm:$0x3f] %vm6084_vm11, %v8019_v33  ;;  %13307 = vmatmul.mubr.msk.f32.vlgmr.msra.gmra.mrb[126].mxu1 %vm6074_vm10, %v16626_v35  ;;  %vm8887_vm11 = vcmask 719872  }
 0xb09   :  { %13309 = vmatprep.mubr.msk.f32.mxu1 %vm14486_vm9, %v14484_v29  ;;  %13824 = vmatpush3.bf16.msra.mxu1 %v13823_v32 }
 0xb0a   :  { %13825 = vmatprep.subr.bf16.mxu1 %v14485_v16 }
 0xb0b   :  { %v16634_v36 = vld [vmem:[#allocation5 + $0xf] sm:$0xff] }
 0xb0c   :  { %13310 = vmatmul.mubr.msk.f32.gmra.mrb[128].mxu1 %vm6074_vm10, %v16634_v36  ;;  %v8026_v41 = vld [vmem:[#allocation5 + $0x8] sm:$0xff] }
 0xb0d   :  { %13312 = vmatprep.mubr.msk.f32.mxu1 %vm14486_vm9, %v14484_v29  ;;  %v8029_v51 = vld [vmem:[#allocation5 + $0xd] sm:$0xff] }
 0xb0e   :  { %v8032_v63 = vld [vmem:[#allocation5 + $0xe] sm:$0xff] }
 0xb0f   :  { %v16646_v39 = vld [vmem:[#allocation5 + $0x17] sm:$0x3f] }
 0xb10   :  { %13313 = vmatmul.mubr.msk.f32.gmra.mrb[130].mxu1 %vm6074_vm10, %v16646_v39  ;;  %v8027_v43 = vld [vmem:[#allocation5 + $0x10] sm:$0xff]  ;;  %v8028_v46 = vld [vmem:[#allocation5 + $0x18] sm:$0x3f] }
 0xb11   :  { %13319 = vmatprep.mubr.msk.f32.mxu1 %vm14486_vm9, %v14484_v29  ;;  %v8030_v52 = vld [vmem:[#allocation5 + $0x15] sm:$0xff] }
 0xb12   :  { %v8033_v0 = vld [vmem:[#allocation5 + $0x16] sm:$0xff] }
 0xb14   :  { %13320 = vmatmul.mubr.msk.f32.vlgmr.msra.gmra.mrb[132].mxu1 %vm6074_vm10, %v8026_v41 }
 0xb15   :  { %13322 = vmatprep.mubr.msk.f32.mxu1 %vm14486_vm9, %v14484_v29  ;;  %13827 = vmatpush3.bf16.msra.mxu1 %v13826_v40 }
 0xb16   :  { %13828 = vmatprep.subr.bf16.mxu1 %v14485_v16 }
 0xb18   :  { %13323 = vmatmul.mubr.msk.f32.gmra.mrb[134].mxu1 %vm6074_vm10, %v8027_v43 }
 0xb19   :  { %13325 = vmatprep.mubr.msk.f32.mxu1 %vm14486_vm9, %v14484_v29 }
 0xb1c   :  { %13326 = vmatmul.mubr.msk.f32.gmra.mrb[136].mxu1 %vm6074_vm10, %v8028_v46 }
 0xb1d   :  { %13332 = vmatprep.mubr.msk.f32.mxu1 %vm14486_vm9, %v14484_v29 }
 0xb20   :  { %13333 = vmatmul.mubr.msk.f32.vlgmr.msra.gmra.mrb[138].mxu1 %vm6074_vm10, %v16626_v35 }
 0xb21   :  { %13335 = vmatprep.mubr.msk.f32.mxu1 %vm14486_vm9, %v14484_v29  ;;  %13830 = vmatpush3.bf16.msra.mxu1 %v13829_v47 }
 0xb22   :  { %13831 = vmatprep.subr.bf16.mxu1 %v14485_v16 }
 0xb24   :  { %13336 = vmatmul.mubr.msk.f32.gmra.mrb[140].mxu1 %vm6074_vm10, %v16634_v36 }
 0xb25   :  { %13338 = vmatprep.mubr.msk.f32.mxu1 %vm14486_vm9, %v14484_v29 }
 0xb28   :  { %13339 = vmatmul.mubr.msk.f32.gmra.mrb[142].mxu1 %vm6074_vm10, %v16646_v39 }
 0xb29   :  { %13345 = vmatprep.mubr.msk.f32.mxu1 %vm14486_vm9, %v14484_v29 }
 0xb2c   :  { %13346 = vmatmul.mubr.msk.f32.vlgmr.msra.gmra.mrb[144].mxu1 %vm6074_vm10, %v8029_v51 }
 0xb2d   :  { %13348 = vmatprep.mubr.msk.f32.mxu1 %vm14486_vm9, %v14484_v29  ;;  %13833 = vmatpush3.bf16.msra.mxu1 %v13832_v50 }
 0xb2e   :  { %13834 = vmatprep.subr.bf16.mxu1 %v14485_v16 }
 0xb30   :  { %13349 = vmatmul.mubr.msk.f32.gmra.mrb[146].mxu1 %vm6074_vm10, %v8030_v52 }
 0xb31   :  { %13351 = vmatprep.mubr.msk.f32.mxu1 %vm14486_vm9, %v14484_v29 }
 0xb34   :  { %13352 = vmatmul.mubr.msk.f32.gmra.mrb[148].mxu1 %vm6074_vm10, %v8031_v54 }
 0xb35   :  { %13358 = vmatprep.mubr.msk.f32.mxu1 %vm14486_vm9, %v14484_v29 }
 0xb38   :  { %13359 = vmatmul.mubr.msk.f32.vlgmr.msra.gmra.mrb[150].mxu1 %vm6074_vm10, %v16626_v35 }
 0xb39   :  { %13361 = vmatprep.mubr.msk.f32.mxu1 %vm14486_vm9, %v14484_v29  ;;  %13836 = vmatpush3.bf16.msra.mxu1 %v13835_v42 }
 0xb3a   :  { %13837 = vmatprep.subr.bf16.mxu1 %v14485_v16 }
 0xb3c   :  { %13362 = vmatmul.mubr.msk.f32.gmra.mrb[152].mxu1 %vm6074_vm10, %v16634_v36 }
 0xb3d   :  { %13364 = vmatprep.mubr.msk.f32.mxu1 %vm14486_vm9, %v14484_v29 }
 0xb40   :  { %13365 = vmatmul.mubr.msk.f32.gmra.mrb[154].mxu1 %vm6074_vm10, %v16646_v39 }
 0xb41   :  { %13371 = vmatprep.mubr.msk.f32.mxu1 %vm14486_vm9, %v14484_v29 }
 0xb44   :  { %13372 = vmatmul.mubr.msk.f32.vlgmr.msra.gmra.mrb[156].mxu1 %vm6074_vm10, %v8026_v41 }
 0xb45   :  { %13374 = vmatprep.mubr.msk.f32.mxu1 %vm14486_vm9, %v14484_v29  ;;  %13839 = vmatpush3.bf16.msra.mxu1 %v13838_v57 }
 0xb46   :  { %13840 = vmatprep.subr.bf16.mxu1 %v14485_v16 }
 0xb48   :  { %13375 = vmatmul.mubr.msk.f32.gmra.mrb[158].mxu1 %vm6074_vm10, %v8027_v43 }
 0xb49   :  { %13377 = vmatprep.mubr.msk.f32.mxu1 %vm14486_vm9, %v14484_v29 }
 0xb4c   :  { %13378 = vmatmul.mubr.msk.f32.gmra.mrb[160].mxu1 %vm6074_vm10, %v8028_v46 }
 0xb4d   :  { %13384 = vmatprep.mubr.msk.f32.mxu1 %vm14486_vm9, %v14484_v29 }
 0xb50   :  { %13385 = vmatmul.mubr.msk.f32.vlgmr.msra.gmra.mrb[162].mxu1 %vm6074_vm10, %v16626_v35 }
 0xb51   :  { %13387 = vmatprep.mubr.msk.f32.mxu1 %vm14486_vm9, %v14484_v29  ;;  %13842 = vmatpush3.bf16.msra.mxu1 %v13841_v60 }
 0xb52   :  { %13843 = vmatprep.subr.bf16.mxu1 %v14485_v16  ;;  %v13844_v16 = vpack.c.bf16 %v8743_v62, %v8742_v61 }
 0xb54   :  { %13388 = vmatmul.mubr.msk.f32.gmra.mrb[164].mxu1 %vm6074_vm10, %v16634_v36 }
 0xb55   :  { %13390 = vmatprep.mubr.msk.f32.mxu1 %vm14486_vm9, %v14484_v29 }
 0xb58   :  { %13391 = vmatmul.mubr.msk.f32.gmra.mrb[166].mxu1 %vm6074_vm10, %v16646_v39 }
 0xb59   :  { %13397 = vmatprep.mubr.msk.f32.mxu1 %vm14486_vm9, %v14484_v29 }
 0xb5c   :  { %13398 = vmatmul.mubr.msk.f32.vlgmr.msra.gmra.mrb[168].mxu1 %vm6074_vm10, %v8029_v51 }
 0xb5d   :  { %13400 = vmatprep.mubr.msk.f32.mxu1 %vm14486_vm9, %v14484_v29  ;;  %13845 = vmatpush3.bf16.msra.mxu1 %v13844_v16 }
 0xb60   :  { %13401 = vmatmul.mubr.msk.f32.gmra.mrb[170].mxu1 %vm6074_vm10, %v8030_v52 }
 0xb61   :  { %13403 = vmatprep.mubr.msk.f32.mxu1 %vm14486_vm9, %v14484_v29 }
 0xb64   :  { %13404 = vmatmul.mubr.msk.f32.gmra.mrb[172].mxu1 %vm6074_vm10, %v8031_v54 }
 0xb65   :  { %13410 = vmatprep.mubr.msk.f32.mxu1 %vm14486_vm9, %v14484_v29 }
 0xb68   :  { %13411 = vmatmul.mubr.msk.f32.vlgmr.msra.gmra.mrb[174].mxu1 %vm6074_vm10, %v8032_v63 }
 0xb69   :  { %13413 = vmatprep.mubr.msk.f32.mxu1 %vm14486_vm9, %v14484_v29 }
 0xb6c   :  { %13414 = vmatmul.mubr.msk.f32.gmra.mrb[176].mxu1 %vm6074_vm10, %v8033_v0 }
 0xb6d   :  { %13416 = vmatprep.mubr.msk.f32.mxu1 %vm14486_vm9, %v14484_v29 }
 0xb70   :  { %13417 = vmatmul.mubr.msk.f32.gmra.mrb[178].mxu1 %vm6074_vm10, %v8034_v3 }
 0xb71   :  { %13441 = vmatprep.mubr.msk.f32.mxu1 %vm8887_vm11, %v8877_v53 }
 0xbdb   :  { %v8120_v4 = vpop.f32.mrb[126].mxu1 }
 0xbdc   :  { %v13308_v5 = vpop.f32.mrb[127].mxu1  ;;  %v8121_v8 = vadd.f32 %v16780_v6, %v8120_v4 }
 0xbdf   :  { %v8125_v7 = vpop.f32.mrb[128].mxu1 }
 0xbe0   :  { %v8126_v9 = vadd.f32 %v16780_v6, %v8125_v7  ;;  %v13311_v10 = vpop.f32.mrb[129].mxu1 }
 0xbe2   :  { %v13846_v18 = vpack.c.bf16 %v8126_v9, %v8121_v8 }
 0xbe3   :  { %v8130_v20 = vpop.f32.mrb[130].mxu1 }
 0xbe4   :  { %v13314_v21 = vpop.f32.mrb[131].mxu1  ;;  %13847 = vmatprep.subr.bf16.mxu1 %v13846_v18  ;;  %v8131_v33 = vadd.f32 %v16780_v6, %v8130_v20 }
 0xbe5   :  { %13849 = vmatpush3.bf16.msra.mxu1 %v13846_v18 }
 0xbe7   :  { %v8215_v22 = vpop.f32.mrb[132].mxu1 }
 0xbe8   :  { %v13321_v23 = vpop.f32.mrb[133].mxu1 }
 0xbeb   :  { %v8220_v24 = vpop.f32.mrb[134].mxu1 }
 0xbec   :  { %v13324_v25 = vpop.f32.mrb[135].mxu1 }
 0xbef   :  { %v8225_v26 = vpop.f32.mrb[136].mxu1 }
 0xbf0   :  { %v13327_v27 = vpop.f32.mrb[137].mxu1 }
 0xbf3   :  { %v8295_v28 = vpop.f32.mrb[138].mxu1 }
 0xbf4   :  { %v8296_v12 = vadd.f32 %v8295_v28, %v8215_v22  ;;  %v13334_v30 = vpop.f32.mrb[139].mxu1 }
 0xbf6   :  { %v8309_v31 = vadd.f32 %v16780_v6, %v8296_v12 }
 0xbf7   :  { %v8300_v32 = vpop.f32.mrb[140].mxu1 }
 0xbf8   :  { %v8842_v34 = vrot.slane %v8309_v31, 2  ;;  %v8301_v35 = vadd.f32 %v8300_v32, %v8220_v24  ;;  %v13337_v36 = vpop.f32.mrb[141].mxu1 }
 0xbfa   :  { %v8310_v37 = vadd.f32 %v16780_v6, %v8301_v35  ;;  %v8874_v38 = vsel %vm264_vm0, %v8131_v33, %v8842_v34 }
 0xbfb   :  { %v8305_v39 = vpop.f32.mrb[142].mxu1 }
 0xbfc   :  { %v8843_v40 = vrot.slane %v8310_v37, 2  ;;  %v8306_v41 = vadd.f32 %v8305_v39, %v8225_v26  ;;  %v13340_v43 = vpop.f32.mrb[143].mxu1 }
 0xbfe   :  { %v8311_v44 = vadd.f32 %v16780_v6, %v8306_v41  ;;  %v8844_v45 = vsel %vm264_vm0, %v8842_v34, %v8843_v40 }
 0xbff   :  { %v8393_v46 = vpop.f32.mrb[144].mxu1  ;;  %v13850_v47 = vpack.c.bf16 %v8844_v45, %v8874_v38 }
 0xc00   :  { %v8845_v48 = vrot.slane %v8311_v44, 2  ;;  %v13347_v49 = vpop.f32.mrb[145].mxu1 }
 0xc01   :  { %13851 = vmatprep.subr.bf16.mxu1 %v13850_v47 }
 0xc02   :  { %13853 = vmatpush3.bf16.msra.mxu1 %v13850_v47  ;;  %v8846_v50 = vsel %vm264_vm0, %v8843_v40, %v8845_v48 }
 0xc03   :  { %v8398_v51 = vpop.f32.mrb[146].mxu1 }
 0xc04   :  { %v13350_v52 = vpop.f32.mrb[147].mxu1 }
 0xc07   :  { %v8403_v54 = vpop.f32.mrb[148].mxu1 }
 0xc08   :  { %v13353_v1 = vpop.f32.mrb[149].mxu1 }
 0xc0b   :  { %v8473_v2 = vpop.f32.mrb[150].mxu1 }
 0xc0c   :  { %v8474_v42 = vadd.f32 %v8473_v2, %v8393_v46  ;;  %v13360_v55 = vpop.f32.mrb[151].mxu1 }
 0xc0d   :  { %v8879_v55 = vld [vmem:[%s17518_s15 + $0x10] sm:$0xff] }
 0xc0e   :  { %v8487_v56 = vadd.f32 %v16780_v6, %v8474_v42  ;;  %v8878_v42 = vld [vmem:[%s17518_s15 + $0x8] sm:$0xff] }
 0xc0f   :  { %v8478_v57 = vpop.f32.mrb[152].mxu1 }
 0xc10   :  { %v8854_v58 = vrot.slane %v8487_v56, 4  ;;  %v8479_v59 = vadd.f32 %v8478_v57, %v8398_v51  ;;  %v13363_v60 = vpop.f32.mrb[153].mxu1  ;;  %v8881_v56 = vld [vmem:[%s17518_s15 + $0x20] sm:$0xff]  ;;  %v8882_v57 = vld [vmem:[%s17518_s15 + $0x28] sm:$0xff] }
 0xc11   :  { %v8885_v60 = vld [vmem:[%s17518_s15 + $0x40] sm:$0xff] }
 0xc12   :  { %v8488_v61 = vadd.f32 %v16780_v6, %v8479_v59  ;;  %v8875_v62 = vsel %vm7920_vm7, %v8845_v48, %v8854_v58  ;;  %v8884_v59 = vld [vmem:[%s17518_s15 + $0x38] sm:$0xff] }
 0xc13   :  { %v8483_v16 = vpop.f32.mrb[154].mxu1  ;;  %v13854_v63 = vpack.c.bf16 %v8875_v62, %v8846_v50  ;;  %v11428_v62 = vld [vmem:[%s17520_s16 + $0x80] sm:$0xff] }
 0xc14   :  { %v8855_v0 = vrot.slane %v8488_v61, 4  ;;  %v8484_v3 = vadd.f32 %v8483_v16, %v8403_v54  ;;  %v13366_v53 = vpop.f32.mrb[155].mxu1  ;;  %v8886_v61 = vld [vmem:[%s17518_s15 + $0x48] sm:$0x3f] }
 0xc15   :  { %13855 = vmatprep.subr.bf16.mxu1 %v13854_v63  ;;  %v11429_v16 = vld [vmem:[%s17520_s16 + $0x88] sm:$0xff] }
 0xc16   :  { %v8489_v4 = vadd.f32 %v16780_v6, %v8484_v3  ;;  %13857 = vmatpush3.bf16.msra.mxu1 %v13854_v63  ;;  %v8856_v5 = vsel %vm7920_vm7, %v8854_v58, %v8855_v0  ;;  %v8883_v58 = vld [vmem:[%s17518_s15 + $0x30] sm:$0xff]  ;;  %v13866_v63 = vpack.c.bf16 %v11429_v16, %v11428_v62  ;;  %v11431_v3 = vld [vmem:[%s17520_s16 + $0x98] sm:$0xff] }
 0xc17   :  { %v8562_v7 = vpop.f32.mrb[156].mxu1  ;;  %v11445_v62 = vld [vmem:[%s17520_s16 + $0xb0] sm:$0xff]  ;;  %v11446_v16 = vld [vmem:[%s17520_s16 + $0xb8] sm:$0xff] }
 0xc18   :  { %v8857_v8 = vrot.slane %v8489_v4, 4  ;;  %v13373_v9 = vpop.f32.mrb[157].mxu1  ;;  %v11447_v4 = vld [vmem:[%s17520_s16 + $0x60] sm:$0xff] }
 0xc19   :  { %v11500_v9 = vld [vmem:[%s17520_s16 + $0x108] sm:$0xff] }
 0xc1a   :  { %v8858_v10 = vsel %vm7920_vm7, %v8855_v0, %v8857_v8  ;;  %v11430_v0 = vld [vmem:[%s17520_s16 + $0x90] sm:$0xff] }
 0xc1b   :  { %v8567_v11 = vpop.f32.mrb[158].mxu1  ;;  %v13858_v13 = vpack.c.bf16 %v8858_v10, %v8856_v5  ;;  %v13870_v53 = vpack.c.bf16 %v11431_v3, %v11430_v0  ;;  %v11448_v5 = vld [vmem:[%s17520_s16 + $0x68] sm:$0xff]  ;;  %v13886_v0 = vpack.c.bf16 %v11446_v16, %v11445_v62  ;;  %v11529_v3 = vld [vmem:[%s17520_s16 + $0x50] sm:$0xff]  ;;  %v10578_v16 = vld [vmem:[%s17521_s18 + $0x58] sm:$0xff] }
 0xc1c   :  { %v13376_v14 = vpop.f32.mrb[159].mxu1 }
 0xc1d   :  { %13859 = vmatprep.subr.bf16.mxu1 %v13858_v13 }
 0xc1e   :  { %13861 = vmatpush3.bf16.msra.mxu1 %v13858_v13 }
 0xc1f   :  { %v8572_v15 = vpop.f32.mrb[160].mxu1 }
 0xc20   :  { %v13379_v17 = vpop.f32.mrb[161].mxu1 }
 0xc23   :  { %v8642_v18 = vpop.f32.mrb[162].mxu1 }
 0xc24   :  { %v8643_v19 = vadd.f32 %v8642_v18, %v8562_v7  ;;  %v13386_v20 = vpop.f32.mrb[163].mxu1  ;;  %v13874_v7 = vpack.c.bf16 %v11448_v5, %v11447_v4  ;;  %v11475_v4 = vld [vmem:[%s17520_s16 + $0x20] sm:$0xff]  ;;  %v11476_v5 = vld [vmem:[%s17520_s16 + $0x28] sm:$0xff] }
 0xc27   :  { %v8647_v21 = vpop.f32.mrb[164].mxu1 }
 0xc28   :  { %v8648_v22 = vadd.f32 %v8647_v21, %v8567_v11  ;;  %v13389_v23 = vpop.f32.mrb[165].mxu1 }
 0xc29   :  { %v11450_v23 = vld [vmem:[%s17520_s16 + $0x78] sm:$0xff] }
 0xc2b   :  { %v8652_v24 = vpop.f32.mrb[166].mxu1 }
 0xc2c   :  { %v8653_v25 = vadd.f32 %v8652_v24, %v8572_v15  ;;  %v13392_v26 = vpop.f32.mrb[167].mxu1 }
 0xc2f   :  { %v8725_v27 = vpop.f32.mrb[168].mxu1 }
 0xc30   :  { %v8739_v28 = vadd.f32 %v8725_v27, %v8643_v19  ;;  %v13399_v12 = vpop.f32.mrb[169].mxu1  ;;  %v11501_v27 = vld [vmem:[%s17520_s16 + $0x110] sm:$0xff] }
 0xc33   :  { %v8730_v30 = vpop.f32.mrb[170].mxu1 }
 0xc34   :  { %v8740_v31 = vadd.f32 %v8730_v30, %v8648_v22  ;;  %v13402_v32 = vpop.f32.mrb[171].mxu1  ;;  %v11449_v22 = vld [vmem:[%s17520_s16 + $0x70] sm:$0xff] }
 0xc35   :  { %v13878_v30 = vpack.c.bf16 %v11450_v23, %v11449_v22 }
 0xc37   :  { %v8735_v33 = vpop.f32.mrb[172].mxu1 }
 0xc38   :  { %v8741_v34 = vadd.f32 %v8735_v33, %v8653_v25  ;;  %v13405_v35 = vpop.f32.mrb[173].mxu1 }
 0xc39   :  { %v11444_v35 = vld [vmem:[%s17520_s16 + $0xa8] sm:$0xff] }
 0xc3b   :  { %v8819_v36 = vpop.f32.mrb[174].mxu1 }
 0xc3c   :  { %v8833_v37 = vadd.f32 %v8819_v36, %v8739_v28  ;;  %v13412_v38 = vpop.f32.mrb[175].mxu1 }
 0xc3e   :  { %v8836_v39 = vadd.f32 %v16780_v6, %v8833_v37 }
 0xc3f   :  { %v8824_v40 = vpop.f32.mrb[176].mxu1 }
 0xc40   :  { %v8866_v41 = vrot.slane %v8836_v39, 6  ;;  %v8834_v43 = vadd.f32 %v8824_v40, %v8740_v31  ;;  %v13415_v44 = vpop.f32.mrb[177].mxu1  ;;  %v11502_v31 = vld [vmem:[%s17520_s16 + $0x118] sm:$0xff] }
 0xc42   :  { %v8837_v45 = vadd.f32 %v16780_v6, %v8834_v43  ;;  %v8876_v46 = vsel %vm7922_vm8, %v8857_v8, %v8866_v41  ;;  %v11499_v8 = vld [vmem:[%s17520_s16 + $0x100] sm:$0xff]  ;;  %v13918_v43 = vpack.c.bf16 %v11502_v31, %v11501_v27 }
 0xc43   :  { %v8829_v47 = vpop.f32.mrb[178].mxu1  ;;  %v13914_v10 = vpack.c.bf16 %v11500_v9, %v11499_v8  ;;  %v13890_v8 = vpack.c.bf16 %v11476_v5, %v11475_v4  ;;  %v10180_v9 = vld [vmem:[%s17520_s16] sm:$0xff]  ;;  %v10580_v5 = vld [vmem:[%s17521_s18 + $0x68] sm:$0xff] }
 0xc44   :  { %v8867_v48 = vrot.slane %v8837_v45, 6  ;;  %v8835_v49 = vadd.f32 %v8829_v47, %v8741_v34  ;;  %v13418_v50 = vpop.f32.mrb[179].mxu1  ;;  %v11443_v34 = vld [vmem:[%s17520_s16 + $0xa0] sm:$0xff] }
 0xc45   :  { %13915 = vmatprep.subr.bf16.mxu0 %v13914_v10  ;;  %v13882_v44 = vpack.c.bf16 %v11444_v35, %v11443_v34  ;;  %v11527_v47 = vld [vmem:[%s17520_s16 + $0x40] sm:$0xff]  ;;  %v11473_v34 = vld [vmem:[%s17520_s16 + $0xf0] sm:$0xff]  ;;  %v11474_v35 = vld [vmem:[%s17520_s16 + $0xf8] sm:$0xff] }
 0xc46   :  { %v8838_v51 = vadd.f32 %v16780_v6, %v8835_v49  ;;  %v8868_v52 = vsel %vm7922_vm8, %v8866_v41, %v8867_v48  ;;  %v8880_v6 = vld [vmem:[%s17518_s15 + $0x18] sm:$0xff] }
 0xc47   :  { %v13862_v54 = vpack.c.bf16 %v8868_v52, %v8876_v46 }
 0xc48   :  { %v8869_v1 = vrot.slane %v8838_v51, 6 }
 0xc49   :  { %13863 = vmatprep.subr.bf16.mxu1 %v13862_v54 }
 0xc4a   :  { %13865 = vmatpush3.bf16.msra.mxu1 %v13862_v54  ;;  %v8870_v2 = vsel %vm7922_vm8, %v8867_v48, %v8869_v1  ;;  %v11528_v48 = vld [vmem:[%s17520_s16 + $0x48] sm:$0xff] }
 0xc4b   :  { %13439 = vmatprep.subr.mxu1 %v8870_v2 }
 0xc4e   :  { %13440 = vmatpush3.msra.mxu1 %v8870_v2  ;;  %v13922_v2 = vpack.c.bf16 %v11528_v48, %v11527_v47 }
 0xc4f   :  { %13442 = vmatmul.mubr.msk.f32.vlgmr.msra.gmra.mrb[180].mxu1 %vm8887_vm11, %v8878_v42  ;;  %13867 = vmatprep.subr.bf16.mxu1 %v13866_v63 }
 0xc50   :  { %13444 = vmatprep.mubr.msk.f32.mxu1 %vm8887_vm11, %v8879_v55  ;;  %13869 = vmatpush3.bf16.msra.mxu1 %v13866_v63 }
 0xc51   :  { %13871 = vmatprep.subr.bf16.mxu1 %v13870_v53 }
 0xc53   :  { %13445 = vmatmul.mubr.msk.f32.gmra.mrb[182].mxu1 %vm8887_vm11, %v8880_v6 }
 0xc54   :  { %13447 = vmatprep.mubr.msk.f32.mxu1 %vm8887_vm11, %v8881_v56  ;;  %13873 = vmatpush3.bf16.msra.mxu1 %v13870_v53  ;;  %v11530_v53 = vld [vmem:[%s17520_s16 + $0x58] sm:$0xff] }
 0xc55   :  { %13875 = vmatprep.subr.bf16.mxu1 %v13874_v7 }
 0xc57   :  { %13448 = vmatmul.mubr.msk.f32.gmra.mrb[184].mxu1 %vm8887_vm11, %v8882_v57 }
 0xc58   :  { %13450 = vmatprep.mubr.msk.f32.mxu1 %vm8887_vm11, %v8883_v58 }
 0xc5b   :  { %13451 = vmatmul.mubr.msk.f32.gmra.mrb[186].mxu1 %vm8887_vm11, %v8884_v59 }
 0xc5c   :  { %13453 = vmatprep.mubr.msk.f32.mxu1 %vm8887_vm11, %v8885_v60 }
 0xc5f   :  { %13454 = vmatmul.mubr.msk.f32.gmra.mrb[188].mxu1 %vm8887_vm11, %v8886_v61 }
 0xd22   :  { %v13443_v11 = vpop.f32.mrb[180].mxu1 }
 0xd23   :  { %v9034_v13 = vmax.f32 %v13443_v11, 0.0  ;;  %v8984_v14 = vpop.f32.mrb[181].mxu1 }
 0xd24   :  { %v9033_v15 = vmax.f32 %v8984_v14, 0.0  ;;  %v11478_v14 = vld [vmem:[%s17520_s16 + $0x38] sm:$0xff] }
 0xd25   :  { %9044 = vst.msk [vmem:[#allocation6 + $0x13] sm:$0xff] %vm62_vm2, %v9034_v13  ;;  %v11477_v13 = vld [vmem:[%s17520_s16 + $0x30] sm:$0xff] }
 0xd26   :  { %9043 = vst.msk [vmem:[#allocation6 + $0xb] sm:$0xff] %vm62_vm2, %v9033_v15  ;;  %v13446_v17 = vpop.f32.mrb[182].mxu1  ;;  %v13894_v15 = vpack.c.bf16 %v11478_v14, %v11477_v13  ;;  %v10581_v13 = vld [vmem:[%s17521_s18 + $0x70] sm:$0xff]  ;;  %v10584_v14 = vld [vmem:[%s17521_s18 + $0x88] sm:$0xff] }
 0xd27   :  { %v9036_v18 = vmax.f32 %v13446_v17, 0.0  ;;  %v8994_v19 = vpop.f32.mrb[183].mxu1 }
 0xd28   :  { %v9035_v20 = vmax.f32 %v8994_v19, 0.0  ;;  %v10183_v19 = vld [vmem:[%s17520_s16 + $0x18] sm:$0xff] }
 0xd29   :  { %9046 = vst.msk [vmem:[#allocation6 + $0x23] sm:$0xff] %vm62_vm2, %v9036_v18  ;;  %v10182_v18 = vld [vmem:[%s17520_s16 + $0x10] sm:$0xff] }
 0xd2a   :  { %9045 = vst.msk [vmem:[#allocation6 + $0x1b] sm:$0xff] %vm62_vm2, %v9035_v20  ;;  %v13449_v21 = vpop.f32.mrb[184].mxu1  ;;  %v11471_v20 = vld [vmem:[%s17520_s16 + $0xe0] sm:$0xff]  ;;  %v13934_v23 = vpack.c.bf16 %v10183_v19, %v10182_v18 }
 0xd2b   :  { %v9038_v24 = vmax.f32 %v13449_v21, 0.0  ;;  %v9004_v25 = vpop.f32.mrb[185].mxu1  ;;  %v11472_v21 = vld [vmem:[%s17520_s16 + $0xe8] sm:$0xff]  ;;  %v10583_v19 = vld [vmem:[%s17521_s18 + $0x80] sm:$0xff] }
 0xd2c   :  { %v9037_v26 = vmax.f32 %v9004_v25, 0.0  ;;  %v16899_v33 = vld [vmem:[#allocation6 + $0x13] sm:$0xff]  ;;  %v13898_v25 = vpack.c.bf16 %v11472_v21, %v11471_v20  ;;  %v10585_v20 = vld [vmem:[%s17521_s18 + $0x90] sm:$0xff]  ;;  %v10588_v21 = vld [vmem:[%s17521_s18 + $0xa8] sm:$0xff] }
 0xd2d   :  { %9048 = vst.msk [vmem:[#allocation6 + $0x33] sm:$0xff] %vm62_vm2, %v9038_v24  ;;  %v16889_v28 = vld [vmem:[#allocation6 + $0xb] sm:$0xff] }
 0xd2e   :  { %v16891_v12 = vld [vmem:[#allocation6 + $0xc] sm:$0xff]  ;;  %9047 = vst.msk [vmem:[#allocation6 + $0x2b] sm:$0xff] %vm62_vm2, %v9037_v26  ;;  %v13452_v32 = vpop.f32.mrb[186].mxu1  ;;  %13464 = vmatprep.mubr.msk.f32.mxu1 %vm62_vm2, %v16889_v28 }
 0xd2f   :  { %13579 = vmatprep.mubr.msk.f32.mxu0 %vm62_vm2, %v16891_v12  ;;  %v9040_v36 = vmax.f32 %v13452_v32, 0.0  ;;  %v9014_v37 = vpop.f32.mrb[187].mxu1  ;;  %13465 = vmatmul.mubr.msk.f32.vlgmr.msra.gmra.mrb[190].mxu1 %vm62_vm2, %v16899_v33 }
 0xd30   :  { %v9039_v38 = vmax.f32 %v9014_v37, 0.0  ;;  %13877 = vmatpush3.bf16.msra.mxu1 %v13874_v7  ;;  %v16918_v46 = vld [vmem:[#allocation6 + $0x23] sm:$0xff]  ;;  %v13926_v7 = vpack.c.bf16 %v11530_v53, %v11529_v3  ;;  %v13902_v37 = vpack.c.bf16 %v11474_v35, %v11473_v34  ;;  %v10575_v3 = vld [vmem:[%s17521_s18 + $0x40] sm:$0xff] }
 0xd31   :  { %9050 = vst.msk [vmem:[#allocation6 + $0x43] sm:$0xff] %vm62_vm2, %v9040_v36  ;;  %v16912_v39 = vld [vmem:[#allocation6 + $0x1b] sm:$0xff]  ;;  %13879 = vmatprep.subr.bf16.mxu1 %v13878_v30  ;;  %v10577_v53 = vld [vmem:[%s17521_s18 + $0x50] sm:$0xff] }
 0xd32   :  { %v9064_v40 = vld [vmem:[#allocation6 + $0x14] sm:$0xff]  ;;  %v9065_v41 = vld [vmem:[#allocation6 + $0x1c] sm:$0xff]  ;;  %9049 = vst.msk [vmem:[#allocation6 + $0x3b] sm:$0xff] %vm62_vm2, %v9039_v38  ;;  %v13455_v45 = vpop.f32.mrb[188].mxu1  ;;  %13467 = vmatprep.mubr.msk.f32.mxu1 %vm62_vm2, %v16912_v39  ;;  %v10633_v35 = vld [vmem:[%s17521_s18 + $0x210] sm:$0xff] }
 0xd33   :  { %13580 = vmatmul.mubr.msk.f32.vlgmr.msra.gmra.mrb[36].mxu0 %vm62_vm2, %v9064_v40  ;;  %v9042_v49 = vmax.f32 %v13455_v45, 0.0  ;;  %v9024_v50 = vpop.f32.mrb[189].mxu1  ;;  %13468 = vmatmul.mubr.msk.f32.gmra.mrb[192].mxu1 %vm62_vm2, %v16918_v46  ;;  %v9073_v17 = vld [vmem:[#allocation6 + $0x15] sm:$0xff]  ;;  %v9074_v22 = vld [vmem:[#allocation6 + $0x1d] sm:$0xff] }
 0xd34   :  { %13582 = vmatprep.mubr.msk.f32.mxu0 %vm62_vm2, %v9065_v41  ;;  %v9041_v51 = vmax.f32 %v9024_v50, 0.0  ;;  %13917 = vmatpush3.bf16.msra.mxu0 %v13914_v10  ;;  %v16936_v42 = vld [vmem:[#allocation6 + $0x33] sm:$0xff]  ;;  %v10181_v10 = vld [vmem:[%s17520_s16 + $0x8] sm:$0xff] }
 0xd35   :  { %13881 = vmatpush3.bf16.msra.mxu1 %v13878_v30  ;;  %9052 = vst.msk [vmem:[#allocation6 + $0x53] sm:$0x3f] %vm3993_vm3, %v9042_v49  ;;  %v16930_v52 = vld [vmem:[#allocation6 + $0x2b] sm:$0xff]  ;;  %13919 = vmatprep.subr.bf16.mxu0 %v13918_v43  ;;  %v13930_v11 = vpack.c.bf16 %v10181_v10, %v10180_v9  ;;  %v9082_v36 = vld [vmem:[#allocation6 + $0x5d] sm:$0x3f]  ;;  %v13948_v9 = vpack.c.bf16 %v10577_v53, %v10575_v3 }
 0xd36   :  { %v9066_v54 = vld [vmem:[#allocation6 + $0x24] sm:$0xff]  ;;  %v9067_v1 = vld [vmem:[#allocation6 + $0x2c] sm:$0xff]  ;;  %13883 = vmatprep.subr.bf16.mxu1 %v13882_v44  ;;  %9051 = vst.msk [vmem:[#allocation6 + $0x4b] sm:$0xff] %vm62_vm2, %v9041_v51  ;;  %13470 = vmatprep.mubr.msk.f32.mxu1 %vm62_vm2, %v16930_v52  ;;  %v9083_v38 = vld [vmem:[#allocation6 + $0x16] sm:$0xff] }
 0xd37   :  { %13583 = vmatmul.mubr.msk.f32.gmra.mrb[38].mxu0 %vm62_vm2, %v9066_v54  ;;  %13471 = vmatmul.mubr.msk.f32.gmra.mrb[194].mxu1 %vm62_vm2, %v16936_v42  ;;  %v9075_v24 = vld [vmem:[#allocation6 + $0x25] sm:$0xff]  ;;  %v9076_v26 = vld [vmem:[#allocation6 + $0x2d] sm:$0xff]  ;;  %v9092_v50 = vld [vmem:[#allocation6 + $0x5e] sm:$0x3f] }
 0xd38   :  { %13585 = vmatprep.mubr.msk.f32.mxu0 %vm62_vm2, %v9067_v1  ;;  %13921 = vmatpush3.bf16.msra.mxu0 %v13918_v43  ;;  %v16946_v57 = vld [vmem:[#allocation6 + $0x43] sm:$0xff]  ;;  %v9086_v43 = vld [vmem:[#allocation6 + $0x2e] sm:$0xff]  ;;  %v10631_v34 = vld [vmem:[%s17521_s18 + $0x200] sm:$0xff] }
 0xd39   :  { %v16941_v55 = vld [vmem:[#allocation6 + $0x3b] sm:$0xff]  ;;  %13923 = vmatprep.subr.bf16.mxu0 %v13922_v2  ;;  %v10601_v53 = vld [vmem:[%s17521_s18 + $0x110] sm:$0xff] }
 0xd3a   :  { %v9068_v6 = vld [vmem:[#allocation6 + $0x34] sm:$0xff]  ;;  %v9069_v56 = vld [vmem:[#allocation6 + $0x3c] sm:$0xff]  ;;  %13473 = vmatprep.mubr.msk.f32.mxu1 %vm62_vm2, %v16941_v55 }
 0xd3b   :  { %13586 = vmatmul.mubr.msk.f32.gmra.mrb[40].mxu0 %vm62_vm2, %v9068_v6  ;;  %13474 = vmatmul.mubr.msk.f32.gmra.mrb[196].mxu1 %vm62_vm2, %v16946_v57  ;;  %v9077_v27 = vld [vmem:[#allocation6 + $0x35] sm:$0xff]  ;;  %v9088_v45 = vld [vmem:[#allocation6 + $0x3e] sm:$0xff] }
 0xd3c   :  { %13588 = vmatprep.mubr.msk.f32.mxu0 %vm62_vm2, %v9069_v56  ;;  %v16956_v61 = vld [vmem:[#allocation6 + $0x53] sm:$0x3f] }
 0xd3d   :  { %v16951_v58 = vld [vmem:[#allocation6 + $0x4b] sm:$0xff]  ;;  %v9072_v63 = vld [vmem:[#allocation6 + $0x54] sm:$0x3f] }
 0xd3e   :  { %v9070_v59 = vld [vmem:[#allocation6 + $0x44] sm:$0xff]  ;;  %v9071_v60 = vld [vmem:[#allocation6 + $0x4c] sm:$0xff]  ;;  %13476 = vmatprep.mubr.msk.f32.mxu1 %vm62_vm2, %v16951_v58  ;;  %v9081_v32 = vld [vmem:[#allocation6 + $0x55] sm:$0xff] }
 0xd3f   :  { %13589 = vmatmul.mubr.msk.f32.gmra.mrb[42].mxu0 %vm62_vm2, %v9070_v59  ;;  %13477 = vmatmul.mubr.msk.f32.gmra.mrb[198].mxu1 %vm62_vm2, %v16956_v61  ;;  %v9079_v30 = vld [vmem:[#allocation6 + $0x45] sm:$0xff]  ;;  %v9080_v31 = vld [vmem:[#allocation6 + $0x4d] sm:$0xff]  ;;  %v9091_v49 = vld [vmem:[#allocation6 + $0x56] sm:$0xff] }
 0xd40   :  { %13591 = vmatprep.mubr.msk.f32.mxu0 %vm62_vm2, %v9071_v60  ;;  %13487 = vmatprep.mubr.msk.f32.mxu1 %vm62_vm2, %v16891_v12  ;;  %v9078_v12 = vld [vmem:[#allocation6 + $0x3d] sm:$0xff]  ;;  %v9089_v47 = vld [vmem:[#allocation6 + $0x46] sm:$0xff]  ;;  %v9090_v48 = vld [vmem:[#allocation6 + $0x4e] sm:$0xff] }
 0xd41   :  { %v10599_v3 = vld [vmem:[%s17521_s18 + $0x100] sm:$0xff] }
 0xd43   :  { %13592 = vmatmul.mubr.msk.f32.gmra.mrb[44].mxu0 %vm62_vm2, %v9072_v63  ;;  %13488 = vmatmul.mubr.msk.f32.vlgmr.msra.gmra.mrb[200].mxu1 %vm62_vm2, %v9064_v40  ;;  %v9084_v40 = vld [vmem:[#allocation6 + $0x1e] sm:$0xff] }
 0xd44   :  { %13602 = vmatprep.mubr.msk.f32.mxu0 %vm62_vm2, %v16889_v28  ;;  %13490 = vmatprep.mubr.msk.f32.mxu1 %vm62_vm2, %v9065_v41  ;;  %v9085_v41 = vld [vmem:[#allocation6 + $0x26] sm:$0xff] }
 0xd45   :  { %13885 = vmatpush3.bf16.msra.mxu1 %v13882_v44  ;;  %v9087_v44 = vld [vmem:[#allocation6 + $0x36] sm:$0xff] }
 0xd46   :  { %13887 = vmatprep.subr.bf16.mxu1 %v13886_v0 }
 0xd47   :  { %13603 = vmatmul.mubr.msk.f32.vlgmr.msra.gmra.mrb[36].mxu0 %vm62_vm2, %v16899_v33  ;;  %13491 = vmatmul.mubr.msk.f32.gmra.mrb[202].mxu1 %vm62_vm2, %v9066_v54  ;;  %v10570_v54 = vld [vmem:[%s17521_s18 + $0x18] sm:$0xff] }
 0xd48   :  { %13605 = vmatprep.mubr.msk.f32.mxu0 %vm62_vm2, %v16912_v39  ;;  %13493 = vmatprep.mubr.msk.f32.mxu1 %vm62_vm2, %v9067_v1  ;;  %v10567_v1 = vld [vmem:[%s17521_s18] sm:$0xff] }
 0xd49   :  { %13925 = vmatpush3.bf16.msra.mxu0 %v13922_v2  ;;  %13889 = vmatpush3.bf16.msra.mxu1 %v13886_v0 }
 0xd4a   :  { %13927 = vmatprep.subr.bf16.mxu0 %v13926_v7  ;;  %13891 = vmatprep.subr.bf16.mxu1 %v13890_v8 }
 0xd4b   :  { %13606 = vmatmul.mubr.msk.f32.gmra.mrb[38].mxu0 %vm62_vm2, %v16918_v46  ;;  %13494 = vmatmul.mubr.msk.f32.gmra.mrb[204].mxu1 %vm62_vm2, %v9068_v6  ;;  %v10574_v6 = vld [vmem:[%s17521_s18 + $0x38] sm:$0xff] }
 0xd4c   :  { %13608 = vmatprep.mubr.msk.f32.mxu0 %vm62_vm2, %v16930_v52  ;;  %13496 = vmatprep.mubr.msk.f32.mxu1 %vm62_vm2, %v9069_v56 }
 0xd4d   :  { %13929 = vmatpush3.bf16.msra.mxu0 %v13926_v7  ;;  %v10582_v7 = vld [vmem:[%s17521_s18 + $0x78] sm:$0xff] }
 0xd4e   :  { %13931 = vmatprep.subr.bf16.mxu0 %v13930_v11  ;;  %v13950_v10 = vpack.c.bf16 %v10582_v7, %v10580_v5  ;;  %v17279_v5 = vld [vmem:[%s17522_s17] ss:$0 sm:$0xff] }
 0xd4f   :  { %13609 = vmatmul.mubr.msk.f32.gmra.mrb[40].mxu0 %vm62_vm2, %v16936_v42  ;;  %13497 = vmatmul.mubr.msk.f32.gmra.mrb[206].mxu1 %vm62_vm2, %v9070_v59  ;;  %v10571_v59 = vld [vmem:[%s17521_s18 + $0x20] sm:$0xff] }
 0xd50   :  { %13611 = vmatprep.mubr.msk.f32.mxu0 %vm62_vm2, %v16941_v55  ;;  %13499 = vmatprep.mubr.msk.f32.mxu1 %vm62_vm2, %v9071_v60  ;;  %v10573_v60 = vld [vmem:[%s17521_s18 + $0x30] sm:$0xff] }
 0xd53   :  { %13612 = vmatmul.mubr.msk.f32.gmra.mrb[42].mxu0 %vm62_vm2, %v16946_v57  ;;  %13500 = vmatmul.mubr.msk.f32.gmra.mrb[208].mxu1 %vm62_vm2, %v9072_v63  ;;  %v13944_v63 = vpack.c.bf16 %v10573_v60, %v10571_v59  ;;  %v10597_v59 = vld [vmem:[%s17521_s18 + $0xf0] sm:$0xff] }
 0xd54   :  { %13614 = vmatprep.mubr.msk.f32.mxu0 %vm62_vm2, %v16951_v58  ;;  %13510 = vmatprep.mubr.msk.f32.mxu1 %vm62_vm2, %v16889_v28 }
 0xd57   :  { %13615 = vmatmul.mubr.msk.f32.gmra.mrb[44].mxu0 %vm62_vm2, %v16956_v61  ;;  %13511 = vmatmul.mubr.msk.f32.vlgmr.msra.gmra.mrb[200].mxu1 %vm62_vm2, %v16899_v33 }
 0xd58   :  { %13625 = vmatprep.mubr.msk.f32.mxu0 %vm62_vm2, %v9073_v17  ;;  %13513 = vmatprep.mubr.msk.f32.mxu1 %vm62_vm2, %v16912_v39 }
 0xd59   :  { %13893 = vmatpush3.bf16.msra.mxu1 %v13890_v8 }
 0xd5a   :  { %13895 = vmatprep.subr.bf16.mxu1 %v13894_v15 }
 0xd5b   :  { %13626 = vmatmul.mubr.msk.f32.vlgmr.msra.gmra.mrb[36].mxu0 %vm62_vm2, %v9074_v22  ;;  %13514 = vmatmul.mubr.msk.f32.gmra.mrb[202].mxu1 %vm62_vm2, %v16918_v46 }
 0xd5c   :  { %13628 = vmatprep.mubr.msk.f32.mxu0 %vm62_vm2, %v9075_v24  ;;  %13516 = vmatprep.mubr.msk.f32.mxu1 %vm62_vm2, %v16930_v52 }
 0xd5d   :  { %13933 = vmatpush3.bf16.msra.mxu0 %v13930_v11  ;;  %13897 = vmatpush3.bf16.msra.mxu1 %v13894_v15  ;;  %v10579_v11 = vld [vmem:[%s17521_s18 + $0x60] sm:$0xff]  ;;  %v10586_v15 = vld [vmem:[%s17521_s18 + $0x98] sm:$0xff] }
 0xd5e   :  { %13935 = vmatprep.subr.bf16.mxu0 %v13934_v23  ;;  %13899 = vmatprep.subr.bf16.mxu1 %v13898_v25  ;;  %v13954_v18 = vpack.c.bf16 %v10586_v15, %v10584_v14  ;;  %v13972_v15 = vpack.c.bf16 %v10601_v53, %v10599_v3  ;;  %v10615_v3 = vld [vmem:[%s17521_s18 + $0x180] sm:$0xff]  ;;  %v10617_v53 = vld [vmem:[%s17521_s18 + $0x190] sm:$0xff] }
 0xd5f   :  { %13629 = vmatmul.mubr.msk.f32.gmra.mrb[38].mxu0 %vm62_vm2, %v9076_v26  ;;  %13517 = vmatmul.mubr.msk.f32.gmra.mrb[204].mxu1 %vm62_vm2, %v16936_v42 }
 0xd60   :  { %13631 = vmatprep.mubr.msk.f32.mxu0 %vm62_vm2, %v9077_v27  ;;  %13519 = vmatprep.mubr.msk.f32.mxu1 %vm62_vm2, %v16941_v55 }
 0xd61   :  { %13937 = vmatpush3.bf16.msra.mxu0 %v13934_v23  ;;  %v13956_v23 = vpack.c.bf16 %v10585_v20, %v10583_v19  ;;  %v10603_v19 = vld [vmem:[%s17521_s18 + $0x120] sm:$0xff]  ;;  %v10605_v20 = vld [vmem:[%s17521_s18 + $0x130] sm:$0xff] }
 0xd63   :  { %13632 = vmatmul.mubr.msk.f32.gmra.mrb[40].mxu0 %vm62_vm2, %v9078_v12  ;;  %13520 = vmatmul.mubr.msk.f32.gmra.mrb[206].mxu1 %vm62_vm2, %v16946_v57 }
 0xd64   :  { %13634 = vmatprep.mubr.msk.f32.mxu0 %vm62_vm2, %v9079_v30  ;;  %13522 = vmatprep.mubr.msk.f32.mxu1 %vm62_vm2, %v16951_v58 }
 0xd67   :  { %13635 = vmatmul.mubr.msk.f32.gmra.mrb[42].mxu0 %vm62_vm2, %v9080_v31  ;;  %13523 = vmatmul.mubr.msk.f32.gmra.mrb[208].mxu1 %vm62_vm2, %v16956_v61 }
 0xd68   :  { %13637 = vmatprep.mubr.msk.f32.mxu0 %vm62_vm2, %v9081_v32  ;;  %13533 = vmatprep.mubr.msk.f32.mxu1 %vm62_vm2, %v9073_v17  ;;  %v13952_v17 = vpack.c.bf16 %v10581_v13, %v10579_v11 }
 0xd6b   :  { %13638 = vmatmul.mubr.msk.f32.gmra.mrb[44].mxu0 %vm62_vm2, %v9082_v36  ;;  %13534 = vmatmul.mubr.msk.f32.vlgmr.msra.gmra.mrb[210].mxu1 %vm62_vm2, %v9074_v22  ;;  %v10590_v22 = vld [vmem:[%s17521_s18 + $0xb8] sm:$0xff] }
 0xd6c   :  { %13648 = vmatprep.mubr.msk.f32.mxu0 %vm62_vm2, %v9083_v38  ;;  %13536 = vmatprep.mubr.msk.f32.mxu1 %vm62_vm2, %v9075_v24  ;;  %v10587_v24 = vld [vmem:[%s17521_s18 + $0xa0] sm:$0xff]  ;;  %v10636_v38 = vld [vmem:[%s17521_s18 + $0x228] sm:$0xff] }
 0xd6d   :  { %13901 = vmatpush3.bf16.msra.mxu1 %v13898_v25  ;;  %v10589_v25 = vld [vmem:[%s17521_s18 + $0xb0] sm:$0xff] }
 0xd6e   :  { %13903 = vmatprep.subr.bf16.mxu1 %v13902_v37 }
 0xd6f   :  { %13649 = vmatmul.mubr.msk.f32.vlgmr.msra.gmra.mrb[36].mxu0 %vm62_vm2, %v9084_v40  ;;  %13537 = vmatmul.mubr.msk.f32.gmra.mrb[212].mxu1 %vm62_vm2, %v9076_v26  ;;  %v13958_v26 = vpack.c.bf16 %v10590_v22, %v10588_v21  ;;  %v10638_v40 = vld [vmem:[%s17521_s18 + $0x238] sm:$0xff] }
 0xd70   :  { %13651 = vmatprep.mubr.msk.f32.mxu0 %vm62_vm2, %v9085_v41  ;;  %13539 = vmatprep.mubr.msk.f32.mxu1 %vm62_vm2, %v9077_v27  ;;  %v10592_v27 = vld [vmem:[%s17521_s18 + $0xc8] sm:$0xff]  ;;  %v10635_v41 = vld [vmem:[%s17521_s18 + $0x220] sm:$0xff] }
 0xd71   :  { %13905 = vmatpush3.bf16.msra.mxu1 %v13902_v37  ;;  %v13960_v37 = vpack.c.bf16 %v10589_v25, %v10587_v24  ;;  %v10608_v24 = vld [vmem:[%s17521_s18 + $0x148] sm:$0xff]  ;;  %v10610_v25 = vld [vmem:[%s17521_s18 + $0x158] sm:$0xff] }
 0xd73   :  { %13652 = vmatmul.mubr.msk.f32.gmra.mrb[38].mxu0 %vm62_vm2, %v9086_v43  ;;  %13540 = vmatmul.mubr.msk.f32.gmra.mrb[214].mxu1 %vm62_vm2, %v9078_v12  ;;  %v10632_v12 = vld [vmem:[%s17521_s18 + $0x208] sm:$0xff] }
 0xd74   :  { %13654 = vmatprep.mubr.msk.f32.mxu0 %vm62_vm2, %v9087_v44  ;;  %13542 = vmatprep.mubr.msk.f32.mxu1 %vm62_vm2, %v9079_v30  ;;  %v10634_v30 = vld [vmem:[%s17521_s18 + $0x218] sm:$0xff]  ;;  %v10591_v44 = vld [vmem:[%s17521_s18 + $0xc0] sm:$0xff] }
 0xd77   :  { %13655 = vmatmul.mubr.msk.f32.gmra.mrb[40].mxu0 %vm62_vm2, %v9088_v45  ;;  %13543 = vmatmul.mubr.msk.f32.gmra.mrb[216].mxu1 %vm62_vm2, %v9080_v31  ;;  %v10594_v31 = vld [vmem:[%s17521_s18 + $0xd8] sm:$0xff]  ;;  %v10593_v45 = vld [vmem:[%s17521_s18 + $0xd0] sm:$0xff] }
 0xd78   :  { %13657 = vmatprep.mubr.msk.f32.mxu0 %vm62_vm2, %v9089_v47  ;;  %13545 = vmatprep.mubr.msk.f32.mxu1 %vm62_vm2, %v9081_v32  ;;  %v14002_v32 = vpack.c.bf16 %v10634_v30, %v10632_v12  ;;  %v13962_v43 = vpack.c.bf16 %v10594_v31, %v10592_v27  ;;  %v14006_v47 = vpack.c.bf16 %v10638_v40, %v10636_v38  ;;  %v10612_v40 = vld [vmem:[%s17521_s18 + $0x168] sm:$0xff] }
 0xd79   :  { %v13976_v31 = vpack.c.bf16 %v10605_v20, %v10603_v19  ;;  %v13988_v20 = vpack.c.bf16 %v10617_v53, %v10615_v3 }
 0xd7a   :  { %14003 = vmatprep.subr.bf16.mxu0 %v14002_v32 }
 0xd7b   :  { %13658 = vmatmul.mubr.msk.f32.gmra.mrb[42].mxu0 %vm62_vm2, %v9090_v48  ;;  %13546 = vmatmul.mubr.msk.f32.gmra.mrb[218].mxu1 %vm62_vm2, %v9082_v36  ;;  %v14004_v36 = vpack.c.bf16 %v10633_v35, %v10631_v34  ;;  %v10637_v48 = vld [vmem:[%s17521_s18 + $0x230] sm:$0xff]  ;;  %v13978_v34 = vpack.c.bf16 %v10610_v25, %v10608_v24  ;;  %v10607_v35 = vld [vmem:[%s17521_s18 + $0x140] sm:$0xff] }
 0xd7c   :  { %13660 = vmatprep.mubr.msk.f32.mxu0 %vm62_vm2, %v9091_v49  ;;  %13556 = vmatprep.mubr.msk.f32.mxu1 %vm62_vm2, %v16889_v28  ;;  %v10596_v49 = vld [vmem:[%s17521_s18 + $0xe8] sm:$0xff]  ;;  %v10621_v24 = vld [vmem:[%s17521_s18 + $0x1b0] sm:$0xff] }
 0xd7d   :  { %14005 = vmatpush1.bf16.msra.mxu0 %v14004_v36  ;;  %v10609_v36 = vld [vmem:[%s17521_s18 + $0x150] sm:$0xff] }
 0xd7e   :  { %14007 = vmatprep.subr.bf16.mxu0 %v14006_v47 }
 0xd7f   :  { %13661 = vmatmul.mubr.msk.f32.gmra.mrb[44].mxu0 %vm62_vm2, %v9092_v50  ;;  %13557 = vmatmul.mubr.msk.f32.vlgmr.msra.gmra.mrb[210].mxu1 %vm62_vm2, %v16899_v33  ;;  %v10598_v50 = vld [vmem:[%s17521_s18 + $0xf8] sm:$0xff] }
 0xd80   :  { %10784 = vmatprep.mubr.f32.mxu0 %v14484_v29  ;;  %13559 = vmatprep.mubr.msk.f32.mxu1 %vm62_vm2, %v16912_v39 }
 0xd83   :  { %13560 = vmatmul.mubr.msk.f32.gmra.mrb[212].mxu1 %vm62_vm2, %v16918_v46 }
 0xd84   :  { %13562 = vmatprep.mubr.msk.f32.mxu1 %vm62_vm2, %v16930_v52  ;;  %v10568_v52 = vld [vmem:[%s17521_s18 + $0x8] sm:$0xff] }
 0xd85   :  { %v13938_v2 = vpack.c.bf16 %v10570_v54, %v10568_v52  ;;  %v14008_v52 = vpack.c.bf16 %v10637_v48, %v10635_v41  ;;  %v10640_v54 = vld [vmem:[%s17521_s18 + $0x248] sm:$0xff]  ;;  %v10614_v41 = vld [vmem:[%s17521_s18 + $0x178] sm:$0xff] }
 0xd87   :  { %13563 = vmatmul.mubr.msk.f32.gmra.mrb[214].mxu1 %vm62_vm2, %v16936_v42  ;;  %v10569_v42 = vld [vmem:[%s17521_s18 + $0x10] sm:$0xff]  ;;  %13939 = vmatprep.subr.bf16.mxu1 %v13938_v2  ;;  %v10639_v2 = vld [vmem:[%s17521_s18 + $0x240] sm:$0xff] }
 0xd88   :  { %13565 = vmatprep.mubr.msk.f32.mxu1 %vm62_vm2, %v16941_v55  ;;  %v10572_v55 = vld [vmem:[%s17521_s18 + $0x28] sm:$0xff]  ;;  %14009 = vmatpush1.bf16.msra.mxu0 %v14008_v52  ;;  %v13982_v52 = vpack.c.bf16 %v10614_v41, %v10612_v40 }
 0xd8b   :  { %13566 = vmatmul.mubr.msk.f32.gmra.mrb[216].mxu1 %vm62_vm2, %v16946_v57  ;;  %v13940_v57 = vpack.c.bf16 %v10569_v42, %v10567_v1  ;;  %v10642_v1 = vld [vmem:[%s17521_s18 + $0x258] sm:$0xff]  ;;  %v10641_v42 = vld [vmem:[%s17521_s18 + $0x250] sm:$0xff] }
 0xd8c   :  { %13568 = vmatprep.mubr.msk.f32.mxu1 %vm62_vm2, %v16951_v58  ;;  %v13942_v58 = vpack.c.bf16 %v10574_v6, %v10572_v55  ;;  %v13964_v55 = vpack.c.bf16 %v10593_v45, %v10591_v44  ;;  %v14010_v6 = vpack.c.bf16 %v10642_v1, %v10640_v54  ;;  %v14012_v60 = vpack.c.bf16 %v10641_v42, %v10639_v2  ;;  %v10611_v54 = vld [vmem:[%s17521_s18 + $0x160] sm:$0xff]  ;;  %v10613_v1 = vld [vmem:[%s17521_s18 + $0x170] sm:$0xff] }
 0xd8d   :  { %13941 = vmatpush1.bf16.msra.mxu1 %v13940_v57  ;;  %v13966_v57 = vpack.c.bf16 %v10598_v50, %v10596_v49  ;;  %v13980_v49 = vpack.c.bf16 %v10609_v36, %v10607_v35 }
 0xd8e   :  { %13943 = vmatprep.subr.bf16.mxu1 %v13942_v58  ;;  %v10595_v58 = vld [vmem:[%s17521_s18 + $0xe0] sm:$0xff]  ;;  %14011 = vmatprep.subr.bf16.mxu0 %v14010_v6  ;;  %v10618_v6 = vld [vmem:[%s17521_s18 + $0x198] sm:$0xff] }
 0xd8f   :  { %13569 = vmatmul.mubr.msk.f32.gmra.mrb[218].mxu1 %vm62_vm2, %v16956_v61  ;;  %v10576_v61 = vld [vmem:[%s17521_s18 + $0x48] sm:$0xff]  ;;  %14013 = vmatpush1.bf16.msra.mxu0 %v14012_v60 }
 0xd90   :  { %v13946_v0 = vpack.c.bf16 %v10578_v16, %v10576_v61  ;;  %v10600_v61 = vld [vmem:[%s17521_s18 + $0x108] sm:$0xff]  ;;  %v10602_v16 = vld [vmem:[%s17521_s18 + $0x118] sm:$0xff] }
 0xd91   :  { %13945 = vmatpush1.bf16.msra.mxu1 %v13944_v63  ;;  %v13968_v63 = vpack.c.bf16 %v10597_v59, %v10595_v58 }
 0xd92   :  { %13947 = vmatprep.subr.bf16.mxu1 %v13946_v0  ;;  %v13970_v0 = vpack.c.bf16 %v10602_v16, %v10600_v61  ;;  %v13984_v16 = vpack.c.bf16 %v10613_v1, %v10611_v54 }
 0xd95   :  { %13949 = vmatpush1.bf16.msra.mxu1 %v13948_v9  ;;  %v10604_v9 = vld [vmem:[%s17521_s18 + $0x128] sm:$0xff] }
 0xd96   :  { %13951 = vmatprep.subr.bf16.mxu1 %v13950_v10  ;;  %v10606_v10 = vld [vmem:[%s17521_s18 + $0x138] sm:$0xff] }
 0xd99   :  { %13953 = vmatpush1.bf16.msra.mxu1 %v13952_v17 }
 0xd9a   :  { %13955 = vmatprep.subr.bf16.mxu1 %v13954_v18  ;;  %v13974_v18 = vpack.c.bf16 %v10606_v10, %v10604_v9  ;;  %v10620_v10 = vld [vmem:[%s17521_s18 + $0x1a8] sm:$0xff] }
 0xd9d   :  { %13957 = vmatpush1.bf16.msra.mxu1 %v13956_v23 }
 0xd9e   :  { %13959 = vmatprep.subr.bf16.mxu1 %v13958_v26 }
 0xda1   :  { %13961 = vmatpush1.bf16.msra.mxu1 %v13960_v37 }
 0xda2   :  { %13963 = vmatprep.subr.bf16.mxu1 %v13962_v43 }
 0xda5   :  { %13965 = vmatpush1.bf16.msra.mxu1 %v13964_v55  ;;  %v10616_v55 = vld [vmem:[%s17521_s18 + $0x188] sm:$0xff] }
 0xda6   :  { %13967 = vmatprep.subr.bf16.mxu1 %v13966_v57 }
 0xda9   :  { %13969 = vmatpush1.bf16.msra.mxu1 %v13968_v63 }
 0xdaa   :  { %13971 = vmatprep.subr.bf16.mxu1 %v13970_v0  ;;  %v13986_v0 = vpack.c.bf16 %v10618_v6, %v10616_v55 }
 0xdad   :  { %13973 = vmatpush1.bf16.msra.mxu1 %v13972_v15 }
 0xdae   :  { %13975 = vmatprep.subr.bf16.mxu1 %v13974_v18 }
 0xdb1   :  { %13977 = vmatpush1.bf16.msra.mxu1 %v13976_v31 }
 0xdb2   :  { %13979 = vmatprep.subr.bf16.mxu1 %v13978_v34 }
 0xdb5   :  { %13981 = vmatpush1.bf16.msra.mxu1 %v13980_v49 }
 0xdb6   :  { %13983 = vmatprep.subr.bf16.mxu1 %v13982_v52 }
 0xdb9   :  { %13985 = vmatpush1.bf16.msra.mxu1 %v13984_v16 }
 0xdba   :  { %13987 = vmatprep.subr.bf16.mxu1 %v13986_v0 }
 0xdbd   :  { %13989 = vmatpush1.bf16.msra.mxu1 %v13988_v20 }
 0xe02   :  { %v17112_v29 = vpop.f32.mrb[190].mxu1 }
 0xe03   :  { %v17114_v28 = vpop.f32.mrb[191].mxu1 }
 0xe06   :  { %v17116_v33 = vpop.f32.mrb[192].mxu1 }
 0xe07   :  { %v17118_v39 = vpop.f32.mrb[193].mxu1 }
 0xe08   :  { %v9212_v31 = vadd.f32 %v17279_v5, %v17118_v39  ;;  %v10625_v39 = vld [vmem:[%s17521_s18 + $0x1d0] sm:$0xff] }
 0xe0a   :  { %v17120_v46 = vpop.f32.mrb[194].mxu1 }
 0xe0b   :  { %v17122_v51 = vpop.f32.mrb[195].mxu1 }
 0xe0e   :  { %v17142_v56 = vpop.f32.mrb[196].mxu1 }
 0xe0f   :  { %v17153_v62 = vpop.f32.mrb[197].mxu1 }
 0xe12   :  { %v17164_v4 = vpop.f32.mrb[198].mxu1 }
 0xe13   :  { %v17172_v8 = vpop.f32.mrb[199].mxu1  ;;  %v9247_v21 = vadd.f32 %v17164_v4, %v17279_v5 }
 0xe2a   :  { %v13512_v7 = vpop.f32.mrb[200].mxu1 }
 0xe2b   :  { %v9521_v11 = vadd.f32 %v13512_v7, %v17279_v5  ;;  %v9471_v13 = vpop.f32.mrb[201].mxu1 }
 0xe2c   :  { %v9520_v14 = vadd.f32 %v17279_v5, %v9471_v13  ;;  %v9202_v13 = vadd.f32 %v17279_v5, %v17114_v28  ;;  %v10619_v28 = vld [vmem:[%s17521_s18 + $0x1a0] sm:$0xff] }
 0xe2d   :  { %v10360_v17 = vrot.slane %v9521_v11, 2  ;;  %v10622_v11 = vld [vmem:[%s17521_s18 + $0x1b8] sm:$0xff]  ;;  %v13992_v35 = vpack.c.bf16 %v10621_v24, %v10619_v28  ;;  %v10627_v24 = vld [vmem:[%s17521_s18 + $0x1e0] sm:$0xff] }
 0xe2e   :  { %v10359_v22 = vrot.slane %v9520_v14, 2  ;;  %v13515_v23 = vpop.f32.mrb[202].mxu1 }
 0xe2f   :  { %v9523_v26 = vadd.f32 %v13515_v23, %v17279_v5  ;;  %v9481_v27 = vpop.f32.mrb[203].mxu1  ;;  %v13990_v23 = vpack.c.bf16 %v10622_v11, %v10620_v10 }
 0xe30   :  { %v9522_v12 = vadd.f32 %v17279_v5, %v9481_v27  ;;  %v17306_v30 = vsel %vm264_vm0, %v9247_v21, %v10359_v22  ;;  %v17309_v4 = vsel %vm264_vm0, %v10359_v22, %v10360_v17  ;;  %v10626_v27 = vld [vmem:[%s17521_s18 + $0x1d8] sm:$0xff] }
 0xe31   :  { %v10364_v32 = vrot.slane %v9523_v26, 2  ;;  %v10624_v26 = vld [vmem:[%s17521_s18 + $0x1c8] sm:$0xff]  ;;  %13991 = vmatprep.subr.bf16.mxu1 %v13990_v23 }
 0xe32   :  { %v10362_v37 = vrot.slane %v9522_v12, 2  ;;  %v13518_v38 = vpop.f32.mrb[204].mxu1  ;;  %v9207_v12 = vadd.f32 %v17112_v29, %v17279_v5  ;;  %v13994_v40 = vpack.c.bf16 %v10626_v27, %v10624_v26  ;;  %v10623_v29 = vld [vmem:[%s17521_s18 + $0x1c0] sm:$0xff]  ;;  %13993 = vmatpush1.bf16.msra.mxu1 %v13992_v35  ;;  %v10644_v26 = vld [vmem:[%s17521_s18 + $0x268] sm:$0xff] }
 0xe33   :  { %v9525_v43 = vadd.f32 %v13518_v38, %v17279_v5  ;;  %v9491_v44 = vpop.f32.mrb[205].mxu1  ;;  %v13996_v52 = vpack.c.bf16 %v10625_v39, %v10623_v29  ;;  %10732 = vmatprep.subr.mxu0 %v10644_v26 }
 0xe34   :  { %v9524_v45 = vadd.f32 %v17279_v5, %v9491_v44  ;;  %v17326_v47 = vsel %vm264_vm0, %v10360_v17, %v10362_v37  ;;  %v17329_v48 = vsel %vm264_vm0, %v10362_v37, %v10364_v32  ;;  %v10628_v44 = vld [vmem:[%s17521_s18 + $0x1e8] sm:$0xff]  ;;  %13995 = vmatprep.subr.bf16.mxu1 %v13994_v40 }
 0xe35   :  { %v10368_v50 = vrot.slane %v9525_v43, 2 }
 0xe36   :  { %v10366_v2 = vrot.slane %v9524_v45, 2  ;;  %v13521_v42 = vpop.f32.mrb[206].mxu1  ;;  %v10630_v45 = vld [vmem:[%s17521_s18 + $0x1f8] sm:$0xff]  ;;  %13997 = vmatpush1.bf16.msra.mxu1 %v13996_v52 }
 0xe37   :  { %v9527_v57 = vadd.f32 %v13521_v42, %v17279_v5  ;;  %v9501_v58 = vpop.f32.mrb[207].mxu1 }
 0xe38   :  { %v9526_v59 = vadd.f32 %v17279_v5, %v9501_v58  ;;  %v17346_v60 = vsel %vm264_vm0, %v10364_v32, %v10366_v2  ;;  %v17349_v61 = vsel %vm264_vm0, %v10366_v2, %v10368_v50  ;;  %v13998_v2 = vpack.c.bf16 %v10630_v45, %v10628_v44 }
 0xe39   :  { %v10372_v63 = vrot.slane %v9527_v57, 2 }
 0xe3a   :  { %v10370_v7 = vrot.slane %v9526_v59, 2  ;;  %v13524_v9 = vpop.f32.mrb[208].mxu1  ;;  %13999 = vmatprep.subr.bf16.mxu1 %v13998_v2  ;;  %v9222_v2 = vadd.f32 %v17279_v5, %v17122_v51 }
 0xe3b   :  { %v17366_v14 = vadd.f32 %v13524_v9, %v17279_v5  ;;  %v9511_v15 = vpop.f32.mrb[209].mxu1 }
 0xe3c   :  { %v9528_v17 = vadd.f32 %v17279_v5, %v9511_v15  ;;  %v10373_v18 = vsel %vm264_vm0, %v10370_v7, %v10372_v63  ;;  %v17371_v19 = vsel %vm264_vm0, %v10368_v50, %v10370_v7 }
 0xe3d   :  { %v10376_v21 = vrot.slane %v17366_v14, 2  ;;  %v14438_v22 = vpack.i.bf16 %v9202_v13, %v10373_v18 }
 0xe3e   :  { %v10374_v25 = vrot.slane %v9528_v17, 2 }
 0xe3f   :  { %14439 = vxpose.xlu0.b32.start [1/16] (narrow) %v14438_v22, 8 }
 0xe40   :  { %v10375_v32 = vsel %vm264_vm0, %v10372_v63, %v10374_v25  ;;  %v10377_v34 = vsel %vm264_vm0, %v10374_v25, %v10376_v21  ;;  %v10629_v25 = vld [vmem:[%s17521_s18 + $0x1f0] sm:$0xff]  ;;  %vm10645_vm0 = vcmask 457728  }
 0xe41   :  { %v14440_v37 = vpack.i.bf16 %v9207_v12, %v10375_v32  ;;  %v14442_v38 = vpack.i.bf16 %v9212_v31, %v10377_v34  ;;  %v14000_v31 = vpack.c.bf16 %v10629_v25, %v10627_v24  ;;  %v10643_v32 = vld [vmem:[%s17521_s18 + $0x260] sm:$0xff] }
 0xe42   :  { %v13650_v36 = vpop.f32.mrb[36].mxu0  ;;  %10733 = vmatpush1.msra.mxu0 %v10643_v32 }
 0xe43   :  { %v10340_v41 = vadd.f32 %v13650_v36, %v17279_v5  ;;  %v10280_v43 = vpop.f32.mrb[37].mxu0  ;;  %14441 = vxpose.xlu0.b32.cont [2/16] (narrow) %v14440_v37, 8  ;;  %14001 = vmatpush1.bf16.msra.mxu1 %v14000_v31 }
 0xe44   :  { %v17408_v49 = vadd.f32 %v17279_v5, %v10280_v43 }
 0xe45   :  { %v10440_v50 = vrot.slane %v10340_v41, 6 }
 0xe46   :  { %v10439_v54 = vrot.slane %v17408_v49, 6  ;;  %v13653_v1 = vpop.f32.mrb[38].mxu0 }
 0xe47   :  { %v10342_v42 = vadd.f32 %v13653_v1, %v17279_v5  ;;  %v10290_v55 = vpop.f32.mrb[39].mxu0  ;;  %14443 = vxpose.xlu0.b32.cont [3/16] (narrow) %v14442_v38, 8 }
 0xe48   :  { %v10341_v6 = vadd.f32 %v17279_v5, %v10290_v55  ;;  %v17416_v57 = vsel %vm7922_vm8, %v10439_v54, %v10440_v50 }
 0xe49   :  { %v10444_v58 = vrot.slane %v10342_v42, 6  ;;  %v14466_v59 = vpack.i.bf16 %v17349_v61, %v17416_v57 }
 0xe4a   :  { %v10442_v16 = vrot.slane %v10341_v6, 6  ;;  %v13656_v63 = vpop.f32.mrb[40].mxu0 }
 0xe4b   :  { %v10344_v0 = vadd.f32 %v13656_v63, %v17279_v5  ;;  %v10300_v3 = vpop.f32.mrb[41].mxu0 }
 0xe4c   :  { %v10343_v53 = vadd.f32 %v17279_v5, %v10300_v3  ;;  %v10445_v7 = vsel %vm7922_vm8, %v10442_v16, %v10444_v58  ;;  %v17424_v9 = vsel %vm7922_vm8, %v10440_v50, %v10442_v16  ;;  %v9217_v50 = vadd.f32 %v17116_v33, %v17279_v5 }
 0xe4d   :  { %v10448_v10 = vrot.slane %v10344_v0, 6  ;;  %10535 = vxpose.xlu1.b32.start [1/7] (short) (narrow) %v10445_v7, 8  ;;  %v14468_v11 = vpack.i.bf16 %v17371_v19, %v17424_v9 }
 0xe4e   :  { %v10446_v13 = vrot.slane %v10343_v53, 6  ;;  %v13659_v15 = vpop.f32.mrb[42].mxu0 }
 0xe4f   :  { %v10346_v17 = vadd.f32 %v13659_v15, %v17279_v5  ;;  %v10310_v18 = vpop.f32.mrb[43].mxu0 }
 0xe50   :  { %v10345_v20 = vadd.f32 %v17279_v5, %v10310_v18  ;;  %v10447_v22 = vsel %vm7922_vm8, %v10444_v58, %v10446_v13  ;;  %v10449_v23 = vsel %vm7922_vm8, %v10446_v13, %v10448_v10  ;;  %v9232_v13 = vadd.f32 %v17279_v5, %v17153_v62 }
 0xe51   :  { %v10452_v28 = vrot.slane %v10346_v17, 6  ;;  %10536 = vxpose.xlu1.b32.cont [2/7] (short) (narrow) %v10447_v22, 8  ;;  %v9242_v62 = vadd.f32 %v17279_v5, %v17172_v8 }
 0xe52   :  { %v10450_v27 = vrot.slane %v10345_v20, 6  ;;  %v13662_v12 = vpop.f32.mrb[44].mxu0  ;;  %v13558_v35 = vpop.f32.mrb[210].mxu1 }
 0xe53   :  { %v10348_v34 = vadd.f32 %v13662_v12, %v17279_v5  ;;  %v10320_v36 = vpop.f32.mrb[45].mxu0  ;;  %v9801_v37 = vadd.f32 %v13558_v35, %v17279_v5  ;;  %v9751_v40 = vpop.f32.mrb[211].mxu1 }
 0xe54   :  { %v10347_v38 = vadd.f32 %v17279_v5, %v10320_v36  ;;  %v10451_v29 = vsel %vm7922_vm8, %v10448_v10, %v10450_v27  ;;  %v10453_v39 = vsel %vm7922_vm8, %v10450_v27, %v10452_v28  ;;  %v9800_v43 = vadd.f32 %v17279_v5, %v9751_v40 }
 0xe55   :  { %v10456_v41 = vrot.slane %v10348_v34, 6  ;;  %10537 = vxpose.xlu1.b32.cont [3/7] (short) (narrow) %v10449_v23, 8  ;;  %v10400_v44 = vrot.slane %v9801_v37, 4  ;;  %v9227_v10 = vadd.f32 %v17120_v46, %v17279_v5  ;;  %v9237_v46 = vadd.f32 %v17142_v56, %v17279_v5 }
 0xe56   :  { %v10454_v45 = vrot.slane %v10347_v38, 6  ;;  %v10399_v52 = vrot.slane %v9800_v43, 4  ;;  %v13561_v1 = vpop.f32.mrb[212].mxu1 }
 0xe57   :  { %v9803_v42 = vadd.f32 %v13561_v1, %v17279_v5  ;;  %v9761_v55 = vpop.f32.mrb[213].mxu1 }
 0xe58   :  { %v10455_v6 = vsel %vm7922_vm8, %v10452_v28, %v10454_v45  ;;  %v10457_v58 = vsel %vm7922_vm8, %v10454_v45, %v10456_v41  ;;  %v9802_v16 = vadd.f32 %v17279_v5, %v9761_v55  ;;  %v10469_v63 = vsel %vm7920_vm7, %v10376_v21, %v10399_v52 }
 0xe59   :  { %10538 = vxpose.xlu1.b32.cont [4/7] (short) (narrow) %v10451_v29, 8  ;;  %v10401_v33 = vsel %vm7920_vm7, %v10399_v52, %v10400_v44  ;;  %v10404_v0 = vrot.slane %v9803_v42, 4  ;;  %v14444_v3 = vpack.i.bf16 %v9217_v50, %v10469_v63 }
 0xe5a   :  { %v14446_v53 = vpack.i.bf16 %v9222_v2, %v10401_v33  ;;  %v10402_v51 = vrot.slane %v9802_v16, 4  ;;  %v13564_v7 = vpop.f32.mrb[214].mxu1 }
 0xe5b   :  { %v9805_v15 = vadd.f32 %v13564_v7, %v17279_v5  ;;  %v9771_v17 = vpop.f32.mrb[215].mxu1  ;;  %14445 = vxpose.xlu0.b32.cont [4/16] (narrow) %v14444_v3, 8 }
 0xe5c   :  { %v9804_v14 = vadd.f32 %v17279_v5, %v9771_v17  ;;  %v10403_v21 = vsel %vm7920_vm7, %v10400_v44, %v10402_v51  ;;  %v10405_v18 = vsel %vm7920_vm7, %v10402_v51, %v10404_v0 }
 0xe5d   :  { %10539 = vxpose.xlu1.b32.cont [5/7] (short) (narrow) %v10453_v39, 8  ;;  %v10408_v20 = vrot.slane %v9805_v15, 4  ;;  %v14448_v22 = vpack.i.bf16 %v9227_v10, %v10403_v21  ;;  %v14450_v23 = vpack.i.bf16 %v9232_v13, %v10405_v18 }
 0xe5e   :  { %v10406_v28 = vrot.slane %v9804_v14, 4  ;;  %v13567_v24 = vpop.f32.mrb[216].mxu1 }
 0xe5f   :  { %v9807_v25 = vadd.f32 %v13567_v24, %v17279_v5  ;;  %v9781_v26 = vpop.f32.mrb[217].mxu1  ;;  %14447 = vxpose.xlu0.b32.cont [5/16] (narrow) %v14446_v53, 8 }
 0xe60   :  { %v9806_v27 = vadd.f32 %v17279_v5, %v9781_v26  ;;  %v10407_v12 = vsel %vm7920_vm7, %v10404_v0, %v10406_v28  ;;  %v10409_v31 = vsel %vm7920_vm7, %v10406_v28, %v10408_v20 }
 0xe61   :  { %10540 = vxpose.xlu1.b32.cont [6/7] (short) (narrow) %v10455_v6, 8  ;;  %v10412_v32 = vrot.slane %v9807_v25, 4  ;;  %v14452_v34 = vpack.i.bf16 %v9237_v46, %v10407_v12  ;;  %v14454_v35 = vpack.i.bf16 %v9242_v62, %v10409_v31 }
 0xe62   :  { %v10410_v36 = vrot.slane %v9806_v27, 4  ;;  %v13570_v37 = vpop.f32.mrb[218].mxu1 }
 0xe63   :  { %v9809_v56 = vadd.f32 %v13570_v37, %v17279_v5  ;;  %v9791_v38 = vpop.f32.mrb[219].mxu1  ;;  %14449 = vxpose.xlu0.b32.cont [6/16] (narrow) %v14448_v22, 8 }
 0xe64   :  { %v9808_v8 = vadd.f32 %v17279_v5, %v9791_v38  ;;  %v10411_v40 = vsel %vm7920_vm7, %v10408_v20, %v10410_v36  ;;  %v10413_v29 = vsel %vm7920_vm7, %v10410_v36, %v10412_v32 }
 0xe65   :  { %10541 = vxpose.xlu1.b32.end [7/7] (short) (narrow) %v10457_v58, 8  ;;  %v10416_v39 = vrot.slane %v9809_v56, 4  ;;  %v14456_v41 = vpack.i.bf16 %v17306_v30, %v10411_v40  ;;  %v14458_v43 = vpack.i.bf16 %v17309_v4, %v10413_v29 }
 0xe66   :  { %v10414_v44 = vrot.slane %v9808_v8, 4 }
 0xe67   :  { %14451 = vxpose.xlu0.b32.cont [7/16] (narrow) %v14450_v23, 8  ;;  %v10470_v45 = vsel %vm7922_vm8, %v10416_v39, %v10439_v54 }
 0xe68   :  { %v10415_v50 = vsel %vm7920_vm7, %v10412_v32, %v10414_v44  ;;  %v10417_v5 = vsel %vm7920_vm7, %v10414_v44, %v10416_v39  ;;  %v14464_v52 = vpack.i.bf16 %v17346_v60, %v10470_v45 }
 0xe69   :  { %v14460_v1 = vpack.i.bf16 %v17326_v47, %v10415_v50  ;;  %v14462_v2 = vpack.i.bf16 %v17329_v48, %v10417_v5 }
 0xe6b   :  { %14453 = vxpose.xlu0.b32.cont [8/16] (narrow) %v14452_v34, 8 }
 0xe6f   :  { %14455 = vxpose.xlu0.b32.cont [9/16] (narrow) %v14454_v35, 8 }
 0xe73   :  { %14457 = vxpose.xlu0.b32.cont [10/16] (narrow) %v14456_v41, 8 }
 0xe77   :  { %14459 = vxpose.xlu0.b32.cont [11/16] (narrow) %v14458_v43, 8 }
 0xe7b   :  { %14461 = vxpose.xlu0.b32.cont [12/16] (narrow) %v14460_v1, 8 }
 0xe7f   :  { %14463 = vxpose.xlu0.b32.cont [13/16] (narrow) %v14462_v2, 8 }
 0xe83   :  { %14465 = vxpose.xlu0.b32.cont [14/16] (narrow) %v14464_v52, 8 }
 0xe87   :  { %14467 = vxpose.xlu0.b32.cont [15/16] (narrow) %v14466_v59, 8 }
 0xe8b   :  { %14469 = vxpose.xlu0.b32.end [16/16] (narrow) %v14468_v11, 8 }
 0xecd   :  { %v10551_v30 = vpop.trf.xlu1 }
 0xece   :  { %11551 = vmatmul.mubr.msk.f32.vlgmr.msra.gmra.mrb[46].mxu0 %vm10645_vm0, %v10551_v30 }
 0xecf   :  { %v14470_v4 = vpop.trf.xlu0 }
 0xed0   :  { %v14474_v47 = vunpack.i.h.bf16 %v14470_v4  ;;  %v14471_v48 = vunpack.i.l.bf16 %v14470_v4 }
 0xed2   :  { %10713 = vmatprep.mubr.f32.mxu1 %v14471_v48 }
 0xed3   :  { %10714 = vmatmul.mubr.f32.vlgmr.msra.gmra.mrb[220].mxu1 %v14474_v47 }
 0xfa1   :  { %v10786_v60 = vpop.f32.mrb[46].mxu0 }
 0xfa2   :  { %v10788_v49 = vpop.f32.mrb[47].mxu0 }
 0xfa6   :  { %v10715_v54 = vpop.f32.mrb[220].mxu1 }
 0xfa7   :  { %v10787_v42 = vadd.f32 %v10786_v60, %v10715_v54  ;;  %v10717_v55 = vpop.f32.mrb[221].mxu1 }
 0xfa8   :  { %v10789_v6 = vadd.f32 %v10788_v49, %v10717_v55 }
 0xfa9   :  { %v10791_v61 = vand.u32 2147483647, %v10787_v42  ;;  %vm10815_vm2 = vcmp.ge.f32.partialorder %v10787_v42, 0.0 }
 0xfaa   :  { %v10792_v57 = vand.u32 2147483647, %v10789_v6  ;;  %vm10816_vm3 = vcmp.ge.f32.partialorder %v10789_v6, 0.0 }
 0xfab   :  { %v10793_v59 = vsub.f32 0.0, %v10791_v61 }
 0xfac   :  { %v10794_v58 = vsub.f32 0.0, %v10792_v57 }
 0xfad   :  { %v10795_v19 = vmul.f32 1.442695, %v10793_v59 }
 0xfae   :  { %v10797_v9 = vmul.f32 1.442695, %v10794_v58 }
 0xfaf   :  { %14475 = vpow2.f32 %v10795_v19 }
 0xfb0   :  { %14477 = vpow2.f32 %v10797_v9 }
 0xfb9   :  { %v14476_v11 = vpop.eup %14475 }
 0xfba   :  { %v14478_v16 = vpop.eup %14477  ;;  %v10799_v63 = vadd.f32 1.0, %v14476_v11 }
 0xfbb   :  { %v10800_v33 = vadd.f32 1.0, %v14478_v16 }
 0xfbc   :  { %14479 = vrcp.f32 %v10799_v63 }
 0xfbd   :  { %14481 = vrcp.f32 %v10800_v33 }
 0xfc6   :  { %v14480_v0 = vpop.eup %14479 }
 0xfc7   :  { %v14482_v3 = vpop.eup %14481  ;;  %v10803_v53 = vmul.f32 %v14480_v0, %v10799_v63 }
 0xfc8   :  { %v10804_v51 = vmul.f32 %v14482_v3, %v10800_v33 }
 0xfc9   :  { %v10805_v7 = vsub.f32 2.0, %v10803_v53 }
 0xfca   :  { %v10806_v10 = vsub.f32 2.0, %v10804_v51 }
 0xfcb   :  { %v10807_v13 = vmul.f32 %v14480_v0, %v10805_v7 }
 0xfcc   :  { %v10808_v15 = vmul.f32 %v14482_v3, %v10806_v10 }
 0xfcd   :  { %v10809_v17 = vmul.f32 %v10807_v13, %v10799_v63 }
 0xfce   :  { %v10810_v14 = vmul.f32 %v10808_v15, %v10800_v33 }
 0xfcf   :  { %v10811_v21 = vsub.f32 2.0, %v10809_v17 }
 0xfd0   :  { %v10812_v18 = vsub.f32 2.0, %v10810_v14 }
 0xfd1   :  { %v10813_v20 = vmul.f32 %v10811_v21, %v10807_v13 }
 0xfd2   :  { %v10814_v22 = vmul.f32 %v10812_v18, %v10808_v15 }
 0xfd3   :  { %v10817_v23 = vsub.f32 1.0, %v10813_v20 }
 0xfd4   :  { %v10818_v28 = vsub.f32 1.0, %v10814_v22 }
 0xfd5   :  { %v10819_v24 = vsel %vm10815_vm2, %v10813_v20, %v10817_v23 }
 0xfd6   :  { %10821 = vst [vmem:[%s17523_s19] sm:$0x3f] %v10819_v24  ;;  %v10820_v46 = vsel %vm10816_vm3, %v10814_v22, %v10818_v28 }
 0xfd7   :  { %10822 = vst [vmem:[%s17523_s19 + $0x8] sm:$0x3f] %v10820_v46 }

</bundles_post_ra>
